<compile_context>
chip_gen: v7x
topology: tpu7x:2x2x1
jax: 0.10.0
libtpu: 0.0.40
codegen_flags: <defaults>
</compile_context>

<pallas_src>
import jax
import jax.numpy as jnp
from jax import lax
from jax.experimental import pallas as pl
from jax.experimental.pallas import tpu as pltpu

_LANE = 128  # VPU/MXU lane width; the batch lives on lanes everywhere.


def convnet_kernel(xph_ref, wc_ref, bc_ref, wf_ref, bf_ref, out_ref, xg_scr):
    # xph_ref : (3,3,9,9,BT) VMEM  phase-split image, batch on lanes:
    #           xph[pr,pc,qr,qc,b] = x[b, 0, 3*qr+pr, 3*qc+pc]
    # wc_ref  : (3, 9)      SMEM  conv weight  [oc, kh*3+kw]
    # bc_ref  : (3,)        SMEM  conv bias
    # wf_ref  : (3, 10, 64) VMEM  fc weight regrouped: wf[oc,c,p] = fc_w[c, oc*64+p]
    # bf_ref  : (10, 1)     VMEM  fc bias
    # out_ref : (10, BT)    VMEM  log-probabilities (class x batch-lane)
    # xg_scr  : (25, 8, 8, BT) VMEM scratch: deduplicated shift slabs,
    #           slab[r0*5+c0][ph, pw, b] = x[b, 0, 3*ph+r0, 3*pw+c0]
    bt = out_ref.shape[1]
    n_chunks = bt // _LANE

    # ---- Phase 1: extract the 25 distinct shift slabs once per tile. ------
    # r0 = 3*dr + pr, c0 = 3*dc + pc with dr, dc in {0,1}: each slab is a
    # unit-stride (8,8,BT) window of the phase grid (only dc=1 slabs need a
    # sublane-offset load).  Kernel HBM read stays at the raw 2916 B/sample.
    for r0 in range(5):
        dr, pr = divmod(r0, 3)
        for c0 in range(5):
            dc, pc = divmod(c0, 3)
            xg_scr[r0 * 5 + c0] = xph_ref[pr, pc, dr:dr + 8, dc:dc + 8, :]

    # ---- Phase 2: per 128-lane chunk: conv+pool+ReLU (VPU), FC (MXU). -----
    # Chunking keeps 3 acc + 3 pooled tiles (6 x 8 vregs) + one streamed slab
    # inside the 64-vreg file -> no spill traffic on the ld/st slots.
    for c in range(n_chunks):
        sl = slice(c * _LANE, (c + 1) * _LANE)

        pooled = [None, None, None]
        for i in range(3):                # 3x3 max-pool window offsets
            for j in range(3):
                acc = [None, None, None]
                for kh in range(3):       # 3x3 conv taps
                    for kw in range(3):
                        sidx = (i + kh) * 5 + (j + kw)
                        sv = xg_scr[sidx, :, :, sl]            # (8, 8, 128): one load,
                        for oc in range(3):                    # reused by all 3 channels
                            term = wc_ref[oc, kh * 3 + kw] * sv
                            acc[oc] = term if acc[oc] is None else acc[oc] + term
                for oc in range(3):
                    pooled[oc] = (acc[oc] if pooled[oc] is None
                                  else jnp.maximum(pooled[oc], acc[oc]))

        logits = None
        for oc in range(3):
            # bias is constant over the pool window -> add after the max, then ReLU
            po = jnp.maximum(pooled[oc] + bc_ref[oc], 0.0)     # (8, 8, 128)
            po = po.reshape(64, _LANE)                         # merge leading->sublanes
            part = jnp.dot(wf_ref[oc], po,
                           preferred_element_type=jnp.float32,
                           precision=lax.Precision.HIGHEST)    # (10, 128) on the MXU
            logits = part if logits is None else logits + part
        logits = logits + bf_ref[...]                          # (10, 128)

        m = jnp.max(logits, axis=0, keepdims=True)
        s = logits - m
        lse = jnp.log(jnp.sum(jnp.exp(s), axis=0, keepdims=True))
        out_ref[:, sl] = s - lse                               # log_softmax


def _round_up(n, m):
    return ((n + m - 1) // m) * m


def _phase_split(x, b_padded):
    """(B,1,28,28) -> (3,3,9,9,b_padded) with xph[pr,pc,qr,qc,b] = x[b,0,3qr+pr,3qc+pc]."""
    B = x.shape[0]
    xt = jnp.transpose(x[:, 0], (1, 2, 0))                     # (28, 28, B)
    if b_padded > B:
        xt = jnp.pad(xt, ((0, 0), (0, 0), (0, b_padded - B)))
    rows = []
    for pr in range(3):
        cols = [xt[pr:pr + 25:3, pc:pc + 25:3, :] for pc in range(3)]  # (9, 9, bp) each
        rows.append(jnp.stack(cols, axis=0))                   # (3, 9, 9, bp)
    return jnp.stack(rows, axis=0)                             # (3, 3, 9, 9, bp)


def convnet_forward(x, conv_w, conv_b, fc_w, fc_b, *, b_tile=512):
    """x: (B,1,28,28), conv_w: (3,1,3,3), conv_b: (3,), fc_w: (10,192), fc_b: (10,).
    Returns (B, 10) log-probabilities.

    b_tile: grid batch tile (multiple of 128).  512 keeps the per-tile VMEM
    footprint at ~7 MiB (fine on v7x's 64 MiB); the kernel internally works
    on 128-lane chunks so vreg pressure is independent of b_tile.
    """
    B = x.shape[0]
    x = x.astype(jnp.float32)

    assert b_tile % _LANE == 0
    bp = _round_up(B, _LANE)
    bt = min(b_tile, bp)
    if bp >= 2 * _LANE:
        # Keep at least 2 grid tiles so the "parallel" axis can shard across
        # both v7x TensorCores (no-op for tiny batches).
        bt = min(bt, _round_up(bp // 2, _LANE))
    bp = _round_up(bp, bt)
    n_tiles = bp // bt

    xph = _phase_split(x, bp)                                   # (3,3,9,9,bp)
    wc = conv_w.reshape(3, 9).astype(jnp.float32)               # (oc, kh*3+kw)
    bc = conv_b.astype(jnp.float32)                             # (3,)
    wf = fc_w.reshape(10, 3, 64).transpose(1, 0, 2).astype(jnp.float32)  # (3,10,64)
    bf = fc_b.reshape(10, 1).astype(jnp.float32)                # (10, 1)

    out = pl.pallas_call(
        convnet_kernel,
        out_shape=jax.ShapeDtypeStruct((10, bp), jnp.float32),
        grid_spec=pltpu.PrefetchScalarGridSpec(
            num_scalar_prefetch=0,
            grid=(n_tiles,),
            in_specs=[
                pl.BlockSpec((3, 3, 9, 9, bt), lambda b: (0, 0, 0, 0, b)),  # image tile
                pl.BlockSpec(memory_space=pltpu.MemorySpace.SMEM),          # conv w
                pl.BlockSpec(memory_space=pltpu.MemorySpace.SMEM),          # conv b
                pl.BlockSpec((3, 10, 64), lambda b: (0, 0, 0)),             # fc w
                pl.BlockSpec((10, 1), lambda b: (0, 0)),                    # fc b
            ],
            out_specs=pl.BlockSpec((10, bt), lambda b: (0, b)),
            scratch_shapes=[pltpu.VMEM((25, 8, 8, bt), jnp.float32)],
        ),
        compiler_params=pltpu.CompilerParams(
            dimension_semantics=("parallel",),
            vmem_limit_bytes=32 * 1024 * 1024,
        ),
        cost_estimate=pl.CostEstimate(
            flops=int(37_000 * bp),
            transcendentals=int(11 * bp),
            bytes_accessed=int((3 * 3 * 9 * 9 + 10) * 4 * bp + 4 * (27 + 3 + 1920 + 10)),
        ),
    )(xph, wc, bc, wf, bf)

    # Glue: drop batch padding, back to PyTorch (B, 10) layout.
    return out[:, :B].T


def convnet_reference(x, conv_w, conv_b, fc_w, fc_b):
    """Pure-JAX reference matching the PyTorch module."""
    conv = lax.conv_general_dilated(
        x, conv_w, window_strides=(1, 1), padding="VALID",
        dimension_numbers=("NCHW", "OIHW", "NCHW")) + conv_b.reshape(1, 3, 1, 1)
    pooled = lax.reduce_window(
        conv, -jnp.inf, lax.max,
        window_dimensions=(1, 1, 3, 3), window_strides=(1, 1, 3, 3),
        padding="VALID")
    h = jnp.maximum(pooled, 0.0).reshape(x.shape[0], 192)
    logits = h @ fc_w.T + fc_b
    return jax.nn.log_softmax(logits, axis=1)


if __name__ == "__main__":
    key = jax.random.PRNGKey(0)
    kx, kc, kcb, kf, kfb = jax.random.split(key, 5)

    B = 2
    x = jax.random.normal(kx, (B, 1, 28, 28), jnp.float32)
    conv_w = jax.random.normal(kc, (3, 1, 3, 3), jnp.float32) * 0.3
    conv_b = jax.random.normal(kcb, (3,), jnp.float32) * 0.1
    fc_w = jax.random.normal(kf, (10, 192), jnp.float32) * 0.05
    fc_b = jax.random.normal(kfb, (10,), jnp.float32) * 0.1

    out = jax.block_until_ready(convnet_forward(x, conv_w, conv_b, fc_w, fc_b))
    ref = jax.block_until_ready(convnet_reference(x, conv_w, conv_b, fc_w, fc_b))

    assert out.shape == (B, 10) and out.dtype == jnp.float32
    assert jnp.allclose(out, ref, atol=1e-3, rtol=1e-3), (out, ref)
    print("KERNEL_OK")
</pallas_src>

<mosaic_0001>
module attributes {stable_mosaic.version = 11 : i64} {
  func.func @convnet_kernel(%arg0: i32, %arg1: memref<3x3x9x9x128xf32, #tpu.memory_space<vmem>>, %arg2: memref<3x9xf32, #tpu.memory_space<smem>>, %arg3: memref<3xf32, #tpu.memory_space<smem>>, %arg4: memref<3x10x64xf32, #tpu.memory_space<vmem>>, %arg5: memref<10x1xf32, #tpu.memory_space<vmem>>, %arg6: memref<10x128xf32, #tpu.memory_space<vmem>>, %arg7: memref<25x8x8x128xf32, #tpu.memory_space<vmem>>) attributes {dimension_semantics = [#tpu.dimension_semantics<parallel>], iteration_bounds = array<i64: 1>, scalar_prefetch = 0 : i64, scratch_operands = 1 : i64, tpu.core_type = #tpu.core_type<tc>, window_params = [{transform_indices = @transform_0, window_bounds = array<i64: 3, 3, 9, 9, 128>}, {transform_indices = @transform_1, window_bounds = array<i64: 3, 9>}, {transform_indices = @transform_2, window_bounds = array<i64: 3>}, {pipeline_mode = #tpu.pipeline_mode<synchronous>, transform_indices = @transform_3, window_bounds = array<i64: 3, 10, 64>}, {pipeline_mode = #tpu.pipeline_mode<synchronous>, transform_indices = @transform_4, window_bounds = array<i64: 10, 1>}, {transform_indices = @transform_5, window_bounds = array<i64: 10, 128>}]} {
    %c0 = arith.constant 0 : index
    %c0_0 = arith.constant 0 : index
    %c0_1 = arith.constant 0 : index
    %c0_2 = arith.constant 0 : index
    %c0_3 = arith.constant 0 : index
    %0 = vector.load %arg1[%c0, %c0_0, %c0_1, %c0_2, %c0_3] : memref<3x3x9x9x128xf32, #tpu.memory_space<vmem>>, vector<1x1x8x8x128xf32>
    %1 = vector.shape_cast %0 : vector<1x1x8x8x128xf32> to vector<8x8x128xf32>
    %c0_4 = arith.constant 0 : index
    %c0_5 = arith.constant 0 : index
    %c0_6 = arith.constant 0 : index
    %c0_7 = arith.constant 0 : index
    %2 = vector.load %arg7[%c0_4, %c0_5, %c0_6, %c0_7] : memref<25x8x8x128xf32, #tpu.memory_space<vmem>>, vector<1x8x8x128xf32>
    %3 = vector.shape_cast %2 : vector<1x8x8x128xf32> to vector<8x8x128xf32>
    %4 = vector.shape_cast %1 : vector<8x8x128xf32> to vector<1x8x8x128xf32>
    tpu.vector_store %arg7[%c0_4, %c0_5, %c0_6, %c0_7], %4 {strides = array<i32>} : memref<25x8x8x128xf32, #tpu.memory_space<vmem>>, vector<1x8x8x128xf32>,
    %c0_8 = arith.constant 0 : index
    %c1 = arith.constant 1 : index
    %c0_9 = arith.constant 0 : index
    %c0_10 = arith.constant 0 : index
    %c0_11 = arith.constant 0 : index
    %5 = vector.load %arg1[%c0_8, %c1, %c0_9, %c0_10, %c0_11] : memref<3x3x9x9x128xf32, #tpu.memory_space<vmem>>, vector<1x1x8x8x128xf32>
    %6 = vector.shape_cast %5 : vector<1x1x8x8x128xf32> to vector<8x8x128xf32>
    %c1_12 = arith.constant 1 : index
    %c0_13 = arith.constant 0 : index
    %c0_14 = arith.constant 0 : index
    %c0_15 = arith.constant 0 : index
    %7 = vector.load %arg7[%c1_12, %c0_13, %c0_14, %c0_15] : memref<25x8x8x128xf32, #tpu.memory_space<vmem>>, vector<1x8x8x128xf32>
    %8 = vector.shape_cast %7 : vector<1x8x8x128xf32> to vector<8x8x128xf32>
    %9 = vector.shape_cast %6 : vector<8x8x128xf32> to vector<1x8x8x128xf32>
    tpu.vector_store %arg7[%c1_12, %c0_13, %c0_14, %c0_15], %9 {strides = array<i32>} : memref<25x8x8x128xf32, #tpu.memory_space<vmem>>, vector<1x8x8x128xf32>,
    %c0_16 = arith.constant 0 : index
    %c2 = arith.constant 2 : index
    %c0_17 = arith.constant 0 : index
    %c0_18 = arith.constant 0 : index
    %c0_19 = arith.constant 0 : index
    %10 = vector.load %arg1[%c0_16, %c2, %c0_17, %c0_18, %c0_19] : memref<3x3x9x9x128xf32, #tpu.memory_space<vmem>>, vector<1x1x8x8x128xf32>
    %11 = vector.shape_cast %10 : vector<1x1x8x8x128xf32> to vector<8x8x128xf32>
    %c2_20 = arith.constant 2 : index
    %c0_21 = arith.constant 0 : index
    %c0_22 = arith.constant 0 : index
    %c0_23 = arith.constant 0 : index
    %12 = vector.load %arg7[%c2_20, %c0_21, %c0_22, %c0_23] : memref<25x8x8x128xf32, #tpu.memory_space<vmem>>, vector<1x8x8x128xf32>
    %13 = vector.shape_cast %12 : vector<1x8x8x128xf32> to vector<8x8x128xf32>
    %14 = vector.shape_cast %11 : vector<8x8x128xf32> to vector<1x8x8x128xf32>
    tpu.vector_store %arg7[%c2_20, %c0_21, %c0_22, %c0_23], %14 {strides = array<i32>} : memref<25x8x8x128xf32, #tpu.memory_space<vmem>>, vector<1x8x8x128xf32>,
    %c0_24 = arith.constant 0 : index
    %c0_25 = arith.constant 0 : index
    %c0_26 = arith.constant 0 : index
    %c1_27 = arith.constant 1 : index
    %c0_28 = arith.constant 0 : index
    %15 = vector.load %arg1[%c0_24, %c0_25, %c0_26, %c1_27, %c0_28] : memref<3x3x9x9x128xf32, #tpu.memory_space<vmem>>, vector<1x1x8x8x128xf32>
    %16 = vector.shape_cast %15 : vector<1x1x8x8x128xf32> to vector<8x8x128xf32>
    %c3 = arith.constant 3 : index
    %c0_29 = arith.constant 0 : index
    %c0_30 = arith.constant 0 : index
    %c0_31 = arith.constant 0 : index
    %17 = vector.load %arg7[%c3, %c0_29, %c0_30, %c0_31] : memref<25x8x8x128xf32, #tpu.memory_space<vmem>>, vector<1x8x8x128xf32>
    %18 = vector.shape_cast %17 : vector<1x8x8x128xf32> to vector<8x8x128xf32>
    %19 = vector.shape_cast %16 : vector<8x8x128xf32> to vector<1x8x8x128xf32>
    tpu.vector_store %arg7[%c3, %c0_29, %c0_30, %c0_31], %19 {strides = array<i32>} : memref<25x8x8x128xf32, #tpu.memory_space<vmem>>, vector<1x8x8x128xf32>,
    %c0_32 = arith.constant 0 : index
    %c1_33 = arith.constant 1 : index
    %c0_34 = arith.constant 0 : index
    %c1_35 = arith.constant 1 : index
    %c0_36 = arith.constant 0 : index
    %20 = vector.load %arg1[%c0_32, %c1_33, %c0_34, %c1_35, %c0_36] : memref<3x3x9x9x128xf32, #tpu.memory_space<vmem>>, vector<1x1x8x8x128xf32>
    %21 = vector.shape_cast %20 : vector<1x1x8x8x128xf32> to vector<8x8x128xf32>
    %c4 = arith.constant 4 : index
    %c0_37 = arith.constant 0 : index
    %c0_38 = arith.constant 0 : index
    %c0_39 = arith.constant 0 : index
    %22 = vector.load %arg7[%c4, %c0_37, %c0_38, %c0_39] : memref<25x8x8x128xf32, #tpu.memory_space<vmem>>, vector<1x8x8x128xf32>
    %23 = vector.shape_cast %22 : vector<1x8x8x128xf32> to vector<8x8x128xf32>
    %24 = vector.shape_cast %21 : vector<8x8x128xf32> to vector<1x8x8x128xf32>
    tpu.vector_store %arg7[%c4, %c0_37, %c0_38, %c0_39], %24 {strides = array<i32>} : memref<25x8x8x128xf32, #tpu.memory_space<vmem>>, vector<1x8x8x128xf32>,
    %c1_40 = arith.constant 1 : index
    %c0_41 = arith.constant 0 : index
    %c0_42 = arith.constant 0 : index
    %c0_43 = arith.constant 0 : index
    %c0_44 = arith.constant 0 : index
    %25 = vector.load %arg1[%c1_40, %c0_41, %c0_42, %c0_43, %c0_44] : memref<3x3x9x9x128xf32, #tpu.memory_space<vmem>>, vector<1x1x8x8x128xf32>
    %26 = vector.shape_cast %25 : vector<1x1x8x8x128xf32> to vector<8x8x128xf32>
    %c5 = arith.constant 5 : index
    %c0_45 = arith.constant 0 : index
    %c0_46 = arith.constant 0 : index
    %c0_47 = arith.constant 0 : index
    %27 = vector.load %arg7[%c5, %c0_45, %c0_46, %c0_47] : memref<25x8x8x128xf32, #tpu.memory_space<vmem>>, vector<1x8x8x128xf32>
    %28 = vector.shape_cast %27 : vector<1x8x8x128xf32> to vector<8x8x128xf32>
    %29 = vector.shape_cast %26 : vector<8x8x128xf32> to vector<1x8x8x128xf32>
    tpu.vector_store %arg7[%c5, %c0_45, %c0_46, %c0_47], %29 {strides = array<i32>} : memref<25x8x8x128xf32, #tpu.memory_space<vmem>>, vector<1x8x8x128xf32>,
    %c1_48 = arith.constant 1 : index
    %c1_49 = arith.constant 1 : index
    %c0_50 = arith.constant 0 : index
    %c0_51 = arith.constant 0 : index
    %c0_52 = arith.constant 0 : index
    %30 = vector.load %arg1[%c1_48, %c1_49, %c0_50, %c0_51, %c0_52] : memref<3x3x9x9x128xf32, #tpu.memory_space<vmem>>, vector<1x1x8x8x128xf32>
    %31 = vector.shape_cast %30 : vector<1x1x8x8x128xf32> to vector<8x8x128xf32>
    %c6 = arith.constant 6 : index
    %c0_53 = arith.constant 0 : index
    %c0_54 = arith.constant 0 : index
    %c0_55 = arith.constant 0 : index
    %32 = vector.load %arg7[%c6, %c0_53, %c0_54, %c0_55] : memref<25x8x8x128xf32, #tpu.memory_space<vmem>>, vector<1x8x8x128xf32>
    %33 = vector.shape_cast %32 : vector<1x8x8x128xf32> to vector<8x8x128xf32>
    %34 = vector.shape_cast %31 : vector<8x8x128xf32> to vector<1x8x8x128xf32>
    tpu.vector_store %arg7[%c6, %c0_53, %c0_54, %c0_55], %34 {strides = array<i32>} : memref<25x8x8x128xf32, #tpu.memory_space<vmem>>, vector<1x8x8x128xf32>,
    %c1_56 = arith.constant 1 : index
    %c2_57 = arith.constant 2 : index
    %c0_58 = arith.constant 0 : index
    %c0_59 = arith.constant 0 : index
    %c0_60 = arith.constant 0 : index
    %35 = vector.load %arg1[%c1_56, %c2_57, %c0_58, %c0_59, %c0_60] : memref<3x3x9x9x128xf32, #tpu.memory_space<vmem>>, vector<1x1x8x8x128xf32>
    %36 = vector.shape_cast %35 : vector<1x1x8x8x128xf32> to vector<8x8x128xf32>
    %c7 = arith.constant 7 : index
    %c0_61 = arith.constant 0 : index
    %c0_62 = arith.constant 0 : index
    %c0_63 = arith.constant 0 : index
    %37 = vector.load %arg7[%c7, %c0_61, %c0_62, %c0_63] : memref<25x8x8x128xf32, #tpu.memory_space<vmem>>, vector<1x8x8x128xf32>
    %38 = vector.shape_cast %37 : vector<1x8x8x128xf32> to vector<8x8x128xf32>
    %39 = vector.shape_cast %36 : vector<8x8x128xf32> to vector<1x8x8x128xf32>
    tpu.vector_store %arg7[%c7, %c0_61, %c0_62, %c0_63], %39 {strides = array<i32>} : memref<25x8x8x128xf32, #tpu.memory_space<vmem>>, vector<1x8x8x128xf32>,
    %c1_64 = arith.constant 1 : index
    %c0_65 = arith.constant 0 : index
    %c0_66 = arith.constant 0 : index
    %c1_67 = arith.constant 1 : index
    %c0_68 = arith.constant 0 : index
    %40 = vector.load %arg1[%c1_64, %c0_65, %c0_66, %c1_67, %c0_68] : memref<3x3x9x9x128xf32, #tpu.memory_space<vmem>>, vector<1x1x8x8x128xf32>
    %41 = vector.shape_cast %40 : vector<1x1x8x8x128xf32> to vector<8x8x128xf32>
    %c8 = arith.constant 8 : index
    %c0_69 = arith.constant 0 : index
    %c0_70 = arith.constant 0 : index
    %c0_71 = arith.constant 0 : index
    %42 = vector.load %arg7[%c8, %c0_69, %c0_70, %c0_71] : memref<25x8x8x128xf32, #tpu.memory_space<vmem>>, vector<1x8x8x128xf32>
    %43 = vector.shape_cast %42 : vector<1x8x8x128xf32> to vector<8x8x128xf32>
    %44 = vector.shape_cast %41 : vector<8x8x128xf32> to vector<1x8x8x128xf32>
    tpu.vector_store %arg7[%c8, %c0_69, %c0_70, %c0_71], %44 {strides = array<i32>} : memref<25x8x8x128xf32, #tpu.memory_space<vmem>>, vector<1x8x8x128xf32>,
    %c1_72 = arith.constant 1 : index
    %c1_73 = arith.constant 1 : index
    %c0_74 = arith.constant 0 : index
    %c1_75 = arith.constant 1 : index
    %c0_76 = arith.constant 0 : index
    %45 = vector.load %arg1[%c1_72, %c1_73, %c0_74, %c1_75, %c0_76] : memref<3x3x9x9x128xf32, #tpu.memory_space<vmem>>, vector<1x1x8x8x128xf32>
    %46 = vector.shape_cast %45 : vector<1x1x8x8x128xf32> to vector<8x8x128xf32>
    %c9 = arith.constant 9 : index
    %c0_77 = arith.constant 0 : index
    %c0_78 = arith.constant 0 : index
    %c0_79 = arith.constant 0 : index
    %47 = vector.load %arg7[%c9, %c0_77, %c0_78, %c0_79] : memref<25x8x8x128xf32, #tpu.memory_space<vmem>>, vector<1x8x8x128xf32>
    %48 = vector.shape_cast %47 : vector<1x8x8x128xf32> to vector<8x8x128xf32>
    %49 = vector.shape_cast %46 : vector<8x8x128xf32> to vector<1x8x8x128xf32>
    tpu.vector_store %arg7[%c9, %c0_77, %c0_78, %c0_79], %49 {strides = array<i32>} : memref<25x8x8x128xf32, #tpu.memory_space<vmem>>, vector<1x8x8x128xf32>,
    %c2_80 = arith.constant 2 : index
    %c0_81 = arith.constant 0 : index
    %c0_82 = arith.constant 0 : index
    %c0_83 = arith.constant 0 : index
    %c0_84 = arith.constant 0 : index
    %50 = vector.load %arg1[%c2_80, %c0_81, %c0_82, %c0_83, %c0_84] : memref<3x3x9x9x128xf32, #tpu.memory_space<vmem>>, vector<1x1x8x8x128xf32>
    %51 = vector.shape_cast %50 : vector<1x1x8x8x128xf32> to vector<8x8x128xf32>
    %c10 = arith.constant 10 : index
    %c0_85 = arith.constant 0 : index
    %c0_86 = arith.constant 0 : index
    %c0_87 = arith.constant 0 : index
    %52 = vector.load %arg7[%c10, %c0_85, %c0_86, %c0_87] : memref<25x8x8x128xf32, #tpu.memory_space<vmem>>, vector<1x8x8x128xf32>
    %53 = vector.shape_cast %52 : vector<1x8x8x128xf32> to vector<8x8x128xf32>
    %54 = vector.shape_cast %51 : vector<8x8x128xf32> to vector<1x8x8x128xf32>
    tpu.vector_store %arg7[%c10, %c0_85, %c0_86, %c0_87], %54 {strides = array<i32>} : memref<25x8x8x128xf32, #tpu.memory_space<vmem>>, vector<1x8x8x128xf32>,
    %c2_88 = arith.constant 2 : index
    %c1_89 = arith.constant 1 : index
    %c0_90 = arith.constant 0 : index
    %c0_91 = arith.constant 0 : index
    %c0_92 = arith.constant 0 : index
    %55 = vector.load %arg1[%c2_88, %c1_89, %c0_90, %c0_91, %c0_92] : memref<3x3x9x9x128xf32, #tpu.memory_space<vmem>>, vector<1x1x8x8x128xf32>
    %56 = vector.shape_cast %55 : vector<1x1x8x8x128xf32> to vector<8x8x128xf32>
    %c11 = arith.constant 11 : index
    %c0_93 = arith.constant 0 : index
    %c0_94 = arith.constant 0 : index
    %c0_95 = arith.constant 0 : index
    %57 = vector.load %arg7[%c11, %c0_93, %c0_94, %c0_95] : memref<25x8x8x128xf32, #tpu.memory_space<vmem>>, vector<1x8x8x128xf32>
    %58 = vector.shape_cast %57 : vector<1x8x8x128xf32> to vector<8x8x128xf32>
    %59 = vector.shape_cast %56 : vector<8x8x128xf32> to vector<1x8x8x128xf32>
    tpu.vector_store %arg7[%c11, %c0_93, %c0_94, %c0_95], %59 {strides = array<i32>} : memref<25x8x8x128xf32, #tpu.memory_space<vmem>>, vector<1x8x8x128xf32>,
    %c2_96 = arith.constant 2 : index
    %c2_97 = arith.constant 2 : index
    %c0_98 = arith.constant 0 : index
    %c0_99 = arith.constant 0 : index
    %c0_100 = arith.constant 0 : index
    %60 = vector.load %arg1[%c2_96, %c2_97, %c0_98, %c0_99, %c0_100] : memref<3x3x9x9x128xf32, #tpu.memory_space<vmem>>, vector<1x1x8x8x128xf32>
    %61 = vector.shape_cast %60 : vector<1x1x8x8x128xf32> to vector<8x8x128xf32>
    %c12 = arith.constant 12 : index
    %c0_101 = arith.constant 0 : index
    %c0_102 = arith.constant 0 : index
    %c0_103 = arith.constant 0 : index
    %62 = vector.load %arg7[%c12, %c0_101, %c0_102, %c0_103] : memref<25x8x8x128xf32, #tpu.memory_space<vmem>>, vector<1x8x8x128xf32>
    %63 = vector.shape_cast %62 : vector<1x8x8x128xf32> to vector<8x8x128xf32>
    %64 = vector.shape_cast %61 : vector<8x8x128xf32> to vector<1x8x8x128xf32>
    tpu.vector_store %arg7[%c12, %c0_101, %c0_102, %c0_103], %64 {strides = array<i32>} : memref<25x8x8x128xf32, #tpu.memory_space<vmem>>, vector<1x8x8x128xf32>,
    %c2_104 = arith.constant 2 : index
    %c0_105 = arith.constant 0 : index
    %c0_106 = arith.constant 0 : index
    %c1_107 = arith.constant 1 : index
    %c0_108 = arith.constant 0 : index
    %65 = vector.load %arg1[%c2_104, %c0_105, %c0_106, %c1_107, %c0_108] : memref<3x3x9x9x128xf32, #tpu.memory_space<vmem>>, vector<1x1x8x8x128xf32>
    %66 = vector.shape_cast %65 : vector<1x1x8x8x128xf32> to vector<8x8x128xf32>
    %c13 = arith.constant 13 : index
    %c0_109 = arith.constant 0 : index
    %c0_110 = arith.constant 0 : index
    %c0_111 = arith.constant 0 : index
    %67 = vector.load %arg7[%c13, %c0_109, %c0_110, %c0_111] : memref<25x8x8x128xf32, #tpu.memory_space<vmem>>, vector<1x8x8x128xf32>
    %68 = vector.shape_cast %67 : vector<1x8x8x128xf32> to vector<8x8x128xf32>
    %69 = vector.shape_cast %66 : vector<8x8x128xf32> to vector<1x8x8x128xf32>
    tpu.vector_store %arg7[%c13, %c0_109, %c0_110, %c0_111], %69 {strides = array<i32>} : memref<25x8x8x128xf32, #tpu.memory_space<vmem>>, vector<1x8x8x128xf32>,
    %c2_112 = arith.constant 2 : index
    %c1_113 = arith.constant 1 : index
    %c0_114 = arith.constant 0 : index
    %c1_115 = arith.constant 1 : index
    %c0_116 = arith.constant 0 : index
    %70 = vector.load %arg1[%c2_112, %c1_113, %c0_114, %c1_115, %c0_116] : memref<3x3x9x9x128xf32, #tpu.memory_space<vmem>>, vector<1x1x8x8x128xf32>
    %71 = vector.shape_cast %70 : vector<1x1x8x8x128xf32> to vector<8x8x128xf32>
    %c14 = arith.constant 14 : index
    %c0_117 = arith.constant 0 : index
    %c0_118 = arith.constant 0 : index
    %c0_119 = arith.constant 0 : index
    %72 = vector.load %arg7[%c14, %c0_117, %c0_118, %c0_119] : memref<25x8x8x128xf32, #tpu.memory_space<vmem>>, vector<1x8x8x128xf32>
    %73 = vector.shape_cast %72 : vector<1x8x8x128xf32> to vector<8x8x128xf32>
    %74 = vector.shape_cast %71 : vector<8x8x128xf32> to vector<1x8x8x128xf32>
    tpu.vector_store %arg7[%c14, %c0_117, %c0_118, %c0_119], %74 {strides = array<i32>} : memref<25x8x8x128xf32, #tpu.memory_space<vmem>>, vector<1x8x8x128xf32>,
    %c0_120 = arith.constant 0 : index
    %c0_121 = arith.constant 0 : index
    %c1_122 = arith.constant 1 : index
    %c0_123 = arith.constant 0 : index
    %c0_124 = arith.constant 0 : index
    %75 = vector.load %arg1[%c0_120, %c0_121, %c1_122, %c0_123, %c0_124] : memref<3x3x9x9x128xf32, #tpu.memory_space<vmem>>, vector<1x1x8x8x128xf32>
    %76 = vector.shape_cast %75 : vector<1x1x8x8x128xf32> to vector<8x8x128xf32>
    %c15 = arith.constant 15 : index
    %c0_125 = arith.constant 0 : index
    %c0_126 = arith.constant 0 : index
    %c0_127 = arith.constant 0 : index
    %77 = vector.load %arg7[%c15, %c0_125, %c0_126, %c0_127] : memref<25x8x8x128xf32, #tpu.memory_space<vmem>>, vector<1x8x8x128xf32>
    %78 = vector.shape_cast %77 : vector<1x8x8x128xf32> to vector<8x8x128xf32>
    %79 = vector.shape_cast %76 : vector<8x8x128xf32> to vector<1x8x8x128xf32>
    tpu.vector_store %arg7[%c15, %c0_125, %c0_126, %c0_127], %79 {strides = array<i32>} : memref<25x8x8x128xf32, #tpu.memory_space<vmem>>, vector<1x8x8x128xf32>,
    %c0_128 = arith.constant 0 : index
    %c1_129 = arith.constant 1 : index
    %c1_130 = arith.constant 1 : index
    %c0_131 = arith.constant 0 : index
    %c0_132 = arith.constant 0 : index
    %80 = vector.load %arg1[%c0_128, %c1_129, %c1_130, %c0_131, %c0_132] : memref<3x3x9x9x128xf32, #tpu.memory_space<vmem>>, vector<1x1x8x8x128xf32>
    %81 = vector.shape_cast %80 : vector<1x1x8x8x128xf32> to vector<8x8x128xf32>
    %c16 = arith.constant 16 : index
    %c0_133 = arith.constant 0 : index
    %c0_134 = arith.constant 0 : index
    %c0_135 = arith.constant 0 : index
    %82 = vector.load %arg7[%c16, %c0_133, %c0_134, %c0_135] : memref<25x8x8x128xf32, #tpu.memory_space<vmem>>, vector<1x8x8x128xf32>
    %83 = vector.shape_cast %82 : vector<1x8x8x128xf32> to vector<8x8x128xf32>
    %84 = vector.shape_cast %81 : vector<8x8x128xf32> to vector<1x8x8x128xf32>
    tpu.vector_store %arg7[%c16, %c0_133, %c0_134, %c0_135], %84 {strides = array<i32>} : memref<25x8x8x128xf32, #tpu.memory_space<vmem>>, vector<1x8x8x128xf32>,
    %c0_136 = arith.constant 0 : index
    %c2_137 = arith.constant 2 : index
    %c1_138 = arith.constant 1 : index
    %c0_139 = arith.constant 0 : index
    %c0_140 = arith.constant 0 : index
    %85 = vector.load %arg1[%c0_136, %c2_137, %c1_138, %c0_139, %c0_140] : memref<3x3x9x9x128xf32, #tpu.memory_space<vmem>>, vector<1x1x8x8x128xf32>
    %86 = vector.shape_cast %85 : vector<1x1x8x8x128xf32> to vector<8x8x128xf32>
    %c17 = arith.constant 17 : index
    %c0_141 = arith.constant 0 : index
    %c0_142 = arith.constant 0 : index
    %c0_143 = arith.constant 0 : index
    %87 = vector.load %arg7[%c17, %c0_141, %c0_142, %c0_143] : memref<25x8x8x128xf32, #tpu.memory_space<vmem>>, vector<1x8x8x128xf32>
    %88 = vector.shape_cast %87 : vector<1x8x8x128xf32> to vector<8x8x128xf32>
    %89 = vector.shape_cast %86 : vector<8x8x128xf32> to vector<1x8x8x128xf32>
    tpu.vector_store %arg7[%c17, %c0_141, %c0_142, %c0_143], %89 {strides = array<i32>} : memref<25x8x8x128xf32, #tpu.memory_space<vmem>>, vector<1x8x8x128xf32>,
    %c0_144 = arith.constant 0 : index
    %c0_145 = arith.constant 0 : index
    %c1_146 = arith.constant 1 : index
    %c1_147 = arith.constant 1 : index
    %c0_148 = arith.constant 0 : index
    %90 = vector.load %arg1[%c0_144, %c0_145, %c1_146, %c1_147, %c0_148] : memref<3x3x9x9x128xf32, #tpu.memory_space<vmem>>, vector<1x1x8x8x128xf32>
    %91 = vector.shape_cast %90 : vector<1x1x8x8x128xf32> to vector<8x8x128xf32>
    %c18 = arith.constant 18 : index
    %c0_149 = arith.constant 0 : index
    %c0_150 = arith.constant 0 : index
    %c0_151 = arith.constant 0 : index
    %92 = vector.load %arg7[%c18, %c0_149, %c0_150, %c0_151] : memref<25x8x8x128xf32, #tpu.memory_space<vmem>>, vector<1x8x8x128xf32>
    %93 = vector.shape_cast %92 : vector<1x8x8x128xf32> to vector<8x8x128xf32>
    %94 = vector.shape_cast %91 : vector<8x8x128xf32> to vector<1x8x8x128xf32>
    tpu.vector_store %arg7[%c18, %c0_149, %c0_150, %c0_151], %94 {strides = array<i32>} : memref<25x8x8x128xf32, #tpu.memory_space<vmem>>, vector<1x8x8x128xf32>,
    %c0_152 = arith.constant 0 : index
    %c1_153 = arith.constant 1 : index
    %c1_154 = arith.constant 1 : index
    %c1_155 = arith.constant 1 : index
    %c0_156 = arith.constant 0 : index
    %95 = vector.load %arg1[%c0_152, %c1_153, %c1_154, %c1_155, %c0_156] : memref<3x3x9x9x128xf32, #tpu.memory_space<vmem>>, vector<1x1x8x8x128xf32>
    %96 = vector.shape_cast %95 : vector<1x1x8x8x128xf32> to vector<8x8x128xf32>
    %c19 = arith.constant 19 : index
    %c0_157 = arith.constant 0 : index
    %c0_158 = arith.constant 0 : index
    %c0_159 = arith.constant 0 : index
    %97 = vector.load %arg7[%c19, %c0_157, %c0_158, %c0_159] : memref<25x8x8x128xf32, #tpu.memory_space<vmem>>, vector<1x8x8x128xf32>
    %98 = vector.shape_cast %97 : vector<1x8x8x128xf32> to vector<8x8x128xf32>
    %99 = vector.shape_cast %96 : vector<8x8x128xf32> to vector<1x8x8x128xf32>
    tpu.vector_store %arg7[%c19, %c0_157, %c0_158, %c0_159], %99 {strides = array<i32>} : memref<25x8x8x128xf32, #tpu.memory_space<vmem>>, vector<1x8x8x128xf32>,
    %c1_160 = arith.constant 1 : index
    %c0_161 = arith.constant 0 : index
    %c1_162 = arith.constant 1 : index
    %c0_163 = arith.constant 0 : index
    %c0_164 = arith.constant 0 : index
    %100 = vector.load %arg1[%c1_160, %c0_161, %c1_162, %c0_163, %c0_164] : memref<3x3x9x9x128xf32, #tpu.memory_space<vmem>>, vector<1x1x8x8x128xf32>
    %101 = vector.shape_cast %100 : vector<1x1x8x8x128xf32> to vector<8x8x128xf32>
    %c20 = arith.constant 20 : index
    %c0_165 = arith.constant 0 : index
    %c0_166 = arith.constant 0 : index
    %c0_167 = arith.constant 0 : index
    %102 = vector.load %arg7[%c20, %c0_165, %c0_166, %c0_167] : memref<25x8x8x128xf32, #tpu.memory_space<vmem>>, vector<1x8x8x128xf32>
    %103 = vector.shape_cast %102 : vector<1x8x8x128xf32> to vector<8x8x128xf32>
    %104 = vector.shape_cast %101 : vector<8x8x128xf32> to vector<1x8x8x128xf32>
    tpu.vector_store %arg7[%c20, %c0_165, %c0_166, %c0_167], %104 {strides = array<i32>} : memref<25x8x8x128xf32, #tpu.memory_space<vmem>>, vector<1x8x8x128xf32>,
    %c1_168 = arith.constant 1 : index
    %c1_169 = arith.constant 1 : index
    %c1_170 = arith.constant 1 : index
    %c0_171 = arith.constant 0 : index
    %c0_172 = arith.constant 0 : index
    %105 = vector.load %arg1[%c1_168, %c1_169, %c1_170, %c0_171, %c0_172] : memref<3x3x9x9x128xf32, #tpu.memory_space<vmem>>, vector<1x1x8x8x128xf32>
    %106 = vector.shape_cast %105 : vector<1x1x8x8x128xf32> to vector<8x8x128xf32>
    %c21 = arith.constant 21 : index
    %c0_173 = arith.constant 0 : index
    %c0_174 = arith.constant 0 : index
    %c0_175 = arith.constant 0 : index
    %107 = vector.load %arg7[%c21, %c0_173, %c0_174, %c0_175] : memref<25x8x8x128xf32, #tpu.memory_space<vmem>>, vector<1x8x8x128xf32>
    %108 = vector.shape_cast %107 : vector<1x8x8x128xf32> to vector<8x8x128xf32>
    %109 = vector.shape_cast %106 : vector<8x8x128xf32> to vector<1x8x8x128xf32>
    tpu.vector_store %arg7[%c21, %c0_173, %c0_174, %c0_175], %109 {strides = array<i32>} : memref<25x8x8x128xf32, #tpu.memory_space<vmem>>, vector<1x8x8x128xf32>,
    %c1_176 = arith.constant 1 : index
    %c2_177 = arith.constant 2 : index
    %c1_178 = arith.constant 1 : index
    %c0_179 = arith.constant 0 : index
    %c0_180 = arith.constant 0 : index
    %110 = vector.load %arg1[%c1_176, %c2_177, %c1_178, %c0_179, %c0_180] : memref<3x3x9x9x128xf32, #tpu.memory_space<vmem>>, vector<1x1x8x8x128xf32>
    %111 = vector.shape_cast %110 : vector<1x1x8x8x128xf32> to vector<8x8x128xf32>
    %c22 = arith.constant 22 : index
    %c0_181 = arith.constant 0 : index
    %c0_182 = arith.constant 0 : index
    %c0_183 = arith.constant 0 : index
    %112 = vector.load %arg7[%c22, %c0_181, %c0_182, %c0_183] : memref<25x8x8x128xf32, #tpu.memory_space<vmem>>, vector<1x8x8x128xf32>
    %113 = vector.shape_cast %112 : vector<1x8x8x128xf32> to vector<8x8x128xf32>
    %114 = vector.shape_cast %111 : vector<8x8x128xf32> to vector<1x8x8x128xf32>
    tpu.vector_store %arg7[%c22, %c0_181, %c0_182, %c0_183], %114 {strides = array<i32>} : memref<25x8x8x128xf32, #tpu.memory_space<vmem>>, vector<1x8x8x128xf32>,
    %c1_184 = arith.constant 1 : index
    %c0_185 = arith.constant 0 : index
    %c1_186 = arith.constant 1 : index
    %c1_187 = arith.constant 1 : index
    %c0_188 = arith.constant 0 : index
    %115 = vector.load %arg1[%c1_184, %c0_185, %c1_186, %c1_187, %c0_188] : memref<3x3x9x9x128xf32, #tpu.memory_space<vmem>>, vector<1x1x8x8x128xf32>
    %116 = vector.shape_cast %115 : vector<1x1x8x8x128xf32> to vector<8x8x128xf32>
    %c23 = arith.constant 23 : index
    %c0_189 = arith.constant 0 : index
    %c0_190 = arith.constant 0 : index
    %c0_191 = arith.constant 0 : index
    %117 = vector.load %arg7[%c23, %c0_189, %c0_190, %c0_191] : memref<25x8x8x128xf32, #tpu.memory_space<vmem>>, vector<1x8x8x128xf32>
    %118 = vector.shape_cast %117 : vector<1x8x8x128xf32> to vector<8x8x128xf32>
    %119 = vector.shape_cast %116 : vector<8x8x128xf32> to vector<1x8x8x128xf32>
    tpu.vector_store %arg7[%c23, %c0_189, %c0_190, %c0_191], %119 {strides = array<i32>} : memref<25x8x8x128xf32, #tpu.memory_space<vmem>>, vector<1x8x8x128xf32>,
    %c1_192 = arith.constant 1 : index
    %c1_193 = arith.constant 1 : index
    %c1_194 = arith.constant 1 : index
    %c1_195 = arith.constant 1 : index
    %c0_196 = arith.constant 0 : index
    %120 = vector.load %arg1[%c1_192, %c1_193, %c1_194, %c1_195, %c0_196] : memref<3x3x9x9x128xf32, #tpu.memory_space<vmem>>, vector<1x1x8x8x128xf32>
    %121 = vector.shape_cast %120 : vector<1x1x8x8x128xf32> to vector<8x8x128xf32>
    %c24 = arith.constant 24 : index
    %c0_197 = arith.constant 0 : index
    %c0_198 = arith.constant 0 : index
    %c0_199 = arith.constant 0 : index
    %122 = vector.load %arg7[%c24, %c0_197, %c0_198, %c0_199] : memref<25x8x8x128xf32, #tpu.memory_space<vmem>>, vector<1x8x8x128xf32>
    %123 = vector.shape_cast %122 : vector<1x8x8x128xf32> to vector<8x8x128xf32>
    %124 = vector.shape_cast %121 : vector<8x8x128xf32> to vector<1x8x8x128xf32>
    tpu.vector_store %arg7[%c24, %c0_197, %c0_198, %c0_199], %124 {strides = array<i32>} : memref<25x8x8x128xf32, #tpu.memory_space<vmem>>, vector<1x8x8x128xf32>,
    %c0_200 = arith.constant 0 : index
    %c0_201 = arith.constant 0 : index
    %c0_202 = arith.constant 0 : index
    %c0_203 = arith.constant 0 : index
    %125 = vector.load %arg7[%c0_200, %c0_201, %c0_202, %c0_203] : memref<25x8x8x128xf32, #tpu.memory_space<vmem>>, vector<1x8x8x128xf32>
    %126 = vector.shape_cast %125 : vector<1x8x8x128xf32> to vector<8x8x128xf32>
    %c0_204 = arith.constant 0 : index
    %c0_205 = arith.constant 0 : index
    %127 = memref.load %arg2[%c0_204, %c0_205] : memref<3x9xf32, #tpu.memory_space<smem>>
    %128 = vector.broadcast %127 : f32 to vector<8x8x128xf32>
    %129 = arith.mulf %128, %126 : vector<8x8x128xf32>
    %c1_206 = arith.constant 1 : index
    %c0_207 = arith.constant 0 : index
    %130 = memref.load %arg2[%c1_206, %c0_207] : memref<3x9xf32, #tpu.memory_space<smem>>
    %131 = vector.broadcast %130 : f32 to vector<8x8x128xf32>
    %132 = arith.mulf %131, %126 : vector<8x8x128xf32>
    %c2_208 = arith.constant 2 : index
    %c0_209 = arith.constant 0 : index
    %133 = memref.load %arg2[%c2_208, %c0_209] : memref<3x9xf32, #tpu.memory_space<smem>>
    %134 = vector.broadcast %133 : f32 to vector<8x8x128xf32>
    %135 = arith.mulf %134, %126 : vector<8x8x128xf32>
    %c1_210 = arith.constant 1 : index
    %c0_211 = arith.constant 0 : index
    %c0_212 = arith.constant 0 : index
    %c0_213 = arith.constant 0 : index
    %136 = vector.load %arg7[%c1_210, %c0_211, %c0_212, %c0_213] : memref<25x8x8x128xf32, #tpu.memory_space<vmem>>, vector<1x8x8x128xf32>
    %137 = vector.shape_cast %136 : vector<1x8x8x128xf32> to vector<8x8x128xf32>
    %c0_214 = arith.constant 0 : index
    %c1_215 = arith.constant 1 : index
    %138 = memref.load %arg2[%c0_214, %c1_215] : memref<3x9xf32, #tpu.memory_space<smem>>
    %139 = vector.broadcast %138 : f32 to vector<8x8x128xf32>
    %140 = arith.mulf %139, %137 : vector<8x8x128xf32>
    %141 = arith.addf %129, %140 : vector<8x8x128xf32>
    %c1_216 = arith.constant 1 : index
    %c1_217 = arith.constant 1 : index
    %142 = memref.load %arg2[%c1_216, %c1_217] : memref<3x9xf32, #tpu.memory_space<smem>>
    %143 = vector.broadcast %142 : f32 to vector<8x8x128xf32>
    %144 = arith.mulf %143, %137 : vector<8x8x128xf32>
    %145 = arith.addf %132, %144 : vector<8x8x128xf32>
    %c2_218 = arith.constant 2 : index
    %c1_219 = arith.constant 1 : index
    %146 = memref.load %arg2[%c2_218, %c1_219] : memref<3x9xf32, #tpu.memory_space<smem>>
    %147 = vector.broadcast %146 : f32 to vector<8x8x128xf32>
    %148 = arith.mulf %147, %137 : vector<8x8x128xf32>
    %149 = arith.addf %135, %148 : vector<8x8x128xf32>
    %c2_220 = arith.constant 2 : index
    %c0_221 = arith.constant 0 : index
    %c0_222 = arith.constant 0 : index
    %c0_223 = arith.constant 0 : index
    %150 = vector.load %arg7[%c2_220, %c0_221, %c0_222, %c0_223] : memref<25x8x8x128xf32, #tpu.memory_space<vmem>>, vector<1x8x8x128xf32>
    %151 = vector.shape_cast %150 : vector<1x8x8x128xf32> to vector<8x8x128xf32>
    %c0_224 = arith.constant 0 : index
    %c2_225 = arith.constant 2 : index
    %152 = memref.load %arg2[%c0_224, %c2_225] : memref<3x9xf32, #tpu.memory_space<smem>>
    %153 = vector.broadcast %152 : f32 to vector<8x8x128xf32>
    %154 = arith.mulf %153, %151 : vector<8x8x128xf32>
    %155 = arith.addf %141, %154 : vector<8x8x128xf32>
    %c1_226 = arith.constant 1 : index
    %c2_227 = arith.constant 2 : index
    %156 = memref.load %arg2[%c1_226, %c2_227] : memref<3x9xf32, #tpu.memory_space<smem>>
    %157 = vector.broadcast %156 : f32 to vector<8x8x128xf32>
    %158 = arith.mulf %157, %151 : vector<8x8x128xf32>
    %159 = arith.addf %145, %158 : vector<8x8x128xf32>
    %c2_228 = arith.constant 2 : index
    %c2_229 = arith.constant 2 : index
    %160 = memref.load %arg2[%c2_228, %c2_229] : memref<3x9xf32, #tpu.memory_space<smem>>
    %161 = vector.broadcast %160 : f32 to vector<8x8x128xf32>
    %162 = arith.mulf %161, %151 : vector<8x8x128xf32>
    %163 = arith.addf %149, %162 : vector<8x8x128xf32>
    %c5_230 = arith.constant 5 : index
    %c0_231 = arith.constant 0 : index
    %c0_232 = arith.constant 0 : index
    %c0_233 = arith.constant 0 : index
    %164 = vector.load %arg7[%c5_230, %c0_231, %c0_232, %c0_233] : memref<25x8x8x128xf32, #tpu.memory_space<vmem>>, vector<1x8x8x128xf32>
    %165 = vector.shape_cast %164 : vector<1x8x8x128xf32> to vector<8x8x128xf32>
    %c0_234 = arith.constant 0 : index
    %c3_235 = arith.constant 3 : index
    %166 = memref.load %arg2[%c0_234, %c3_235] : memref<3x9xf32, #tpu.memory_space<smem>>
    %167 = vector.broadcast %166 : f32 to vector<8x8x128xf32>
    %168 = arith.mulf %167, %165 : vector<8x8x128xf32>
    %169 = arith.addf %155, %168 : vector<8x8x128xf32>
    %c1_236 = arith.constant 1 : index
    %c3_237 = arith.constant 3 : index
    %170 = memref.load %arg2[%c1_236, %c3_237] : memref<3x9xf32, #tpu.memory_space<smem>>
    %171 = vector.broadcast %170 : f32 to vector<8x8x128xf32>
    %172 = arith.mulf %171, %165 : vector<8x8x128xf32>
    %173 = arith.addf %159, %172 : vector<8x8x128xf32>
    %c2_238 = arith.constant 2 : index
    %c3_239 = arith.constant 3 : index
    %174 = memref.load %arg2[%c2_238, %c3_239] : memref<3x9xf32, #tpu.memory_space<smem>>
    %175 = vector.broadcast %174 : f32 to vector<8x8x128xf32>
    %176 = arith.mulf %175, %165 : vector<8x8x128xf32>
    %177 = arith.addf %163, %176 : vector<8x8x128xf32>
    %c6_240 = arith.constant 6 : index
    %c0_241 = arith.constant 0 : index
    %c0_242 = arith.constant 0 : index
    %c0_243 = arith.constant 0 : index
    %178 = vector.load %arg7[%c6_240, %c0_241, %c0_242, %c0_243] : memref<25x8x8x128xf32, #tpu.memory_space<vmem>>, vector<1x8x8x128xf32>
    %179 = vector.shape_cast %178 : vector<1x8x8x128xf32> to vector<8x8x128xf32>
    %c0_244 = arith.constant 0 : index
    %c4_245 = arith.constant 4 : index
    %180 = memref.load %arg2[%c0_244, %c4_245] : memref<3x9xf32, #tpu.memory_space<smem>>
    %181 = vector.broadcast %180 : f32 to vector<8x8x128xf32>
    %182 = arith.mulf %181, %179 : vector<8x8x128xf32>
    %183 = arith.addf %169, %182 : vector<8x8x128xf32>
    %c1_246 = arith.constant 1 : index
    %c4_247 = arith.constant 4 : index
    %184 = memref.load %arg2[%c1_246, %c4_247] : memref<3x9xf32, #tpu.memory_space<smem>>
    %185 = vector.broadcast %184 : f32 to vector<8x8x128xf32>
    %186 = arith.mulf %185, %179 : vector<8x8x128xf32>
    %187 = arith.addf %173, %186 : vector<8x8x128xf32>
    %c2_248 = arith.constant 2 : index
    %c4_249 = arith.constant 4 : index
    %188 = memref.load %arg2[%c2_248, %c4_249] : memref<3x9xf32, #tpu.memory_space<smem>>
    %189 = vector.broadcast %188 : f32 to vector<8x8x128xf32>
    %190 = arith.mulf %189, %179 : vector<8x8x128xf32>
    %191 = arith.addf %177, %190 : vector<8x8x128xf32>
    %c7_250 = arith.constant 7 : index
    %c0_251 = arith.constant 0 : index
    %c0_252 = arith.constant 0 : index
    %c0_253 = arith.constant 0 : index
    %192 = vector.load %arg7[%c7_250, %c0_251, %c0_252, %c0_253] : memref<25x8x8x128xf32, #tpu.memory_space<vmem>>, vector<1x8x8x128xf32>
    %193 = vector.shape_cast %192 : vector<1x8x8x128xf32> to vector<8x8x128xf32>
    %c0_254 = arith.constant 0 : index
    %c5_255 = arith.constant 5 : index
    %194 = memref.load %arg2[%c0_254, %c5_255] : memref<3x9xf32, #tpu.memory_space<smem>>
    %195 = vector.broadcast %194 : f32 to vector<8x8x128xf32>
    %196 = arith.mulf %195, %193 : vector<8x8x128xf32>
    %197 = arith.addf %183, %196 : vector<8x8x128xf32>
    %c1_256 = arith.constant 1 : index
    %c5_257 = arith.constant 5 : index
    %198 = memref.load %arg2[%c1_256, %c5_257] : memref<3x9xf32, #tpu.memory_space<smem>>
    %199 = vector.broadcast %198 : f32 to vector<8x8x128xf32>
    %200 = arith.mulf %199, %193 : vector<8x8x128xf32>
    %201 = arith.addf %187, %200 : vector<8x8x128xf32>
    %c2_258 = arith.constant 2 : index
    %c5_259 = arith.constant 5 : index
    %202 = memref.load %arg2[%c2_258, %c5_259] : memref<3x9xf32, #tpu.memory_space<smem>>
    %203 = vector.broadcast %202 : f32 to vector<8x8x128xf32>
    %204 = arith.mulf %203, %193 : vector<8x8x128xf32>
    %205 = arith.addf %191, %204 : vector<8x8x128xf32>
    %c10_260 = arith.constant 10 : index
    %c0_261 = arith.constant 0 : index
    %c0_262 = arith.constant 0 : index
    %c0_263 = arith.constant 0 : index
    %206 = vector.load %arg7[%c10_260, %c0_261, %c0_262, %c0_263] : memref<25x8x8x128xf32, #tpu.memory_space<vmem>>, vector<1x8x8x128xf32>
    %207 = vector.shape_cast %206 : vector<1x8x8x128xf32> to vector<8x8x128xf32>
    %c0_264 = arith.constant 0 : index
    %c6_265 = arith.constant 6 : index
    %208 = memref.load %arg2[%c0_264, %c6_265] : memref<3x9xf32, #tpu.memory_space<smem>>
    %209 = vector.broadcast %208 : f32 to vector<8x8x128xf32>
    %210 = arith.mulf %209, %207 : vector<8x8x128xf32>
    %211 = arith.addf %197, %210 : vector<8x8x128xf32>
    %c1_266 = arith.constant 1 : index
    %c6_267 = arith.constant 6 : index
    %212 = memref.load %arg2[%c1_266, %c6_267] : memref<3x9xf32, #tpu.memory_space<smem>>
    %213 = vector.broadcast %212 : f32 to vector<8x8x128xf32>
    %214 = arith.mulf %213, %207 : vector<8x8x128xf32>
    %215 = arith.addf %201, %214 : vector<8x8x128xf32>
    %c2_268 = arith.constant 2 : index
    %c6_269 = arith.constant 6 : index
    %216 = memref.load %arg2[%c2_268, %c6_269] : memref<3x9xf32, #tpu.memory_space<smem>>
    %217 = vector.broadcast %216 : f32 to vector<8x8x128xf32>
    %218 = arith.mulf %217, %207 : vector<8x8x128xf32>
    %219 = arith.addf %205, %218 : vector<8x8x128xf32>
    %c11_270 = arith.constant 11 : index
    %c0_271 = arith.constant 0 : index
    %c0_272 = arith.constant 0 : index
    %c0_273 = arith.constant 0 : index
    %220 = vector.load %arg7[%c11_270, %c0_271, %c0_272, %c0_273] : memref<25x8x8x128xf32, #tpu.memory_space<vmem>>, vector<1x8x8x128xf32>
    %221 = vector.shape_cast %220 : vector<1x8x8x128xf32> to vector<8x8x128xf32>
    %c0_274 = arith.constant 0 : index
    %c7_275 = arith.constant 7 : index
    %222 = memref.load %arg2[%c0_274, %c7_275] : memref<3x9xf32, #tpu.memory_space<smem>>
    %223 = vector.broadcast %222 : f32 to vector<8x8x128xf32>
    %224 = arith.mulf %223, %221 : vector<8x8x128xf32>
    %225 = arith.addf %211, %224 : vector<8x8x128xf32>
    %c1_276 = arith.constant 1 : index
    %c7_277 = arith.constant 7 : index
    %226 = memref.load %arg2[%c1_276, %c7_277] : memref<3x9xf32, #tpu.memory_space<smem>>
    %227 = vector.broadcast %226 : f32 to vector<8x8x128xf32>
    %228 = arith.mulf %227, %221 : vector<8x8x128xf32>
    %229 = arith.addf %215, %228 : vector<8x8x128xf32>
    %c2_278 = arith.constant 2 : index
    %c7_279 = arith.constant 7 : index
    %230 = memref.load %arg2[%c2_278, %c7_279] : memref<3x9xf32, #tpu.memory_space<smem>>
    %231 = vector.broadcast %230 : f32 to vector<8x8x128xf32>
    %232 = arith.mulf %231, %221 : vector<8x8x128xf32>
    %233 = arith.addf %219, %232 : vector<8x8x128xf32>
    %c12_280 = arith.constant 12 : index
    %c0_281 = arith.constant 0 : index
    %c0_282 = arith.constant 0 : index
    %c0_283 = arith.constant 0 : index
    %234 = vector.load %arg7[%c12_280, %c0_281, %c0_282, %c0_283] : memref<25x8x8x128xf32, #tpu.memory_space<vmem>>, vector<1x8x8x128xf32>
    %235 = vector.shape_cast %234 : vector<1x8x8x128xf32> to vector<8x8x128xf32>
    %c0_284 = arith.constant 0 : index
    %c8_285 = arith.constant 8 : index
    %236 = memref.load %arg2[%c0_284, %c8_285] : memref<3x9xf32, #tpu.memory_space<smem>>
    %237 = vector.broadcast %236 : f32 to vector<8x8x128xf32>
    %238 = arith.mulf %237, %235 : vector<8x8x128xf32>
    %239 = arith.addf %225, %238 : vector<8x8x128xf32>
    %c1_286 = arith.constant 1 : index
    %c8_287 = arith.constant 8 : index
    %240 = memref.load %arg2[%c1_286, %c8_287] : memref<3x9xf32, #tpu.memory_space<smem>>
    %241 = vector.broadcast %240 : f32 to vector<8x8x128xf32>
    %242 = arith.mulf %241, %235 : vector<8x8x128xf32>
    %243 = arith.addf %229, %242 : vector<8x8x128xf32>
    %c2_288 = arith.constant 2 : index
    %c8_289 = arith.constant 8 : index
    %244 = memref.load %arg2[%c2_288, %c8_289] : memref<3x9xf32, #tpu.memory_space<smem>>
    %245 = vector.broadcast %244 : f32 to vector<8x8x128xf32>
    %246 = arith.mulf %245, %235 : vector<8x8x128xf32>
    %247 = arith.addf %233, %246 : vector<8x8x128xf32>
    %c1_290 = arith.constant 1 : index
    %c0_291 = arith.constant 0 : index
    %c0_292 = arith.constant 0 : index
    %c0_293 = arith.constant 0 : index
    %248 = vector.load %arg7[%c1_290, %c0_291, %c0_292, %c0_293] : memref<25x8x8x128xf32, #tpu.memory_space<vmem>>, vector<1x8x8x128xf32>
    %249 = vector.shape_cast %248 : vector<1x8x8x128xf32> to vector<8x8x128xf32>
    %c0_294 = arith.constant 0 : index
    %c0_295 = arith.constant 0 : index
    %250 = memref.load %arg2[%c0_294, %c0_295] : memref<3x9xf32, #tpu.memory_space<smem>>
    %251 = vector.broadcast %250 : f32 to vector<8x8x128xf32>
    %252 = arith.mulf %251, %249 : vector<8x8x128xf32>
    %c1_296 = arith.constant 1 : index
    %c0_297 = arith.constant 0 : index
    %253 = memref.load %arg2[%c1_296, %c0_297] : memref<3x9xf32, #tpu.memory_space<smem>>
    %254 = vector.broadcast %253 : f32 to vector<8x8x128xf32>
    %255 = arith.mulf %254, %249 : vector<8x8x128xf32>
    %c2_298 = arith.constant 2 : index
    %c0_299 = arith.constant 0 : index
    %256 = memref.load %arg2[%c2_298, %c0_299] : memref<3x9xf32, #tpu.memory_space<smem>>
    %257 = vector.broadcast %256 : f32 to vector<8x8x128xf32>
    %258 = arith.mulf %257, %249 : vector<8x8x128xf32>
    %c2_300 = arith.constant 2 : index
    %c0_301 = arith.constant 0 : index
    %c0_302 = arith.constant 0 : index
    %c0_303 = arith.constant 0 : index
    %259 = vector.load %arg7[%c2_300, %c0_301, %c0_302, %c0_303] : memref<25x8x8x128xf32, #tpu.memory_space<vmem>>, vector<1x8x8x128xf32>
    %260 = vector.shape_cast %259 : vector<1x8x8x128xf32> to vector<8x8x128xf32>
    %c0_304 = arith.constant 0 : index
    %c1_305 = arith.constant 1 : index
    %261 = memref.load %arg2[%c0_304, %c1_305] : memref<3x9xf32, #tpu.memory_space<smem>>
    %262 = vector.broadcast %261 : f32 to vector<8x8x128xf32>
    %263 = arith.mulf %262, %260 : vector<8x8x128xf32>
    %264 = arith.addf %252, %263 : vector<8x8x128xf32>
    %c1_306 = arith.constant 1 : index
    %c1_307 = arith.constant 1 : index
    %265 = memref.load %arg2[%c1_306, %c1_307] : memref<3x9xf32, #tpu.memory_space<smem>>
    %266 = vector.broadcast %265 : f32 to vector<8x8x128xf32>
    %267 = arith.mulf %266, %260 : vector<8x8x128xf32>
    %268 = arith.addf %255, %267 : vector<8x8x128xf32>
    %c2_308 = arith.constant 2 : index
    %c1_309 = arith.constant 1 : index
    %269 = memref.load %arg2[%c2_308, %c1_309] : memref<3x9xf32, #tpu.memory_space<smem>>
    %270 = vector.broadcast %269 : f32 to vector<8x8x128xf32>
    %271 = arith.mulf %270, %260 : vector<8x8x128xf32>
    %272 = arith.addf %258, %271 : vector<8x8x128xf32>
    %c3_310 = arith.constant 3 : index
    %c0_311 = arith.constant 0 : index
    %c0_312 = arith.constant 0 : index
    %c0_313 = arith.constant 0 : index
    %273 = vector.load %arg7[%c3_310, %c0_311, %c0_312, %c0_313] : memref<25x8x8x128xf32, #tpu.memory_space<vmem>>, vector<1x8x8x128xf32>
    %274 = vector.shape_cast %273 : vector<1x8x8x128xf32> to vector<8x8x128xf32>
    %c0_314 = arith.constant 0 : index
    %c2_315 = arith.constant 2 : index
    %275 = memref.load %arg2[%c0_314, %c2_315] : memref<3x9xf32, #tpu.memory_space<smem>>
    %276 = vector.broadcast %275 : f32 to vector<8x8x128xf32>
    %277 = arith.mulf %276, %274 : vector<8x8x128xf32>
    %278 = arith.addf %264, %277 : vector<8x8x128xf32>
    %c1_316 = arith.constant 1 : index
    %c2_317 = arith.constant 2 : index
    %279 = memref.load %arg2[%c1_316, %c2_317] : memref<3x9xf32, #tpu.memory_space<smem>>
    %280 = vector.broadcast %279 : f32 to vector<8x8x128xf32>
    %281 = arith.mulf %280, %274 : vector<8x8x128xf32>
    %282 = arith.addf %268, %281 : vector<8x8x128xf32>
    %c2_318 = arith.constant 2 : index
    %c2_319 = arith.constant 2 : index
    %283 = memref.load %arg2[%c2_318, %c2_319] : memref<3x9xf32, #tpu.memory_space<smem>>
    %284 = vector.broadcast %283 : f32 to vector<8x8x128xf32>
    %285 = arith.mulf %284, %274 : vector<8x8x128xf32>
    %286 = arith.addf %272, %285 : vector<8x8x128xf32>
    %c6_320 = arith.constant 6 : index
    %c0_321 = arith.constant 0 : index
    %c0_322 = arith.constant 0 : index
    %c0_323 = arith.constant 0 : index
    %287 = vector.load %arg7[%c6_320, %c0_321, %c0_322, %c0_323] : memref<25x8x8x128xf32, #tpu.memory_space<vmem>>, vector<1x8x8x128xf32>
    %288 = vector.shape_cast %287 : vector<1x8x8x128xf32> to vector<8x8x128xf32>
    %c0_324 = arith.constant 0 : index
    %c3_325 = arith.constant 3 : index
    %289 = memref.load %arg2[%c0_324, %c3_325] : memref<3x9xf32, #tpu.memory_space<smem>>
    %290 = vector.broadcast %289 : f32 to vector<8x8x128xf32>
    %291 = arith.mulf %290, %288 : vector<8x8x128xf32>
    %292 = arith.addf %278, %291 : vector<8x8x128xf32>
    %c1_326 = arith.constant 1 : index
    %c3_327 = arith.constant 3 : index
    %293 = memref.load %arg2[%c1_326, %c3_327] : memref<3x9xf32, #tpu.memory_space<smem>>
    %294 = vector.broadcast %293 : f32 to vector<8x8x128xf32>
    %295 = arith.mulf %294, %288 : vector<8x8x128xf32>
    %296 = arith.addf %282, %295 : vector<8x8x128xf32>
    %c2_328 = arith.constant 2 : index
    %c3_329 = arith.constant 3 : index
    %297 = memref.load %arg2[%c2_328, %c3_329] : memref<3x9xf32, #tpu.memory_space<smem>>
    %298 = vector.broadcast %297 : f32 to vector<8x8x128xf32>
    %299 = arith.mulf %298, %288 : vector<8x8x128xf32>
    %300 = arith.addf %286, %299 : vector<8x8x128xf32>
    %c7_330 = arith.constant 7 : index
    %c0_331 = arith.constant 0 : index
    %c0_332 = arith.constant 0 : index
    %c0_333 = arith.constant 0 : index
    %301 = vector.load %arg7[%c7_330, %c0_331, %c0_332, %c0_333] : memref<25x8x8x128xf32, #tpu.memory_space<vmem>>, vector<1x8x8x128xf32>
    %302 = vector.shape_cast %301 : vector<1x8x8x128xf32> to vector<8x8x128xf32>
    %c0_334 = arith.constant 0 : index
    %c4_335 = arith.constant 4 : index
    %303 = memref.load %arg2[%c0_334, %c4_335] : memref<3x9xf32, #tpu.memory_space<smem>>
    %304 = vector.broadcast %303 : f32 to vector<8x8x128xf32>
    %305 = arith.mulf %304, %302 : vector<8x8x128xf32>
    %306 = arith.addf %292, %305 : vector<8x8x128xf32>
    %c1_336 = arith.constant 1 : index
    %c4_337 = arith.constant 4 : index
    %307 = memref.load %arg2[%c1_336, %c4_337] : memref<3x9xf32, #tpu.memory_space<smem>>
    %308 = vector.broadcast %307 : f32 to vector<8x8x128xf32>
    %309 = arith.mulf %308, %302 : vector<8x8x128xf32>
    %310 = arith.addf %296, %309 : vector<8x8x128xf32>
    %c2_338 = arith.constant 2 : index
    %c4_339 = arith.constant 4 : index
    %311 = memref.load %arg2[%c2_338, %c4_339] : memref<3x9xf32, #tpu.memory_space<smem>>
    %312 = vector.broadcast %311 : f32 to vector<8x8x128xf32>
    %313 = arith.mulf %312, %302 : vector<8x8x128xf32>
    %314 = arith.addf %300, %313 : vector<8x8x128xf32>
    %c8_340 = arith.constant 8 : index
    %c0_341 = arith.constant 0 : index
    %c0_342 = arith.constant 0 : index
    %c0_343 = arith.constant 0 : index
    %315 = vector.load %arg7[%c8_340, %c0_341, %c0_342, %c0_343] : memref<25x8x8x128xf32, #tpu.memory_space<vmem>>, vector<1x8x8x128xf32>
    %316 = vector.shape_cast %315 : vector<1x8x8x128xf32> to vector<8x8x128xf32>
    %c0_344 = arith.constant 0 : index
    %c5_345 = arith.constant 5 : index
    %317 = memref.load %arg2[%c0_344, %c5_345] : memref<3x9xf32, #tpu.memory_space<smem>>
    %318 = vector.broadcast %317 : f32 to vector<8x8x128xf32>
    %319 = arith.mulf %318, %316 : vector<8x8x128xf32>
    %320 = arith.addf %306, %319 : vector<8x8x128xf32>
    %c1_346 = arith.constant 1 : index
    %c5_347 = arith.constant 5 : index
    %321 = memref.load %arg2[%c1_346, %c5_347] : memref<3x9xf32, #tpu.memory_space<smem>>
    %322 = vector.broadcast %321 : f32 to vector<8x8x128xf32>
    %323 = arith.mulf %322, %316 : vector<8x8x128xf32>
    %324 = arith.addf %310, %323 : vector<8x8x128xf32>
    %c2_348 = arith.constant 2 : index
    %c5_349 = arith.constant 5 : index
    %325 = memref.load %arg2[%c2_348, %c5_349] : memref<3x9xf32, #tpu.memory_space<smem>>
    %326 = vector.broadcast %325 : f32 to vector<8x8x128xf32>
    %327 = arith.mulf %326, %316 : vector<8x8x128xf32>
    %328 = arith.addf %314, %327 : vector<8x8x128xf32>
    %c11_350 = arith.constant 11 : index
    %c0_351 = arith.constant 0 : index
    %c0_352 = arith.constant 0 : index
    %c0_353 = arith.constant 0 : index
    %329 = vector.load %arg7[%c11_350, %c0_351, %c0_352, %c0_353] : memref<25x8x8x128xf32, #tpu.memory_space<vmem>>, vector<1x8x8x128xf32>
    %330 = vector.shape_cast %329 : vector<1x8x8x128xf32> to vector<8x8x128xf32>
    %c0_354 = arith.constant 0 : index
    %c6_355 = arith.constant 6 : index
    %331 = memref.load %arg2[%c0_354, %c6_355] : memref<3x9xf32, #tpu.memory_space<smem>>
    %332 = vector.broadcast %331 : f32 to vector<8x8x128xf32>
    %333 = arith.mulf %332, %330 : vector<8x8x128xf32>
    %334 = arith.addf %320, %333 : vector<8x8x128xf32>
    %c1_356 = arith.constant 1 : index
    %c6_357 = arith.constant 6 : index
    %335 = memref.load %arg2[%c1_356, %c6_357] : memref<3x9xf32, #tpu.memory_space<smem>>
    %336 = vector.broadcast %335 : f32 to vector<8x8x128xf32>
    %337 = arith.mulf %336, %330 : vector<8x8x128xf32>
    %338 = arith.addf %324, %337 : vector<8x8x128xf32>
    %c2_358 = arith.constant 2 : index
    %c6_359 = arith.constant 6 : index
    %339 = memref.load %arg2[%c2_358, %c6_359] : memref<3x9xf32, #tpu.memory_space<smem>>
    %340 = vector.broadcast %339 : f32 to vector<8x8x128xf32>
    %341 = arith.mulf %340, %330 : vector<8x8x128xf32>
    %342 = arith.addf %328, %341 : vector<8x8x128xf32>
    %c12_360 = arith.constant 12 : index
    %c0_361 = arith.constant 0 : index
    %c0_362 = arith.constant 0 : index
    %c0_363 = arith.constant 0 : index
    %343 = vector.load %arg7[%c12_360, %c0_361, %c0_362, %c0_363] : memref<25x8x8x128xf32, #tpu.memory_space<vmem>>, vector<1x8x8x128xf32>
    %344 = vector.shape_cast %343 : vector<1x8x8x128xf32> to vector<8x8x128xf32>
    %c0_364 = arith.constant 0 : index
    %c7_365 = arith.constant 7 : index
    %345 = memref.load %arg2[%c0_364, %c7_365] : memref<3x9xf32, #tpu.memory_space<smem>>
    %346 = vector.broadcast %345 : f32 to vector<8x8x128xf32>
    %347 = arith.mulf %346, %344 : vector<8x8x128xf32>
    %348 = arith.addf %334, %347 : vector<8x8x128xf32>
    %c1_366 = arith.constant 1 : index
    %c7_367 = arith.constant 7 : index
    %349 = memref.load %arg2[%c1_366, %c7_367] : memref<3x9xf32, #tpu.memory_space<smem>>
    %350 = vector.broadcast %349 : f32 to vector<8x8x128xf32>
    %351 = arith.mulf %350, %344 : vector<8x8x128xf32>
    %352 = arith.addf %338, %351 : vector<8x8x128xf32>
    %c2_368 = arith.constant 2 : index
    %c7_369 = arith.constant 7 : index
    %353 = memref.load %arg2[%c2_368, %c7_369] : memref<3x9xf32, #tpu.memory_space<smem>>
    %354 = vector.broadcast %353 : f32 to vector<8x8x128xf32>
    %355 = arith.mulf %354, %344 : vector<8x8x128xf32>
    %356 = arith.addf %342, %355 : vector<8x8x128xf32>
    %c13_370 = arith.constant 13 : index
    %c0_371 = arith.constant 0 : index
    %c0_372 = arith.constant 0 : index
    %c0_373 = arith.constant 0 : index
    %357 = vector.load %arg7[%c13_370, %c0_371, %c0_372, %c0_373] : memref<25x8x8x128xf32, #tpu.memory_space<vmem>>, vector<1x8x8x128xf32>
    %358 = vector.shape_cast %357 : vector<1x8x8x128xf32> to vector<8x8x128xf32>
    %c0_374 = arith.constant 0 : index
    %c8_375 = arith.constant 8 : index
    %359 = memref.load %arg2[%c0_374, %c8_375] : memref<3x9xf32, #tpu.memory_space<smem>>
    %360 = vector.broadcast %359 : f32 to vector<8x8x128xf32>
    %361 = arith.mulf %360, %358 : vector<8x8x128xf32>
    %362 = arith.addf %348, %361 : vector<8x8x128xf32>
    %c1_376 = arith.constant 1 : index
    %c8_377 = arith.constant 8 : index
    %363 = memref.load %arg2[%c1_376, %c8_377] : memref<3x9xf32, #tpu.memory_space<smem>>
    %364 = vector.broadcast %363 : f32 to vector<8x8x128xf32>
    %365 = arith.mulf %364, %358 : vector<8x8x128xf32>
    %366 = arith.addf %352, %365 : vector<8x8x128xf32>
    %c2_378 = arith.constant 2 : index
    %c8_379 = arith.constant 8 : index
    %367 = memref.load %arg2[%c2_378, %c8_379] : memref<3x9xf32, #tpu.memory_space<smem>>
    %368 = vector.broadcast %367 : f32 to vector<8x8x128xf32>
    %369 = arith.mulf %368, %358 : vector<8x8x128xf32>
    %370 = arith.addf %356, %369 : vector<8x8x128xf32>
    %371 = arith.maximumf %239, %362 : vector<8x8x128xf32>
    %372 = arith.maximumf %243, %366 : vector<8x8x128xf32>
    %373 = arith.maximumf %247, %370 : vector<8x8x128xf32>
    %c2_380 = arith.constant 2 : index
    %c0_381 = arith.constant 0 : index
    %c0_382 = arith.constant 0 : index
    %c0_383 = arith.constant 0 : index
    %374 = vector.load %arg7[%c2_380, %c0_381, %c0_382, %c0_383] : memref<25x8x8x128xf32, #tpu.memory_space<vmem>>, vector<1x8x8x128xf32>
    %375 = vector.shape_cast %374 : vector<1x8x8x128xf32> to vector<8x8x128xf32>
    %c0_384 = arith.constant 0 : index
    %c0_385 = arith.constant 0 : index
    %376 = memref.load %arg2[%c0_384, %c0_385] : memref<3x9xf32, #tpu.memory_space<smem>>
    %377 = vector.broadcast %376 : f32 to vector<8x8x128xf32>
    %378 = arith.mulf %377, %375 : vector<8x8x128xf32>
    %c1_386 = arith.constant 1 : index
    %c0_387 = arith.constant 0 : index
    %379 = memref.load %arg2[%c1_386, %c0_387] : memref<3x9xf32, #tpu.memory_space<smem>>
    %380 = vector.broadcast %379 : f32 to vector<8x8x128xf32>
    %381 = arith.mulf %380, %375 : vector<8x8x128xf32>
    %c2_388 = arith.constant 2 : index
    %c0_389 = arith.constant 0 : index
    %382 = memref.load %arg2[%c2_388, %c0_389] : memref<3x9xf32, #tpu.memory_space<smem>>
    %383 = vector.broadcast %382 : f32 to vector<8x8x128xf32>
    %384 = arith.mulf %383, %375 : vector<8x8x128xf32>
    %c3_390 = arith.constant 3 : index
    %c0_391 = arith.constant 0 : index
    %c0_392 = arith.constant 0 : index
    %c0_393 = arith.constant 0 : index
    %385 = vector.load %arg7[%c3_390, %c0_391, %c0_392, %c0_393] : memref<25x8x8x128xf32, #tpu.memory_space<vmem>>, vector<1x8x8x128xf32>
    %386 = vector.shape_cast %385 : vector<1x8x8x128xf32> to vector<8x8x128xf32>
    %c0_394 = arith.constant 0 : index
    %c1_395 = arith.constant 1 : index
    %387 = memref.load %arg2[%c0_394, %c1_395] : memref<3x9xf32, #tpu.memory_space<smem>>
    %388 = vector.broadcast %387 : f32 to vector<8x8x128xf32>
    %389 = arith.mulf %388, %386 : vector<8x8x128xf32>
    %390 = arith.addf %378, %389 : vector<8x8x128xf32>
    %c1_396 = arith.constant 1 : index
    %c1_397 = arith.constant 1 : index
    %391 = memref.load %arg2[%c1_396, %c1_397] : memref<3x9xf32, #tpu.memory_space<smem>>
    %392 = vector.broadcast %391 : f32 to vector<8x8x128xf32>
    %393 = arith.mulf %392, %386 : vector<8x8x128xf32>
    %394 = arith.addf %381, %393 : vector<8x8x128xf32>
    %c2_398 = arith.constant 2 : index
    %c1_399 = arith.constant 1 : index
    %395 = memref.load %arg2[%c2_398, %c1_399] : memref<3x9xf32, #tpu.memory_space<smem>>
    %396 = vector.broadcast %395 : f32 to vector<8x8x128xf32>
    %397 = arith.mulf %396, %386 : vector<8x8x128xf32>
    %398 = arith.addf %384, %397 : vector<8x8x128xf32>
    %c4_400 = arith.constant 4 : index
    %c0_401 = arith.constant 0 : index
    %c0_402 = arith.constant 0 : index
    %c0_403 = arith.constant 0 : index
    %399 = vector.load %arg7[%c4_400, %c0_401, %c0_402, %c0_403] : memref<25x8x8x128xf32, #tpu.memory_space<vmem>>, vector<1x8x8x128xf32>
    %400 = vector.shape_cast %399 : vector<1x8x8x128xf32> to vector<8x8x128xf32>
    %c0_404 = arith.constant 0 : index
    %c2_405 = arith.constant 2 : index
    %401 = memref.load %arg2[%c0_404, %c2_405] : memref<3x9xf32, #tpu.memory_space<smem>>
    %402 = vector.broadcast %401 : f32 to vector<8x8x128xf32>
    %403 = arith.mulf %402, %400 : vector<8x8x128xf32>
    %404 = arith.addf %390, %403 : vector<8x8x128xf32>
    %c1_406 = arith.constant 1 : index
    %c2_407 = arith.constant 2 : index
    %405 = memref.load %arg2[%c1_406, %c2_407] : memref<3x9xf32, #tpu.memory_space<smem>>
    %406 = vector.broadcast %405 : f32 to vector<8x8x128xf32>
    %407 = arith.mulf %406, %400 : vector<8x8x128xf32>
    %408 = arith.addf %394, %407 : vector<8x8x128xf32>
    %c2_408 = arith.constant 2 : index
    %c2_409 = arith.constant 2 : index
    %409 = memref.load %arg2[%c2_408, %c2_409] : memref<3x9xf32, #tpu.memory_space<smem>>
    %410 = vector.broadcast %409 : f32 to vector<8x8x128xf32>
    %411 = arith.mulf %410, %400 : vector<8x8x128xf32>
    %412 = arith.addf %398, %411 : vector<8x8x128xf32>
    %c7_410 = arith.constant 7 : index
    %c0_411 = arith.constant 0 : index
    %c0_412 = arith.constant 0 : index
    %c0_413 = arith.constant 0 : index
    %413 = vector.load %arg7[%c7_410, %c0_411, %c0_412, %c0_413] : memref<25x8x8x128xf32, #tpu.memory_space<vmem>>, vector<1x8x8x128xf32>
    %414 = vector.shape_cast %413 : vector<1x8x8x128xf32> to vector<8x8x128xf32>
    %c0_414 = arith.constant 0 : index
    %c3_415 = arith.constant 3 : index
    %415 = memref.load %arg2[%c0_414, %c3_415] : memref<3x9xf32, #tpu.memory_space<smem>>
    %416 = vector.broadcast %415 : f32 to vector<8x8x128xf32>
    %417 = arith.mulf %416, %414 : vector<8x8x128xf32>
    %418 = arith.addf %404, %417 : vector<8x8x128xf32>
    %c1_416 = arith.constant 1 : index
    %c3_417 = arith.constant 3 : index
    %419 = memref.load %arg2[%c1_416, %c3_417] : memref<3x9xf32, #tpu.memory_space<smem>>
    %420 = vector.broadcast %419 : f32 to vector<8x8x128xf32>
    %421 = arith.mulf %420, %414 : vector<8x8x128xf32>
    %422 = arith.addf %408, %421 : vector<8x8x128xf32>
    %c2_418 = arith.constant 2 : index
    %c3_419 = arith.constant 3 : index
    %423 = memref.load %arg2[%c2_418, %c3_419] : memref<3x9xf32, #tpu.memory_space<smem>>
    %424 = vector.broadcast %423 : f32 to vector<8x8x128xf32>
    %425 = arith.mulf %424, %414 : vector<8x8x128xf32>
    %426 = arith.addf %412, %425 : vector<8x8x128xf32>
    %c8_420 = arith.constant 8 : index
    %c0_421 = arith.constant 0 : index
    %c0_422 = arith.constant 0 : index
    %c0_423 = arith.constant 0 : index
    %427 = vector.load %arg7[%c8_420, %c0_421, %c0_422, %c0_423] : memref<25x8x8x128xf32, #tpu.memory_space<vmem>>, vector<1x8x8x128xf32>
    %428 = vector.shape_cast %427 : vector<1x8x8x128xf32> to vector<8x8x128xf32>
    %c0_424 = arith.constant 0 : index
    %c4_425 = arith.constant 4 : index
    %429 = memref.load %arg2[%c0_424, %c4_425] : memref<3x9xf32, #tpu.memory_space<smem>>
    %430 = vector.broadcast %429 : f32 to vector<8x8x128xf32>
    %431 = arith.mulf %430, %428 : vector<8x8x128xf32>
    %432 = arith.addf %418, %431 : vector<8x8x128xf32>
    %c1_426 = arith.constant 1 : index
    %c4_427 = arith.constant 4 : index
    %433 = memref.load %arg2[%c1_426, %c4_427] : memref<3x9xf32, #tpu.memory_space<smem>>
    %434 = vector.broadcast %433 : f32 to vector<8x8x128xf32>
    %435 = arith.mulf %434, %428 : vector<8x8x128xf32>
    %436 = arith.addf %422, %435 : vector<8x8x128xf32>
    %c2_428 = arith.constant 2 : index
    %c4_429 = arith.constant 4 : index
    %437 = memref.load %arg2[%c2_428, %c4_429] : memref<3x9xf32, #tpu.memory_space<smem>>
    %438 = vector.broadcast %437 : f32 to vector<8x8x128xf32>
    %439 = arith.mulf %438, %428 : vector<8x8x128xf32>
    %440 = arith.addf %426, %439 : vector<8x8x128xf32>
    %c9_430 = arith.constant 9 : index
    %c0_431 = arith.constant 0 : index
    %c0_432 = arith.constant 0 : index
    %c0_433 = arith.constant 0 : index
    %441 = vector.load %arg7[%c9_430, %c0_431, %c0_432, %c0_433] : memref<25x8x8x128xf32, #tpu.memory_space<vmem>>, vector<1x8x8x128xf32>
    %442 = vector.shape_cast %441 : vector<1x8x8x128xf32> to vector<8x8x128xf32>
    %c0_434 = arith.constant 0 : index
    %c5_435 = arith.constant 5 : index
    %443 = memref.load %arg2[%c0_434, %c5_435] : memref<3x9xf32, #tpu.memory_space<smem>>
    %444 = vector.broadcast %443 : f32 to vector<8x8x128xf32>
    %445 = arith.mulf %444, %442 : vector<8x8x128xf32>
    %446 = arith.addf %432, %445 : vector<8x8x128xf32>
    %c1_436 = arith.constant 1 : index
    %c5_437 = arith.constant 5 : index
    %447 = memref.load %arg2[%c1_436, %c5_437] : memref<3x9xf32, #tpu.memory_space<smem>>
    %448 = vector.broadcast %447 : f32 to vector<8x8x128xf32>
    %449 = arith.mulf %448, %442 : vector<8x8x128xf32>
    %450 = arith.addf %436, %449 : vector<8x8x128xf32>
    %c2_438 = arith.constant 2 : index
    %c5_439 = arith.constant 5 : index
    %451 = memref.load %arg2[%c2_438, %c5_439] : memref<3x9xf32, #tpu.memory_space<smem>>
    %452 = vector.broadcast %451 : f32 to vector<8x8x128xf32>
    %453 = arith.mulf %452, %442 : vector<8x8x128xf32>
    %454 = arith.addf %440, %453 : vector<8x8x128xf32>
    %c12_440 = arith.constant 12 : index
    %c0_441 = arith.constant 0 : index
    %c0_442 = arith.constant 0 : index
    %c0_443 = arith.constant 0 : index
    %455 = vector.load %arg7[%c12_440, %c0_441, %c0_442, %c0_443] : memref<25x8x8x128xf32, #tpu.memory_space<vmem>>, vector<1x8x8x128xf32>
    %456 = vector.shape_cast %455 : vector<1x8x8x128xf32> to vector<8x8x128xf32>
    %c0_444 = arith.constant 0 : index
    %c6_445 = arith.constant 6 : index
    %457 = memref.load %arg2[%c0_444, %c6_445] : memref<3x9xf32, #tpu.memory_space<smem>>
    %458 = vector.broadcast %457 : f32 to vector<8x8x128xf32>
    %459 = arith.mulf %458, %456 : vector<8x8x128xf32>
    %460 = arith.addf %446, %459 : vector<8x8x128xf32>
    %c1_446 = arith.constant 1 : index
    %c6_447 = arith.constant 6 : index
    %461 = memref.load %arg2[%c1_446, %c6_447] : memref<3x9xf32, #tpu.memory_space<smem>>
    %462 = vector.broadcast %461 : f32 to vector<8x8x128xf32>
    %463 = arith.mulf %462, %456 : vector<8x8x128xf32>
    %464 = arith.addf %450, %463 : vector<8x8x128xf32>
    %c2_448 = arith.constant 2 : index
    %c6_449 = arith.constant 6 : index
    %465 = memref.load %arg2[%c2_448, %c6_449] : memref<3x9xf32, #tpu.memory_space<smem>>
    %466 = vector.broadcast %465 : f32 to vector<8x8x128xf32>
    %467 = arith.mulf %466, %456 : vector<8x8x128xf32>
    %468 = arith.addf %454, %467 : vector<8x8x128xf32>
    %c13_450 = arith.constant 13 : index
    %c0_451 = arith.constant 0 : index
    %c0_452 = arith.constant 0 : index
    %c0_453 = arith.constant 0 : index
    %469 = vector.load %arg7[%c13_450, %c0_451, %c0_452, %c0_453] : memref<25x8x8x128xf32, #tpu.memory_space<vmem>>, vector<1x8x8x128xf32>
    %470 = vector.shape_cast %469 : vector<1x8x8x128xf32> to vector<8x8x128xf32>
    %c0_454 = arith.constant 0 : index
    %c7_455 = arith.constant 7 : index
    %471 = memref.load %arg2[%c0_454, %c7_455] : memref<3x9xf32, #tpu.memory_space<smem>>
    %472 = vector.broadcast %471 : f32 to vector<8x8x128xf32>
    %473 = arith.mulf %472, %470 : vector<8x8x128xf32>
    %474 = arith.addf %460, %473 : vector<8x8x128xf32>
    %c1_456 = arith.constant 1 : index
    %c7_457 = arith.constant 7 : index
    %475 = memref.load %arg2[%c1_456, %c7_457] : memref<3x9xf32, #tpu.memory_space<smem>>
    %476 = vector.broadcast %475 : f32 to vector<8x8x128xf32>
    %477 = arith.mulf %476, %470 : vector<8x8x128xf32>
    %478 = arith.addf %464, %477 : vector<8x8x128xf32>
    %c2_458 = arith.constant 2 : index
    %c7_459 = arith.constant 7 : index
    %479 = memref.load %arg2[%c2_458, %c7_459] : memref<3x9xf32, #tpu.memory_space<smem>>
    %480 = vector.broadcast %479 : f32 to vector<8x8x128xf32>
    %481 = arith.mulf %480, %470 : vector<8x8x128xf32>
    %482 = arith.addf %468, %481 : vector<8x8x128xf32>
    %c14_460 = arith.constant 14 : index
    %c0_461 = arith.constant 0 : index
    %c0_462 = arith.constant 0 : index
    %c0_463 = arith.constant 0 : index
    %483 = vector.load %arg7[%c14_460, %c0_461, %c0_462, %c0_463] : memref<25x8x8x128xf32, #tpu.memory_space<vmem>>, vector<1x8x8x128xf32>
    %484 = vector.shape_cast %483 : vector<1x8x8x128xf32> to vector<8x8x128xf32>
    %c0_464 = arith.constant 0 : index
    %c8_465 = arith.constant 8 : index
    %485 = memref.load %arg2[%c0_464, %c8_465] : memref<3x9xf32, #tpu.memory_space<smem>>
    %486 = vector.broadcast %485 : f32 to vector<8x8x128xf32>
    %487 = arith.mulf %486, %484 : vector<8x8x128xf32>
    %488 = arith.addf %474, %487 : vector<8x8x128xf32>
    %c1_466 = arith.constant 1 : index
    %c8_467 = arith.constant 8 : index
    %489 = memref.load %arg2[%c1_466, %c8_467] : memref<3x9xf32, #tpu.memory_space<smem>>
    %490 = vector.broadcast %489 : f32 to vector<8x8x128xf32>
    %491 = arith.mulf %490, %484 : vector<8x8x128xf32>
    %492 = arith.addf %478, %491 : vector<8x8x128xf32>
    %c2_468 = arith.constant 2 : index
    %c8_469 = arith.constant 8 : index
    %493 = memref.load %arg2[%c2_468, %c8_469] : memref<3x9xf32, #tpu.memory_space<smem>>
    %494 = vector.broadcast %493 : f32 to vector<8x8x128xf32>
    %495 = arith.mulf %494, %484 : vector<8x8x128xf32>
    %496 = arith.addf %482, %495 : vector<8x8x128xf32>
    %497 = arith.maximumf %371, %488 : vector<8x8x128xf32>
    %498 = arith.maximumf %372, %492 : vector<8x8x128xf32>
    %499 = arith.maximumf %373, %496 : vector<8x8x128xf32>
    %c5_470 = arith.constant 5 : index
    %c0_471 = arith.constant 0 : index
    %c0_472 = arith.constant 0 : index
    %c0_473 = arith.constant 0 : index
    %500 = vector.load %arg7[%c5_470, %c0_471, %c0_472, %c0_473] : memref<25x8x8x128xf32, #tpu.memory_space<vmem>>, vector<1x8x8x128xf32>
    %501 = vector.shape_cast %500 : vector<1x8x8x128xf32> to vector<8x8x128xf32>
    %c0_474 = arith.constant 0 : index
    %c0_475 = arith.constant 0 : index
    %502 = memref.load %arg2[%c0_474, %c0_475] : memref<3x9xf32, #tpu.memory_space<smem>>
    %503 = vector.broadcast %502 : f32 to vector<8x8x128xf32>
    %504 = arith.mulf %503, %501 : vector<8x8x128xf32>
    %c1_476 = arith.constant 1 : index
    %c0_477 = arith.constant 0 : index
    %505 = memref.load %arg2[%c1_476, %c0_477] : memref<3x9xf32, #tpu.memory_space<smem>>
    %506 = vector.broadcast %505 : f32 to vector<8x8x128xf32>
    %507 = arith.mulf %506, %501 : vector<8x8x128xf32>
    %c2_478 = arith.constant 2 : index
    %c0_479 = arith.constant 0 : index
    %508 = memref.load %arg2[%c2_478, %c0_479] : memref<3x9xf32, #tpu.memory_space<smem>>
    %509 = vector.broadcast %508 : f32 to vector<8x8x128xf32>
    %510 = arith.mulf %509, %501 : vector<8x8x128xf32>
    %c6_480 = arith.constant 6 : index
    %c0_481 = arith.constant 0 : index
    %c0_482 = arith.constant 0 : index
    %c0_483 = arith.constant 0 : index
    %511 = vector.load %arg7[%c6_480, %c0_481, %c0_482, %c0_483] : memref<25x8x8x128xf32, #tpu.memory_space<vmem>>, vector<1x8x8x128xf32>
    %512 = vector.shape_cast %511 : vector<1x8x8x128xf32> to vector<8x8x128xf32>
    %c0_484 = arith.constant 0 : index
    %c1_485 = arith.constant 1 : index
    %513 = memref.load %arg2[%c0_484, %c1_485] : memref<3x9xf32, #tpu.memory_space<smem>>
    %514 = vector.broadcast %513 : f32 to vector<8x8x128xf32>
    %515 = arith.mulf %514, %512 : vector<8x8x128xf32>
    %516 = arith.addf %504, %515 : vector<8x8x128xf32>
    %c1_486 = arith.constant 1 : index
    %c1_487 = arith.constant 1 : index
    %517 = memref.load %arg2[%c1_486, %c1_487] : memref<3x9xf32, #tpu.memory_space<smem>>
    %518 = vector.broadcast %517 : f32 to vector<8x8x128xf32>
    %519 = arith.mulf %518, %512 : vector<8x8x128xf32>
    %520 = arith.addf %507, %519 : vector<8x8x128xf32>
    %c2_488 = arith.constant 2 : index
    %c1_489 = arith.constant 1 : index
    %521 = memref.load %arg2[%c2_488, %c1_489] : memref<3x9xf32, #tpu.memory_space<smem>>
    %522 = vector.broadcast %521 : f32 to vector<8x8x128xf32>
    %523 = arith.mulf %522, %512 : vector<8x8x128xf32>
    %524 = arith.addf %510, %523 : vector<8x8x128xf32>
    %c7_490 = arith.constant 7 : index
    %c0_491 = arith.constant 0 : index
    %c0_492 = arith.constant 0 : index
    %c0_493 = arith.constant 0 : index
    %525 = vector.load %arg7[%c7_490, %c0_491, %c0_492, %c0_493] : memref<25x8x8x128xf32, #tpu.memory_space<vmem>>, vector<1x8x8x128xf32>
    %526 = vector.shape_cast %525 : vector<1x8x8x128xf32> to vector<8x8x128xf32>
    %c0_494 = arith.constant 0 : index
    %c2_495 = arith.constant 2 : index
    %527 = memref.load %arg2[%c0_494, %c2_495] : memref<3x9xf32, #tpu.memory_space<smem>>
    %528 = vector.broadcast %527 : f32 to vector<8x8x128xf32>
    %529 = arith.mulf %528, %526 : vector<8x8x128xf32>
    %530 = arith.addf %516, %529 : vector<8x8x128xf32>
    %c1_496 = arith.constant 1 : index
    %c2_497 = arith.constant 2 : index
    %531 = memref.load %arg2[%c1_496, %c2_497] : memref<3x9xf32, #tpu.memory_space<smem>>
    %532 = vector.broadcast %531 : f32 to vector<8x8x128xf32>
    %533 = arith.mulf %532, %526 : vector<8x8x128xf32>
    %534 = arith.addf %520, %533 : vector<8x8x128xf32>
    %c2_498 = arith.constant 2 : index
    %c2_499 = arith.constant 2 : index
    %535 = memref.load %arg2[%c2_498, %c2_499] : memref<3x9xf32, #tpu.memory_space<smem>>
    %536 = vector.broadcast %535 : f32 to vector<8x8x128xf32>
    %537 = arith.mulf %536, %526 : vector<8x8x128xf32>
    %538 = arith.addf %524, %537 : vector<8x8x128xf32>
    %c10_500 = arith.constant 10 : index
    %c0_501 = arith.constant 0 : index
    %c0_502 = arith.constant 0 : index
    %c0_503 = arith.constant 0 : index
    %539 = vector.load %arg7[%c10_500, %c0_501, %c0_502, %c0_503] : memref<25x8x8x128xf32, #tpu.memory_space<vmem>>, vector<1x8x8x128xf32>
    %540 = vector.shape_cast %539 : vector<1x8x8x128xf32> to vector<8x8x128xf32>
    %c0_504 = arith.constant 0 : index
    %c3_505 = arith.constant 3 : index
    %541 = memref.load %arg2[%c0_504, %c3_505] : memref<3x9xf32, #tpu.memory_space<smem>>
    %542 = vector.broadcast %541 : f32 to vector<8x8x128xf32>
    %543 = arith.mulf %542, %540 : vector<8x8x128xf32>
    %544 = arith.addf %530, %543 : vector<8x8x128xf32>
    %c1_506 = arith.constant 1 : index
    %c3_507 = arith.constant 3 : index
    %545 = memref.load %arg2[%c1_506, %c3_507] : memref<3x9xf32, #tpu.memory_space<smem>>
    %546 = vector.broadcast %545 : f32 to vector<8x8x128xf32>
    %547 = arith.mulf %546, %540 : vector<8x8x128xf32>
    %548 = arith.addf %534, %547 : vector<8x8x128xf32>
    %c2_508 = arith.constant 2 : index
    %c3_509 = arith.constant 3 : index
    %549 = memref.load %arg2[%c2_508, %c3_509] : memref<3x9xf32, #tpu.memory_space<smem>>
    %550 = vector.broadcast %549 : f32 to vector<8x8x128xf32>
    %551 = arith.mulf %550, %540 : vector<8x8x128xf32>
    %552 = arith.addf %538, %551 : vector<8x8x128xf32>
    %c11_510 = arith.constant 11 : index
    %c0_511 = arith.constant 0 : index
    %c0_512 = arith.constant 0 : index
    %c0_513 = arith.constant 0 : index
    %553 = vector.load %arg7[%c11_510, %c0_511, %c0_512, %c0_513] : memref<25x8x8x128xf32, #tpu.memory_space<vmem>>, vector<1x8x8x128xf32>
    %554 = vector.shape_cast %553 : vector<1x8x8x128xf32> to vector<8x8x128xf32>
    %c0_514 = arith.constant 0 : index
    %c4_515 = arith.constant 4 : index
    %555 = memref.load %arg2[%c0_514, %c4_515] : memref<3x9xf32, #tpu.memory_space<smem>>
    %556 = vector.broadcast %555 : f32 to vector<8x8x128xf32>
    %557 = arith.mulf %556, %554 : vector<8x8x128xf32>
    %558 = arith.addf %544, %557 : vector<8x8x128xf32>
    %c1_516 = arith.constant 1 : index
    %c4_517 = arith.constant 4 : index
    %559 = memref.load %arg2[%c1_516, %c4_517] : memref<3x9xf32, #tpu.memory_space<smem>>
    %560 = vector.broadcast %559 : f32 to vector<8x8x128xf32>
    %561 = arith.mulf %560, %554 : vector<8x8x128xf32>
    %562 = arith.addf %548, %561 : vector<8x8x128xf32>
    %c2_518 = arith.constant 2 : index
    %c4_519 = arith.constant 4 : index
    %563 = memref.load %arg2[%c2_518, %c4_519] : memref<3x9xf32, #tpu.memory_space<smem>>
    %564 = vector.broadcast %563 : f32 to vector<8x8x128xf32>
    %565 = arith.mulf %564, %554 : vector<8x8x128xf32>
    %566 = arith.addf %552, %565 : vector<8x8x128xf32>
    %c12_520 = arith.constant 12 : index
    %c0_521 = arith.constant 0 : index
    %c0_522 = arith.constant 0 : index
    %c0_523 = arith.constant 0 : index
    %567 = vector.load %arg7[%c12_520, %c0_521, %c0_522, %c0_523] : memref<25x8x8x128xf32, #tpu.memory_space<vmem>>, vector<1x8x8x128xf32>
    %568 = vector.shape_cast %567 : vector<1x8x8x128xf32> to vector<8x8x128xf32>
    %c0_524 = arith.constant 0 : index
    %c5_525 = arith.constant 5 : index
    %569 = memref.load %arg2[%c0_524, %c5_525] : memref<3x9xf32, #tpu.memory_space<smem>>
    %570 = vector.broadcast %569 : f32 to vector<8x8x128xf32>
    %571 = arith.mulf %570, %568 : vector<8x8x128xf32>
    %572 = arith.addf %558, %571 : vector<8x8x128xf32>
    %c1_526 = arith.constant 1 : index
    %c5_527 = arith.constant 5 : index
    %573 = memref.load %arg2[%c1_526, %c5_527] : memref<3x9xf32, #tpu.memory_space<smem>>
    %574 = vector.broadcast %573 : f32 to vector<8x8x128xf32>
    %575 = arith.mulf %574, %568 : vector<8x8x128xf32>
    %576 = arith.addf %562, %575 : vector<8x8x128xf32>
    %c2_528 = arith.constant 2 : index
    %c5_529 = arith.constant 5 : index
    %577 = memref.load %arg2[%c2_528, %c5_529] : memref<3x9xf32, #tpu.memory_space<smem>>
    %578 = vector.broadcast %577 : f32 to vector<8x8x128xf32>
    %579 = arith.mulf %578, %568 : vector<8x8x128xf32>
    %580 = arith.addf %566, %579 : vector<8x8x128xf32>
    %c15_530 = arith.constant 15 : index
    %c0_531 = arith.constant 0 : index
    %c0_532 = arith.constant 0 : index
    %c0_533 = arith.constant 0 : index
    %581 = vector.load %arg7[%c15_530, %c0_531, %c0_532, %c0_533] : memref<25x8x8x128xf32, #tpu.memory_space<vmem>>, vector<1x8x8x128xf32>
    %582 = vector.shape_cast %581 : vector<1x8x8x128xf32> to vector<8x8x128xf32>
    %c0_534 = arith.constant 0 : index
    %c6_535 = arith.constant 6 : index
    %583 = memref.load %arg2[%c0_534, %c6_535] : memref<3x9xf32, #tpu.memory_space<smem>>
    %584 = vector.broadcast %583 : f32 to vector<8x8x128xf32>
    %585 = arith.mulf %584, %582 : vector<8x8x128xf32>
    %586 = arith.addf %572, %585 : vector<8x8x128xf32>
    %c1_536 = arith.constant 1 : index
    %c6_537 = arith.constant 6 : index
    %587 = memref.load %arg2[%c1_536, %c6_537] : memref<3x9xf32, #tpu.memory_space<smem>>
    %588 = vector.broadcast %587 : f32 to vector<8x8x128xf32>
    %589 = arith.mulf %588, %582 : vector<8x8x128xf32>
    %590 = arith.addf %576, %589 : vector<8x8x128xf32>
    %c2_538 = arith.constant 2 : index
    %c6_539 = arith.constant 6 : index
    %591 = memref.load %arg2[%c2_538, %c6_539] : memref<3x9xf32, #tpu.memory_space<smem>>
    %592 = vector.broadcast %591 : f32 to vector<8x8x128xf32>
    %593 = arith.mulf %592, %582 : vector<8x8x128xf32>
    %594 = arith.addf %580, %593 : vector<8x8x128xf32>
    %c16_540 = arith.constant 16 : index
    %c0_541 = arith.constant 0 : index
    %c0_542 = arith.constant 0 : index
    %c0_543 = arith.constant 0 : index
    %595 = vector.load %arg7[%c16_540, %c0_541, %c0_542, %c0_543] : memref<25x8x8x128xf32, #tpu.memory_space<vmem>>, vector<1x8x8x128xf32>
    %596 = vector.shape_cast %595 : vector<1x8x8x128xf32> to vector<8x8x128xf32>
    %c0_544 = arith.constant 0 : index
    %c7_545 = arith.constant 7 : index
    %597 = memref.load %arg2[%c0_544, %c7_545] : memref<3x9xf32, #tpu.memory_space<smem>>
    %598 = vector.broadcast %597 : f32 to vector<8x8x128xf32>
    %599 = arith.mulf %598, %596 : vector<8x8x128xf32>
    %600 = arith.addf %586, %599 : vector<8x8x128xf32>
    %c1_546 = arith.constant 1 : index
    %c7_547 = arith.constant 7 : index
    %601 = memref.load %arg2[%c1_546, %c7_547] : memref<3x9xf32, #tpu.memory_space<smem>>
    %602 = vector.broadcast %601 : f32 to vector<8x8x128xf32>
    %603 = arith.mulf %602, %596 : vector<8x8x128xf32>
    %604 = arith.addf %590, %603 : vector<8x8x128xf32>
    %c2_548 = arith.constant 2 : index
    %c7_549 = arith.constant 7 : index
    %605 = memref.load %arg2[%c2_548, %c7_549] : memref<3x9xf32, #tpu.memory_space<smem>>
    %606 = vector.broadcast %605 : f32 to vector<8x8x128xf32>
    %607 = arith.mulf %606, %596 : vector<8x8x128xf32>
    %608 = arith.addf %594, %607 : vector<8x8x128xf32>
    %c17_550 = arith.constant 17 : index
    %c0_551 = arith.constant 0 : index
    %c0_552 = arith.constant 0 : index
    %c0_553 = arith.constant 0 : index
    %609 = vector.load %arg7[%c17_550, %c0_551, %c0_552, %c0_553] : memref<25x8x8x128xf32, #tpu.memory_space<vmem>>, vector<1x8x8x128xf32>
    %610 = vector.shape_cast %609 : vector<1x8x8x128xf32> to vector<8x8x128xf32>
    %c0_554 = arith.constant 0 : index
    %c8_555 = arith.constant 8 : index
    %611 = memref.load %arg2[%c0_554, %c8_555] : memref<3x9xf32, #tpu.memory_space<smem>>
    %612 = vector.broadcast %611 : f32 to vector<8x8x128xf32>
    %613 = arith.mulf %612, %610 : vector<8x8x128xf32>
    %614 = arith.addf %600, %613 : vector<8x8x128xf32>
    %c1_556 = arith.constant 1 : index
    %c8_557 = arith.constant 8 : index
    %615 = memref.load %arg2[%c1_556, %c8_557] : memref<3x9xf32, #tpu.memory_space<smem>>
    %616 = vector.broadcast %615 : f32 to vector<8x8x128xf32>
    %617 = arith.mulf %616, %610 : vector<8x8x128xf32>
    %618 = arith.addf %604, %617 : vector<8x8x128xf32>
    %c2_558 = arith.constant 2 : index
    %c8_559 = arith.constant 8 : index
    %619 = memref.load %arg2[%c2_558, %c8_559] : memref<3x9xf32, #tpu.memory_space<smem>>
    %620 = vector.broadcast %619 : f32 to vector<8x8x128xf32>
    %621 = arith.mulf %620, %610 : vector<8x8x128xf32>
    %622 = arith.addf %608, %621 : vector<8x8x128xf32>
    %623 = arith.maximumf %497, %614 : vector<8x8x128xf32>
    %624 = arith.maximumf %498, %618 : vector<8x8x128xf32>
    %625 = arith.maximumf %499, %622 : vector<8x8x128xf32>
    %c6_560 = arith.constant 6 : index
    %c0_561 = arith.constant 0 : index
    %c0_562 = arith.constant 0 : index
    %c0_563 = arith.constant 0 : index
    %626 = vector.load %arg7[%c6_560, %c0_561, %c0_562, %c0_563] : memref<25x8x8x128xf32, #tpu.memory_space<vmem>>, vector<1x8x8x128xf32>
    %627 = vector.shape_cast %626 : vector<1x8x8x128xf32> to vector<8x8x128xf32>
    %c0_564 = arith.constant 0 : index
    %c0_565 = arith.constant 0 : index
    %628 = memref.load %arg2[%c0_564, %c0_565] : memref<3x9xf32, #tpu.memory_space<smem>>
    %629 = vector.broadcast %628 : f32 to vector<8x8x128xf32>
    %630 = arith.mulf %629, %627 : vector<8x8x128xf32>
    %c1_566 = arith.constant 1 : index
    %c0_567 = arith.constant 0 : index
    %631 = memref.load %arg2[%c1_566, %c0_567] : memref<3x9xf32, #tpu.memory_space<smem>>
    %632 = vector.broadcast %631 : f32 to vector<8x8x128xf32>
    %633 = arith.mulf %632, %627 : vector<8x8x128xf32>
    %c2_568 = arith.constant 2 : index
    %c0_569 = arith.constant 0 : index
    %634 = memref.load %arg2[%c2_568, %c0_569] : memref<3x9xf32, #tpu.memory_space<smem>>
    %635 = vector.broadcast %634 : f32 to vector<8x8x128xf32>
    %636 = arith.mulf %635, %627 : vector<8x8x128xf32>
    %c7_570 = arith.constant 7 : index
    %c0_571 = arith.constant 0 : index
    %c0_572 = arith.constant 0 : index
    %c0_573 = arith.constant 0 : index
    %637 = vector.load %arg7[%c7_570, %c0_571, %c0_572, %c0_573] : memref<25x8x8x128xf32, #tpu.memory_space<vmem>>, vector<1x8x8x128xf32>
    %638 = vector.shape_cast %637 : vector<1x8x8x128xf32> to vector<8x8x128xf32>
    %c0_574 = arith.constant 0 : index
    %c1_575 = arith.constant 1 : index
    %639 = memref.load %arg2[%c0_574, %c1_575] : memref<3x9xf32, #tpu.memory_space<smem>>
    %640 = vector.broadcast %639 : f32 to vector<8x8x128xf32>
    %641 = arith.mulf %640, %638 : vector<8x8x128xf32>
    %642 = arith.addf %630, %641 : vector<8x8x128xf32>
    %c1_576 = arith.constant 1 : index
    %c1_577 = arith.constant 1 : index
    %643 = memref.load %arg2[%c1_576, %c1_577] : memref<3x9xf32, #tpu.memory_space<smem>>
    %644 = vector.broadcast %643 : f32 to vector<8x8x128xf32>
    %645 = arith.mulf %644, %638 : vector<8x8x128xf32>
    %646 = arith.addf %633, %645 : vector<8x8x128xf32>
    %c2_578 = arith.constant 2 : index
    %c1_579 = arith.constant 1 : index
    %647 = memref.load %arg2[%c2_578, %c1_579] : memref<3x9xf32, #tpu.memory_space<smem>>
    %648 = vector.broadcast %647 : f32 to vector<8x8x128xf32>
    %649 = arith.mulf %648, %638 : vector<8x8x128xf32>
    %650 = arith.addf %636, %649 : vector<8x8x128xf32>
    %c8_580 = arith.constant 8 : index
    %c0_581 = arith.constant 0 : index
    %c0_582 = arith.constant 0 : index
    %c0_583 = arith.constant 0 : index
    %651 = vector.load %arg7[%c8_580, %c0_581, %c0_582, %c0_583] : memref<25x8x8x128xf32, #tpu.memory_space<vmem>>, vector<1x8x8x128xf32>
    %652 = vector.shape_cast %651 : vector<1x8x8x128xf32> to vector<8x8x128xf32>
    %c0_584 = arith.constant 0 : index
    %c2_585 = arith.constant 2 : index
    %653 = memref.load %arg2[%c0_584, %c2_585] : memref<3x9xf32, #tpu.memory_space<smem>>
    %654 = vector.broadcast %653 : f32 to vector<8x8x128xf32>
    %655 = arith.mulf %654, %652 : vector<8x8x128xf32>
    %656 = arith.addf %642, %655 : vector<8x8x128xf32>
    %c1_586 = arith.constant 1 : index
    %c2_587 = arith.constant 2 : index
    %657 = memref.load %arg2[%c1_586, %c2_587] : memref<3x9xf32, #tpu.memory_space<smem>>
    %658 = vector.broadcast %657 : f32 to vector<8x8x128xf32>
    %659 = arith.mulf %658, %652 : vector<8x8x128xf32>
    %660 = arith.addf %646, %659 : vector<8x8x128xf32>
    %c2_588 = arith.constant 2 : index
    %c2_589 = arith.constant 2 : index
    %661 = memref.load %arg2[%c2_588, %c2_589] : memref<3x9xf32, #tpu.memory_space<smem>>
    %662 = vector.broadcast %661 : f32 to vector<8x8x128xf32>
    %663 = arith.mulf %662, %652 : vector<8x8x128xf32>
    %664 = arith.addf %650, %663 : vector<8x8x128xf32>
    %c11_590 = arith.constant 11 : index
    %c0_591 = arith.constant 0 : index
    %c0_592 = arith.constant 0 : index
    %c0_593 = arith.constant 0 : index
    %665 = vector.load %arg7[%c11_590, %c0_591, %c0_592, %c0_593] : memref<25x8x8x128xf32, #tpu.memory_space<vmem>>, vector<1x8x8x128xf32>
    %666 = vector.shape_cast %665 : vector<1x8x8x128xf32> to vector<8x8x128xf32>
    %c0_594 = arith.constant 0 : index
    %c3_595 = arith.constant 3 : index
    %667 = memref.load %arg2[%c0_594, %c3_595] : memref<3x9xf32, #tpu.memory_space<smem>>
    %668 = vector.broadcast %667 : f32 to vector<8x8x128xf32>
    %669 = arith.mulf %668, %666 : vector<8x8x128xf32>
    %670 = arith.addf %656, %669 : vector<8x8x128xf32>
    %c1_596 = arith.constant 1 : index
    %c3_597 = arith.constant 3 : index
    %671 = memref.load %arg2[%c1_596, %c3_597] : memref<3x9xf32, #tpu.memory_space<smem>>
    %672 = vector.broadcast %671 : f32 to vector<8x8x128xf32>
    %673 = arith.mulf %672, %666 : vector<8x8x128xf32>
    %674 = arith.addf %660, %673 : vector<8x8x128xf32>
    %c2_598 = arith.constant 2 : index
    %c3_599 = arith.constant 3 : index
    %675 = memref.load %arg2[%c2_598, %c3_599] : memref<3x9xf32, #tpu.memory_space<smem>>
    %676 = vector.broadcast %675 : f32 to vector<8x8x128xf32>
    %677 = arith.mulf %676, %666 : vector<8x8x128xf32>
    %678 = arith.addf %664, %677 : vector<8x8x128xf32>
    %c12_600 = arith.constant 12 : index
    %c0_601 = arith.constant 0 : index
    %c0_602 = arith.constant 0 : index
    %c0_603 = arith.constant 0 : index
    %679 = vector.load %arg7[%c12_600, %c0_601, %c0_602, %c0_603] : memref<25x8x8x128xf32, #tpu.memory_space<vmem>>, vector<1x8x8x128xf32>
    %680 = vector.shape_cast %679 : vector<1x8x8x128xf32> to vector<8x8x128xf32>
    %c0_604 = arith.constant 0 : index
    %c4_605 = arith.constant 4 : index
    %681 = memref.load %arg2[%c0_604, %c4_605] : memref<3x9xf32, #tpu.memory_space<smem>>
    %682 = vector.broadcast %681 : f32 to vector<8x8x128xf32>
    %683 = arith.mulf %682, %680 : vector<8x8x128xf32>
    %684 = arith.addf %670, %683 : vector<8x8x128xf32>
    %c1_606 = arith.constant 1 : index
    %c4_607 = arith.constant 4 : index
    %685 = memref.load %arg2[%c1_606, %c4_607] : memref<3x9xf32, #tpu.memory_space<smem>>
    %686 = vector.broadcast %685 : f32 to vector<8x8x128xf32>
    %687 = arith.mulf %686, %680 : vector<8x8x128xf32>
    %688 = arith.addf %674, %687 : vector<8x8x128xf32>
    %c2_608 = arith.constant 2 : index
    %c4_609 = arith.constant 4 : index
    %689 = memref.load %arg2[%c2_608, %c4_609] : memref<3x9xf32, #tpu.memory_space<smem>>
    %690 = vector.broadcast %689 : f32 to vector<8x8x128xf32>
    %691 = arith.mulf %690, %680 : vector<8x8x128xf32>
    %692 = arith.addf %678, %691 : vector<8x8x128xf32>
    %c13_610 = arith.constant 13 : index
    %c0_611 = arith.constant 0 : index
    %c0_612 = arith.constant 0 : index
    %c0_613 = arith.constant 0 : index
    %693 = vector.load %arg7[%c13_610, %c0_611, %c0_612, %c0_613] : memref<25x8x8x128xf32, #tpu.memory_space<vmem>>, vector<1x8x8x128xf32>
    %694 = vector.shape_cast %693 : vector<1x8x8x128xf32> to vector<8x8x128xf32>
    %c0_614 = arith.constant 0 : index
    %c5_615 = arith.constant 5 : index
    %695 = memref.load %arg2[%c0_614, %c5_615] : memref<3x9xf32, #tpu.memory_space<smem>>
    %696 = vector.broadcast %695 : f32 to vector<8x8x128xf32>
    %697 = arith.mulf %696, %694 : vector<8x8x128xf32>
    %698 = arith.addf %684, %697 : vector<8x8x128xf32>
    %c1_616 = arith.constant 1 : index
    %c5_617 = arith.constant 5 : index
    %699 = memref.load %arg2[%c1_616, %c5_617] : memref<3x9xf32, #tpu.memory_space<smem>>
    %700 = vector.broadcast %699 : f32 to vector<8x8x128xf32>
    %701 = arith.mulf %700, %694 : vector<8x8x128xf32>
    %702 = arith.addf %688, %701 : vector<8x8x128xf32>
    %c2_618 = arith.constant 2 : index
    %c5_619 = arith.constant 5 : index
    %703 = memref.load %arg2[%c2_618, %c5_619] : memref<3x9xf32, #tpu.memory_space<smem>>
    %704 = vector.broadcast %703 : f32 to vector<8x8x128xf32>
    %705 = arith.mulf %704, %694 : vector<8x8x128xf32>
    %706 = arith.addf %692, %705 : vector<8x8x128xf32>
    %c16_620 = arith.constant 16 : index
    %c0_621 = arith.constant 0 : index
    %c0_622 = arith.constant 0 : index
    %c0_623 = arith.constant 0 : index
    %707 = vector.load %arg7[%c16_620, %c0_621, %c0_622, %c0_623] : memref<25x8x8x128xf32, #tpu.memory_space<vmem>>, vector<1x8x8x128xf32>
    %708 = vector.shape_cast %707 : vector<1x8x8x128xf32> to vector<8x8x128xf32>
    %c0_624 = arith.constant 0 : index
    %c6_625 = arith.constant 6 : index
    %709 = memref.load %arg2[%c0_624, %c6_625] : memref<3x9xf32, #tpu.memory_space<smem>>
    %710 = vector.broadcast %709 : f32 to vector<8x8x128xf32>
    %711 = arith.mulf %710, %708 : vector<8x8x128xf32>
    %712 = arith.addf %698, %711 : vector<8x8x128xf32>
    %c1_626 = arith.constant 1 : index
    %c6_627 = arith.constant 6 : index
    %713 = memref.load %arg2[%c1_626, %c6_627] : memref<3x9xf32, #tpu.memory_space<smem>>
    %714 = vector.broadcast %713 : f32 to vector<8x8x128xf32>
    %715 = arith.mulf %714, %708 : vector<8x8x128xf32>
    %716 = arith.addf %702, %715 : vector<8x8x128xf32>
    %c2_628 = arith.constant 2 : index
    %c6_629 = arith.constant 6 : index
    %717 = memref.load %arg2[%c2_628, %c6_629] : memref<3x9xf32, #tpu.memory_space<smem>>
    %718 = vector.broadcast %717 : f32 to vector<8x8x128xf32>
    %719 = arith.mulf %718, %708 : vector<8x8x128xf32>
    %720 = arith.addf %706, %719 : vector<8x8x128xf32>
    %c17_630 = arith.constant 17 : index
    %c0_631 = arith.constant 0 : index
    %c0_632 = arith.constant 0 : index
    %c0_633 = arith.constant 0 : index
    %721 = vector.load %arg7[%c17_630, %c0_631, %c0_632, %c0_633] : memref<25x8x8x128xf32, #tpu.memory_space<vmem>>, vector<1x8x8x128xf32>
    %722 = vector.shape_cast %721 : vector<1x8x8x128xf32> to vector<8x8x128xf32>
    %c0_634 = arith.constant 0 : index
    %c7_635 = arith.constant 7 : index
    %723 = memref.load %arg2[%c0_634, %c7_635] : memref<3x9xf32, #tpu.memory_space<smem>>
    %724 = vector.broadcast %723 : f32 to vector<8x8x128xf32>
    %725 = arith.mulf %724, %722 : vector<8x8x128xf32>
    %726 = arith.addf %712, %725 : vector<8x8x128xf32>
    %c1_636 = arith.constant 1 : index
    %c7_637 = arith.constant 7 : index
    %727 = memref.load %arg2[%c1_636, %c7_637] : memref<3x9xf32, #tpu.memory_space<smem>>
    %728 = vector.broadcast %727 : f32 to vector<8x8x128xf32>
    %729 = arith.mulf %728, %722 : vector<8x8x128xf32>
    %730 = arith.addf %716, %729 : vector<8x8x128xf32>
    %c2_638 = arith.constant 2 : index
    %c7_639 = arith.constant 7 : index
    %731 = memref.load %arg2[%c2_638, %c7_639] : memref<3x9xf32, #tpu.memory_space<smem>>
    %732 = vector.broadcast %731 : f32 to vector<8x8x128xf32>
    %733 = arith.mulf %732, %722 : vector<8x8x128xf32>
    %734 = arith.addf %720, %733 : vector<8x8x128xf32>
    %c18_640 = arith.constant 18 : index
    %c0_641 = arith.constant 0 : index
    %c0_642 = arith.constant 0 : index
    %c0_643 = arith.constant 0 : index
    %735 = vector.load %arg7[%c18_640, %c0_641, %c0_642, %c0_643] : memref<25x8x8x128xf32, #tpu.memory_space<vmem>>, vector<1x8x8x128xf32>
    %736 = vector.shape_cast %735 : vector<1x8x8x128xf32> to vector<8x8x128xf32>
    %c0_644 = arith.constant 0 : index
    %c8_645 = arith.constant 8 : index
    %737 = memref.load %arg2[%c0_644, %c8_645] : memref<3x9xf32, #tpu.memory_space<smem>>
    %738 = vector.broadcast %737 : f32 to vector<8x8x128xf32>
    %739 = arith.mulf %738, %736 : vector<8x8x128xf32>
    %740 = arith.addf %726, %739 : vector<8x8x128xf32>
    %c1_646 = arith.constant 1 : index
    %c8_647 = arith.constant 8 : index
    %741 = memref.load %arg2[%c1_646, %c8_647] : memref<3x9xf32, #tpu.memory_space<smem>>
    %742 = vector.broadcast %741 : f32 to vector<8x8x128xf32>
    %743 = arith.mulf %742, %736 : vector<8x8x128xf32>
    %744 = arith.addf %730, %743 : vector<8x8x128xf32>
    %c2_648 = arith.constant 2 : index
    %c8_649 = arith.constant 8 : index
    %745 = memref.load %arg2[%c2_648, %c8_649] : memref<3x9xf32, #tpu.memory_space<smem>>
    %746 = vector.broadcast %745 : f32 to vector<8x8x128xf32>
    %747 = arith.mulf %746, %736 : vector<8x8x128xf32>
    %748 = arith.addf %734, %747 : vector<8x8x128xf32>
    %749 = arith.maximumf %623, %740 : vector<8x8x128xf32>
    %750 = arith.maximumf %624, %744 : vector<8x8x128xf32>
    %751 = arith.maximumf %625, %748 : vector<8x8x128xf32>
    %c7_650 = arith.constant 7 : index
    %c0_651 = arith.constant 0 : index
    %c0_652 = arith.constant 0 : index
    %c0_653 = arith.constant 0 : index
    %752 = vector.load %arg7[%c7_650, %c0_651, %c0_652, %c0_653] : memref<25x8x8x128xf32, #tpu.memory_space<vmem>>, vector<1x8x8x128xf32>
    %753 = vector.shape_cast %752 : vector<1x8x8x128xf32> to vector<8x8x128xf32>
    %c0_654 = arith.constant 0 : index
    %c0_655 = arith.constant 0 : index
    %754 = memref.load %arg2[%c0_654, %c0_655] : memref<3x9xf32, #tpu.memory_space<smem>>
    %755 = vector.broadcast %754 : f32 to vector<8x8x128xf32>
    %756 = arith.mulf %755, %753 : vector<8x8x128xf32>
    %c1_656 = arith.constant 1 : index
    %c0_657 = arith.constant 0 : index
    %757 = memref.load %arg2[%c1_656, %c0_657] : memref<3x9xf32, #tpu.memory_space<smem>>
    %758 = vector.broadcast %757 : f32 to vector<8x8x128xf32>
    %759 = arith.mulf %758, %753 : vector<8x8x128xf32>
    %c2_658 = arith.constant 2 : index
    %c0_659 = arith.constant 0 : index
    %760 = memref.load %arg2[%c2_658, %c0_659] : memref<3x9xf32, #tpu.memory_space<smem>>
    %761 = vector.broadcast %760 : f32 to vector<8x8x128xf32>
    %762 = arith.mulf %761, %753 : vector<8x8x128xf32>
    %c8_660 = arith.constant 8 : index
    %c0_661 = arith.constant 0 : index
    %c0_662 = arith.constant 0 : index
    %c0_663 = arith.constant 0 : index
    %763 = vector.load %arg7[%c8_660, %c0_661, %c0_662, %c0_663] : memref<25x8x8x128xf32, #tpu.memory_space<vmem>>, vector<1x8x8x128xf32>
    %764 = vector.shape_cast %763 : vector<1x8x8x128xf32> to vector<8x8x128xf32>
    %c0_664 = arith.constant 0 : index
    %c1_665 = arith.constant 1 : index
    %765 = memref.load %arg2[%c0_664, %c1_665] : memref<3x9xf32, #tpu.memory_space<smem>>
    %766 = vector.broadcast %765 : f32 to vector<8x8x128xf32>
    %767 = arith.mulf %766, %764 : vector<8x8x128xf32>
    %768 = arith.addf %756, %767 : vector<8x8x128xf32>
    %c1_666 = arith.constant 1 : index
    %c1_667 = arith.constant 1 : index
    %769 = memref.load %arg2[%c1_666, %c1_667] : memref<3x9xf32, #tpu.memory_space<smem>>
    %770 = vector.broadcast %769 : f32 to vector<8x8x128xf32>
    %771 = arith.mulf %770, %764 : vector<8x8x128xf32>
    %772 = arith.addf %759, %771 : vector<8x8x128xf32>
    %c2_668 = arith.constant 2 : index
    %c1_669 = arith.constant 1 : index
    %773 = memref.load %arg2[%c2_668, %c1_669] : memref<3x9xf32, #tpu.memory_space<smem>>
    %774 = vector.broadcast %773 : f32 to vector<8x8x128xf32>
    %775 = arith.mulf %774, %764 : vector<8x8x128xf32>
    %776 = arith.addf %762, %775 : vector<8x8x128xf32>
    %c9_670 = arith.constant 9 : index
    %c0_671 = arith.constant 0 : index
    %c0_672 = arith.constant 0 : index
    %c0_673 = arith.constant 0 : index
    %777 = vector.load %arg7[%c9_670, %c0_671, %c0_672, %c0_673] : memref<25x8x8x128xf32, #tpu.memory_space<vmem>>, vector<1x8x8x128xf32>
    %778 = vector.shape_cast %777 : vector<1x8x8x128xf32> to vector<8x8x128xf32>
    %c0_674 = arith.constant 0 : index
    %c2_675 = arith.constant 2 : index
    %779 = memref.load %arg2[%c0_674, %c2_675] : memref<3x9xf32, #tpu.memory_space<smem>>
    %780 = vector.broadcast %779 : f32 to vector<8x8x128xf32>
    %781 = arith.mulf %780, %778 : vector<8x8x128xf32>
    %782 = arith.addf %768, %781 : vector<8x8x128xf32>
    %c1_676 = arith.constant 1 : index
    %c2_677 = arith.constant 2 : index
    %783 = memref.load %arg2[%c1_676, %c2_677] : memref<3x9xf32, #tpu.memory_space<smem>>
    %784 = vector.broadcast %783 : f32 to vector<8x8x128xf32>
    %785 = arith.mulf %784, %778 : vector<8x8x128xf32>
    %786 = arith.addf %772, %785 : vector<8x8x128xf32>
    %c2_678 = arith.constant 2 : index
    %c2_679 = arith.constant 2 : index
    %787 = memref.load %arg2[%c2_678, %c2_679] : memref<3x9xf32, #tpu.memory_space<smem>>
    %788 = vector.broadcast %787 : f32 to vector<8x8x128xf32>
    %789 = arith.mulf %788, %778 : vector<8x8x128xf32>
    %790 = arith.addf %776, %789 : vector<8x8x128xf32>
    %c12_680 = arith.constant 12 : index
    %c0_681 = arith.constant 0 : index
    %c0_682 = arith.constant 0 : index
    %c0_683 = arith.constant 0 : index
    %791 = vector.load %arg7[%c12_680, %c0_681, %c0_682, %c0_683] : memref<25x8x8x128xf32, #tpu.memory_space<vmem>>, vector<1x8x8x128xf32>
    %792 = vector.shape_cast %791 : vector<1x8x8x128xf32> to vector<8x8x128xf32>
    %c0_684 = arith.constant 0 : index
    %c3_685 = arith.constant 3 : index
    %793 = memref.load %arg2[%c0_684, %c3_685] : memref<3x9xf32, #tpu.memory_space<smem>>
    %794 = vector.broadcast %793 : f32 to vector<8x8x128xf32>
    %795 = arith.mulf %794, %792 : vector<8x8x128xf32>
    %796 = arith.addf %782, %795 : vector<8x8x128xf32>
    %c1_686 = arith.constant 1 : index
    %c3_687 = arith.constant 3 : index
    %797 = memref.load %arg2[%c1_686, %c3_687] : memref<3x9xf32, #tpu.memory_space<smem>>
    %798 = vector.broadcast %797 : f32 to vector<8x8x128xf32>
    %799 = arith.mulf %798, %792 : vector<8x8x128xf32>
    %800 = arith.addf %786, %799 : vector<8x8x128xf32>
    %c2_688 = arith.constant 2 : index
    %c3_689 = arith.constant 3 : index
    %801 = memref.load %arg2[%c2_688, %c3_689] : memref<3x9xf32, #tpu.memory_space<smem>>
    %802 = vector.broadcast %801 : f32 to vector<8x8x128xf32>
    %803 = arith.mulf %802, %792 : vector<8x8x128xf32>
    %804 = arith.addf %790, %803 : vector<8x8x128xf32>
    %c13_690 = arith.constant 13 : index
    %c0_691 = arith.constant 0 : index
    %c0_692 = arith.constant 0 : index
    %c0_693 = arith.constant 0 : index
    %805 = vector.load %arg7[%c13_690, %c0_691, %c0_692, %c0_693] : memref<25x8x8x128xf32, #tpu.memory_space<vmem>>, vector<1x8x8x128xf32>
    %806 = vector.shape_cast %805 : vector<1x8x8x128xf32> to vector<8x8x128xf32>
    %c0_694 = arith.constant 0 : index
    %c4_695 = arith.constant 4 : index
    %807 = memref.load %arg2[%c0_694, %c4_695] : memref<3x9xf32, #tpu.memory_space<smem>>
    %808 = vector.broadcast %807 : f32 to vector<8x8x128xf32>
    %809 = arith.mulf %808, %806 : vector<8x8x128xf32>
    %810 = arith.addf %796, %809 : vector<8x8x128xf32>
    %c1_696 = arith.constant 1 : index
    %c4_697 = arith.constant 4 : index
    %811 = memref.load %arg2[%c1_696, %c4_697] : memref<3x9xf32, #tpu.memory_space<smem>>
    %812 = vector.broadcast %811 : f32 to vector<8x8x128xf32>
    %813 = arith.mulf %812, %806 : vector<8x8x128xf32>
    %814 = arith.addf %800, %813 : vector<8x8x128xf32>
    %c2_698 = arith.constant 2 : index
    %c4_699 = arith.constant 4 : index
    %815 = memref.load %arg2[%c2_698, %c4_699] : memref<3x9xf32, #tpu.memory_space<smem>>
    %816 = vector.broadcast %815 : f32 to vector<8x8x128xf32>
    %817 = arith.mulf %816, %806 : vector<8x8x128xf32>
    %818 = arith.addf %804, %817 : vector<8x8x128xf32>
    %c14_700 = arith.constant 14 : index
    %c0_701 = arith.constant 0 : index
    %c0_702 = arith.constant 0 : index
    %c0_703 = arith.constant 0 : index
    %819 = vector.load %arg7[%c14_700, %c0_701, %c0_702, %c0_703] : memref<25x8x8x128xf32, #tpu.memory_space<vmem>>, vector<1x8x8x128xf32>
    %820 = vector.shape_cast %819 : vector<1x8x8x128xf32> to vector<8x8x128xf32>
    %c0_704 = arith.constant 0 : index
    %c5_705 = arith.constant 5 : index
    %821 = memref.load %arg2[%c0_704, %c5_705] : memref<3x9xf32, #tpu.memory_space<smem>>
    %822 = vector.broadcast %821 : f32 to vector<8x8x128xf32>
    %823 = arith.mulf %822, %820 : vector<8x8x128xf32>
    %824 = arith.addf %810, %823 : vector<8x8x128xf32>
    %c1_706 = arith.constant 1 : index
    %c5_707 = arith.constant 5 : index
    %825 = memref.load %arg2[%c1_706, %c5_707] : memref<3x9xf32, #tpu.memory_space<smem>>
    %826 = vector.broadcast %825 : f32 to vector<8x8x128xf32>
    %827 = arith.mulf %826, %820 : vector<8x8x128xf32>
    %828 = arith.addf %814, %827 : vector<8x8x128xf32>
    %c2_708 = arith.constant 2 : index
    %c5_709 = arith.constant 5 : index
    %829 = memref.load %arg2[%c2_708, %c5_709] : memref<3x9xf32, #tpu.memory_space<smem>>
    %830 = vector.broadcast %829 : f32 to vector<8x8x128xf32>
    %831 = arith.mulf %830, %820 : vector<8x8x128xf32>
    %832 = arith.addf %818, %831 : vector<8x8x128xf32>
    %c17_710 = arith.constant 17 : index
    %c0_711 = arith.constant 0 : index
    %c0_712 = arith.constant 0 : index
    %c0_713 = arith.constant 0 : index
    %833 = vector.load %arg7[%c17_710, %c0_711, %c0_712, %c0_713] : memref<25x8x8x128xf32, #tpu.memory_space<vmem>>, vector<1x8x8x128xf32>
    %834 = vector.shape_cast %833 : vector<1x8x8x128xf32> to vector<8x8x128xf32>
    %c0_714 = arith.constant 0 : index
    %c6_715 = arith.constant 6 : index
    %835 = memref.load %arg2[%c0_714, %c6_715] : memref<3x9xf32, #tpu.memory_space<smem>>
    %836 = vector.broadcast %835 : f32 to vector<8x8x128xf32>
    %837 = arith.mulf %836, %834 : vector<8x8x128xf32>
    %838 = arith.addf %824, %837 : vector<8x8x128xf32>
    %c1_716 = arith.constant 1 : index
    %c6_717 = arith.constant 6 : index
    %839 = memref.load %arg2[%c1_716, %c6_717] : memref<3x9xf32, #tpu.memory_space<smem>>
    %840 = vector.broadcast %839 : f32 to vector<8x8x128xf32>
    %841 = arith.mulf %840, %834 : vector<8x8x128xf32>
    %842 = arith.addf %828, %841 : vector<8x8x128xf32>
    %c2_718 = arith.constant 2 : index
    %c6_719 = arith.constant 6 : index
    %843 = memref.load %arg2[%c2_718, %c6_719] : memref<3x9xf32, #tpu.memory_space<smem>>
    %844 = vector.broadcast %843 : f32 to vector<8x8x128xf32>
    %845 = arith.mulf %844, %834 : vector<8x8x128xf32>
    %846 = arith.addf %832, %845 : vector<8x8x128xf32>
    %c18_720 = arith.constant 18 : index
    %c0_721 = arith.constant 0 : index
    %c0_722 = arith.constant 0 : index
    %c0_723 = arith.constant 0 : index
    %847 = vector.load %arg7[%c18_720, %c0_721, %c0_722, %c0_723] : memref<25x8x8x128xf32, #tpu.memory_space<vmem>>, vector<1x8x8x128xf32>
    %848 = vector.shape_cast %847 : vector<1x8x8x128xf32> to vector<8x8x128xf32>
    %c0_724 = arith.constant 0 : index
    %c7_725 = arith.constant 7 : index
    %849 = memref.load %arg2[%c0_724, %c7_725] : memref<3x9xf32, #tpu.memory_space<smem>>
    %850 = vector.broadcast %849 : f32 to vector<8x8x128xf32>
    %851 = arith.mulf %850, %848 : vector<8x8x128xf32>
    %852 = arith.addf %838, %851 : vector<8x8x128xf32>
    %c1_726 = arith.constant 1 : index
    %c7_727 = arith.constant 7 : index
    %853 = memref.load %arg2[%c1_726, %c7_727] : memref<3x9xf32, #tpu.memory_space<smem>>
    %854 = vector.broadcast %853 : f32 to vector<8x8x128xf32>
    %855 = arith.mulf %854, %848 : vector<8x8x128xf32>
    %856 = arith.addf %842, %855 : vector<8x8x128xf32>
    %c2_728 = arith.constant 2 : index
    %c7_729 = arith.constant 7 : index
    %857 = memref.load %arg2[%c2_728, %c7_729] : memref<3x9xf32, #tpu.memory_space<smem>>
    %858 = vector.broadcast %857 : f32 to vector<8x8x128xf32>
    %859 = arith.mulf %858, %848 : vector<8x8x128xf32>
    %860 = arith.addf %846, %859 : vector<8x8x128xf32>
    %c19_730 = arith.constant 19 : index
    %c0_731 = arith.constant 0 : index
    %c0_732 = arith.constant 0 : index
    %c0_733 = arith.constant 0 : index
    %861 = vector.load %arg7[%c19_730, %c0_731, %c0_732, %c0_733] : memref<25x8x8x128xf32, #tpu.memory_space<vmem>>, vector<1x8x8x128xf32>
    %862 = vector.shape_cast %861 : vector<1x8x8x128xf32> to vector<8x8x128xf32>
    %c0_734 = arith.constant 0 : index
    %c8_735 = arith.constant 8 : index
    %863 = memref.load %arg2[%c0_734, %c8_735] : memref<3x9xf32, #tpu.memory_space<smem>>
    %864 = vector.broadcast %863 : f32 to vector<8x8x128xf32>
    %865 = arith.mulf %864, %862 : vector<8x8x128xf32>
    %866 = arith.addf %852, %865 : vector<8x8x128xf32>
    %c1_736 = arith.constant 1 : index
    %c8_737 = arith.constant 8 : index
    %867 = memref.load %arg2[%c1_736, %c8_737] : memref<3x9xf32, #tpu.memory_space<smem>>
    %868 = vector.broadcast %867 : f32 to vector<8x8x128xf32>
    %869 = arith.mulf %868, %862 : vector<8x8x128xf32>
    %870 = arith.addf %856, %869 : vector<8x8x128xf32>
    %c2_738 = arith.constant 2 : index
    %c8_739 = arith.constant 8 : index
    %871 = memref.load %arg2[%c2_738, %c8_739] : memref<3x9xf32, #tpu.memory_space<smem>>
    %872 = vector.broadcast %871 : f32 to vector<8x8x128xf32>
    %873 = arith.mulf %872, %862 : vector<8x8x128xf32>
    %874 = arith.addf %860, %873 : vector<8x8x128xf32>
    %875 = arith.maximumf %749, %866 : vector<8x8x128xf32>
    %876 = arith.maximumf %750, %870 : vector<8x8x128xf32>
    %877 = arith.maximumf %751, %874 : vector<8x8x128xf32>
    %c10_740 = arith.constant 10 : index
    %c0_741 = arith.constant 0 : index
    %c0_742 = arith.constant 0 : index
    %c0_743 = arith.constant 0 : index
    %878 = vector.load %arg7[%c10_740, %c0_741, %c0_742, %c0_743] : memref<25x8x8x128xf32, #tpu.memory_space<vmem>>, vector<1x8x8x128xf32>
    %879 = vector.shape_cast %878 : vector<1x8x8x128xf32> to vector<8x8x128xf32>
    %c0_744 = arith.constant 0 : index
    %c0_745 = arith.constant 0 : index
    %880 = memref.load %arg2[%c0_744, %c0_745] : memref<3x9xf32, #tpu.memory_space<smem>>
    %881 = vector.broadcast %880 : f32 to vector<8x8x128xf32>
    %882 = arith.mulf %881, %879 : vector<8x8x128xf32>
    %c1_746 = arith.constant 1 : index
    %c0_747 = arith.constant 0 : index
    %883 = memref.load %arg2[%c1_746, %c0_747] : memref<3x9xf32, #tpu.memory_space<smem>>
    %884 = vector.broadcast %883 : f32 to vector<8x8x128xf32>
    %885 = arith.mulf %884, %879 : vector<8x8x128xf32>
    %c2_748 = arith.constant 2 : index
    %c0_749 = arith.constant 0 : index
    %886 = memref.load %arg2[%c2_748, %c0_749] : memref<3x9xf32, #tpu.memory_space<smem>>
    %887 = vector.broadcast %886 : f32 to vector<8x8x128xf32>
    %888 = arith.mulf %887, %879 : vector<8x8x128xf32>
    %c11_750 = arith.constant 11 : index
    %c0_751 = arith.constant 0 : index
    %c0_752 = arith.constant 0 : index
    %c0_753 = arith.constant 0 : index
    %889 = vector.load %arg7[%c11_750, %c0_751, %c0_752, %c0_753] : memref<25x8x8x128xf32, #tpu.memory_space<vmem>>, vector<1x8x8x128xf32>
    %890 = vector.shape_cast %889 : vector<1x8x8x128xf32> to vector<8x8x128xf32>
    %c0_754 = arith.constant 0 : index
    %c1_755 = arith.constant 1 : index
    %891 = memref.load %arg2[%c0_754, %c1_755] : memref<3x9xf32, #tpu.memory_space<smem>>
    %892 = vector.broadcast %891 : f32 to vector<8x8x128xf32>
    %893 = arith.mulf %892, %890 : vector<8x8x128xf32>
    %894 = arith.addf %882, %893 : vector<8x8x128xf32>
    %c1_756 = arith.constant 1 : index
    %c1_757 = arith.constant 1 : index
    %895 = memref.load %arg2[%c1_756, %c1_757] : memref<3x9xf32, #tpu.memory_space<smem>>
    %896 = vector.broadcast %895 : f32 to vector<8x8x128xf32>
    %897 = arith.mulf %896, %890 : vector<8x8x128xf32>
    %898 = arith.addf %885, %897 : vector<8x8x128xf32>
    %c2_758 = arith.constant 2 : index
    %c1_759 = arith.constant 1 : index
    %899 = memref.load %arg2[%c2_758, %c1_759] : memref<3x9xf32, #tpu.memory_space<smem>>
    %900 = vector.broadcast %899 : f32 to vector<8x8x128xf32>
    %901 = arith.mulf %900, %890 : vector<8x8x128xf32>
    %902 = arith.addf %888, %901 : vector<8x8x128xf32>
    %c12_760 = arith.constant 12 : index
    %c0_761 = arith.constant 0 : index
    %c0_762 = arith.constant 0 : index
    %c0_763 = arith.constant 0 : index
    %903 = vector.load %arg7[%c12_760, %c0_761, %c0_762, %c0_763] : memref<25x8x8x128xf32, #tpu.memory_space<vmem>>, vector<1x8x8x128xf32>
    %904 = vector.shape_cast %903 : vector<1x8x8x128xf32> to vector<8x8x128xf32>
    %c0_764 = arith.constant 0 : index
    %c2_765 = arith.constant 2 : index
    %905 = memref.load %arg2[%c0_764, %c2_765] : memref<3x9xf32, #tpu.memory_space<smem>>
    %906 = vector.broadcast %905 : f32 to vector<8x8x128xf32>
    %907 = arith.mulf %906, %904 : vector<8x8x128xf32>
    %908 = arith.addf %894, %907 : vector<8x8x128xf32>
    %c1_766 = arith.constant 1 : index
    %c2_767 = arith.constant 2 : index
    %909 = memref.load %arg2[%c1_766, %c2_767] : memref<3x9xf32, #tpu.memory_space<smem>>
    %910 = vector.broadcast %909 : f32 to vector<8x8x128xf32>
    %911 = arith.mulf %910, %904 : vector<8x8x128xf32>
    %912 = arith.addf %898, %911 : vector<8x8x128xf32>
    %c2_768 = arith.constant 2 : index
    %c2_769 = arith.constant 2 : index
    %913 = memref.load %arg2[%c2_768, %c2_769] : memref<3x9xf32, #tpu.memory_space<smem>>
    %914 = vector.broadcast %913 : f32 to vector<8x8x128xf32>
    %915 = arith.mulf %914, %904 : vector<8x8x128xf32>
    %916 = arith.addf %902, %915 : vector<8x8x128xf32>
    %c15_770 = arith.constant 15 : index
    %c0_771 = arith.constant 0 : index
    %c0_772 = arith.constant 0 : index
    %c0_773 = arith.constant 0 : index
    %917 = vector.load %arg7[%c15_770, %c0_771, %c0_772, %c0_773] : memref<25x8x8x128xf32, #tpu.memory_space<vmem>>, vector<1x8x8x128xf32>
    %918 = vector.shape_cast %917 : vector<1x8x8x128xf32> to vector<8x8x128xf32>
    %c0_774 = arith.constant 0 : index
    %c3_775 = arith.constant 3 : index
    %919 = memref.load %arg2[%c0_774, %c3_775] : memref<3x9xf32, #tpu.memory_space<smem>>
    %920 = vector.broadcast %919 : f32 to vector<8x8x128xf32>
    %921 = arith.mulf %920, %918 : vector<8x8x128xf32>
    %922 = arith.addf %908, %921 : vector<8x8x128xf32>
    %c1_776 = arith.constant 1 : index
    %c3_777 = arith.constant 3 : index
    %923 = memref.load %arg2[%c1_776, %c3_777] : memref<3x9xf32, #tpu.memory_space<smem>>
    %924 = vector.broadcast %923 : f32 to vector<8x8x128xf32>
    %925 = arith.mulf %924, %918 : vector<8x8x128xf32>
    %926 = arith.addf %912, %925 : vector<8x8x128xf32>
    %c2_778 = arith.constant 2 : index
    %c3_779 = arith.constant 3 : index
    %927 = memref.load %arg2[%c2_778, %c3_779] : memref<3x9xf32, #tpu.memory_space<smem>>
    %928 = vector.broadcast %927 : f32 to vector<8x8x128xf32>
    %929 = arith.mulf %928, %918 : vector<8x8x128xf32>
    %930 = arith.addf %916, %929 : vector<8x8x128xf32>
    %c16_780 = arith.constant 16 : index
    %c0_781 = arith.constant 0 : index
    %c0_782 = arith.constant 0 : index
    %c0_783 = arith.constant 0 : index
    %931 = vector.load %arg7[%c16_780, %c0_781, %c0_782, %c0_783] : memref<25x8x8x128xf32, #tpu.memory_space<vmem>>, vector<1x8x8x128xf32>
    %932 = vector.shape_cast %931 : vector<1x8x8x128xf32> to vector<8x8x128xf32>
    %c0_784 = arith.constant 0 : index
    %c4_785 = arith.constant 4 : index
    %933 = memref.load %arg2[%c0_784, %c4_785] : memref<3x9xf32, #tpu.memory_space<smem>>
    %934 = vector.broadcast %933 : f32 to vector<8x8x128xf32>
    %935 = arith.mulf %934, %932 : vector<8x8x128xf32>
    %936 = arith.addf %922, %935 : vector<8x8x128xf32>
    %c1_786 = arith.constant 1 : index
    %c4_787 = arith.constant 4 : index
    %937 = memref.load %arg2[%c1_786, %c4_787] : memref<3x9xf32, #tpu.memory_space<smem>>
    %938 = vector.broadcast %937 : f32 to vector<8x8x128xf32>
    %939 = arith.mulf %938, %932 : vector<8x8x128xf32>
    %940 = arith.addf %926, %939 : vector<8x8x128xf32>
    %c2_788 = arith.constant 2 : index
    %c4_789 = arith.constant 4 : index
    %941 = memref.load %arg2[%c2_788, %c4_789] : memref<3x9xf32, #tpu.memory_space<smem>>
    %942 = vector.broadcast %941 : f32 to vector<8x8x128xf32>
    %943 = arith.mulf %942, %932 : vector<8x8x128xf32>
    %944 = arith.addf %930, %943 : vector<8x8x128xf32>
    %c17_790 = arith.constant 17 : index
    %c0_791 = arith.constant 0 : index
    %c0_792 = arith.constant 0 : index
    %c0_793 = arith.constant 0 : index
    %945 = vector.load %arg7[%c17_790, %c0_791, %c0_792, %c0_793] : memref<25x8x8x128xf32, #tpu.memory_space<vmem>>, vector<1x8x8x128xf32>
    %946 = vector.shape_cast %945 : vector<1x8x8x128xf32> to vector<8x8x128xf32>
    %c0_794 = arith.constant 0 : index
    %c5_795 = arith.constant 5 : index
    %947 = memref.load %arg2[%c0_794, %c5_795] : memref<3x9xf32, #tpu.memory_space<smem>>
    %948 = vector.broadcast %947 : f32 to vector<8x8x128xf32>
    %949 = arith.mulf %948, %946 : vector<8x8x128xf32>
    %950 = arith.addf %936, %949 : vector<8x8x128xf32>
    %c1_796 = arith.constant 1 : index
    %c5_797 = arith.constant 5 : index
    %951 = memref.load %arg2[%c1_796, %c5_797] : memref<3x9xf32, #tpu.memory_space<smem>>
    %952 = vector.broadcast %951 : f32 to vector<8x8x128xf32>
    %953 = arith.mulf %952, %946 : vector<8x8x128xf32>
    %954 = arith.addf %940, %953 : vector<8x8x128xf32>
    %c2_798 = arith.constant 2 : index
    %c5_799 = arith.constant 5 : index
    %955 = memref.load %arg2[%c2_798, %c5_799] : memref<3x9xf32, #tpu.memory_space<smem>>
    %956 = vector.broadcast %955 : f32 to vector<8x8x128xf32>
    %957 = arith.mulf %956, %946 : vector<8x8x128xf32>
    %958 = arith.addf %944, %957 : vector<8x8x128xf32>
    %c20_800 = arith.constant 20 : index
    %c0_801 = arith.constant 0 : index
    %c0_802 = arith.constant 0 : index
    %c0_803 = arith.constant 0 : index
    %959 = vector.load %arg7[%c20_800, %c0_801, %c0_802, %c0_803] : memref<25x8x8x128xf32, #tpu.memory_space<vmem>>, vector<1x8x8x128xf32>
    %960 = vector.shape_cast %959 : vector<1x8x8x128xf32> to vector<8x8x128xf32>
    %c0_804 = arith.constant 0 : index
    %c6_805 = arith.constant 6 : index
    %961 = memref.load %arg2[%c0_804, %c6_805] : memref<3x9xf32, #tpu.memory_space<smem>>
    %962 = vector.broadcast %961 : f32 to vector<8x8x128xf32>
    %963 = arith.mulf %962, %960 : vector<8x8x128xf32>
    %964 = arith.addf %950, %963 : vector<8x8x128xf32>
    %c1_806 = arith.constant 1 : index
    %c6_807 = arith.constant 6 : index
    %965 = memref.load %arg2[%c1_806, %c6_807] : memref<3x9xf32, #tpu.memory_space<smem>>
    %966 = vector.broadcast %965 : f32 to vector<8x8x128xf32>
    %967 = arith.mulf %966, %960 : vector<8x8x128xf32>
    %968 = arith.addf %954, %967 : vector<8x8x128xf32>
    %c2_808 = arith.constant 2 : index
    %c6_809 = arith.constant 6 : index
    %969 = memref.load %arg2[%c2_808, %c6_809] : memref<3x9xf32, #tpu.memory_space<smem>>
    %970 = vector.broadcast %969 : f32 to vector<8x8x128xf32>
    %971 = arith.mulf %970, %960 : vector<8x8x128xf32>
    %972 = arith.addf %958, %971 : vector<8x8x128xf32>
    %c21_810 = arith.constant 21 : index
    %c0_811 = arith.constant 0 : index
    %c0_812 = arith.constant 0 : index
    %c0_813 = arith.constant 0 : index
    %973 = vector.load %arg7[%c21_810, %c0_811, %c0_812, %c0_813] : memref<25x8x8x128xf32, #tpu.memory_space<vmem>>, vector<1x8x8x128xf32>
    %974 = vector.shape_cast %973 : vector<1x8x8x128xf32> to vector<8x8x128xf32>
    %c0_814 = arith.constant 0 : index
    %c7_815 = arith.constant 7 : index
    %975 = memref.load %arg2[%c0_814, %c7_815] : memref<3x9xf32, #tpu.memory_space<smem>>
    %976 = vector.broadcast %975 : f32 to vector<8x8x128xf32>
    %977 = arith.mulf %976, %974 : vector<8x8x128xf32>
    %978 = arith.addf %964, %977 : vector<8x8x128xf32>
    %c1_816 = arith.constant 1 : index
    %c7_817 = arith.constant 7 : index
    %979 = memref.load %arg2[%c1_816, %c7_817] : memref<3x9xf32, #tpu.memory_space<smem>>
    %980 = vector.broadcast %979 : f32 to vector<8x8x128xf32>
    %981 = arith.mulf %980, %974 : vector<8x8x128xf32>
    %982 = arith.addf %968, %981 : vector<8x8x128xf32>
    %c2_818 = arith.constant 2 : index
    %c7_819 = arith.constant 7 : index
    %983 = memref.load %arg2[%c2_818, %c7_819] : memref<3x9xf32, #tpu.memory_space<smem>>
    %984 = vector.broadcast %983 : f32 to vector<8x8x128xf32>
    %985 = arith.mulf %984, %974 : vector<8x8x128xf32>
    %986 = arith.addf %972, %985 : vector<8x8x128xf32>
    %c22_820 = arith.constant 22 : index
    %c0_821 = arith.constant 0 : index
    %c0_822 = arith.constant 0 : index
    %c0_823 = arith.constant 0 : index
    %987 = vector.load %arg7[%c22_820, %c0_821, %c0_822, %c0_823] : memref<25x8x8x128xf32, #tpu.memory_space<vmem>>, vector<1x8x8x128xf32>
    %988 = vector.shape_cast %987 : vector<1x8x8x128xf32> to vector<8x8x128xf32>
    %c0_824 = arith.constant 0 : index
    %c8_825 = arith.constant 8 : index
    %989 = memref.load %arg2[%c0_824, %c8_825] : memref<3x9xf32, #tpu.memory_space<smem>>
    %990 = vector.broadcast %989 : f32 to vector<8x8x128xf32>
    %991 = arith.mulf %990, %988 : vector<8x8x128xf32>
    %992 = arith.addf %978, %991 : vector<8x8x128xf32>
    %c1_826 = arith.constant 1 : index
    %c8_827 = arith.constant 8 : index
    %993 = memref.load %arg2[%c1_826, %c8_827] : memref<3x9xf32, #tpu.memory_space<smem>>
    %994 = vector.broadcast %993 : f32 to vector<8x8x128xf32>
    %995 = arith.mulf %994, %988 : vector<8x8x128xf32>
    %996 = arith.addf %982, %995 : vector<8x8x128xf32>
    %c2_828 = arith.constant 2 : index
    %c8_829 = arith.constant 8 : index
    %997 = memref.load %arg2[%c2_828, %c8_829] : memref<3x9xf32, #tpu.memory_space<smem>>
    %998 = vector.broadcast %997 : f32 to vector<8x8x128xf32>
    %999 = arith.mulf %998, %988 : vector<8x8x128xf32>
    %1000 = arith.addf %986, %999 : vector<8x8x128xf32>
    %1001 = arith.maximumf %875, %992 : vector<8x8x128xf32>
    %1002 = arith.maximumf %876, %996 : vector<8x8x128xf32>
    %1003 = arith.maximumf %877, %1000 : vector<8x8x128xf32>
    %c11_830 = arith.constant 11 : index
    %c0_831 = arith.constant 0 : index
    %c0_832 = arith.constant 0 : index
    %c0_833 = arith.constant 0 : index
    %1004 = vector.load %arg7[%c11_830, %c0_831, %c0_832, %c0_833] : memref<25x8x8x128xf32, #tpu.memory_space<vmem>>, vector<1x8x8x128xf32>
    %1005 = vector.shape_cast %1004 : vector<1x8x8x128xf32> to vector<8x8x128xf32>
    %c0_834 = arith.constant 0 : index
    %c0_835 = arith.constant 0 : index
    %1006 = memref.load %arg2[%c0_834, %c0_835] : memref<3x9xf32, #tpu.memory_space<smem>>
    %1007 = vector.broadcast %1006 : f32 to vector<8x8x128xf32>
    %1008 = arith.mulf %1007, %1005 : vector<8x8x128xf32>
    %c1_836 = arith.constant 1 : index
    %c0_837 = arith.constant 0 : index
    %1009 = memref.load %arg2[%c1_836, %c0_837] : memref<3x9xf32, #tpu.memory_space<smem>>
    %1010 = vector.broadcast %1009 : f32 to vector<8x8x128xf32>
    %1011 = arith.mulf %1010, %1005 : vector<8x8x128xf32>
    %c2_838 = arith.constant 2 : index
    %c0_839 = arith.constant 0 : index
    %1012 = memref.load %arg2[%c2_838, %c0_839] : memref<3x9xf32, #tpu.memory_space<smem>>
    %1013 = vector.broadcast %1012 : f32 to vector<8x8x128xf32>
    %1014 = arith.mulf %1013, %1005 : vector<8x8x128xf32>
    %c12_840 = arith.constant 12 : index
    %c0_841 = arith.constant 0 : index
    %c0_842 = arith.constant 0 : index
    %c0_843 = arith.constant 0 : index
    %1015 = vector.load %arg7[%c12_840, %c0_841, %c0_842, %c0_843] : memref<25x8x8x128xf32, #tpu.memory_space<vmem>>, vector<1x8x8x128xf32>
    %1016 = vector.shape_cast %1015 : vector<1x8x8x128xf32> to vector<8x8x128xf32>
    %c0_844 = arith.constant 0 : index
    %c1_845 = arith.constant 1 : index
    %1017 = memref.load %arg2[%c0_844, %c1_845] : memref<3x9xf32, #tpu.memory_space<smem>>
    %1018 = vector.broadcast %1017 : f32 to vector<8x8x128xf32>
    %1019 = arith.mulf %1018, %1016 : vector<8x8x128xf32>
    %1020 = arith.addf %1008, %1019 : vector<8x8x128xf32>
    %c1_846 = arith.constant 1 : index
    %c1_847 = arith.constant 1 : index
    %1021 = memref.load %arg2[%c1_846, %c1_847] : memref<3x9xf32, #tpu.memory_space<smem>>
    %1022 = vector.broadcast %1021 : f32 to vector<8x8x128xf32>
    %1023 = arith.mulf %1022, %1016 : vector<8x8x128xf32>
    %1024 = arith.addf %1011, %1023 : vector<8x8x128xf32>
    %c2_848 = arith.constant 2 : index
    %c1_849 = arith.constant 1 : index
    %1025 = memref.load %arg2[%c2_848, %c1_849] : memref<3x9xf32, #tpu.memory_space<smem>>
    %1026 = vector.broadcast %1025 : f32 to vector<8x8x128xf32>
    %1027 = arith.mulf %1026, %1016 : vector<8x8x128xf32>
    %1028 = arith.addf %1014, %1027 : vector<8x8x128xf32>
    %c13_850 = arith.constant 13 : index
    %c0_851 = arith.constant 0 : index
    %c0_852 = arith.constant 0 : index
    %c0_853 = arith.constant 0 : index
    %1029 = vector.load %arg7[%c13_850, %c0_851, %c0_852, %c0_853] : memref<25x8x8x128xf32, #tpu.memory_space<vmem>>, vector<1x8x8x128xf32>
    %1030 = vector.shape_cast %1029 : vector<1x8x8x128xf32> to vector<8x8x128xf32>
    %c0_854 = arith.constant 0 : index
    %c2_855 = arith.constant 2 : index
    %1031 = memref.load %arg2[%c0_854, %c2_855] : memref<3x9xf32, #tpu.memory_space<smem>>
    %1032 = vector.broadcast %1031 : f32 to vector<8x8x128xf32>
    %1033 = arith.mulf %1032, %1030 : vector<8x8x128xf32>
    %1034 = arith.addf %1020, %1033 : vector<8x8x128xf32>
    %c1_856 = arith.constant 1 : index
    %c2_857 = arith.constant 2 : index
    %1035 = memref.load %arg2[%c1_856, %c2_857] : memref<3x9xf32, #tpu.memory_space<smem>>
    %1036 = vector.broadcast %1035 : f32 to vector<8x8x128xf32>
    %1037 = arith.mulf %1036, %1030 : vector<8x8x128xf32>
    %1038 = arith.addf %1024, %1037 : vector<8x8x128xf32>
    %c2_858 = arith.constant 2 : index
    %c2_859 = arith.constant 2 : index
    %1039 = memref.load %arg2[%c2_858, %c2_859] : memref<3x9xf32, #tpu.memory_space<smem>>
    %1040 = vector.broadcast %1039 : f32 to vector<8x8x128xf32>
    %1041 = arith.mulf %1040, %1030 : vector<8x8x128xf32>
    %1042 = arith.addf %1028, %1041 : vector<8x8x128xf32>
    %c16_860 = arith.constant 16 : index
    %c0_861 = arith.constant 0 : index
    %c0_862 = arith.constant 0 : index
    %c0_863 = arith.constant 0 : index
    %1043 = vector.load %arg7[%c16_860, %c0_861, %c0_862, %c0_863] : memref<25x8x8x128xf32, #tpu.memory_space<vmem>>, vector<1x8x8x128xf32>
    %1044 = vector.shape_cast %1043 : vector<1x8x8x128xf32> to vector<8x8x128xf32>
    %c0_864 = arith.constant 0 : index
    %c3_865 = arith.constant 3 : index
    %1045 = memref.load %arg2[%c0_864, %c3_865] : memref<3x9xf32, #tpu.memory_space<smem>>
    %1046 = vector.broadcast %1045 : f32 to vector<8x8x128xf32>
    %1047 = arith.mulf %1046, %1044 : vector<8x8x128xf32>
    %1048 = arith.addf %1034, %1047 : vector<8x8x128xf32>
    %c1_866 = arith.constant 1 : index
    %c3_867 = arith.constant 3 : index
    %1049 = memref.load %arg2[%c1_866, %c3_867] : memref<3x9xf32, #tpu.memory_space<smem>>
    %1050 = vector.broadcast %1049 : f32 to vector<8x8x128xf32>
    %1051 = arith.mulf %1050, %1044 : vector<8x8x128xf32>
    %1052 = arith.addf %1038, %1051 : vector<8x8x128xf32>
    %c2_868 = arith.constant 2 : index
    %c3_869 = arith.constant 3 : index
    %1053 = memref.load %arg2[%c2_868, %c3_869] : memref<3x9xf32, #tpu.memory_space<smem>>
    %1054 = vector.broadcast %1053 : f32 to vector<8x8x128xf32>
    %1055 = arith.mulf %1054, %1044 : vector<8x8x128xf32>
    %1056 = arith.addf %1042, %1055 : vector<8x8x128xf32>
    %c17_870 = arith.constant 17 : index
    %c0_871 = arith.constant 0 : index
    %c0_872 = arith.constant 0 : index
    %c0_873 = arith.constant 0 : index
    %1057 = vector.load %arg7[%c17_870, %c0_871, %c0_872, %c0_873] : memref<25x8x8x128xf32, #tpu.memory_space<vmem>>, vector<1x8x8x128xf32>
    %1058 = vector.shape_cast %1057 : vector<1x8x8x128xf32> to vector<8x8x128xf32>
    %c0_874 = arith.constant 0 : index
    %c4_875 = arith.constant 4 : index
    %1059 = memref.load %arg2[%c0_874, %c4_875] : memref<3x9xf32, #tpu.memory_space<smem>>
    %1060 = vector.broadcast %1059 : f32 to vector<8x8x128xf32>
    %1061 = arith.mulf %1060, %1058 : vector<8x8x128xf32>
    %1062 = arith.addf %1048, %1061 : vector<8x8x128xf32>
    %c1_876 = arith.constant 1 : index
    %c4_877 = arith.constant 4 : index
    %1063 = memref.load %arg2[%c1_876, %c4_877] : memref<3x9xf32, #tpu.memory_space<smem>>
    %1064 = vector.broadcast %1063 : f32 to vector<8x8x128xf32>
    %1065 = arith.mulf %1064, %1058 : vector<8x8x128xf32>
    %1066 = arith.addf %1052, %1065 : vector<8x8x128xf32>
    %c2_878 = arith.constant 2 : index
    %c4_879 = arith.constant 4 : index
    %1067 = memref.load %arg2[%c2_878, %c4_879] : memref<3x9xf32, #tpu.memory_space<smem>>
    %1068 = vector.broadcast %1067 : f32 to vector<8x8x128xf32>
    %1069 = arith.mulf %1068, %1058 : vector<8x8x128xf32>
    %1070 = arith.addf %1056, %1069 : vector<8x8x128xf32>
    %c18_880 = arith.constant 18 : index
    %c0_881 = arith.constant 0 : index
    %c0_882 = arith.constant 0 : index
    %c0_883 = arith.constant 0 : index
    %1071 = vector.load %arg7[%c18_880, %c0_881, %c0_882, %c0_883] : memref<25x8x8x128xf32, #tpu.memory_space<vmem>>, vector<1x8x8x128xf32>
    %1072 = vector.shape_cast %1071 : vector<1x8x8x128xf32> to vector<8x8x128xf32>
    %c0_884 = arith.constant 0 : index
    %c5_885 = arith.constant 5 : index
    %1073 = memref.load %arg2[%c0_884, %c5_885] : memref<3x9xf32, #tpu.memory_space<smem>>
    %1074 = vector.broadcast %1073 : f32 to vector<8x8x128xf32>
    %1075 = arith.mulf %1074, %1072 : vector<8x8x128xf32>
    %1076 = arith.addf %1062, %1075 : vector<8x8x128xf32>
    %c1_886 = arith.constant 1 : index
    %c5_887 = arith.constant 5 : index
    %1077 = memref.load %arg2[%c1_886, %c5_887] : memref<3x9xf32, #tpu.memory_space<smem>>
    %1078 = vector.broadcast %1077 : f32 to vector<8x8x128xf32>
    %1079 = arith.mulf %1078, %1072 : vector<8x8x128xf32>
    %1080 = arith.addf %1066, %1079 : vector<8x8x128xf32>
    %c2_888 = arith.constant 2 : index
    %c5_889 = arith.constant 5 : index
    %1081 = memref.load %arg2[%c2_888, %c5_889] : memref<3x9xf32, #tpu.memory_space<smem>>
    %1082 = vector.broadcast %1081 : f32 to vector<8x8x128xf32>
    %1083 = arith.mulf %1082, %1072 : vector<8x8x128xf32>
    %1084 = arith.addf %1070, %1083 : vector<8x8x128xf32>
    %c21_890 = arith.constant 21 : index
    %c0_891 = arith.constant 0 : index
    %c0_892 = arith.constant 0 : index
    %c0_893 = arith.constant 0 : index
    %1085 = vector.load %arg7[%c21_890, %c0_891, %c0_892, %c0_893] : memref<25x8x8x128xf32, #tpu.memory_space<vmem>>, vector<1x8x8x128xf32>
    %1086 = vector.shape_cast %1085 : vector<1x8x8x128xf32> to vector<8x8x128xf32>
    %c0_894 = arith.constant 0 : index
    %c6_895 = arith.constant 6 : index
    %1087 = memref.load %arg2[%c0_894, %c6_895] : memref<3x9xf32, #tpu.memory_space<smem>>
    %1088 = vector.broadcast %1087 : f32 to vector<8x8x128xf32>
    %1089 = arith.mulf %1088, %1086 : vector<8x8x128xf32>
    %1090 = arith.addf %1076, %1089 : vector<8x8x128xf32>
    %c1_896 = arith.constant 1 : index
    %c6_897 = arith.constant 6 : index
    %1091 = memref.load %arg2[%c1_896, %c6_897] : memref<3x9xf32, #tpu.memory_space<smem>>
    %1092 = vector.broadcast %1091 : f32 to vector<8x8x128xf32>
    %1093 = arith.mulf %1092, %1086 : vector<8x8x128xf32>
    %1094 = arith.addf %1080, %1093 : vector<8x8x128xf32>
    %c2_898 = arith.constant 2 : index
    %c6_899 = arith.constant 6 : index
    %1095 = memref.load %arg2[%c2_898, %c6_899] : memref<3x9xf32, #tpu.memory_space<smem>>
    %1096 = vector.broadcast %1095 : f32 to vector<8x8x128xf32>
    %1097 = arith.mulf %1096, %1086 : vector<8x8x128xf32>
    %1098 = arith.addf %1084, %1097 : vector<8x8x128xf32>
    %c22_900 = arith.constant 22 : index
    %c0_901 = arith.constant 0 : index
    %c0_902 = arith.constant 0 : index
    %c0_903 = arith.constant 0 : index
    %1099 = vector.load %arg7[%c22_900, %c0_901, %c0_902, %c0_903] : memref<25x8x8x128xf32, #tpu.memory_space<vmem>>, vector<1x8x8x128xf32>
    %1100 = vector.shape_cast %1099 : vector<1x8x8x128xf32> to vector<8x8x128xf32>
    %c0_904 = arith.constant 0 : index
    %c7_905 = arith.constant 7 : index
    %1101 = memref.load %arg2[%c0_904, %c7_905] : memref<3x9xf32, #tpu.memory_space<smem>>
    %1102 = vector.broadcast %1101 : f32 to vector<8x8x128xf32>
    %1103 = arith.mulf %1102, %1100 : vector<8x8x128xf32>
    %1104 = arith.addf %1090, %1103 : vector<8x8x128xf32>
    %c1_906 = arith.constant 1 : index
    %c7_907 = arith.constant 7 : index
    %1105 = memref.load %arg2[%c1_906, %c7_907] : memref<3x9xf32, #tpu.memory_space<smem>>
    %1106 = vector.broadcast %1105 : f32 to vector<8x8x128xf32>
    %1107 = arith.mulf %1106, %1100 : vector<8x8x128xf32>
    %1108 = arith.addf %1094, %1107 : vector<8x8x128xf32>
    %c2_908 = arith.constant 2 : index
    %c7_909 = arith.constant 7 : index
    %1109 = memref.load %arg2[%c2_908, %c7_909] : memref<3x9xf32, #tpu.memory_space<smem>>
    %1110 = vector.broadcast %1109 : f32 to vector<8x8x128xf32>
    %1111 = arith.mulf %1110, %1100 : vector<8x8x128xf32>
    %1112 = arith.addf %1098, %1111 : vector<8x8x128xf32>
    %c23_910 = arith.constant 23 : index
    %c0_911 = arith.constant 0 : index
    %c0_912 = arith.constant 0 : index
    %c0_913 = arith.constant 0 : index
    %1113 = vector.load %arg7[%c23_910, %c0_911, %c0_912, %c0_913] : memref<25x8x8x128xf32, #tpu.memory_space<vmem>>, vector<1x8x8x128xf32>
    %1114 = vector.shape_cast %1113 : vector<1x8x8x128xf32> to vector<8x8x128xf32>
    %c0_914 = arith.constant 0 : index
    %c8_915 = arith.constant 8 : index
    %1115 = memref.load %arg2[%c0_914, %c8_915] : memref<3x9xf32, #tpu.memory_space<smem>>
    %1116 = vector.broadcast %1115 : f32 to vector<8x8x128xf32>
    %1117 = arith.mulf %1116, %1114 : vector<8x8x128xf32>
    %1118 = arith.addf %1104, %1117 : vector<8x8x128xf32>
    %c1_916 = arith.constant 1 : index
    %c8_917 = arith.constant 8 : index
    %1119 = memref.load %arg2[%c1_916, %c8_917] : memref<3x9xf32, #tpu.memory_space<smem>>
    %1120 = vector.broadcast %1119 : f32 to vector<8x8x128xf32>
    %1121 = arith.mulf %1120, %1114 : vector<8x8x128xf32>
    %1122 = arith.addf %1108, %1121 : vector<8x8x128xf32>
    %c2_918 = arith.constant 2 : index
    %c8_919 = arith.constant 8 : index
    %1123 = memref.load %arg2[%c2_918, %c8_919] : memref<3x9xf32, #tpu.memory_space<smem>>
    %1124 = vector.broadcast %1123 : f32 to vector<8x8x128xf32>
    %1125 = arith.mulf %1124, %1114 : vector<8x8x128xf32>
    %1126 = arith.addf %1112, %1125 : vector<8x8x128xf32>
    %1127 = arith.maximumf %1001, %1118 : vector<8x8x128xf32>
    %1128 = arith.maximumf %1002, %1122 : vector<8x8x128xf32>
    %1129 = arith.maximumf %1003, %1126 : vector<8x8x128xf32>
    %c12_920 = arith.constant 12 : index
    %c0_921 = arith.constant 0 : index
    %c0_922 = arith.constant 0 : index
    %c0_923 = arith.constant 0 : index
    %1130 = vector.load %arg7[%c12_920, %c0_921, %c0_922, %c0_923] : memref<25x8x8x128xf32, #tpu.memory_space<vmem>>, vector<1x8x8x128xf32>
    %1131 = vector.shape_cast %1130 : vector<1x8x8x128xf32> to vector<8x8x128xf32>
    %c0_924 = arith.constant 0 : index
    %c0_925 = arith.constant 0 : index
    %1132 = memref.load %arg2[%c0_924, %c0_925] : memref<3x9xf32, #tpu.memory_space<smem>>
    %1133 = vector.broadcast %1132 : f32 to vector<8x8x128xf32>
    %1134 = arith.mulf %1133, %1131 : vector<8x8x128xf32>
    %c1_926 = arith.constant 1 : index
    %c0_927 = arith.constant 0 : index
    %1135 = memref.load %arg2[%c1_926, %c0_927] : memref<3x9xf32, #tpu.memory_space<smem>>
    %1136 = vector.broadcast %1135 : f32 to vector<8x8x128xf32>
    %1137 = arith.mulf %1136, %1131 : vector<8x8x128xf32>
    %c2_928 = arith.constant 2 : index
    %c0_929 = arith.constant 0 : index
    %1138 = memref.load %arg2[%c2_928, %c0_929] : memref<3x9xf32, #tpu.memory_space<smem>>
    %1139 = vector.broadcast %1138 : f32 to vector<8x8x128xf32>
    %1140 = arith.mulf %1139, %1131 : vector<8x8x128xf32>
    %c13_930 = arith.constant 13 : index
    %c0_931 = arith.constant 0 : index
    %c0_932 = arith.constant 0 : index
    %c0_933 = arith.constant 0 : index
    %1141 = vector.load %arg7[%c13_930, %c0_931, %c0_932, %c0_933] : memref<25x8x8x128xf32, #tpu.memory_space<vmem>>, vector<1x8x8x128xf32>
    %1142 = vector.shape_cast %1141 : vector<1x8x8x128xf32> to vector<8x8x128xf32>
    %c0_934 = arith.constant 0 : index
    %c1_935 = arith.constant 1 : index
    %1143 = memref.load %arg2[%c0_934, %c1_935] : memref<3x9xf32, #tpu.memory_space<smem>>
    %1144 = vector.broadcast %1143 : f32 to vector<8x8x128xf32>
    %1145 = arith.mulf %1144, %1142 : vector<8x8x128xf32>
    %1146 = arith.addf %1134, %1145 : vector<8x8x128xf32>
    %c1_936 = arith.constant 1 : index
    %c1_937 = arith.constant 1 : index
    %1147 = memref.load %arg2[%c1_936, %c1_937] : memref<3x9xf32, #tpu.memory_space<smem>>
    %1148 = vector.broadcast %1147 : f32 to vector<8x8x128xf32>
    %1149 = arith.mulf %1148, %1142 : vector<8x8x128xf32>
    %1150 = arith.addf %1137, %1149 : vector<8x8x128xf32>
    %c2_938 = arith.constant 2 : index
    %c1_939 = arith.constant 1 : index
    %1151 = memref.load %arg2[%c2_938, %c1_939] : memref<3x9xf32, #tpu.memory_space<smem>>
    %1152 = vector.broadcast %1151 : f32 to vector<8x8x128xf32>
    %1153 = arith.mulf %1152, %1142 : vector<8x8x128xf32>
    %1154 = arith.addf %1140, %1153 : vector<8x8x128xf32>
    %c14_940 = arith.constant 14 : index
    %c0_941 = arith.constant 0 : index
    %c0_942 = arith.constant 0 : index
    %c0_943 = arith.constant 0 : index
    %1155 = vector.load %arg7[%c14_940, %c0_941, %c0_942, %c0_943] : memref<25x8x8x128xf32, #tpu.memory_space<vmem>>, vector<1x8x8x128xf32>
    %1156 = vector.shape_cast %1155 : vector<1x8x8x128xf32> to vector<8x8x128xf32>
    %c0_944 = arith.constant 0 : index
    %c2_945 = arith.constant 2 : index
    %1157 = memref.load %arg2[%c0_944, %c2_945] : memref<3x9xf32, #tpu.memory_space<smem>>
    %1158 = vector.broadcast %1157 : f32 to vector<8x8x128xf32>
    %1159 = arith.mulf %1158, %1156 : vector<8x8x128xf32>
    %1160 = arith.addf %1146, %1159 : vector<8x8x128xf32>
    %c1_946 = arith.constant 1 : index
    %c2_947 = arith.constant 2 : index
    %1161 = memref.load %arg2[%c1_946, %c2_947] : memref<3x9xf32, #tpu.memory_space<smem>>
    %1162 = vector.broadcast %1161 : f32 to vector<8x8x128xf32>
    %1163 = arith.mulf %1162, %1156 : vector<8x8x128xf32>
    %1164 = arith.addf %1150, %1163 : vector<8x8x128xf32>
    %c2_948 = arith.constant 2 : index
    %c2_949 = arith.constant 2 : index
    %1165 = memref.load %arg2[%c2_948, %c2_949] : memref<3x9xf32, #tpu.memory_space<smem>>
    %1166 = vector.broadcast %1165 : f32 to vector<8x8x128xf32>
    %1167 = arith.mulf %1166, %1156 : vector<8x8x128xf32>
    %1168 = arith.addf %1154, %1167 : vector<8x8x128xf32>
    %c17_950 = arith.constant 17 : index
    %c0_951 = arith.constant 0 : index
    %c0_952 = arith.constant 0 : index
    %c0_953 = arith.constant 0 : index
    %1169 = vector.load %arg7[%c17_950, %c0_951, %c0_952, %c0_953] : memref<25x8x8x128xf32, #tpu.memory_space<vmem>>, vector<1x8x8x128xf32>
    %1170 = vector.shape_cast %1169 : vector<1x8x8x128xf32> to vector<8x8x128xf32>
    %c0_954 = arith.constant 0 : index
    %c3_955 = arith.constant 3 : index
    %1171 = memref.load %arg2[%c0_954, %c3_955] : memref<3x9xf32, #tpu.memory_space<smem>>
    %1172 = vector.broadcast %1171 : f32 to vector<8x8x128xf32>
    %1173 = arith.mulf %1172, %1170 : vector<8x8x128xf32>
    %1174 = arith.addf %1160, %1173 : vector<8x8x128xf32>
    %c1_956 = arith.constant 1 : index
    %c3_957 = arith.constant 3 : index
    %1175 = memref.load %arg2[%c1_956, %c3_957] : memref<3x9xf32, #tpu.memory_space<smem>>
    %1176 = vector.broadcast %1175 : f32 to vector<8x8x128xf32>
    %1177 = arith.mulf %1176, %1170 : vector<8x8x128xf32>
    %1178 = arith.addf %1164, %1177 : vector<8x8x128xf32>
    %c2_958 = arith.constant 2 : index
    %c3_959 = arith.constant 3 : index
    %1179 = memref.load %arg2[%c2_958, %c3_959] : memref<3x9xf32, #tpu.memory_space<smem>>
    %1180 = vector.broadcast %1179 : f32 to vector<8x8x128xf32>
    %1181 = arith.mulf %1180, %1170 : vector<8x8x128xf32>
    %1182 = arith.addf %1168, %1181 : vector<8x8x128xf32>
    %c18_960 = arith.constant 18 : index
    %c0_961 = arith.constant 0 : index
    %c0_962 = arith.constant 0 : index
    %c0_963 = arith.constant 0 : index
    %1183 = vector.load %arg7[%c18_960, %c0_961, %c0_962, %c0_963] : memref<25x8x8x128xf32, #tpu.memory_space<vmem>>, vector<1x8x8x128xf32>
    %1184 = vector.shape_cast %1183 : vector<1x8x8x128xf32> to vector<8x8x128xf32>
    %c0_964 = arith.constant 0 : index
    %c4_965 = arith.constant 4 : index
    %1185 = memref.load %arg2[%c0_964, %c4_965] : memref<3x9xf32, #tpu.memory_space<smem>>
    %1186 = vector.broadcast %1185 : f32 to vector<8x8x128xf32>
    %1187 = arith.mulf %1186, %1184 : vector<8x8x128xf32>
    %1188 = arith.addf %1174, %1187 : vector<8x8x128xf32>
    %c1_966 = arith.constant 1 : index
    %c4_967 = arith.constant 4 : index
    %1189 = memref.load %arg2[%c1_966, %c4_967] : memref<3x9xf32, #tpu.memory_space<smem>>
    %1190 = vector.broadcast %1189 : f32 to vector<8x8x128xf32>
    %1191 = arith.mulf %1190, %1184 : vector<8x8x128xf32>
    %1192 = arith.addf %1178, %1191 : vector<8x8x128xf32>
    %c2_968 = arith.constant 2 : index
    %c4_969 = arith.constant 4 : index
    %1193 = memref.load %arg2[%c2_968, %c4_969] : memref<3x9xf32, #tpu.memory_space<smem>>
    %1194 = vector.broadcast %1193 : f32 to vector<8x8x128xf32>
    %1195 = arith.mulf %1194, %1184 : vector<8x8x128xf32>
    %1196 = arith.addf %1182, %1195 : vector<8x8x128xf32>
    %c19_970 = arith.constant 19 : index
    %c0_971 = arith.constant 0 : index
    %c0_972 = arith.constant 0 : index
    %c0_973 = arith.constant 0 : index
    %1197 = vector.load %arg7[%c19_970, %c0_971, %c0_972, %c0_973] : memref<25x8x8x128xf32, #tpu.memory_space<vmem>>, vector<1x8x8x128xf32>
    %1198 = vector.shape_cast %1197 : vector<1x8x8x128xf32> to vector<8x8x128xf32>
    %c0_974 = arith.constant 0 : index
    %c5_975 = arith.constant 5 : index
    %1199 = memref.load %arg2[%c0_974, %c5_975] : memref<3x9xf32, #tpu.memory_space<smem>>
    %1200 = vector.broadcast %1199 : f32 to vector<8x8x128xf32>
    %1201 = arith.mulf %1200, %1198 : vector<8x8x128xf32>
    %1202 = arith.addf %1188, %1201 : vector<8x8x128xf32>
    %c1_976 = arith.constant 1 : index
    %c5_977 = arith.constant 5 : index
    %1203 = memref.load %arg2[%c1_976, %c5_977] : memref<3x9xf32, #tpu.memory_space<smem>>
    %1204 = vector.broadcast %1203 : f32 to vector<8x8x128xf32>
    %1205 = arith.mulf %1204, %1198 : vector<8x8x128xf32>
    %1206 = arith.addf %1192, %1205 : vector<8x8x128xf32>
    %c2_978 = arith.constant 2 : index
    %c5_979 = arith.constant 5 : index
    %1207 = memref.load %arg2[%c2_978, %c5_979] : memref<3x9xf32, #tpu.memory_space<smem>>
    %1208 = vector.broadcast %1207 : f32 to vector<8x8x128xf32>
    %1209 = arith.mulf %1208, %1198 : vector<8x8x128xf32>
    %1210 = arith.addf %1196, %1209 : vector<8x8x128xf32>
    %c22_980 = arith.constant 22 : index
    %c0_981 = arith.constant 0 : index
    %c0_982 = arith.constant 0 : index
    %c0_983 = arith.constant 0 : index
    %1211 = vector.load %arg7[%c22_980, %c0_981, %c0_982, %c0_983] : memref<25x8x8x128xf32, #tpu.memory_space<vmem>>, vector<1x8x8x128xf32>
    %1212 = vector.shape_cast %1211 : vector<1x8x8x128xf32> to vector<8x8x128xf32>
    %c0_984 = arith.constant 0 : index
    %c6_985 = arith.constant 6 : index
    %1213 = memref.load %arg2[%c0_984, %c6_985] : memref<3x9xf32, #tpu.memory_space<smem>>
    %1214 = vector.broadcast %1213 : f32 to vector<8x8x128xf32>
    %1215 = arith.mulf %1214, %1212 : vector<8x8x128xf32>
    %1216 = arith.addf %1202, %1215 : vector<8x8x128xf32>
    %c1_986 = arith.constant 1 : index
    %c6_987 = arith.constant 6 : index
    %1217 = memref.load %arg2[%c1_986, %c6_987] : memref<3x9xf32, #tpu.memory_space<smem>>
    %1218 = vector.broadcast %1217 : f32 to vector<8x8x128xf32>
    %1219 = arith.mulf %1218, %1212 : vector<8x8x128xf32>
    %1220 = arith.addf %1206, %1219 : vector<8x8x128xf32>
    %c2_988 = arith.constant 2 : index
    %c6_989 = arith.constant 6 : index
    %1221 = memref.load %arg2[%c2_988, %c6_989] : memref<3x9xf32, #tpu.memory_space<smem>>
    %1222 = vector.broadcast %1221 : f32 to vector<8x8x128xf32>
    %1223 = arith.mulf %1222, %1212 : vector<8x8x128xf32>
    %1224 = arith.addf %1210, %1223 : vector<8x8x128xf32>
    %c23_990 = arith.constant 23 : index
    %c0_991 = arith.constant 0 : index
    %c0_992 = arith.constant 0 : index
    %c0_993 = arith.constant 0 : index
    %1225 = vector.load %arg7[%c23_990, %c0_991, %c0_992, %c0_993] : memref<25x8x8x128xf32, #tpu.memory_space<vmem>>, vector<1x8x8x128xf32>
    %1226 = vector.shape_cast %1225 : vector<1x8x8x128xf32> to vector<8x8x128xf32>
    %c0_994 = arith.constant 0 : index
    %c7_995 = arith.constant 7 : index
    %1227 = memref.load %arg2[%c0_994, %c7_995] : memref<3x9xf32, #tpu.memory_space<smem>>
    %1228 = vector.broadcast %1227 : f32 to vector<8x8x128xf32>
    %1229 = arith.mulf %1228, %1226 : vector<8x8x128xf32>
    %1230 = arith.addf %1216, %1229 : vector<8x8x128xf32>
    %c1_996 = arith.constant 1 : index
    %c7_997 = arith.constant 7 : index
    %1231 = memref.load %arg2[%c1_996, %c7_997] : memref<3x9xf32, #tpu.memory_space<smem>>
    %1232 = vector.broadcast %1231 : f32 to vector<8x8x128xf32>
    %1233 = arith.mulf %1232, %1226 : vector<8x8x128xf32>
    %1234 = arith.addf %1220, %1233 : vector<8x8x128xf32>
    %c2_998 = arith.constant 2 : index
    %c7_999 = arith.constant 7 : index
    %1235 = memref.load %arg2[%c2_998, %c7_999] : memref<3x9xf32, #tpu.memory_space<smem>>
    %1236 = vector.broadcast %1235 : f32 to vector<8x8x128xf32>
    %1237 = arith.mulf %1236, %1226 : vector<8x8x128xf32>
    %1238 = arith.addf %1224, %1237 : vector<8x8x128xf32>
    %c24_1000 = arith.constant 24 : index
    %c0_1001 = arith.constant 0 : index
    %c0_1002 = arith.constant 0 : index
    %c0_1003 = arith.constant 0 : index
    %1239 = vector.load %arg7[%c24_1000, %c0_1001, %c0_1002, %c0_1003] : memref<25x8x8x128xf32, #tpu.memory_space<vmem>>, vector<1x8x8x128xf32>
    %1240 = vector.shape_cast %1239 : vector<1x8x8x128xf32> to vector<8x8x128xf32>
    %c0_1004 = arith.constant 0 : index
    %c8_1005 = arith.constant 8 : index
    %1241 = memref.load %arg2[%c0_1004, %c8_1005] : memref<3x9xf32, #tpu.memory_space<smem>>
    %1242 = vector.broadcast %1241 : f32 to vector<8x8x128xf32>
    %1243 = arith.mulf %1242, %1240 : vector<8x8x128xf32>
    %1244 = arith.addf %1230, %1243 : vector<8x8x128xf32>
    %c1_1006 = arith.constant 1 : index
    %c8_1007 = arith.constant 8 : index
    %1245 = memref.load %arg2[%c1_1006, %c8_1007] : memref<3x9xf32, #tpu.memory_space<smem>>
    %1246 = vector.broadcast %1245 : f32 to vector<8x8x128xf32>
    %1247 = arith.mulf %1246, %1240 : vector<8x8x128xf32>
    %1248 = arith.addf %1234, %1247 : vector<8x8x128xf32>
    %c2_1008 = arith.constant 2 : index
    %c8_1009 = arith.constant 8 : index
    %1249 = memref.load %arg2[%c2_1008, %c8_1009] : memref<3x9xf32, #tpu.memory_space<smem>>
    %1250 = vector.broadcast %1249 : f32 to vector<8x8x128xf32>
    %1251 = arith.mulf %1250, %1240 : vector<8x8x128xf32>
    %1252 = arith.addf %1238, %1251 : vector<8x8x128xf32>
    %1253 = arith.maximumf %1127, %1244 : vector<8x8x128xf32>
    %1254 = arith.maximumf %1128, %1248 : vector<8x8x128xf32>
    %1255 = arith.maximumf %1129, %1252 : vector<8x8x128xf32>
    %c0_1010 = arith.constant 0 : index
    %1256 = memref.load %arg3[%c0_1010] : memref<3xf32, #tpu.memory_space<smem>>
    %1257 = vector.broadcast %1256 : f32 to vector<8x8x128xf32>
    %1258 = arith.addf %1253, %1257 : vector<8x8x128xf32>
    %cst = arith.constant 0.000000e+00 : f32
    %1259 = vector.broadcast %cst : f32 to vector<8x8x128xf32>
    %1260 = arith.maximumf %1258, %1259 : vector<8x8x128xf32>
    %1261 = vector.shape_cast %1260 : vector<8x8x128xf32> to vector<64x128xf32>
    %c0_1011 = arith.constant 0 : index
    %c0_1012 = arith.constant 0 : index
    %c0_1013 = arith.constant 0 : index
    %1262 = vector.load %arg4[%c0_1011, %c0_1012, %c0_1013] : memref<3x10x64xf32, #tpu.memory_space<vmem>>, vector<1x10x64xf32>
    %1263 = vector.shape_cast %1262 : vector<1x10x64xf32> to vector<10x64xf32>
    %cst_1014 = arith.constant dense<0.000000e+00> : vector<10x128xf32>
    %1264 = tpu.matmul %1263, %1261, %cst_1014 {dimension_numbers = #tpu.dot_dimension_numbers<[1], [0], [0], [1], [0, 0, 1, 1], [], []>, precision = #tpu.contract_precision<fp32>} : vector<10x64xf32>, vector<64x128xf32>, vector<10x128xf32> -> vector<10x128xf32>
    %c1_1015 = arith.constant 1 : index
    %1265 = memref.load %arg3[%c1_1015] : memref<3xf32, #tpu.memory_space<smem>>
    %1266 = vector.broadcast %1265 : f32 to vector<8x8x128xf32>
    %1267 = arith.addf %1254, %1266 : vector<8x8x128xf32>
    %cst_1016 = arith.constant 0.000000e+00 : f32
    %1268 = vector.broadcast %cst_1016 : f32 to vector<8x8x128xf32>
    %1269 = arith.maximumf %1267, %1268 : vector<8x8x128xf32>
    %1270 = vector.shape_cast %1269 : vector<8x8x128xf32> to vector<64x128xf32>
    %c1_1017 = arith.constant 1 : index
    %c0_1018 = arith.constant 0 : index
    %c0_1019 = arith.constant 0 : index
    %1271 = vector.load %arg4[%c1_1017, %c0_1018, %c0_1019] : memref<3x10x64xf32, #tpu.memory_space<vmem>>, vector<1x10x64xf32>
    %1272 = vector.shape_cast %1271 : vector<1x10x64xf32> to vector<10x64xf32>
    %cst_1020 = arith.constant dense<0.000000e+00> : vector<10x128xf32>
    %1273 = tpu.matmul %1272, %1270, %cst_1020 {dimension_numbers = #tpu.dot_dimension_numbers<[1], [0], [0], [1], [0, 0, 1, 1], [], []>, precision = #tpu.contract_precision<fp32>} : vector<10x64xf32>, vector<64x128xf32>, vector<10x128xf32> -> vector<10x128xf32>
    %1274 = arith.addf %1264, %1273 : vector<10x128xf32>
    %c2_1021 = arith.constant 2 : index
    %1275 = memref.load %arg3[%c2_1021] : memref<3xf32, #tpu.memory_space<smem>>
    %1276 = vector.broadcast %1275 : f32 to vector<8x8x128xf32>
    %1277 = arith.addf %1255, %1276 : vector<8x8x128xf32>
    %cst_1022 = arith.constant 0.000000e+00 : f32
    %1278 = vector.broadcast %cst_1022 : f32 to vector<8x8x128xf32>
    %1279 = arith.maximumf %1277, %1278 : vector<8x8x128xf32>
    %1280 = vector.shape_cast %1279 : vector<8x8x128xf32> to vector<64x128xf32>
    %c2_1023 = arith.constant 2 : index
    %c0_1024 = arith.constant 0 : index
    %c0_1025 = arith.constant 0 : index
    %1281 = vector.load %arg4[%c2_1023, %c0_1024, %c0_1025] : memref<3x10x64xf32, #tpu.memory_space<vmem>>, vector<1x10x64xf32>
    %1282 = vector.shape_cast %1281 : vector<1x10x64xf32> to vector<10x64xf32>
    %cst_1026 = arith.constant dense<0.000000e+00> : vector<10x128xf32>
    %1283 = tpu.matmul %1282, %1280, %cst_1026 {dimension_numbers = #tpu.dot_dimension_numbers<[1], [0], [0], [1], [0, 0, 1, 1], [], []>, precision = #tpu.contract_precision<fp32>} : vector<10x64xf32>, vector<64x128xf32>, vector<10x128xf32> -> vector<10x128xf32>
    %1284 = arith.addf %1274, %1283 : vector<10x128xf32>
    %c0_1027 = arith.constant 0 : index
    %c0_1028 = arith.constant 0 : index
    %1285 = vector.load %arg5[%c0_1027, %c0_1028] : memref<10x1xf32, #tpu.memory_space<vmem>>, vector<10x1xf32>
    %1286 = vector.broadcast %1285 : vector<10x1xf32> to vector<10x128xf32>
    %1287 = arith.addf %1284, %1286 : vector<10x128xf32>
    %cst_1029 = arith.constant dense<0xFF800000> : vector<128xf32>
    %1288 = vector.multi_reduction <maximumf>, %1287, %cst_1029 [0] : vector<10x128xf32> to vector<128xf32>
    %1289 = vector.shape_cast %1288 : vector<128xf32> to vector<1x128xf32>
    %1290 = vector.broadcast %1289 : vector<1x128xf32> to vector<10x128xf32>
    %1291 = arith.subf %1287, %1290 : vector<10x128xf32>
    %1292 = math.exp %1291 : vector<10x128xf32>
    %cst_1030 = arith.constant dense<0.000000e+00> : vector<128xf32>
    %1293 = vector.multi_reduction <add>, %1292, %cst_1030 [0] : vector<10x128xf32> to vector<128xf32>
    %1294 = vector.shape_cast %1293 : vector<128xf32> to vector<1x128xf32>
    %1295 = math.log %1294 : vector<1x128xf32>
    %1296 = vector.broadcast %1295 : vector<1x128xf32> to vector<10x128xf32>
    %1297 = arith.subf %1291, %1296 : vector<10x128xf32>
    %c0_1031 = arith.constant 0 : index
    %c0_1032 = arith.constant 0 : index
    %1298 = vector.load %arg6[%c0_1031, %c0_1032] : memref<10x128xf32, #tpu.memory_space<vmem>>, vector<10x128xf32>
    tpu.vector_store %arg6[%c0_1031, %c0_1032], %1297 {strides = array<i32>} : memref<10x128xf32, #tpu.memory_space<vmem>>, vector<10x128xf32>,
    return
  }
  func.func @transform_0(%arg0: i32) -> (i32, i32, i32, i32, i32) {
    %c0_i32 = arith.constant 0 : i32
    %c0_i32_0 = arith.constant 0 : i32
    %c0_i32_1 = arith.constant 0 : i32
    %c0_i32_2 = arith.constant 0 : i32
    %c0_i32_3 = arith.constant 0 : i32
    return %c0_i32, %c0_i32_0, %c0_i32_1, %c0_i32_2, %arg0 : i32, i32, i32, i32, i32
  }
  func.func @transform_1(%arg0: i32) -> (i32, i32) {
    %c0_i32 = arith.constant 0 : i32
    %c0_i32_0 = arith.constant 0 : i32
    %c0_i32_1 = arith.constant 0 : i32
    return %c0_i32, %c0_i32_0 : i32, i32
  }
  func.func @transform_2(%arg0: i32) -> i32 {
    %c0_i32 = arith.constant 0 : i32
    %c0_i32_0 = arith.constant 0 : i32
    return %c0_i32 : i32
  }
  func.func @transform_3(%arg0: i32) -> (i32, i32, i32) {
    %c0_i32 = arith.constant 0 : i32
    %c0_i32_0 = arith.constant 0 : i32
    %c0_i32_1 = arith.constant 0 : i32
    %c0_i32_2 = arith.constant 0 : i32
    return %c0_i32, %c0_i32_0, %c0_i32_1 : i32, i32, i32
  }
  func.func @transform_4(%arg0: i32) -> (i32, i32) {
    %c0_i32 = arith.constant 0 : i32
    %c0_i32_0 = arith.constant 0 : i32
    %c0_i32_1 = arith.constant 0 : i32
    return %c0_i32, %c0_i32_0 : i32, i32
  }
  func.func @transform_5(%arg0: i32) -> (i32, i32) {
    %c0_i32 = arith.constant 0 : i32
    %c0_i32_0 = arith.constant 0 : i32
    return %c0_i32, %arg0 : i32, i32
  }
}

</mosaic_0001>

<bundles_post_ra>
// kernel: tpu_custom_call.1
= control target key start
LH: loop header
LB: loop body
LE: loop exit
PB: predicated region body
PF: predicated region fallthrough
CT: control target
= control target key end

     0   :  { %10 = vsyncpa [#allocation5], 0  ;;  %s14697_s0 = inlined_call_operand.vmem [shape: f32[3,3,9,9,128], index: 0, kind: input, shape index: {}]   ;;  %s14698_s1 = inlined_call_operand.vmem [shape: f32[3,9], index: 1, kind: input, shape index: {}]   ;;  %s14699_s2 = inlined_call_operand.vmem [shape: f32[3], index: 2, kind: input, shape index: {}]   ;;  %s14700_s3 = inlined_call_operand.vmem [shape: f32[3,10,64], index: 3, kind: input, shape index: {}]   ;;  %s14701_s4 = inlined_call_operand.vmem [shape: f32[10,1], index: 4, kind: input, shape index: {}]   ;;  %s14702_s5 = inlined_call_operand.hbm [shape: f32[10,128], index: 5, kind: output, shape index: {}]  }
   0x1   :  { %11 = vsyncpa [#allocation7], 0 }
   0x2   :  { %12 = vsyncpa [#allocation4], 0  ;;  %s21_s20 = sshll.u32 %s14698_s1, 4  ;;  %s31_s23 = sshll.u32 %s14699_s2, 4  ;;  %s22_s20 = int_to_ptr.vmem [resolvable:$true] %s21_s20  ;;  %s32_s23 = int_to_ptr.vmem [resolvable:$true] %s31_s23 }
   0x3   :  { %s7806_s24 = scalar_lea.vmem %s22_s20, 64  ;;  %p7811_p1 = scmp.lt.s32.totalorder %s22_s20, %s22_s20 }
   0x4   :  { %p7807_p0 = scmp.ne.s32.totalorder %s22_s20, %s7806_s24  ;;  %p7812_p2 = scmp.lt.s32.totalorder %s7806_s24, %s7806_s24 }
   0x6   :  { %p7813_p3 = por %p7812_p2, %p7811_p1 }
   0x8   :  { %p7814_p4 = pnand %p7813_p3, %p7807_p0 }
   0xa   :  { %7817 = shalt.err (!%p7814_p4)
}
   0xb   :  { %s7858_s25 = smov [#allocation3]   ;;  %s7818_s26 = scalar_lea.vmem %s32_s23, 16 }
   0xc   :  { %24 = dma.vmem_to_smem %s22_s20, 64, %s7858_s25, [#allocation5]  }
   0xd   :  { %p7819_p5 = scmp.ne.s32.totalorder %s32_s23, %s7818_s26  ;;  %p7823_p6 = scmp.lt.s32.totalorder %s32_s23, %s32_s23 }
   0xe   :  { %p7824_p7 = scmp.lt.s32.totalorder %s7818_s26, %s7818_s26 }
  0x10   :  { %p7825_p8 = por %p7824_p7, %p7823_p6 }
  0x12   :  { %p7826_p9 = pnand %p7825_p8, %p7819_p5 }
  0x14   :  { %7829 = shalt.err (!%p7826_p9)
}
  0x15   :  { %s7859_s1 = smov [#allocation6]  }
  0x16   :  { %34 = dma.vmem_to_smem %s32_s23, 16, %s7859_s1, [#allocation7]  }
  0x17   :  { %7852 = dma.done.wait [#allocation5], 64  }
  0x18   :  { %7853 = vsyncadd [#allocation5], 4294967232 }
  0x19   :  { %7854 = dma.done.wait [#allocation7], 16  }
  0x1a   :  { %7855 = vsyncadd [#allocation7], 4294967280 }
  0x1b   :  { %45 = sfence }
  0x1c   :  { %s6670_s2 = sld [smem:[#allocation3 + $0x80]]  ;;  %s6673_s27 = sld [smem:[#allocation3 + $0x81]]  ;;  %v7903_v0 = vld [vmem:[%s14697_s0] sm:$0xff]  ;;  %v7908_v1 = vld [vmem:[%s14697_s0 + $0x10] sm:$0xff]  ;;  %vm4643_vm0 = vcmask 523264   ;;  %vm6439_vm1 = vcmask 1041408  }
  0x1d   :  { %s6676_s28 = sld [smem:[#allocation3 + $0x82]]  ;;  %s6679_s29 = sld [smem:[#allocation3 + $0x83]]  ;;  %15056 = vst [vmem:[#allocation12_spill] sm:$0xff] %v7903_v0  ;;  %v7913_v2 = vld [vmem:[%s14697_s0 + $0x90] sm:$0xff]  ;;  %v7920_v3 = vld [vmem:[%s14697_s0 + $0xa0] sm:$0xff] }
  0x1e   :  { %15057 = vst [vmem:[#allocation13_spill] sm:$0xff] %v7913_v2  ;;  %s7915_s11 = sld [smem:[#allocation3 + $0x84]]  ;;  %s7922_s14 = sld [smem:[#allocation3 + $0x85]]  ;;  %v7927_v4 = vld [vmem:[%s14697_s0 + $0x120] sm:$0xff]  ;;  %v7936_v6 = vld [vmem:[%s14697_s0 + $0x1b0] sm:$0xff] }
  0x1f   :  { %15058 = vst [vmem:[#allocation14_spill] sm:$0xff] %v7927_v4  ;;  %s7931_s17 = sld [smem:[#allocation3 + $0x86]]  ;;  %15060 = vst [vmem:[#allocation16_spill] sm:$0xff] %v7936_v6  ;;  %v7941_v7 = vld [vmem:[%s14697_s0 + $0x1c0] sm:$0xff]  ;;  %s7949_s22 = sld [smem:[#allocation3 + $0x87]]  ;;  %v7956_v12 = vld [vmem:[%s14697_s0 + $0x130] sm:$0xff] }
  0x20   :  { %15061 = vst [vmem:[#allocation17_spill] sm:$0xff] %v7941_v7  ;;  %v7961_v13 = vld [vmem:[%s14697_s0 + $0x1] sm:$0xff]  ;;  %s7969_s1 = sld [smem:[#allocation3 + $0x88]]  ;;  %v7993_v27 = vld [vmem:[%s14697_s0 + $0x250] sm:$0xff]  ;;  %s8446_s7 = sld [smem:[#allocation6 + $0x1]] }
  0x21   :  { %15063 = vst [vmem:[#allocation19_spill] sm:$0xff] %v7961_v13  ;;  %v7988_v26 = vld [vmem:[%s14697_s0 + $0x240] sm:$0xff]  ;;  %v8005_v32 = vld [vmem:[%s14697_s0 + $0x11] sm:$0xff]  ;;  %s8448_s8 = sld [smem:[#allocation3]]  ;;  %s8458_s9 = sld [smem:[#allocation3 + $0x1]] }
  0x22   :  { %v7929_v5 = vstv %s6670_s2  ;;  %v7947_v10 = vstv %s6673_s27  ;;  %v8010_v33 = vld [vmem:[%s14697_s0 + $0x2d0] sm:$0xff]  ;;  %v8015_v34 = vld [vmem:[%s14697_s0 + $0x2e0] sm:$0xff]  ;;  %s8460_s10 = sld [smem:[#allocation3 + $0x2]]  ;;  %s8475_s13 = sld [smem:[#allocation3 + $0x3]] }
  0x23   :  { %15059 = vst [vmem:[#allocation15_spill] sm:$0xff] %v7929_v5  ;;  %v504_v8 = vmul.f32 %v7929_v5, %v7903_v0  ;;  %v505_v9 = vmul.f32 %v7929_v5, %v7908_v1  ;;  %15062 = vst [vmem:[#allocation18_spill] sm:$0xff] %v7947_v10  ;;  %v1026_v11 = vmul.f32 %v7913_v2, %v7929_v5  ;;  %v7967_v16 = vstv %s6676_s28  ;;  %v8024_v39 = vld [vmem:[%s14697_s0 + $0x360] sm:$0xff]  ;;  %v8038_v44 = vld [vmem:[%s14697_s0 + $0x370] sm:$0xff]  ;;  %s8477_s15 = sld [smem:[#allocation3 + $0x4]]  ;;  %s8491_s16 = sld [smem:[#allocation3 + $0x5]] }
  0x24   :  { %v550_v14 = vmul.f32 %v7913_v2, %v7947_v10  ;;  %v551_v15 = vmul.f32 %v7920_v3, %v7947_v10  ;;  %15064 = vst [vmem:[#allocation20_spill] sm:$0xff] %v7967_v16  ;;  %v1027_v17 = vmul.f32 %v7920_v3, %v7929_v5  ;;  %v612_v18 = vmul.f32 %v7927_v4, %v7967_v16  ;;  %v8043_v45 = vld [vmem:[%s14697_s0 + $0x3f0] sm:$0xff]  ;;  %v8048_v46 = vld [vmem:[%s14697_s0 + $0x400] sm:$0xff]  ;;  %s8493_s18 = sld [smem:[#allocation3 + $0x6]]  ;;  %s8513_s19 = sld [smem:[#allocation3 + $0x7]] }
  0x25   :  { %v613_v19 = vmul.f32 %v7956_v12, %v7967_v16  ;;  %v7977_v20 = vstv %s6679_s29  ;;  %v1058_v21 = vmul.f32 %v7927_v4, %v7947_v10  ;;  %v7996_v28 = vstv %s7915_s11  ;;  %15067 = vst [vmem:[#allocation23_spill] sm:$0xff] %v8024_v39  ;;  %15071 = vst [vmem:[#allocation27_spill] sm:$0xff] %v8038_v44  ;;  %v8065_v55 = vld [vmem:[%s14697_s0 + $0x1b1] sm:$0xff]  ;;  %v8070_v56 = vld [vmem:[%s14697_s0 + $0x480] sm:$0xff]  ;;  %s8515_s20 = sld [smem:[#allocation3 + $0x8]]  ;;  %s12119_s11 = sld [smem:[#allocation3 + $0x101]] }
  0x26   :  { %15065 = vst [vmem:[#allocation21_spill] sm:$0xff] %v7977_v20  ;;  %v558_v22 = vadd.f32 %v550_v14, %v504_v8  ;;  %v559_v23 = vadd.f32 %v551_v15, %v505_v9  ;;  %v674_v24 = vmul.f32 %v7936_v6, %v7977_v20  ;;  %v675_v25 = vmul.f32 %v7941_v7, %v7977_v20  ;;  %v8075_v57 = vld [vmem:[%s14697_s0 + $0x490] sm:$0xff]  ;;  %v8085_v62 = vld [vmem:[%s14697_s0 + $0x1c1] sm:$0xff]  ;;  %s8923_s2 = sld [smem:[#allocation6]]  ;;  %s12137_s12 = sld [smem:[#allocation3 + $0x102]] }
  0x27   :  { %15066 = vst [vmem:[#allocation22_spill] sm:$0xff] %v7996_v28  ;;  %v1059_v29 = vmul.f32 %v7956_v12, %v7947_v10  ;;  %v1066_v30 = vadd.f32 %v1058_v21, %v1026_v11  ;;  %v1114_v31 = vmul.f32 %v7967_v16, %v7961_v13  ;;  %v736_v37 = vmul.f32 %v7988_v26, %v7996_v28  ;;  %v8234_v0 = vld [vmem:[%s14697_s0 + $0x140] sm:$0xff] }
  0x28   :  { %v620_v35 = vadd.f32 %v612_v18, %v558_v22  ;;  %v621_v36 = vadd.f32 %v613_v19, %v559_v23  ;;  %v737_v38 = vmul.f32 %v7993_v27, %v7996_v28  ;;  %v8027_v40 = vstv %s7922_s14  ;;  %15072 = vst [vmem:[#allocation28_spill] sm:$0xff] %v8065_v55 }
  0x29   :  { %15068 = vst [vmem:[#allocation24_spill] sm:$0xff] %v8027_v40  ;;  %v8030_v41 = vstv %s7931_s17  ;;  %v8033_v42 = vstv %s7949_s22  ;;  %v1067_v43 = vadd.f32 %v1059_v29, %v1027_v17  ;;  %v798_v49 = vmul.f32 %v8010_v33, %v8027_v40 }
  0x2a   :  { %15069 = vst [vmem:[#allocation25_spill] sm:$0xff] %v8030_v41  ;;  %15070 = vst [vmem:[#allocation26_spill] sm:$0xff] %v8033_v42  ;;  %v682_v47 = vadd.f32 %v674_v24, %v620_v35  ;;  %v683_v48 = vadd.f32 %v675_v25, %v621_v36  ;;  %v799_v50 = vmul.f32 %v8015_v34, %v8027_v40  ;;  %v8078_v60 = vstv %s7969_s1  ;;  %v8104_v24 = vld [vmem:[%s14697_s0 + $0x361] sm:$0xff]  ;;  %v8109_v25 = vld [vmem:[%s14697_s0 + $0x371] sm:$0xff] }
  0x2b   :  { %v860_v51 = vmul.f32 %v8024_v39, %v8030_v41  ;;  %v861_v52 = vmul.f32 %v8038_v44, %v8030_v41  ;;  %v922_v53 = vmul.f32 %v8043_v45, %v8033_v42  ;;  %v923_v54 = vmul.f32 %v8048_v46, %v8033_v42  ;;  %15073 = vst [vmem:[#allocation29_spill] sm:$0xff] %v8078_v60 }
  0x2c   :  { %v744_v58 = vadd.f32 %v736_v37, %v682_v47  ;;  %v745_v59 = vadd.f32 %v737_v38, %v683_v48  ;;  %v1115_v61 = vmul.f32 %v7967_v16, %v8005_v32  ;;  %v984_v63 = vmul.f32 %v8070_v56, %v8078_v60  ;;  %v8122_v47 = vld [vmem:[%s14697_s0 + $0x91] sm:$0xff] }
  0x2d   :  { %v985_v8 = vmul.f32 %v8075_v57, %v8078_v60  ;;  %v1122_v9 = vadd.f32 %v1114_v31, %v1066_v30  ;;  %v1162_v11 = vmul.f32 %v7988_v26, %v7977_v20  ;;  %v1163_v18 = vmul.f32 %v7993_v27, %v7977_v20  ;;  %15074 = vst [vmem:[#allocation30_spill] sm:$0xff] %v8122_v47 }
  0x2e   :  { %v806_v14 = vadd.f32 %v798_v49, %v744_v58  ;;  %v807_v15 = vadd.f32 %v799_v50, %v745_v59  ;;  %v1123_v17 = vadd.f32 %v1115_v61, %v1067_v43  ;;  %v1210_v21 = vmul.f32 %v8010_v33, %v7996_v28 }
  0x2f   :  { %v1170_v19 = vadd.f32 %v1162_v11, %v1122_v9  ;;  %v1211_v22 = vmul.f32 %v8015_v34, %v7996_v28  ;;  %v1266_v23 = vmul.f32 %v8065_v55, %v8027_v40  ;;  %v1267_v35 = vmul.f32 %v8085_v62, %v8027_v40 }
  0x30   :  { %v868_v29 = vadd.f32 %v860_v51, %v806_v14  ;;  %v869_v30 = vadd.f32 %v861_v52, %v807_v15  ;;  %v1171_v31 = vadd.f32 %v1163_v18, %v1123_v17  ;;  %v1314_v37 = vmul.f32 %v8043_v45, %v8030_v41  ;;  %v8129_v52 = vld [vmem:[%s14697_s0 + $0xa1] sm:$0xff]  ;;  %v8151_v17 = vld [vmem:[%s14697_s0 + $0x251] sm:$0xff] }
  0x31   :  { %v1218_v36 = vadd.f32 %v1210_v21, %v1170_v19  ;;  %v1315_v38 = vmul.f32 %v8048_v46, %v8030_v41  ;;  %v1362_v43 = vmul.f32 %v8070_v56, %v8033_v42  ;;  %v1363_v51 = vmul.f32 %v8075_v57, %v8033_v42  ;;  %15075 = vst [vmem:[#allocation31_spill] sm:$0xff] %v8129_v52  ;;  %v8146_v15 = vld [vmem:[%s14697_s0 + $0x241] sm:$0xff] }
  0x32   :  { %v930_v48 = vadd.f32 %v922_v53, %v868_v29  ;;  %v931_v49 = vadd.f32 %v923_v54, %v869_v30  ;;  %v1219_v50 = vadd.f32 %v1211_v22, %v1171_v31  ;;  %v1418_v59 = vmul.f32 %v8104_v24, %v8078_v60  ;;  %15076 = vst [vmem:[#allocation32_spill] sm:$0xff] %v8146_v15 }
  0x33   :  { %v1274_v58 = vadd.f32 %v1266_v23, %v1218_v36  ;;  %v1419_v61 = vmul.f32 %v8109_v25, %v8078_v60  ;;  %v1482_v53 = vmul.f32 %v7927_v4, %v7929_v5  ;;  %v1483_v14 = vmul.f32 %v7956_v12, %v7929_v5 }
  0x34   :  { %v8137_v54 = vadd.f32 %v984_v63, %v930_v48  ;;  %v8139_v9 = vadd.f32 %v985_v8, %v931_v49  ;;  %v1275_v11 = vadd.f32 %v1267_v35, %v1219_v50  ;;  %v1514_v63 = vmul.f32 %v7947_v10, %v7961_v13  ;;  %v8181_v50 = vld [vmem:[%s14697_s0 + $0x401] sm:$0xff] }
  0x35   :  { %v1322_v18 = vadd.f32 %v1314_v37, %v1274_v58  ;;  %v1515_v8 = vmul.f32 %v7947_v10, %v8005_v32  ;;  %v1570_v19 = vmul.f32 %v8122_v47, %v7967_v16  ;;  %v1571_v22 = vmul.f32 %v8129_v52, %v7967_v16  ;;  %v8170_v37 = vld [vmem:[%s14697_s0 + $0x3f1] sm:$0xff] }
  0x36   :  { %v1323_v21 = vadd.f32 %v1315_v38, %v1275_v11  ;;  %v1618_v23 = vmul.f32 %v8010_v33, %v7977_v20  ;;  %v1619_v29 = vmul.f32 %v8015_v34, %v7977_v20  ;;  %v1522_v31 = vadd.f32 %v1514_v63, %v1482_v53 }
  0x37   :  { %v1370_v30 = vadd.f32 %v1362_v43, %v1322_v18  ;;  %v1523_v35 = vadd.f32 %v1515_v8, %v1483_v14  ;;  %v1666_v36 = vmul.f32 %v8065_v55, %v7996_v28  ;;  %v1667_v48 = vmul.f32 %v8085_v62, %v7996_v28 }
  0x38   :  { %v1371_v38 = vadd.f32 %v1363_v51, %v1323_v21  ;;  %v1722_v49 = vmul.f32 %v8146_v15, %v8027_v40  ;;  %v1723_v43 = vmul.f32 %v8151_v17, %v8027_v40  ;;  %v1578_v53 = vadd.f32 %v1570_v19, %v1522_v31 }
  0x39   :  { %v1426_v58 = vadd.f32 %v1418_v59, %v1370_v30  ;;  %v1579_v11 = vadd.f32 %v1571_v22, %v1523_v35  ;;  %v1770_v51 = vmul.f32 %v8070_v56, %v8030_v41  ;;  %v1771_v18 = vmul.f32 %v8075_v57, %v8030_v41 }
  0x3a   :  { %v1427_v14 = vadd.f32 %v1419_v61, %v1371_v38  ;;  %v1818_v63 = vmul.f32 %v8104_v24, %v8033_v42  ;;  %v1819_v8 = vmul.f32 %v8109_v25, %v8033_v42  ;;  %v1626_v47 = vadd.f32 %v1618_v23, %v1578_v53 }
  0x3b   :  { %v1458_v21 = vmax.f32 %v8137_v54, %v1426_v58  ;;  %v1627_v13 = vadd.f32 %v1619_v29, %v1579_v11  ;;  %v1874_v59 = vmul.f32 %v8170_v37, %v8078_v60  ;;  %v1875_v61 = vmul.f32 %v8181_v50, %v8078_v60 }
  0x3c   :  { %v1459_v19 = vmax.f32 %v8139_v9, %v1427_v14  ;;  %v1938_v22 = vmul.f32 %v7936_v6, %v7929_v5  ;;  %v1939_v30 = vmul.f32 %v7941_v7, %v7929_v5  ;;  %v1674_v31 = vadd.f32 %v1666_v36, %v1626_v47  ;;  %v8221_v47 = vld [vmem:[%s14697_s0 + $0xb0] sm:$0xff] }
  0x3d   :  { %v1675_v35 = vadd.f32 %v1667_v48, %v1627_v13  ;;  %v1970_v54 = vmul.f32 %v7988_v26, %v7947_v10  ;;  %v1971_v23 = vmul.f32 %v7993_v27, %v7947_v10  ;;  %v2018_v9 = vmul.f32 %v8010_v33, %v7967_v16  ;;  %v8216_v13 = vld [vmem:[%s14697_s0 + $0x20] sm:$0xff] }
  0x3e   :  { %v2019_v29 = vmul.f32 %v8015_v34, %v7967_v16  ;;  %v2066_v38 = vmul.f32 %v8024_v39, %v7977_v20  ;;  %v2067_v58 = vmul.f32 %v8038_v44, %v7977_v20  ;;  %15077 = vst [vmem:[#allocation33_spill] sm:$0xff] %v8216_v13  ;;  %v1730_v36 = vadd.f32 %v1722_v49, %v1674_v31 }
  0x3f   :  { %v1731_v48 = vadd.f32 %v1723_v43, %v1675_v35  ;;  %v1978_v53 = vadd.f32 %v1970_v54, %v1938_v22  ;;  %v1979_v11 = vadd.f32 %v1971_v23, %v1939_v30  ;;  %v2114_v14 = vmul.f32 %v8043_v45, %v7996_v28 }
  0x40   :  { %v2115_v6 = vmul.f32 %v8048_v46, %v7996_v28  ;;  %v2162_v4 = vmul.f32 %v8070_v56, %v8027_v40  ;;  %v2163_v2 = vmul.f32 %v8075_v57, %v8027_v40  ;;  %v1778_v49 = vadd.f32 %v1770_v51, %v1730_v36 }
  0x41   :  { %v1779_v43 = vadd.f32 %v1771_v18, %v1731_v48  ;;  %v2026_v22 = vadd.f32 %v2018_v9, %v1978_v53  ;;  %v2027_v30 = vadd.f32 %v2019_v29, %v1979_v11  ;;  %v2218_v31 = vmul.f32 %v8030_v41, %v7908_v1 }
  0x42   :  { %v2219_v35 = vmul.f32 %v8216_v13, %v8030_v41  ;;  %v2274_v54 = vmul.f32 %v7920_v3, %v8033_v42  ;;  %v2275_v23 = vmul.f32 %v8221_v47, %v8033_v42  ;;  %v1826_v7 = vadd.f32 %v1818_v63, %v1778_v49 }
  0x43   :  { %v1827_v44 = vadd.f32 %v1819_v8, %v1779_v43  ;;  %v2074_v39 = vadd.f32 %v2066_v38, %v2026_v22  ;;  %v2075_v52 = vadd.f32 %v2067_v58, %v2027_v30  ;;  %v2330_v51 = vmul.f32 %v7956_v12, %v8078_v60 }
  0x44   :  { %v2331_v18 = vmul.f32 %v8234_v0, %v8078_v60  ;;  %v2394_v9 = vmul.f32 %v7988_v26, %v7929_v5  ;;  %v2395_v29 = vmul.f32 %v7993_v27, %v7929_v5  ;;  %v1882_v36 = vadd.f32 %v1874_v59, %v1826_v7 }
  0x45   :  { %v1883_v48 = vadd.f32 %v1875_v61, %v1827_v44  ;;  %v2122_v53 = vadd.f32 %v2114_v14, %v2074_v39  ;;  %v2123_v11 = vadd.f32 %v2115_v6, %v2075_v52  ;;  %v2426_v63 = vmul.f32 %v8010_v33, %v7947_v10 }
  0x46   :  { %v2427_v8 = vmul.f32 %v8015_v34, %v7947_v10  ;;  %v2474_v38 = vmul.f32 %v8065_v55, %v7967_v16  ;;  %v2475_v58 = vmul.f32 %v8085_v62, %v7967_v16  ;;  %v8260_v49 = vmax.f32 %v1458_v21, %v1882_v36 }
  0x47   :  { %v8262_v43 = vmax.f32 %v1459_v19, %v1883_v48  ;;  %v2170_v7 = vadd.f32 %v2162_v4, %v2122_v53  ;;  %v2171_v44 = vadd.f32 %v2163_v2, %v2123_v11  ;;  %v2434_v39 = vadd.f32 %v2426_v63, %v2394_v9  ;;  %v8275_v2 = vld [vmem:[%s14697_s0 + $0x21] sm:$0xff] }
  0x48   :  { %v2435_v6 = vadd.f32 %v2427_v8, %v2395_v29  ;;  %v2522_v52 = vmul.f32 %v8043_v45, %v7977_v20  ;;  %v2523_v59 = vmul.f32 %v8048_v46, %v7977_v20  ;;  %v2570_v22 = vmul.f32 %v8070_v56, %v7996_v28 }
  0x49   :  { %v2226_v61 = vadd.f32 %v2218_v31, %v2170_v7  ;;  %v2227_v14 = vadd.f32 %v2219_v35, %v2171_v44  ;;  %v2571_v21 = vmul.f32 %v8075_v57, %v7996_v28  ;;  %v2482_v4 = vadd.f32 %v2474_v38, %v2434_v39 }
  0x4a   :  { %v2483_v19 = vadd.f32 %v2475_v58, %v2435_v6  ;;  %v2618_v30 = vmul.f32 %v8104_v24, %v8027_v40  ;;  %v2619_v31 = vmul.f32 %v8109_v25, %v8027_v40  ;;  %v2666_v29 = vmul.f32 %v7920_v3, %v8030_v41 }
  0x4b   :  { %v2282_v35 = vadd.f32 %v2274_v54, %v2226_v61  ;;  %v2283_v9 = vadd.f32 %v2275_v23, %v2227_v14  ;;  %v2667_v36 = vmul.f32 %v8221_v47, %v8030_v41  ;;  %v2530_v48 = vadd.f32 %v2522_v52, %v2482_v4 }
  0x4c   :  { %v2531_v53 = vadd.f32 %v2523_v59, %v2483_v19  ;;  %v2714_v11 = vmul.f32 %v7956_v12, %v8033_v42  ;;  %v2715_v63 = vmul.f32 %v8234_v0, %v8033_v42  ;;  %v2770_v54 = vmul.f32 %v8078_v60, %v8005_v32 }
  0x4d   :  { %v2338_v8 = vadd.f32 %v2330_v51, %v2282_v35  ;;  %v2339_v38 = vadd.f32 %v2331_v18, %v2283_v9  ;;  %v2771_v23 = vmul.f32 %v8275_v2, %v8078_v60  ;;  %v2578_v58 = vadd.f32 %v2570_v22, %v2530_v48  ;;  %v8318_v9 = vld [vmem:[%s14697_s0 + $0xb1] sm:$0xff] }
  0x4e   :  { %v2579_v7 = vadd.f32 %v2571_v21, %v2531_v53  ;;  %v2834_v44 = vmul.f32 %v8010_v33, %v7929_v5  ;;  %v2835_v39 = vmul.f32 %v8015_v34, %v7929_v5  ;;  %v2866_v51 = vmul.f32 %v8065_v55, %v7947_v10 }
  0x4f   :  { %v2370_v6 = vmax.f32 %v8260_v49, %v2338_v8  ;;  %v2371_v52 = vmax.f32 %v8262_v43, %v2339_v38  ;;  %v2867_v18 = vmul.f32 %v8085_v62, %v7947_v10  ;;  %v2626_v59 = vadd.f32 %v2618_v30, %v2578_v58 }
  0x50   :  { %v2627_v61 = vadd.f32 %v2619_v31, %v2579_v7  ;;  %v2914_v14 = vmul.f32 %v8146_v15, %v7967_v16  ;;  %v2915_v22 = vmul.f32 %v8151_v17, %v7967_v16  ;;  %v2874_v21 = vadd.f32 %v2866_v51, %v2834_v44 }
  0x51   :  { %v2875_v4 = vadd.f32 %v2867_v18, %v2835_v39  ;;  %v2962_v49 = vmul.f32 %v8070_v56, %v7977_v20  ;;  %v2963_v43 = vmul.f32 %v8075_v57, %v7977_v20  ;;  %v2674_v19 = vadd.f32 %v2666_v29, %v2626_v59 }
  0x52   :  { %v2675_v35 = vadd.f32 %v2667_v36, %v2627_v61  ;;  %v3010_v30 = vmul.f32 %v8104_v24, %v7996_v28  ;;  %v3011_v31 = vmul.f32 %v8109_v25, %v7996_v28  ;;  %v2922_v48 = vadd.f32 %v2914_v14, %v2874_v21  ;;  %v15078_v14 = vld [vmem:[#allocation31_spill] sm:$0xff] }
  0x53   :  { %v2923_v53 = vadd.f32 %v2915_v22, %v2875_v4  ;;  %v3058_v8 = vmul.f32 %v8170_v37, %v8027_v40  ;;  %v3059_v29 = vmul.f32 %v8181_v50, %v8027_v40  ;;  %v2722_v36 = vadd.f32 %v2714_v11, %v2674_v19  ;;  %v15079_v4 = vld [vmem:[#allocation23_spill] sm:$0xff] }
  0x54   :  { %v2723_v38 = vadd.f32 %v2715_v63, %v2675_v35  ;;  %v3106_v58 = vmul.f32 %v7956_v12, %v8030_v41  ;;  %v3107_v7 = vmul.f32 %v8234_v0, %v8030_v41  ;;  %v2970_v44 = vadd.f32 %v2962_v49, %v2922_v48 }
  0x55   :  { %v2971_v39 = vadd.f32 %v2963_v43, %v2923_v53  ;;  %v3154_v51 = vmul.f32 %v8033_v42, %v8005_v32  ;;  %v3155_v18 = vmul.f32 %v8275_v2, %v8033_v42  ;;  %v2778_v59 = vadd.f32 %v2770_v54, %v2722_v36  ;;  %v15080_v43 = vld [vmem:[#allocation27_spill] sm:$0xff] }
  0x56   :  { %v2779_v61 = vadd.f32 %v2771_v23, %v2723_v38  ;;  %v3210_v11 = vmul.f32 %v15078_v14, %v8078_v60  ;;  %v3211_v63 = vmul.f32 %v8318_v9, %v8078_v60  ;;  %v3018_v22 = vadd.f32 %v3010_v30, %v2970_v44 }
  0x57   :  { %v3019_v21 = vadd.f32 %v3011_v31, %v2971_v39  ;;  %v3274_v49 = vmul.f32 %v15079_v4, %v7929_v5  ;;  %v3275_v19 = vmul.f32 %v15080_v43, %v7929_v5  ;;  %v8340_v35 = vmax.f32 %v2370_v6, %v2778_v59  ;;  %v8355_v6 = vld [vmem:[%s14697_s0 + $0x1d0] sm:$0xff] }
  0x58   :  { %v8342_v48 = vmax.f32 %v2371_v52, %v2779_v61  ;;  %v3306_v54 = vmul.f32 %v8043_v45, %v7947_v10  ;;  %v3307_v23 = vmul.f32 %v8048_v46, %v7947_v10  ;;  %v3066_v53 = vadd.f32 %v3058_v8, %v3018_v22  ;;  %15081 = vst [vmem:[#allocation31_spill] sm:$0xff] %v8355_v6 }
  0x59   :  { %v3067_v36 = vadd.f32 %v3059_v29, %v3019_v21  ;;  %v3354_v30 = vmul.f32 %v8070_v56, %v7967_v16  ;;  %v3355_v31 = vmul.f32 %v8075_v57, %v7967_v16  ;;  %v3402_v44 = vmul.f32 %v7977_v20, %v7908_v1  ;;  %v8364_v29 = vld [vmem:[%s14697_s0 + $0x260] sm:$0xff]  ;;  %v8373_v21 = vld [vmem:[%s14697_s0 + $0x2f0] sm:$0xff] }
  0x5a   :  { %v3314_v52 = vadd.f32 %v3306_v54, %v3274_v49  ;;  %v3315_v38 = vadd.f32 %v3307_v23, %v3275_v19  ;;  %v3403_v8 = vmul.f32 %v8216_v13, %v7977_v20  ;;  %v3114_v39 = vadd.f32 %v3106_v58, %v3066_v53  ;;  %v15082_v53 = vld [vmem:[#allocation17_spill] sm:$0xff] }
  0x5b   :  { %v3115_v59 = vadd.f32 %v3107_v7, %v3067_v36  ;;  %v3450_v61 = vmul.f32 %v7920_v3, %v7996_v28  ;;  %v3451_v22 = vmul.f32 %v8221_v47, %v7996_v28  ;;  %v3498_v54 = vmul.f32 %v7956_v12, %v8027_v40 }
  0x5c   :  { %v3362_v49 = vadd.f32 %v3354_v30, %v3314_v52  ;;  %v3363_v19 = vadd.f32 %v3355_v31, %v3315_v38  ;;  %v3499_v58 = vmul.f32 %v8234_v0, %v8027_v40  ;;  %v3162_v7 = vadd.f32 %v3154_v51, %v3114_v39 }
  0x5d   :  { %v3163_v23 = vadd.f32 %v3155_v18, %v3115_v59  ;;  %v3554_v36 = vmul.f32 %v15082_v53, %v8030_v41  ;;  %v3555_v13 = vmul.f32 %v8355_v6, %v8030_v41  ;;  %v3610_v30 = vmul.f32 %v7993_v27, %v8033_v42 }
  0x5e   :  { %v3410_v15 = vadd.f32 %v3402_v44, %v3362_v49  ;;  %v3411_v55 = vadd.f32 %v3403_v8, %v3363_v19  ;;  %v3611_v31 = vmul.f32 %v8364_v29, %v8033_v42  ;;  %v3218_v52 = vadd.f32 %v3210_v11, %v3162_v7 }
  0x5f   :  { %v3219_v38 = vadd.f32 %v3211_v63, %v3163_v23  ;;  %v3666_v51 = vmul.f32 %v8015_v34, %v8078_v60  ;;  %v3667_v18 = vmul.f32 %v8373_v21, %v8078_v60  ;;  %v3730_v44 = vmul.f32 %v8043_v45, %v7929_v5 }
  0x60   :  { %v3458_v39 = vadd.f32 %v3450_v61, %v3410_v15  ;;  %v3459_v59 = vadd.f32 %v3451_v22, %v3411_v55  ;;  %v3731_v8 = vmul.f32 %v8048_v46, %v7929_v5  ;;  %v3250_v49 = vmax.f32 %v8340_v35, %v3218_v52 }
  0x61   :  { %v3251_v19 = vmax.f32 %v8342_v48, %v3219_v38  ;;  %v3762_v11 = vmul.f32 %v8070_v56, %v7947_v10  ;;  %v3763_v63 = vmul.f32 %v8075_v57, %v7947_v10  ;;  %v3810_v55 = vmul.f32 %v8104_v24, %v7967_v16 }
  0x62   :  { %v3506_v7 = vadd.f32 %v3498_v54, %v3458_v39  ;;  %v3507_v23 = vadd.f32 %v3499_v58, %v3459_v59  ;;  %v3811_v15 = vmul.f32 %v8109_v25, %v7967_v16  ;;  %v3858_v35 = vmul.f32 %v7920_v3, %v7977_v20  ;;  %v8416_v39 = vld [vmem:[%s14697_s0 + $0x1d1] sm:$0xff] }
  0x63   :  { %v3770_v61 = vadd.f32 %v3762_v11, %v3730_v44  ;;  %v3771_v22 = vadd.f32 %v3763_v63, %v3731_v8  ;;  %v3859_v48 = vmul.f32 %v8221_v47, %v7977_v20  ;;  %v3906_v54 = vmul.f32 %v7956_v12, %v7996_v28  ;;  %15083 = vst [vmem:[#allocation23_spill] sm:$0xff] %v8416_v39 }
  0x64   :  { %v3562_v52 = vadd.f32 %v3554_v36, %v3506_v7  ;;  %v3563_v38 = vadd.f32 %v3555_v13, %v3507_v23  ;;  %v3907_v58 = vmul.f32 %v8234_v0, %v7996_v28  ;;  %v3954_v8 = vmul.f32 %v8027_v40, %v8005_v32 }
  0x65   :  { %v3818_v59 = vadd.f32 %v3810_v55, %v3770_v61  ;;  %v3819_v44 = vadd.f32 %v3811_v15, %v3771_v22  ;;  %v3955_v36 = vmul.f32 %v8275_v2, %v8027_v40  ;;  %v4002_v63 = vmul.f32 %v7993_v27, %v8030_v41 }
  0x66   :  { %v3618_v13 = vadd.f32 %v3610_v30, %v3562_v52  ;;  %v3619_v11 = vadd.f32 %v3611_v31, %v3563_v38  ;;  %v4003_v7 = vmul.f32 %v8364_v29, %v8030_v41  ;;  %v4050_v55 = vmul.f32 %v8015_v34, %v8033_v42 }
  0x67   :  { %v3866_v23 = vadd.f32 %v3858_v35, %v3818_v59  ;;  %v3867_v6 = vadd.f32 %v3859_v48, %v3819_v44  ;;  %v4051_v15 = vmul.f32 %v8373_v21, %v8033_v42  ;;  %v4106_v30 = vmul.f32 %v8085_v62, %v8078_v60 }
  0x68   :  { %v3674_v61 = vadd.f32 %v3666_v51, %v3618_v13  ;;  %v3675_v22 = vadd.f32 %v3667_v18, %v3619_v11  ;;  %v4107_v31 = vmul.f32 %v8416_v39, %v8078_v60  ;;  %v4170_v35 = vmul.f32 %v8070_v56, %v7929_v5 }
  0x69   :  { %v3914_v52 = vadd.f32 %v3906_v54, %v3866_v23  ;;  %v3915_v38 = vadd.f32 %v3907_v58, %v3867_v6  ;;  %v4171_v48 = vmul.f32 %v8075_v57, %v7929_v5  ;;  %v4202_v51 = vmul.f32 %v8104_v24, %v7947_v10 }
  0x6a   :  { %v8438_v59 = vmax.f32 %v3250_v49, %v3674_v61  ;;  %v8440_v44 = vmax.f32 %v3251_v19, %v3675_v22  ;;  %v4203_v18 = vmul.f32 %v8109_v25, %v7947_v10  ;;  %v4250_v58 = vmul.f32 %v8170_v37, %v7967_v16 }
  0x6b   :  { %v3962_v6 = vadd.f32 %v3954_v8, %v3914_v52  ;;  %v3963_v54 = vadd.f32 %v3955_v36, %v3915_v38  ;;  %v4251_v49 = vmul.f32 %v8181_v50, %v7967_v16  ;;  %v4210_v19 = vadd.f32 %v4202_v51, %v4170_v35  ;;  %v8469_v52 = vld [vmem:[%s14697_s0 + $0x261] sm:$0xff] }
  0x6c   :  { %v4211_v13 = vadd.f32 %v4203_v18, %v4171_v48  ;;  %v4298_v11 = vmul.f32 %v7956_v12, %v7977_v20  ;;  %v4299_v23 = vmul.f32 %v8234_v0, %v7977_v20  ;;  %v4346_v61 = vmul.f32 %v7996_v28, %v8005_v32  ;;  %15084 = vst [vmem:[#allocation27_spill] sm:$0xff] %v8469_v52 }
  0x6d   :  { %v4010_v8 = vadd.f32 %v4002_v63, %v3962_v6  ;;  %v4011_v36 = vadd.f32 %v4003_v7, %v3963_v54  ;;  %v4347_v22 = vmul.f32 %v8275_v2, %v7996_v28  ;;  %v4258_v38 = vadd.f32 %v4250_v58, %v4210_v19 }
  0x6e   :  { %v4259_v35 = vadd.f32 %v4251_v49, %v4211_v13  ;;  %v4394_v48 = vmul.f32 %v15078_v14, %v8027_v40  ;;  %v4395_v63 = vmul.f32 %v8318_v9, %v8027_v40  ;;  %v4442_v18 = vmul.f32 %v8015_v34, %v8030_v41 }
  0x6f   :  { %v4058_v7 = vadd.f32 %v4050_v55, %v4010_v8  ;;  %v4059_v51 = vadd.f32 %v4051_v15, %v4011_v36  ;;  %v4443_v6 = vmul.f32 %v8373_v21, %v8030_v41  ;;  %v4306_v54 = vadd.f32 %v4298_v11, %v4258_v38  ;;  %v15094_v41 = vld [vmem:[#allocation16_spill] sm:$0xff] }
  0x70   :  { %v4307_v58 = vadd.f32 %v4299_v23, %v4259_v35  ;;  %v4490_v49 = vmul.f32 %v8085_v62, %v8033_v42  ;;  %v4491_v19 = vmul.f32 %v8416_v39, %v8033_v42  ;;  %v4546_v15 = vmul.f32 %v8151_v17, %v8078_v60  ;;  %v15087_v35 = vld [vmem:[#allocation12_spill] sm:$0xff] }
  0x71   :  { %v4114_v13 = vadd.f32 %v4106_v30, %v4058_v7  ;;  %v4115_v55 = vadd.f32 %v4107_v31, %v4059_v51  ;;  %v4547_v8 = vmul.f32 %v8469_v52, %v8078_v60  ;;  %v4354_v11 = vadd.f32 %v4346_v61, %v4306_v54 }
  0x72   :  { %v4355_v23 = vadd.f32 %v4347_v22, %v4307_v58  ;;  %v8496_v36 = vstv %s8446_s7  ;;  %v8499_v38 = vstv %s8448_s8  ;;  %v8508_v61 = vstv %s8458_s9  ;;  %v15091_v58 = vld [vmem:[#allocation14_spill] sm:$0xff]  ;;  %s12424_s9 = sld [smem:[#allocation6 + $0x2]] }
  0x73   :  { %15085 = vst [vmem:[#allocation17_spill] sm:$0xff] %v8496_v36  ;;  %15086 = vst [vmem:[#allocation34_spill] sm:$0xff] %v8499_v38  ;;  %v4146_v30 = vmax.f32 %v8438_v59, %v4114_v13  ;;  %v4147_v31 = vmax.f32 %v8440_v44, %v4115_v55  ;;  %v494_v7 = vmul.f32 %v8499_v38, %v15087_v35  ;;  %v8511_v22 = vstv %s8460_s10  ;;  %v15090_v59 = vld [vmem:[#allocation13_spill] sm:$0xff]  ;;  %s12108_s10 = sld [smem:[#allocation3 + $0x100]] }
  0x74   :  { %v495_v51 = vmul.f32 %v8499_v38, %v7908_v1  ;;  %v4402_v60 = vadd.f32 %v4394_v48, %v4354_v11  ;;  %v4403_v42 = vadd.f32 %v4395_v63, %v4355_v23  ;;  %15088 = vst [vmem:[#allocation12_spill] sm:$0xff] %v8508_v61  ;;  %15089 = vst [vmem:[#allocation35_spill] sm:$0xff] %v8511_v22  ;;  %v8526_v55 = vstv %s8475_s13  ;;  %s12139_s13 = sld [smem:[#allocation3 + $0x103]] }
  0x75   :  { %v532_v44 = vmul.f32 %v15090_v59, %v8508_v61  ;;  %v533_v54 = vmul.f32 %v7920_v3, %v8508_v61  ;;  %v594_v13 = vmul.f32 %v15091_v58, %v8511_v22  ;;  %v595_v1 = vmul.f32 %v7956_v12, %v8511_v22  ;;  %15092 = vst [vmem:[#allocation13_spill] sm:$0xff] %v8526_v55 }
  0x76   :  { %v4450_v48 = vadd.f32 %v4442_v18, %v4402_v60  ;;  %v4451_v63 = vadd.f32 %v4443_v6, %v4403_v42  ;;  %v8529_v11 = vstv %s8477_s15  ;;  %v656_v40 = vmul.f32 %v15094_v41, %v8526_v55  ;;  %s12163_s15 = sld [smem:[#allocation3 + $0x104]] }
  0x77   :  { %15093 = vst [vmem:[#allocation14_spill] sm:$0xff] %v8529_v11  ;;  %v540_v23 = vadd.f32 %v532_v44, %v494_v7  ;;  %v541_v35 = vadd.f32 %v533_v54, %v495_v51  ;;  %v657_v28 = vmul.f32 %v15082_v53, %v8526_v55  ;;  %v718_v10 = vmul.f32 %v7988_v26, %v8529_v11 }
  0x78   :  { %v4498_v20 = vadd.f32 %v4490_v49, %v4450_v48  ;;  %v4499_v16 = vadd.f32 %v4491_v19, %v4451_v63  ;;  %v719_v42 = vmul.f32 %v7993_v27, %v8529_v11  ;;  %v8540_v6 = vstv %s8491_s16  ;;  %s12171_s16 = sld [smem:[#allocation3 + $0x105]] }
  0x79   :  { %v602_v60 = vadd.f32 %v594_v13, %v540_v23  ;;  %v603_v18 = vadd.f32 %v595_v1, %v541_v35  ;;  %15095 = vst [vmem:[#allocation16_spill] sm:$0xff] %v8540_v6  ;;  %v8543_v7 = vstv %s8493_s18  ;;  %v780_v49 = vmul.f32 %v8010_v33, %v8540_v6  ;;  %s12185_s18 = sld [smem:[#allocation3 + $0x106]] }
  0x7a   :  { %15096 = vst [vmem:[#allocation36_spill] sm:$0xff] %v8543_v7  ;;  %v4554_v51 = vadd.f32 %v4546_v15, %v4498_v20  ;;  %v4555_v44 = vadd.f32 %v4547_v8, %v4499_v16  ;;  %v781_v19 = vmul.f32 %v8015_v34, %v8540_v6  ;;  %v842_v63 = vmul.f32 %v15079_v4, %v8543_v7 }
  0x7b   :  { %v664_v54 = vadd.f32 %v656_v40, %v602_v60  ;;  %v665_v48 = vadd.f32 %v657_v28, %v603_v18  ;;  %v843_v13 = vmul.f32 %v15080_v43, %v8543_v7  ;;  %v8554_v35 = vstv %s8513_s19  ;;  %s12217_s19 = sld [smem:[#allocation3 + $0x107]] }
  0x7c   :  { %v4586_v1 = vmax.f32 %v4146_v30, %v4554_v51  ;;  %v4587_v23 = vmax.f32 %v4147_v31, %v4555_v44  ;;  %15097 = vst [vmem:[#allocation37_spill] sm:$0xff] %v8554_v35  ;;  %v8557_v20 = vstv %s8515_s20  ;;  %v904_v8 = vmul.f32 %v8043_v45, %v8554_v35  ;;  %s12219_s20 = sld [smem:[#allocation3 + $0x108]] }
  0x7d   :  { %15098 = vst [vmem:[#allocation38_spill] sm:$0xff] %v8557_v20  ;;  %v726_v16 = vadd.f32 %v718_v10, %v664_v54  ;;  %v727_v15 = vadd.f32 %v719_v42, %v665_v48  ;;  %v905_v28 = vmul.f32 %v8048_v46, %v8554_v35  ;;  %v966_v30 = vmul.f32 %v8070_v56, %v8557_v20 }
  0x7e   :  { %v8564_v40 = vadd.f32 %v8496_v36, %v4586_v1  ;;  %v8567_v60 = vadd.f32 %v8496_v36, %v4587_v23  ;;  %v967_v31 = vmul.f32 %v8075_v57, %v8557_v20  ;;  %v1018_v18 = vmul.f32 %v15090_v59, %v8499_v38 }
  0x7f   :  { %v788_v10 = vadd.f32 %v780_v49, %v726_v16  ;;  %v789_v42 = vadd.f32 %v781_v19, %v727_v15  ;;  %v1019_v51 = vmul.f32 %v7920_v3, %v8499_v38  ;;  %v1042_v48 = vmul.f32 %v15091_v58, %v8508_v61  ;;  %v15101_v49 = vld [vmem:[#allocation19_spill] sm:$0xff] }
  0x80   :  { %15099 = vst [vmem:[#allocation39_spill] sm:$0xff] %v8564_v40  ;;  %15100 = vst [vmem:[#allocation40_spill] sm:$0xff] %v8567_v60  ;;  %v14751_v44 = vmax.f32 %v8564_v40, 0.0  ;;  %v14752_v54 = vmax.f32 %v8567_v60, 0.0  ;;  %v1043_v1 = vmul.f32 %v7956_v12, %v8508_v61  ;;  %v1098_v19 = vmul.f32 %v8511_v22, %v15101_v49 }
  0x81   :  { %v850_v23 = vadd.f32 %v842_v63, %v788_v10  ;;  %v851_v36 = vadd.f32 %v843_v13, %v789_v42  ;;  %v1099_v59 = vmul.f32 %v8511_v22, %v8005_v32  ;;  %v1050_v15 = vadd.f32 %v1042_v48, %v1018_v18 }
  0x82   :  { %v8589_v3 = vand.u32 4294901760, %v14751_v44  ;;  %v8593_v16 = vand.u32 4294901760, %v14752_v54  ;;  %v1051_v5 = vadd.f32 %v1043_v1, %v1019_v51  ;;  %v1146_v63 = vmul.f32 %v7988_v26, %v8526_v55 }
  0x83   :  { %v912_v52 = vadd.f32 %v904_v8, %v850_v23  ;;  %v913_v39 = vadd.f32 %v905_v28, %v851_v36  ;;  %v1147_v13 = vmul.f32 %v7993_v27, %v8526_v55  ;;  %v1106_v42 = vadd.f32 %v1098_v19, %v1050_v15  ;;  %v15105_v8 = vld [vmem:[#allocation28_spill] sm:$0xff] }
  0x84   :  { %15102 = vst [vmem:[#allocation19_spill] sm:$0xff] %v8589_v3  ;;  %15103 = vst [vmem:[#allocation41_spill] sm:$0xff] %v8593_v16  ;;  %v8601_v10 = vpack.c.bf16 %v8593_v16, %v8589_v3  ;;  %v1107_v44 = vadd.f32 %v1099_v59, %v1051_v5  ;;  %v1194_v54 = vmul.f32 %v8010_v33, %v8529_v11 }
  0x85   :  { %v8605_v60 = vadd.f32 %v966_v30, %v912_v52  ;;  %v8607_v18 = vadd.f32 %v967_v31, %v913_v39  ;;  %v1195_v36 = vmul.f32 %v8015_v34, %v8529_v11  ;;  %v1250_v28 = vmul.f32 %v15105_v8, %v8540_v6 }
  0x86   :  { %15104 = vst [vmem:[#allocation42_spill] sm:$0xff] %v8601_v10  ;;  %7225 = vmatprep.subr.bf16.mxu1 %v8601_v10  ;;  %v1154_v51 = vadd.f32 %v1146_v63, %v1106_v42  ;;  %v1155_v48 = vadd.f32 %v1147_v13, %v1107_v44  ;;  %v1251_v5 = vmul.f32 %v8085_v62, %v8540_v6  ;;  %v15106_v42 = vld [vmem:[#allocation30_spill] sm:$0xff] }
  0x87   :  { %v1298_v1 = vmul.f32 %v8043_v45, %v8543_v7  ;;  %v1299_v39 = vmul.f32 %v8048_v46, %v8543_v7  ;;  %v1346_v52 = vmul.f32 %v8070_v56, %v8554_v35  ;;  %v1347_v30 = vmul.f32 %v8075_v57, %v8554_v35  ;;  %7227 = vmatpush3.bf16.msra.mxu1 %v8601_v10 }
  0x88   :  { %v1402_v31 = vmul.f32 %v8104_v24, %v8557_v20  ;;  %v1202_v44 = vadd.f32 %v1194_v54, %v1154_v51  ;;  %v1203_v23 = vadd.f32 %v1195_v36, %v1155_v48  ;;  %v1403_v19 = vmul.f32 %v8109_v25, %v8557_v20 }
  0x89   :  { %v1474_v59 = vmul.f32 %v15091_v58, %v8499_v38  ;;  %v1475_v15 = vmul.f32 %v7956_v12, %v8499_v38  ;;  %v1498_v63 = vmul.f32 %v8508_v61, %v15101_v49  ;;  %v1499_v13 = vmul.f32 %v8508_v61, %v8005_v32 }
  0x8a   :  { %v1554_v10 = vmul.f32 %v15106_v42, %v8511_v22  ;;  %v1258_v54 = vadd.f32 %v1250_v28, %v1202_v44  ;;  %v1259_v36 = vadd.f32 %v1251_v5, %v1203_v23  ;;  %v1555_v51 = vmul.f32 %v15078_v14, %v8511_v22  ;;  %v15107_v5 = vld [vmem:[#allocation32_spill] sm:$0xff] }
  0x8b   :  { %v1602_v58 = vmul.f32 %v8010_v33, %v8526_v55  ;;  %v1506_v48 = vadd.f32 %v1498_v63, %v1474_v59  ;;  %v1507_v16 = vadd.f32 %v1499_v13, %v1475_v15  ;;  %v1603_v12 = vmul.f32 %v8015_v34, %v8526_v55 }
  0x8c   :  { %v1650_v49 = vmul.f32 %v15105_v8, %v8529_v11  ;;  %v1306_v32 = vadd.f32 %v1298_v1, %v1258_v54  ;;  %v1307_v40 = vadd.f32 %v1299_v39, %v1259_v36  ;;  %v1651_v28 = vmul.f32 %v8085_v62, %v8529_v11 }
  0x8d   :  { %v1706_v44 = vmul.f32 %v15107_v5, %v8540_v6  ;;  %v1562_v23 = vadd.f32 %v1554_v10, %v1506_v48  ;;  %v1563_v42 = vadd.f32 %v1555_v51, %v1507_v16  ;;  %v1707_v59 = vmul.f32 %v8151_v17, %v8540_v6 }
  0x8e   :  { %v1754_v15 = vmul.f32 %v8070_v56, %v8543_v7  ;;  %v1354_v63 = vadd.f32 %v1346_v52, %v1306_v32  ;;  %v1355_v13 = vadd.f32 %v1347_v30, %v1307_v40  ;;  %v1755_v1 = vmul.f32 %v8075_v57, %v8543_v7 }
  0x8f   :  { %v1802_v39 = vmul.f32 %v8104_v24, %v8554_v35  ;;  %v1610_v54 = vadd.f32 %v1602_v58, %v1562_v23  ;;  %v1611_v36 = vadd.f32 %v1603_v12, %v1563_v42  ;;  %v1803_v10 = vmul.f32 %v8109_v25, %v8554_v35 }
  0x90   :  { %v1858_v16 = vmul.f32 %v8170_v37, %v8557_v20  ;;  %v1410_v51 = vadd.f32 %v1402_v31, %v1354_v63  ;;  %v1411_v48 = vadd.f32 %v1403_v19, %v1355_v13  ;;  %v1859_v52 = vmul.f32 %v8181_v50, %v8557_v20 }
  0x91   :  { %v1930_v40 = vmul.f32 %v15094_v41, %v8499_v38  ;;  %v1658_v30 = vadd.f32 %v1650_v49, %v1610_v54  ;;  %v1659_v32 = vadd.f32 %v1651_v28, %v1611_v36  ;;  %v1931_v58 = vmul.f32 %v15082_v53, %v8499_v38 }
  0x92   :  { %v1954_v12 = vmul.f32 %v7988_v26, %v8508_v61  ;;  %v1450_v23 = vmax.f32 %v8605_v60, %v1410_v51  ;;  %v1451_v42 = vmax.f32 %v8607_v18, %v1411_v48  ;;  %v1955_v31 = vmul.f32 %v7993_v27, %v8508_v61 }
  0x93   :  { %v2002_v19 = vmul.f32 %v8010_v33, %v8511_v22  ;;  %v1714_v63 = vadd.f32 %v1706_v44, %v1658_v30  ;;  %v1715_v41 = vadd.f32 %v1707_v59, %v1659_v32  ;;  %v2003_v28 = vmul.f32 %v8015_v34, %v8511_v22  ;;  %v15108_v32 = vld [vmem:[#allocation33_spill] sm:$0xff] }
  0x94   :  { %v1962_v49 = vadd.f32 %v1954_v12, %v1930_v40  ;;  %v1963_v53 = vadd.f32 %v1955_v31, %v1931_v58  ;;  %v2050_v13 = vmul.f32 %v15079_v4, %v8526_v55  ;;  %v2051_v60 = vmul.f32 %v15080_v43, %v8526_v55  ;;  %v8694_v4 = vld [vmem:[%s14697_s0 + $0x10] sm:$0xff]  ;;  %v8703_v31 = vld [vmem:[%s14697_s0 + $0xa0] sm:$0xff] }
  0x95   :  { %v2098_v18 = vmul.f32 %v8043_v45, %v8529_v11  ;;  %v1762_v54 = vadd.f32 %v1754_v15, %v1714_v63  ;;  %v1763_v36 = vadd.f32 %v1755_v1, %v1715_v41  ;;  %v2099_v44 = vmul.f32 %v8048_v46, %v8529_v11 }
  0x96   :  { %v2010_v51 = vadd.f32 %v2002_v19, %v1962_v49  ;;  %v2011_v59 = vadd.f32 %v2003_v28, %v1963_v53  ;;  %v2146_v48 = vmul.f32 %v8070_v56, %v8540_v6  ;;  %v2147_v40 = vmul.f32 %v8075_v57, %v8540_v6 }
  0x97   :  { %v2202_v43 = vmul.f32 %v8694_v4, %v8543_v7  ;;  %v1810_v15 = vadd.f32 %v1802_v39, %v1762_v54  ;;  %v1811_v1 = vadd.f32 %v1803_v10, %v1763_v36  ;;  %v2203_v58 = vmul.f32 %v15108_v32, %v8543_v7  ;;  %v8712_v39 = vld [vmem:[%s14697_s0 + $0x130] sm:$0xff] }
  0x98   :  { %v2058_v30 = vadd.f32 %v2050_v13, %v2010_v51  ;;  %v2059_v12 = vadd.f32 %v2051_v60, %v2011_v59  ;;  %v2258_v19 = vmul.f32 %v8703_v31, %v8554_v35  ;;  %v2259_v63 = vmul.f32 %v8221_v47, %v8554_v35 }
  0x99   :  { %v2314_v10 = vmul.f32 %v8712_v39, %v8557_v20  ;;  %v1866_v41 = vadd.f32 %v1858_v16, %v1810_v15  ;;  %v1867_v49 = vadd.f32 %v1859_v52, %v1811_v1  ;;  %v2315_v53 = vmul.f32 %v8234_v0, %v8557_v20 }
  0x9a   :  { %v2106_v28 = vadd.f32 %v2098_v18, %v2058_v30  ;;  %v2107_v13 = vadd.f32 %v2099_v44, %v2059_v12  ;;  %v2386_v60 = vmul.f32 %v7988_v26, %v8499_v38  ;;  %v2387_v54 = vmul.f32 %v7993_v27, %v8499_v38 }
  0x9b   :  { %v2410_v36 = vmul.f32 %v8010_v33, %v8508_v61  ;;  %v8724_v51 = vmax.f32 %v1450_v23, %v1866_v41  ;;  %v8726_v59 = vmax.f32 %v1451_v42, %v1867_v49  ;;  %v2411_v52 = vmul.f32 %v8015_v34, %v8508_v61 }
  0x9c   :  { %v2154_v16 = vadd.f32 %v2146_v48, %v2106_v28  ;;  %v2155_v18 = vadd.f32 %v2147_v40, %v2107_v13  ;;  %v2458_v44 = vmul.f32 %v15105_v8, %v8511_v22  ;;  %v2459_v26 = vmul.f32 %v8085_v62, %v8511_v22 }
  0x9d   :  { %v2418_v15 = vadd.f32 %v2410_v36, %v2386_v60  ;;  %v2419_v1 = vadd.f32 %v2411_v52, %v2387_v54  ;;  %v2506_v33 = vmul.f32 %v8043_v45, %v8526_v55  ;;  %v2507_v23 = vmul.f32 %v8048_v46, %v8526_v55  ;;  %v8771_v52 = vld [vmem:[%s14697_s0 + $0x2e0] sm:$0xff] }
  0x9e   :  { %v2210_v27 = vadd.f32 %v2202_v43, %v2154_v16  ;;  %v2211_v42 = vadd.f32 %v2203_v58, %v2155_v18  ;;  %v2554_v34 = vmul.f32 %v8070_v56, %v8529_v11  ;;  %v2555_v40 = vmul.f32 %v8075_v57, %v8529_v11  ;;  %v7563_v16 = vld [vmem:[%s14697_s0 + $0x2d0] sm:$0xff] }
  0x9f   :  { %v2466_v48 = vadd.f32 %v2458_v44, %v2418_v15  ;;  %v2467_v30 = vadd.f32 %v2459_v26, %v2419_v1  ;;  %v2602_v43 = vmul.f32 %v8104_v24, %v8540_v6  ;;  %v2603_v12 = vmul.f32 %v8109_v25, %v8540_v6 }
  0xa0   :  { %v2266_v8 = vadd.f32 %v2258_v19, %v2210_v27  ;;  %v2267_v45 = vadd.f32 %v2259_v63, %v2211_v42  ;;  %v2650_v46 = vmul.f32 %v8703_v31, %v8543_v7  ;;  %v2651_v58 = vmul.f32 %v8221_v47, %v8543_v7  ;;  %v8757_v63 = vld [vmem:[%s14697_s0 + $0x11] sm:$0xff] }
  0xa1   :  { %v2514_v41 = vadd.f32 %v2506_v33, %v2466_v48  ;;  %v2515_v49 = vadd.f32 %v2507_v23, %v2467_v30  ;;  %v2698_v57 = vmul.f32 %v8712_v39, %v8554_v35  ;;  %v2699_v19 = vmul.f32 %v8234_v0, %v8554_v35 }
  0xa2   :  { %v2322_v56 = vadd.f32 %v2314_v10, %v2266_v8  ;;  %v2323_v28 = vadd.f32 %v2315_v53, %v2267_v45  ;;  %v2754_v60 = vmul.f32 %v8757_v63, %v8557_v20  ;;  %v2755_v10 = vmul.f32 %v8275_v2, %v8557_v20 }
  0xa3   :  { %v2562_v13 = vadd.f32 %v2554_v34, %v2514_v41  ;;  %v2563_v36 = vadd.f32 %v2555_v40, %v2515_v49  ;;  %v2826_v53 = vmul.f32 %v7563_v16, %v8499_v38  ;;  %v2827_v18 = vmul.f32 %v8771_v52, %v8499_v38 }
  0xa4   :  { %v2362_v54 = vmax.f32 %v8724_v51, %v2322_v56  ;;  %v2363_v15 = vmax.f32 %v8726_v59, %v2323_v28  ;;  %v7565_v51 = vld [vmem:[%s14697_s0 + $0x1b1] sm:$0xff]  ;;  %v2851_v27 = vmul.f32 %v8085_v62, %v8508_v61  ;;  %v2898_v33 = vmul.f32 %v15107_v5, %v8511_v22  ;;  %v8789_v59 = vld [vmem:[%s14697_s0 + $0x480] sm:$0xff] }
  0xa5   :  { %v2610_v44 = vadd.f32 %v2602_v43, %v2562_v13  ;;  %v2850_v26 = vmul.f32 %v7565_v51, %v8508_v61  ;;  %v2611_v1 = vadd.f32 %v2603_v12, %v2563_v36  ;;  %v2899_v23 = vmul.f32 %v8151_v17, %v8511_v22  ;;  %v8796_v62 = vld [vmem:[%s14697_s0 + $0x490] sm:$0xff]  ;;  %v7568_v36 = vld [vmem:[%s14697_s0 + $0x360] sm:$0xff] }
  0xa6   :  { %v2946_v42 = vmul.f32 %v8789_v59, %v8526_v55  ;;  %v2859_v40 = vadd.f32 %v2851_v27, %v2827_v18  ;;  %v2947_v5 = vmul.f32 %v8796_v62, %v8526_v55  ;;  %v2994_v8 = vmul.f32 %v8104_v24, %v8529_v11  ;;  %v7570_v51 = vld [vmem:[%s14697_s0 + $0x3f0] sm:$0xff] }
  0xa7   :  { %v2658_v48 = vadd.f32 %v2650_v46, %v2610_v44  ;;  %v2858_v34 = vadd.f32 %v2850_v26, %v2826_v53  ;;  %v2659_v17 = vadd.f32 %v2651_v58, %v2611_v1  ;;  %v2995_v30 = vmul.f32 %v8109_v25, %v8529_v11 }
  0xa8   :  { %v3042_v43 = vmul.f32 %v8170_v37, %v8540_v6  ;;  %v2907_v41 = vadd.f32 %v2899_v23, %v2859_v40  ;;  %v3043_v46 = vmul.f32 %v8181_v50, %v8540_v6  ;;  %v3090_v49 = vmul.f32 %v8712_v39, %v8543_v7 }
  0xa9   :  { %v2706_v12 = vadd.f32 %v2698_v57, %v2658_v48  ;;  %v2906_v45 = vadd.f32 %v2898_v33, %v2858_v34  ;;  %v2707_v56 = vadd.f32 %v2699_v19, %v2659_v17  ;;  %v3091_v58 = vmul.f32 %v8234_v0, %v8543_v7 }
  0xaa   :  { %v3138_v24 = vmul.f32 %v8757_v63, %v8554_v35  ;;  %v2955_v13 = vadd.f32 %v2947_v5, %v2907_v41  ;;  %v3139_v37 = vmul.f32 %v8275_v2, %v8554_v35  ;;  %v3194_v50 = vmul.f32 %v15078_v14, %v8557_v20 }
  0xab   :  { %v2762_v25 = vadd.f32 %v2754_v60, %v2706_v12  ;;  %v2954_v28 = vadd.f32 %v2946_v42, %v2906_v45  ;;  %v2763_v57 = vadd.f32 %v2755_v10, %v2707_v56  ;;  %v3195_v19 = vmul.f32 %v8318_v9, %v8557_v20  ;;  %v7569_v10 = vld [vmem:[%s14697_s0 + $0x370] sm:$0xff] }
  0xac   :  { %v3266_v16 = vmul.f32 %v7568_v36, %v8499_v38  ;;  %v3003_v18 = vadd.f32 %v2995_v30, %v2955_v13  ;;  %v3267_v44 = vmul.f32 %v7569_v10, %v8499_v38  ;;  %v3290_v26 = vmul.f32 %v7570_v51, %v8508_v61 }
  0xad   :  { %v8824_v53 = vmax.f32 %v2362_v54, %v2762_v25  ;;  %v3002_v60 = vadd.f32 %v2994_v8, %v2954_v28  ;;  %v8830_v14 = vmax.f32 %v2363_v15, %v2763_v57  ;;  %v7571_v54 = vld [vmem:[%s14697_s0 + $0x400] sm:$0xff]  ;;  %v3338_v1 = vmul.f32 %v8789_v59, %v8511_v22  ;;  %v7573_v25 = vld [vmem:[%s14697_s0 + $0x250] sm:$0xff] }
  0xae   :  { %v3291_v27 = vmul.f32 %v7571_v54, %v8508_v61  ;;  %v3051_v23 = vadd.f32 %v3043_v46, %v3003_v18  ;;  %v3339_v15 = vmul.f32 %v8796_v62, %v8511_v22  ;;  %v3386_v42 = vmul.f32 %v8694_v4, %v8526_v55 }
  0xaf   :  { %v3050_v33 = vadd.f32 %v3042_v43, %v3002_v60  ;;  %v3298_v48 = vadd.f32 %v3290_v26, %v3266_v16  ;;  %v3387_v40 = vmul.f32 %v15108_v32, %v8526_v55  ;;  %v3434_v5 = vmul.f32 %v8703_v31, %v8529_v11  ;;  %v7572_v32 = vld [vmem:[%s14697_s0 + $0x1c0] sm:$0xff] }
  0xb0   :  { %v3299_v34 = vadd.f32 %v3291_v27, %v3267_v44  ;;  %v3099_v8 = vadd.f32 %v3091_v58, %v3051_v23  ;;  %v3435_v30 = vmul.f32 %v8221_v47, %v8529_v11  ;;  %v3482_v43 = vmul.f32 %v8712_v39, %v8540_v6 }
  0xb1   :  { %v3098_v17 = vadd.f32 %v3090_v49, %v3050_v33  ;;  %v3346_v12 = vadd.f32 %v3338_v1, %v3298_v48  ;;  %v3483_v4 = vmul.f32 %v8234_v0, %v8540_v6  ;;  %v3538_v41 = vmul.f32 %v7572_v32, %v8543_v7  ;;  %v15109_v49 = vld [vmem:[#allocation31_spill] sm:$0xff] }
  0xb2   :  { %v3347_v45 = vadd.f32 %v3339_v15, %v3299_v34  ;;  %v3147_v56 = vadd.f32 %v3139_v37, %v3099_v8  ;;  %v3539_v58 = vmul.f32 %v15109_v49, %v8543_v7  ;;  %v3594_v28 = vmul.f32 %v7573_v25, %v8554_v35  ;;  %v7576_v49 = vld [vmem:[%s14697_s0 + $0x1c1] sm:$0xff] }
  0xb3   :  { %v3146_v46 = vadd.f32 %v3138_v24, %v3098_v17  ;;  %v3394_v13 = vadd.f32 %v3386_v42, %v3346_v12  ;;  %v3595_v36 = vmul.f32 %v8364_v29, %v8554_v35  ;;  %v3650_v16 = vmul.f32 %v8771_v52, %v8557_v20 }
  0xb4   :  { %v3395_v57 = vadd.f32 %v3387_v40, %v3347_v45  ;;  %v3203_v24 = vadd.f32 %v3195_v19, %v3147_v56  ;;  %v3651_v37 = vmul.f32 %v8373_v21, %v8557_v20  ;;  %v3722_v18 = vmul.f32 %v7570_v51, %v8499_v38  ;;  %v7574_v19 = vld [vmem:[%s14697_s0 + $0x361] sm:$0xff] }
  0xb5   :  { %v3202_v60 = vadd.f32 %v3194_v50, %v3146_v46  ;;  %v3442_v10 = vadd.f32 %v3434_v5, %v3394_v13  ;;  %v3723_v26 = vmul.f32 %v7571_v54, %v8499_v38  ;;  %v3746_v27 = vmul.f32 %v8789_v59, %v8508_v61  ;;  %v7575_v54 = vld [vmem:[%s14697_s0 + $0x371] sm:$0xff] }
  0xb6   :  { %v3443_v44 = vadd.f32 %v3435_v30, %v3395_v57  ;;  %v3243_v33 = vmax.f32 %v8830_v14, %v3203_v24  ;;  %v3747_v50 = vmul.f32 %v8796_v62, %v8508_v61  ;;  %v3794_v51 = vmul.f32 %v7574_v19, %v8511_v22  ;;  %v15110_v57 = vld [vmem:[#allocation23_spill] sm:$0xff] }
  0xb7   :  { %v3242_v1 = vmax.f32 %v8824_v53, %v3202_v60  ;;  %v3490_v23 = vadd.f32 %v3482_v43, %v3442_v10  ;;  %v3754_v42 = vadd.f32 %v3746_v27, %v3722_v18  ;;  %v3795_v53 = vmul.f32 %v7575_v54, %v8511_v22 }
  0xb8   :  { %v3491_v15 = vadd.f32 %v3483_v4, %v3443_v44  ;;  %v3755_v48 = vadd.f32 %v3747_v50, %v3723_v26  ;;  %v3842_v14 = vmul.f32 %v8703_v31, %v8526_v55  ;;  %v3843_v34 = vmul.f32 %v8221_v47, %v8526_v55 }
  0xb9   :  { %v3890_v40 = vmul.f32 %v8712_v39, %v8529_v11  ;;  %v3546_v5 = vadd.f32 %v3538_v41, %v3490_v23  ;;  %v3802_v8 = vadd.f32 %v3794_v51, %v3754_v42  ;;  %v3891_v30 = vmul.f32 %v8234_v0, %v8529_v11  ;;  %v7579_v23 = vld [vmem:[%s14697_s0 + $0x140] sm:$0xff] }
  0xba   :  { %v3547_v17 = vadd.f32 %v3539_v58, %v3491_v15  ;;  %v3803_v43 = vadd.f32 %v3795_v53, %v3755_v48  ;;  %v3938_v12 = vmul.f32 %v8757_v63, %v8540_v6  ;;  %v3939_v45 = vmul.f32 %v8275_v2, %v8540_v6 }
  0xbb   :  { %v3986_v31 = vmul.f32 %v7573_v25, %v8543_v7  ;;  %v3602_v4 = vadd.f32 %v3594_v28, %v3546_v5  ;;  %v3850_v32 = vadd.f32 %v3842_v14, %v3802_v8  ;;  %v3987_v41 = vmul.f32 %v8364_v29, %v8543_v7 }
  0xbc   :  { %v3603_v47 = vadd.f32 %v3595_v36, %v3547_v17  ;;  %v3851_v46 = vadd.f32 %v3843_v34, %v3803_v43  ;;  %v4034_v56 = vmul.f32 %v8771_v52, %v8554_v35  ;;  %v4035_v0 = vmul.f32 %v8373_v21, %v8554_v35 }
  0xbd   :  { %v4090_v58 = vmul.f32 %v7576_v49, %v8557_v20  ;;  %v3658_v25 = vadd.f32 %v3650_v16, %v3602_v4  ;;  %v3898_v13 = vadd.f32 %v3890_v40, %v3850_v32  ;;  %v4091_v36 = vmul.f32 %v15110_v57, %v8557_v20 }
  0xbe   :  { %v3659_v28 = vadd.f32 %v3651_v37, %v3603_v47  ;;  %v3899_v29 = vadd.f32 %v3891_v30, %v3851_v46  ;;  %v4162_v60 = vmul.f32 %v8789_v59, %v8499_v38  ;;  %v4163_v24 = vmul.f32 %v8796_v62, %v8499_v38  ;;  %v7577_v59 = vld [vmem:[%s14697_s0 + $0x3f1] sm:$0xff]  ;;  %v7578_v62 = vld [vmem:[%s14697_s0 + $0x401] sm:$0xff] }
  0xbf   :  { %v4186_v18 = vmul.f32 %v7574_v19, %v8508_v61  ;;  %v8918_v10 = vmax.f32 %v3242_v1, %v3658_v25  ;;  %v3946_v26 = vadd.f32 %v3938_v12, %v3898_v13  ;;  %v4187_v16 = vmul.f32 %v7575_v54, %v8508_v61  ;;  %v7581_v47 = vld [vmem:[%s14697_s0 + $0x251] sm:$0xff]  ;;  %v15117_v13 = vld [vmem:[#allocation15_spill] sm:$0xff] }
  0xc0   :  { %v8920_v44 = vmax.f32 %v3243_v33, %v3659_v28  ;;  %v3947_v37 = vadd.f32 %v3939_v45, %v3899_v29  ;;  %v4234_v50 = vmul.f32 %v7577_v59, %v8511_v22  ;;  %v4235_v1 = vmul.f32 %v7578_v62, %v8511_v22  ;;  %v8994_v25 = vld [vmem:[%s14697_s0 + $0x1d0] sm:$0xff]  ;;  %v8999_v28 = vld [vmem:[%s14697_s0 + $0x1e0] sm:$0xff] }
  0xc1   :  { %v4194_v27 = vadd.f32 %v4186_v18, %v4162_v60  ;;  %v3994_v33 = vadd.f32 %v3986_v31, %v3946_v26  ;;  %v4195_v19 = vadd.f32 %v4187_v16, %v4163_v24  ;;  %v4282_v51 = vmul.f32 %v8712_v39, %v8526_v55  ;;  %v7580_v39 = vld [vmem:[%s14697_s0 + $0xa1] sm:$0xff]  ;;  %15115 = vst [vmem:[#allocation33_spill] sm:$0xff] %v8994_v25  ;;  %v9013_v24 = vld [vmem:[%s14697_s0 + $0x150] sm:$0xff] }
  0xc2   :  { %v4283_v15 = vmul.f32 %v7579_v23, %v8526_v55  ;;  %v3995_v42 = vadd.f32 %v3987_v41, %v3947_v37  ;;  %v4330_v53 = vmul.f32 %v8757_v63, %v8529_v11  ;;  %v4331_v48 = vmul.f32 %v8275_v2, %v8529_v11  ;;  %v8956_v2 = vld [vmem:[%s14697_s0 + $0x20] sm:$0xff]  ;;  %v15113_v41 = vld [vmem:[#allocation27_spill] sm:$0xff]  ;;  %15116 = vst [vmem:[#allocation31_spill] sm:$0xff] %v8999_v28  ;;  %v15120_v37 = vld [vmem:[#allocation20_spill] sm:$0xff] }
  0xc3   :  { %v4242_v54 = vadd.f32 %v4234_v50, %v4194_v27  ;;  %v4042_v14 = vadd.f32 %v4034_v56, %v3994_v33  ;;  %v4243_v34 = vadd.f32 %v4235_v1, %v4195_v19  ;;  %v4378_v40 = vmul.f32 %v7580_v39, %v8540_v6  ;;  %15111 = vst [vmem:[#allocation28_spill] sm:$0xff] %v8956_v2  ;;  %v8984_v56 = vld [vmem:[%s14697_s0 + $0xc0] sm:$0xff]  ;;  %v9033_v1 = vld [vmem:[%s14697_s0 + $0x270] sm:$0xff]  ;;  %v15121_v19 = vld [vmem:[#allocation21_spill] sm:$0xff] }
  0xc4   :  { %v4379_v5 = vmul.f32 %v8318_v9, %v8540_v6  ;;  %v4043_v17 = vadd.f32 %v4035_v0, %v3995_v42  ;;  %v4426_v30 = vmul.f32 %v8771_v52, %v8543_v7  ;;  %v4427_v63 = vmul.f32 %v8373_v21, %v8543_v7  ;;  %v8966_v52 = vld [vmem:[%s14697_s0 + $0x30] sm:$0xff]  ;;  %v9008_v60 = vld [vmem:[%s14697_s0 + $0x140] sm:$0xff] }
  0xc5   :  { %v4290_v8 = vadd.f32 %v4282_v51, %v4242_v54  ;;  %v8958_v43 = vadd.f32 %v4090_v58, %v4042_v14  ;;  %v4291_v12 = vadd.f32 %v4283_v15, %v4243_v34  ;;  %v4474_v45 = vmul.f32 %v7576_v49, %v8554_v35  ;;  %v8971_v21 = vld [vmem:[%s14697_s0 + $0xb0] sm:$0xff]  ;;  %15118 = vst [vmem:[#allocation23_spill] sm:$0xff] %v9008_v60  ;;  %v9028_v62 = vld [vmem:[%s14697_s0 + $0x260] sm:$0xff] }
  0xc6   :  { %v4475_v9 = vmul.f32 %v15110_v57, %v8554_v35  ;;  %15112 = vst [vmem:[#allocation30_spill] sm:$0xff] %v8971_v21  ;;  %v8973_v31 = vadd.f32 %v4091_v36, %v4043_v17  ;;  %v4530_v32 = vmul.f32 %v7581_v47, %v8557_v20  ;;  %v4531_v46 = vmul.f32 %v15113_v41, %v8557_v20  ;;  %v9042_v42 = vld [vmem:[%s14697_s0 + $0x2f0] sm:$0xff]  ;;  %v9047_v54 = vld [vmem:[%s14697_s0 + $0x300] sm:$0xff] }
  0xc7   :  { %v4338_v4 = vadd.f32 %v4330_v53, %v4290_v8  ;;  %v4138_v0 = vmax.f32 %v8918_v10, %v8958_v43  ;;  %v4339_v49 = vadd.f32 %v4331_v48, %v4291_v12  ;;  %v8989_v58 = vstv %s8923_s2  ;;  %v15119_v10 = vld [vmem:[#allocation18_spill] sm:$0xff]  ;;  %v15125_v8 = vld [vmem:[#allocation24_spill] sm:$0xff] }
  0xc8   :  { %15114 = vst [vmem:[#allocation32_spill] sm:$0xff] %v8989_v58  ;;  %v506_v57 = vmul.f32 %v15117_v13, %v8956_v2  ;;  %v4139_v36 = vmax.f32 %v8920_v44, %v8973_v31  ;;  %v507_v18 = vmul.f32 %v15117_v13, %v8966_v52  ;;  %v552_v26 = vmul.f32 %v8971_v21, %v15119_v10  ;;  %v15122_v48 = vld [vmem:[#allocation22_spill] sm:$0xff]  ;;  %v9070_v12 = vld [vmem:[%s14697_s0 + $0x410] sm:$0xff] }
  0xc9   :  { %v4386_v29 = vadd.f32 %v4378_v40, %v4338_v4  ;;  %v4387_v16 = vadd.f32 %v4379_v5, %v4339_v49  ;;  %v553_v44 = vmul.f32 %v8984_v56, %v15119_v10  ;;  %v614_v27 = vmul.f32 %v9008_v60, %v15120_v37  ;;  %v9056_v40 = vld [vmem:[%s14697_s0 + $0x380] sm:$0xff]  ;;  %v9061_v5 = vld [vmem:[%s14697_s0 + $0x390] sm:$0xff]  ;;  %v15126_v4 = vld [vmem:[#allocation25_spill] sm:$0xff] }
  0xca   :  { %v615_v59 = vmul.f32 %v9013_v24, %v15120_v37  ;;  %v560_v33 = vadd.f32 %v552_v26, %v506_v57  ;;  %v676_v51 = vmul.f32 %v8994_v25, %v15121_v19  ;;  %v677_v23 = vmul.f32 %v8999_v28, %v15121_v19  ;;  %15123 = vst [vmem:[#allocation27_spill] sm:$0xff] %v9056_v40  ;;  %v9089_v57 = vld [vmem:[%s14697_s0 + $0x4b0] sm:$0xff] }
  0xcb   :  { %v4434_v50 = vadd.f32 %v4426_v30, %v4386_v29  ;;  %v4435_v15 = vadd.f32 %v4427_v63, %v4387_v16  ;;  %v561_v53 = vadd.f32 %v553_v44, %v507_v18  ;;  %v738_v14 = vmul.f32 %v9028_v62, %v15122_v48  ;;  %15124 = vst [vmem:[#allocation43_spill] sm:$0xff] %v9061_v5  ;;  %v15127_v18 = vld [vmem:[#allocation26_spill] sm:$0xff]  ;;  %v9136_v35 = vld [vmem:[%s14697_s0 + $0x1d1] sm:$0xff] }
  0xcc   :  { %v739_v34 = vmul.f32 %v9033_v1, %v15122_v48  ;;  %v622_v17 = vadd.f32 %v614_v27, %v560_v33  ;;  %v800_v30 = vmul.f32 %v9042_v42, %v15125_v8  ;;  %v801_v63 = vmul.f32 %v9047_v54, %v15125_v8  ;;  %v9103_v27 = vld [vmem:[%s14697_s0 + $0x31] sm:$0xff]  ;;  %15132 = vst [vmem:[#allocation47_spill] sm:$0xff] %v9136_v35 }
  0xcd   :  { %v4482_v39 = vadd.f32 %v4474_v45, %v4434_v50  ;;  %v4483_v43 = vadd.f32 %v4475_v9, %v4435_v15  ;;  %v9075_v45 = vld [vmem:[%s14697_s0 + $0x420] sm:$0xff]  ;;  %v623_v31 = vadd.f32 %v615_v59, %v561_v53  ;;  %v862_v47 = vmul.f32 %v9056_v40, %v15126_v4  ;;  %v15129_v50 = vld [vmem:[#allocation29_spill] sm:$0xff] }
  0xce   :  { %v863_v41 = vmul.f32 %v9061_v5, %v15126_v4  ;;  %v9084_v9 = vld [vmem:[%s14697_s0 + $0x4a0] sm:$0xff]  ;;  %v684_v29 = vadd.f32 %v676_v51, %v622_v17  ;;  %v924_v26 = vmul.f32 %v9070_v12, %v15127_v18  ;;  %v925_v16 = vmul.f32 %v9075_v45, %v15127_v18  ;;  %v9232_v6 = vld [vmem:[%s14697_s0 + $0x411] sm:$0xff] }
  0xcf   :  { %v4538_v49 = vadd.f32 %v4530_v32, %v4482_v39  ;;  %v4539_v44 = vadd.f32 %v4531_v46, %v4483_v43  ;;  %v9098_v32 = vld [vmem:[%s14697_s0 + $0x21] sm:$0xff]  ;;  %v685_v59 = vadd.f32 %v677_v23, %v623_v31  ;;  %v986_v33 = vmul.f32 %v9084_v9, %v15129_v50 }
  0xd0   :  { %15128 = vst [vmem:[#allocation44_spill] sm:$0xff] %v9098_v32  ;;  %v987_v51 = vmul.f32 %v9089_v57, %v15129_v50  ;;  %v746_v53 = vadd.f32 %v738_v14, %v684_v29  ;;  %v1028_v46 = vmul.f32 %v8971_v21, %v15117_v13  ;;  %v1029_v39 = vmul.f32 %v8984_v56, %v15117_v13 }
  0xd1   :  { %v4578_v15 = vmax.f32 %v4138_v0, %v4538_v49  ;;  %v4579_v17 = vmax.f32 %v4139_v36, %v4539_v44  ;;  %v747_v43 = vadd.f32 %v739_v34, %v685_v59  ;;  %v1060_v3 = vmul.f32 %v9008_v60, %v15119_v10 }
  0xd2   :  { %v1061_v23 = vmul.f32 %v9013_v24, %v15119_v10  ;;  %v808_v20 = vadd.f32 %v800_v30, %v746_v53  ;;  %v1116_v0 = vmul.f32 %v15120_v37, %v9098_v32  ;;  %v1117_v14 = vmul.f32 %v15120_v37, %v9103_v27 }
  0xd3   :  { %v9118_v31 = vadd.f32 %v8989_v58, %v4578_v15  ;;  %v9125_v49 = vadd.f32 %v8989_v58, %v4579_v17  ;;  %v809_v36 = vadd.f32 %v801_v63, %v747_v43  ;;  %v1068_v34 = vadd.f32 %v1060_v3, %v1028_v46  ;;  %v9141_v3 = vld [vmem:[%s14697_s0 + $0x1e1] sm:$0xff] }
  0xd4   :  { %v1069_v29 = vadd.f32 %v1061_v23, %v1029_v39  ;;  %v870_v59 = vadd.f32 %v862_v47, %v808_v20  ;;  %v1164_v15 = vmul.f32 %v9028_v62, %v15121_v19  ;;  %v1165_v30 = vmul.f32 %v9033_v1, %v15121_v19 }
  0xd5   :  { %15130 = vst [vmem:[#allocation45_spill] sm:$0xff] %v9118_v31  ;;  %15131 = vst [vmem:[#allocation46_spill] sm:$0xff] %v9125_v49  ;;  %v14764_v44 = vmax.f32 %v9118_v31, 0.0  ;;  %v14763_v53 = vmax.f32 %v9125_v49, 0.0  ;;  %v871_v63 = vadd.f32 %v863_v41, %v809_v36  ;;  %v1124_v20 = vadd.f32 %v1116_v0, %v1068_v34  ;;  %v9158_v41 = vld [vmem:[%s14697_s0 + $0x381] sm:$0xff] }
  0xd6   :  { %v1125_v47 = vadd.f32 %v1117_v14, %v1069_v29  ;;  %v932_v39 = vadd.f32 %v924_v26, %v870_v59  ;;  %v1212_v17 = vmul.f32 %v9042_v42, %v15122_v48  ;;  %v1213_v43 = vmul.f32 %v9047_v54, %v15122_v48  ;;  %v9163_v26 = vld [vmem:[%s14697_s0 + $0x391] sm:$0xff] }
  0xd7   :  { %v9145_v46 = vand.u32 4294901760, %v14764_v44  ;;  %v9153_v23 = vand.u32 4294901760, %v14763_v53  ;;  %v933_v0 = vadd.f32 %v925_v16, %v871_v63  ;;  %v1172_v14 = vadd.f32 %v1164_v15, %v1124_v20  ;;  %v9180_v15 = vld [vmem:[%s14697_s0 + $0xb1] sm:$0xff]  ;;  %v9187_v20 = vld [vmem:[%s14697_s0 + $0xc1] sm:$0xff] }
  0xd8   :  { %v1173_v36 = vadd.f32 %v1165_v30, %v1125_v47  ;;  %v9165_v34 = vadd.f32 %v986_v33, %v932_v39  ;;  %v1268_v29 = vmul.f32 %v9136_v35, %v15125_v8  ;;  %v1269_v59 = vmul.f32 %v9141_v3, %v15125_v8  ;;  %15136 = vst [vmem:[#allocation51_spill] sm:$0xff] %v9180_v15 }
  0xd9   :  { %15133 = vst [vmem:[#allocation48_spill] sm:$0xff] %v9145_v46  ;;  %15134 = vst [vmem:[#allocation49_spill] sm:$0xff] %v9153_v23  ;;  %v1316_v53 = vmul.f32 %v9070_v12, %v15126_v4  ;;  %v9175_v16 = vpack.c.bf16 %v9153_v23, %v9145_v46  ;;  %v9182_v33 = vadd.f32 %v987_v51, %v933_v0 }
  0xda   :  { %v1220_v30 = vadd.f32 %v1212_v17, %v1172_v14  ;;  %v1221_v63 = vadd.f32 %v1213_v43, %v1173_v36  ;;  %v1317_v47 = vmul.f32 %v9075_v45, %v15126_v4  ;;  %v1364_v39 = vmul.f32 %v9084_v9, %v15127_v18  ;;  %v9206_v36 = vld [vmem:[%s14697_s0 + $0x261] sm:$0xff] }
  0xdb   :  { %15135 = vst [vmem:[#allocation50_spill] sm:$0xff] %v9175_v16  ;;  %v1365_v44 = vmul.f32 %v9089_v57, %v15127_v18  ;;  %v1420_v51 = vmul.f32 %v9158_v41, %v15129_v50  ;;  %7369 = vmatprep.subr.bf16.mxu0 %v9175_v16  ;;  %v1421_v0 = vmul.f32 %v9163_v26, %v15129_v50  ;;  %15137 = vst [vmem:[#allocation52_spill] sm:$0xff] %v9206_v36 }
  0xdc   :  { %v1276_v17 = vadd.f32 %v1268_v29, %v1220_v30  ;;  %v1277_v43 = vadd.f32 %v1269_v59, %v1221_v63  ;;  %v1484_v14 = vmul.f32 %v9008_v60, %v15117_v13  ;;  %7371 = vmatpush3.bf16.msra.mxu0 %v9175_v16  ;;  %v1485_v49 = vmul.f32 %v9013_v24, %v15117_v13  ;;  %v9219_v63 = vld [vmem:[%s14697_s0 + $0x271] sm:$0xff] }
  0xdd   :  { %v1516_v29 = vmul.f32 %v15119_v10, %v9098_v32  ;;  %v1517_v59 = vmul.f32 %v15119_v10, %v9103_v27  ;;  %v1572_v30 = vmul.f32 %v9180_v15, %v15120_v37  ;;  %v1573_v31 = vmul.f32 %v9187_v20, %v15120_v37 }
  0xde   :  { %v1324_v16 = vadd.f32 %v1316_v53, %v1276_v17  ;;  %v1325_v23 = vadd.f32 %v1317_v47, %v1277_v43  ;;  %v1620_v46 = vmul.f32 %v9042_v42, %v15121_v19  ;;  %v1621_v7 = vmul.f32 %v9047_v54, %v15121_v19 }
  0xdf   :  { %v1524_v58 = vadd.f32 %v1516_v29, %v1484_v14  ;;  %v1525_v32 = vadd.f32 %v1517_v59, %v1485_v49  ;;  %v1668_v15 = vmul.f32 %v9136_v35, %v15122_v48  ;;  %v1669_v17 = vmul.f32 %v9141_v3, %v15122_v48  ;;  %v9241_v49 = vld [vmem:[%s14697_s0 + $0x421] sm:$0xff] }
  0xe0   :  { %v1372_v53 = vadd.f32 %v1364_v39, %v1324_v16  ;;  %v1373_v47 = vadd.f32 %v1365_v44, %v1325_v23  ;;  %v1724_v43 = vmul.f32 %v9206_v36, %v15125_v8  ;;  %v1725_v59 = vmul.f32 %v9219_v63, %v15125_v8 }
  0xe1   :  { %v1580_v14 = vadd.f32 %v1572_v30, %v1524_v58  ;;  %v1581_v29 = vadd.f32 %v1573_v31, %v1525_v32  ;;  %v1772_v16 = vmul.f32 %v9084_v9, %v15126_v4  ;;  %v1773_v39 = vmul.f32 %v9089_v57, %v15126_v4 }
  0xe2   :  { %v1428_v44 = vadd.f32 %v1420_v51, %v1372_v53  ;;  %v1429_v23 = vadd.f32 %v1421_v0, %v1373_v47  ;;  %v1820_v11 = vmul.f32 %v9158_v41, %v15127_v18  ;;  %v1821_v58 = vmul.f32 %v9163_v26, %v15127_v18 }
  0xe3   :  { %v1628_v55 = vadd.f32 %v1620_v46, %v1580_v14  ;;  %v1629_v60 = vadd.f32 %v1621_v7, %v1581_v29  ;;  %v1876_v32 = vmul.f32 %v9232_v6, %v15129_v50  ;;  %v1877_v51 = vmul.f32 %v9241_v49, %v15129_v50 }
  0xe4   :  { %v1460_v31 = vmax.f32 %v9165_v34, %v1428_v44  ;;  %v1461_v30 = vmax.f32 %v9182_v33, %v1429_v23  ;;  %v1940_v0 = vmul.f32 %v8994_v25, %v15117_v13  ;;  %v1941_v7 = vmul.f32 %v8999_v28, %v15117_v13  ;;  %v9283_v23 = vld [vmem:[%s14697_s0 + $0xd0] sm:$0xff] }
  0xe5   :  { %v1676_v53 = vadd.f32 %v1668_v15, %v1628_v55  ;;  %v1677_v47 = vadd.f32 %v1669_v17, %v1629_v60  ;;  %v1972_v46 = vmul.f32 %v9028_v62, %v15119_v10  ;;  %v1973_v14 = vmul.f32 %v9033_v1, %v15119_v10  ;;  %v9276_v55 = vld [vmem:[%s14697_s0 + $0x40] sm:$0xff] }
  0xe6   :  { %v2020_v34 = vmul.f32 %v9042_v42, %v15120_v37  ;;  %v2021_v33 = vmul.f32 %v9047_v54, %v15120_v37  ;;  %v2068_v29 = vmul.f32 %v9056_v40, %v15121_v19  ;;  %15138 = vst [vmem:[#allocation53_spill] sm:$0xff] %v9276_v55  ;;  %v2069_v44 = vmul.f32 %v9061_v5, %v15121_v19 }
  0xe7   :  { %v1732_v60 = vadd.f32 %v1724_v43, %v1676_v53  ;;  %v1733_v15 = vadd.f32 %v1725_v59, %v1677_v47  ;;  %v1980_v17 = vadd.f32 %v1972_v46, %v1940_v0  ;;  %v1981_v25 = vadd.f32 %v1973_v14, %v1941_v7  ;;  %v9294_v59 = vld [vmem:[%s14697_s0 + $0x160] sm:$0xff] }
  0xe8   :  { %v2116_v22 = vmul.f32 %v9070_v12, %v15122_v48  ;;  %v2117_v21 = vmul.f32 %v9075_v45, %v15122_v48  ;;  %v2164_v43 = vmul.f32 %v9084_v9, %v15125_v8  ;;  %v2165_v7 = vmul.f32 %v9089_v57, %v15125_v8 }
  0xe9   :  { %v1780_v0 = vadd.f32 %v1772_v16, %v1732_v60  ;;  %v1781_v53 = vadd.f32 %v1773_v39, %v1733_v15  ;;  %v2028_v47 = vadd.f32 %v2020_v34, %v1980_v17  ;;  %v2029_v46 = vadd.f32 %v2021_v33, %v1981_v25 }
  0xea   :  { %v2220_v14 = vmul.f32 %v15126_v4, %v8966_v52  ;;  %v2221_v61 = vmul.f32 %v9276_v55, %v15126_v4  ;;  %v2276_v38 = vmul.f32 %v8984_v56, %v15127_v18  ;;  %v2277_v16 = vmul.f32 %v9283_v23, %v15127_v18 }
  0xeb   :  { %v1828_v2 = vadd.f32 %v1820_v11, %v1780_v0  ;;  %v1829_v28 = vadd.f32 %v1821_v58, %v1781_v53  ;;  %v2076_v5 = vadd.f32 %v2068_v29, %v2028_v47  ;;  %v2077_v39 = vadd.f32 %v2069_v44, %v2029_v46 }
  0xec   :  { %v2332_v34 = vmul.f32 %v9013_v24, %v15129_v50  ;;  %v2333_v25 = vmul.f32 %v9294_v59, %v15129_v50  ;;  %v2396_v33 = vmul.f32 %v9028_v62, %v15117_v13  ;;  %v2397_v11 = vmul.f32 %v9033_v1, %v15117_v13 }
  0xed   :  { %v1884_v60 = vadd.f32 %v1876_v32, %v1828_v2  ;;  %v1885_v15 = vadd.f32 %v1877_v51, %v1829_v28  ;;  %v2124_v17 = vadd.f32 %v2116_v22, %v2076_v5  ;;  %v2125_v58 = vadd.f32 %v2117_v21, %v2077_v39 }
  0xee   :  { %v2428_v29 = vmul.f32 %v9042_v42, %v15119_v10  ;;  %v2429_v44 = vmul.f32 %v9047_v54, %v15119_v10  ;;  %v2476_v0 = vmul.f32 %v9136_v35, %v15120_v37  ;;  %v2477_v22 = vmul.f32 %v9141_v3, %v15120_v37 }
  0xef   :  { %v9320_v53 = vmax.f32 %v1460_v31, %v1884_v60  ;;  %v9322_v47 = vmax.f32 %v1461_v30, %v1885_v15  ;;  %v2172_v2 = vadd.f32 %v2164_v43, %v2124_v17  ;;  %v2173_v28 = vadd.f32 %v2165_v7, %v2125_v58  ;;  %v9337_v43 = vld [vmem:[%s14697_s0 + $0x41] sm:$0xff] }
  0xf0   :  { %v2436_v5 = vadd.f32 %v2428_v29, %v2396_v33  ;;  %v2437_v21 = vadd.f32 %v2429_v44, %v2397_v11  ;;  %v2524_v32 = vmul.f32 %v9070_v12, %v15121_v19  ;;  %v2525_v46 = vmul.f32 %v9075_v45, %v15121_v19 }
  0xf1   :  { %v2228_v51 = vadd.f32 %v2220_v14, %v2172_v2  ;;  %v2572_v31 = vmul.f32 %v9084_v9, %v15122_v48  ;;  %v2573_v30 = vmul.f32 %v9089_v57, %v15122_v48  ;;  %v2229_v7 = vadd.f32 %v2221_v61, %v2173_v28 }
  0xf2   :  { %v2484_v39 = vadd.f32 %v2476_v0, %v2436_v5  ;;  %v2485_v33 = vadd.f32 %v2477_v22, %v2437_v21  ;;  %v2620_v14 = vmul.f32 %v9158_v41, %v15125_v8  ;;  %v2621_v15 = vmul.f32 %v9163_v26, %v15125_v8 }
  0xf3   :  { %v2284_v60 = vadd.f32 %v2276_v38, %v2228_v51  ;;  %v2668_v17 = vmul.f32 %v8984_v56, %v15126_v4  ;;  %v2669_v11 = vmul.f32 %v9283_v23, %v15126_v4  ;;  %v2285_v58 = vadd.f32 %v2277_v16, %v2229_v7 }
  0xf4   :  { %v2532_v29 = vadd.f32 %v2524_v32, %v2484_v39  ;;  %v2533_v44 = vadd.f32 %v2525_v46, %v2485_v33  ;;  %v2716_v61 = vmul.f32 %v9013_v24, %v15127_v18  ;;  %v2717_v2 = vmul.f32 %v9294_v59, %v15127_v18 }
  0xf5   :  { %v2340_v0 = vadd.f32 %v2332_v34, %v2284_v60  ;;  %v2772_v38 = vmul.f32 %v15129_v50, %v9103_v27  ;;  %v2773_v22 = vmul.f32 %v9337_v43, %v15129_v50  ;;  %v2341_v28 = vadd.f32 %v2333_v25, %v2285_v58 }
  0xf6   :  { %v2580_v5 = vadd.f32 %v2572_v31, %v2532_v29  ;;  %v2581_v21 = vadd.f32 %v2573_v30, %v2533_v44  ;;  %v2836_v16 = vmul.f32 %v9042_v42, %v15117_v13  ;;  %v2837_v34 = vmul.f32 %v9047_v54, %v15117_v13 }
  0xf7   :  { %v2372_v32 = vmax.f32 %v9320_v53, %v2340_v0  ;;  %v2868_v51 = vmul.f32 %v9136_v35, %v15119_v10  ;;  %v2869_v46 = vmul.f32 %v9141_v3, %v15119_v10  ;;  %v2373_v7 = vmax.f32 %v9322_v47, %v2341_v28 }
  0xf8   :  { %v2628_v39 = vadd.f32 %v2620_v14, %v2580_v5  ;;  %v2629_v25 = vadd.f32 %v2621_v15, %v2581_v21  ;;  %v2916_v31 = vmul.f32 %v9206_v36, %v15120_v37  ;;  %v2917_v53 = vmul.f32 %v9219_v63, %v15120_v37  ;;  %v9382_v5 = vld [vmem:[%s14697_s0 + $0xd1] sm:$0xff] }
  0xf9   :  { %v2876_v30 = vadd.f32 %v2868_v51, %v2836_v16  ;;  %v2877_v33 = vadd.f32 %v2869_v46, %v2837_v34  ;;  %v2964_v60 = vmul.f32 %v9084_v9, %v15121_v19  ;;  %v2965_v44 = vmul.f32 %v9089_v57, %v15121_v19 }
  0xfa   :  { %v2676_v58 = vadd.f32 %v2668_v17, %v2628_v39  ;;  %v2677_v29 = vadd.f32 %v2669_v11, %v2629_v25  ;;  %v3012_v47 = vmul.f32 %v9158_v41, %v15122_v48  ;;  %v3013_v0 = vmul.f32 %v9163_v26, %v15122_v48 }
  0xfb   :  { %v2924_v14 = vadd.f32 %v2916_v31, %v2876_v30  ;;  %v2925_v15 = vadd.f32 %v2917_v53, %v2877_v33  ;;  %v3060_v28 = vmul.f32 %v9232_v6, %v15125_v8  ;;  %v3061_v21 = vmul.f32 %v9241_v49, %v15125_v8 }
  0xfc   :  { %v2724_v17 = vadd.f32 %v2716_v61, %v2676_v58  ;;  %v2725_v11 = vadd.f32 %v2717_v2, %v2677_v29  ;;  %v3108_v16 = vmul.f32 %v9013_v24, %v15126_v4  ;;  %v3109_v46 = vmul.f32 %v9294_v59, %v15126_v4 }
  0xfd   :  { %v2972_v34 = vadd.f32 %v2964_v60, %v2924_v14  ;;  %v2973_v51 = vadd.f32 %v2965_v44, %v2925_v15  ;;  %v3156_v39 = vmul.f32 %v15127_v18, %v9103_v27  ;;  %v3157_v61 = vmul.f32 %v9337_v43, %v15127_v18 }
  0xfe   :  { %v2780_v25 = vadd.f32 %v2772_v38, %v2724_v17  ;;  %v2781_v31 = vadd.f32 %v2773_v22, %v2725_v11  ;;  %v3212_v2 = vmul.f32 %v9187_v20, %v15129_v50  ;;  %v3213_v53 = vmul.f32 %v9382_v5, %v15129_v50  ;;  %v15139_v38 = vld [vmem:[#allocation43_spill] sm:$0xff] }
  0xff   :  { %v3020_v30 = vadd.f32 %v3012_v47, %v2972_v34  ;;  %v3021_v33 = vadd.f32 %v3013_v0, %v2973_v51  ;;  %v3276_v60 = vmul.f32 %v9056_v40, %v15117_v13  ;;  %v3277_v22 = vmul.f32 %v15139_v38, %v15117_v13 }
 0x100   :  { %v9400_v58 = vmax.f32 %v2372_v32, %v2780_v25  ;;  %v9402_v29 = vmax.f32 %v2373_v7, %v2781_v31  ;;  %v3308_v44 = vmul.f32 %v9070_v12, %v15119_v10  ;;  %v3309_v47 = vmul.f32 %v9075_v45, %v15119_v10 }
 0x101   :  { %v3068_v14 = vadd.f32 %v3060_v28, %v3020_v30  ;;  %v3069_v15 = vadd.f32 %v3061_v21, %v3021_v33  ;;  %v3356_v0 = vmul.f32 %v9084_v9, %v15120_v37  ;;  %v3357_v32 = vmul.f32 %v9089_v57, %v15120_v37  ;;  %v9421_v28 = vld [vmem:[%s14697_s0 + $0x1f0] sm:$0xff]  ;;  %v9426_v21 = vld [vmem:[%s14697_s0 + $0x280] sm:$0xff] }
 0x102   :  { %v3316_v17 = vadd.f32 %v3308_v44, %v3276_v60  ;;  %v3404_v7 = vmul.f32 %v15121_v19, %v8966_v52  ;;  %v3405_v11 = vmul.f32 %v9276_v55, %v15121_v19  ;;  %15140 = vst [vmem:[#allocation54_spill] sm:$0xff] %v9421_v28  ;;  %15141 = vst [vmem:[#allocation55_spill] sm:$0xff] %v9426_v21  ;;  %v9439_v55 = vld [vmem:[%s14697_s0 + $0x310] sm:$0xff] }
 0x103   :  { %v3116_v34 = vadd.f32 %v3108_v16, %v3068_v14  ;;  %v3117_v51 = vadd.f32 %v3109_v46, %v3069_v15  ;;  %v3317_v25 = vadd.f32 %v3309_v47, %v3277_v22  ;;  %v3452_v31 = vmul.f32 %v8984_v56, %v15122_v48  ;;  %15142 = vst [vmem:[#allocation56_spill] sm:$0xff] %v9439_v55  ;;  %v15143_v14 = vld [vmem:[#allocation31_spill] sm:$0xff] }
 0x104   :  { %v3364_v30 = vadd.f32 %v3356_v0, %v3316_v17  ;;  %v3453_v33 = vmul.f32 %v9283_v23, %v15122_v48  ;;  %v3500_v60 = vmul.f32 %v9013_v24, %v15125_v8  ;;  %v3501_v44 = vmul.f32 %v9294_v59, %v15125_v8 }
 0x105   :  { %v3164_v16 = vadd.f32 %v3156_v39, %v3116_v34  ;;  %v3165_v46 = vadd.f32 %v3157_v61, %v3117_v51  ;;  %v3365_v22 = vadd.f32 %v3357_v32, %v3317_v25  ;;  %v3556_v15 = vmul.f32 %v15143_v14, %v15126_v4 }
 0x106   :  { %v3412_v47 = vadd.f32 %v3404_v7, %v3364_v30  ;;  %v3557_v0 = vmul.f32 %v9421_v28, %v15126_v4  ;;  %v3612_v17 = vmul.f32 %v9033_v1, %v15127_v18  ;;  %v3613_v36 = vmul.f32 %v9426_v21, %v15127_v18 }
 0x107   :  { %v3220_v35 = vadd.f32 %v3212_v2, %v3164_v16  ;;  %v3221_v38 = vadd.f32 %v3213_v53, %v3165_v46  ;;  %v3413_v40 = vadd.f32 %v3405_v11, %v3365_v22  ;;  %v3668_v39 = vmul.f32 %v9047_v54, %v15129_v50 }
 0x108   :  { %v3460_v61 = vadd.f32 %v3452_v31, %v3412_v47  ;;  %v3669_v32 = vmul.f32 %v9439_v55, %v15129_v50  ;;  %v3732_v7 = vmul.f32 %v9070_v12, %v15117_v13  ;;  %v3733_v34 = vmul.f32 %v9075_v45, %v15117_v13 }
 0x109   :  { %v3252_v51 = vmax.f32 %v9400_v58, %v3220_v35  ;;  %v3253_v25 = vmax.f32 %v9402_v29, %v3221_v38  ;;  %v3461_v2 = vadd.f32 %v3453_v33, %v3413_v40  ;;  %v3764_v53 = vmul.f32 %v9084_v9, %v15119_v10 }
 0x10a   :  { %v3508_v11 = vadd.f32 %v3500_v60, %v3460_v61  ;;  %v3765_v31 = vmul.f32 %v9089_v57, %v15119_v10  ;;  %v3812_v30 = vmul.f32 %v9158_v41, %v15120_v37  ;;  %v3813_v16 = vmul.f32 %v9163_v26, %v15120_v37  ;;  %v9478_v60 = vld [vmem:[%s14697_s0 + $0x1f1] sm:$0xff] }
 0x10b   :  { %v3509_v46 = vadd.f32 %v3501_v44, %v3461_v2  ;;  %v3772_v22 = vadd.f32 %v3764_v53, %v3732_v7  ;;  %v3860_v35 = vmul.f32 %v8984_v56, %v15121_v19  ;;  %v3861_v40 = vmul.f32 %v9283_v23, %v15121_v19  ;;  %15144 = vst [vmem:[#allocation31_spill] sm:$0xff] %v9478_v60 }
 0x10c   :  { %v3564_v58 = vadd.f32 %v3556_v15, %v3508_v11  ;;  %v3773_v29 = vadd.f32 %v3765_v31, %v3733_v34  ;;  %v3908_v38 = vmul.f32 %v9013_v24, %v15122_v48  ;;  %v3909_v33 = vmul.f32 %v9294_v59, %v15122_v48 }
 0x10d   :  { %v3565_v44 = vadd.f32 %v3557_v0, %v3509_v46  ;;  %v3820_v47 = vadd.f32 %v3812_v30, %v3772_v22  ;;  %v3956_v61 = vmul.f32 %v15125_v8, %v9103_v27  ;;  %v3957_v15 = vmul.f32 %v9337_v43, %v15125_v8 }
 0x10e   :  { %v3620_v7 = vadd.f32 %v3612_v17, %v3564_v58  ;;  %v3821_v34 = vadd.f32 %v3813_v16, %v3773_v29  ;;  %v4004_v2 = vmul.f32 %v9033_v1, %v15126_v4  ;;  %v4005_v53 = vmul.f32 %v9426_v21, %v15126_v4 }
 0x10f   :  { %v3621_v11 = vadd.f32 %v3613_v36, %v3565_v44  ;;  %v3868_v31 = vadd.f32 %v3860_v35, %v3820_v47  ;;  %v4052_v0 = vmul.f32 %v9047_v54, %v15127_v18  ;;  %v4053_v30 = vmul.f32 %v9439_v55, %v15127_v18 }
 0x110   :  { %v3676_v46 = vadd.f32 %v3668_v39, %v3620_v7  ;;  %v3869_v22 = vadd.f32 %v3861_v40, %v3821_v34  ;;  %v4108_v17 = vmul.f32 %v9141_v3, %v15129_v50  ;;  %v4109_v16 = vmul.f32 %v9478_v60, %v15129_v50 }
 0x111   :  { %v3677_v58 = vadd.f32 %v3669_v32, %v3621_v11  ;;  %v3916_v29 = vadd.f32 %v3908_v38, %v3868_v31  ;;  %v4172_v36 = vmul.f32 %v9084_v9, %v15117_v13  ;;  %v4173_v35 = vmul.f32 %v9089_v57, %v15117_v13  ;;  %v15154_v13 = vld [vmem:[#allocation14_spill] sm:$0xff] }
 0x112   :  { %v9500_v44 = vmax.f32 %v3252_v51, %v3676_v46  ;;  %v3917_v47 = vadd.f32 %v3909_v33, %v3869_v22  ;;  %v4204_v39 = vmul.f32 %v9158_v41, %v15119_v10  ;;  %v4205_v40 = vmul.f32 %v9163_v26, %v15119_v10 }
 0x113   :  { %v9506_v7 = vmax.f32 %v3253_v25, %v3677_v58  ;;  %v3964_v34 = vadd.f32 %v3956_v61, %v3916_v29  ;;  %v4252_v32 = vmul.f32 %v9232_v6, %v15120_v37  ;;  %v4253_v38 = vmul.f32 %v9241_v49, %v15120_v37  ;;  %v9523_v58 = vld [vmem:[%s14697_s0 + $0x281] sm:$0xff] }
 0x114   :  { %v3965_v11 = vadd.f32 %v3957_v15, %v3917_v47  ;;  %v4212_v31 = vadd.f32 %v4204_v39, %v4172_v36  ;;  %v4213_v51 = vadd.f32 %v4205_v40, %v4173_v35  ;;  %v4300_v33 = vmul.f32 %v9013_v24, %v15121_v19  ;;  %15145 = vst [vmem:[#allocation57_spill] sm:$0xff] %v9523_v58 }
 0x115   :  { %v4012_v46 = vadd.f32 %v4004_v2, %v3964_v34  ;;  %v4301_v22 = vmul.f32 %v9294_v59, %v15121_v19  ;;  %v4348_v25 = vmul.f32 %v15122_v48, %v9103_v27  ;;  %v4349_v61 = vmul.f32 %v9337_v43, %v15122_v48 }
 0x116   :  { %v4013_v15 = vadd.f32 %v4005_v53, %v3965_v11  ;;  %v4260_v29 = vadd.f32 %v4252_v32, %v4212_v31  ;;  %v4261_v36 = vadd.f32 %v4253_v38, %v4213_v51  ;;  %v4396_v2 = vmul.f32 %v9187_v20, %v15125_v8 }
 0x117   :  { %v4060_v35 = vadd.f32 %v4052_v0, %v4012_v46  ;;  %v4397_v47 = vmul.f32 %v9382_v5, %v15125_v8  ;;  %v4444_v39 = vmul.f32 %v9047_v54, %v15126_v4  ;;  %v4445_v40 = vmul.f32 %v9439_v55, %v15126_v4  ;;  %v15146_v4 = vld [vmem:[#allocation28_spill] sm:$0xff] }
 0x118   :  { %v4061_v34 = vadd.f32 %v4053_v30, %v4013_v15  ;;  %v4308_v48 = vadd.f32 %v4300_v33, %v4260_v29  ;;  %v4309_v19 = vadd.f32 %v4301_v22, %v4261_v36  ;;  %v4492_v53 = vmul.f32 %v9141_v3, %v15127_v18  ;;  %v15147_v30 = vld [vmem:[#allocation34_spill] sm:$0xff]  ;;  %v15148_v15 = vld [vmem:[#allocation12_spill] sm:$0xff] }
 0x119   :  { %v4116_v32 = vadd.f32 %v4108_v17, %v4060_v35  ;;  %v4493_v38 = vmul.f32 %v9478_v60, %v15127_v18  ;;  %v4548_v0 = vmul.f32 %v9219_v63, %v15129_v50  ;;  %v4549_v11 = vmul.f32 %v9523_v58, %v15129_v50  ;;  %v15149_v29 = vld [vmem:[#allocation30_spill] sm:$0xff]  ;;  %v15158_v58 = vld [vmem:[#allocation43_spill] sm:$0xff] }
 0x11a   :  { %v4117_v31 = vadd.f32 %v4109_v16, %v4061_v34  ;;  %v4356_v51 = vadd.f32 %v4348_v25, %v4308_v48  ;;  %v4357_v46 = vadd.f32 %v4349_v61, %v4309_v19  ;;  %v496_v33 = vmul.f32 %v15147_v30, %v15146_v4  ;;  %v15150_v48 = vld [vmem:[#allocation35_spill] sm:$0xff]  ;;  %v15152_v34 = vld [vmem:[#allocation13_spill] sm:$0xff] }
 0x11b   :  { %v4148_v22 = vmax.f32 %v9500_v44, %v4116_v32  ;;  %v497_v17 = vmul.f32 %v15147_v30, %v8966_v52  ;;  %v534_v36 = vmul.f32 %v15149_v29, %v15148_v15  ;;  %v535_v35 = vmul.f32 %v8984_v56, %v15148_v15  ;;  %v15151_v19 = vld [vmem:[#allocation23_spill] sm:$0xff]  ;;  %v15153_v52 = vld [vmem:[#allocation33_spill] sm:$0xff] }
 0x11c   :  { %v4149_v18 = vmax.f32 %v9506_v7, %v4117_v31  ;;  %v4404_v50 = vadd.f32 %v4396_v2, %v4356_v51  ;;  %v4405_v16 = vadd.f32 %v4397_v47, %v4357_v46  ;;  %v596_v25 = vmul.f32 %v15151_v19, %v15150_v48  ;;  %v15155_v51 = vld [vmem:[#allocation16_spill] sm:$0xff] }
 0x11d   :  { %v542_v61 = vadd.f32 %v534_v36, %v496_v33  ;;  %v543_v4 = vadd.f32 %v535_v35, %v497_v17  ;;  %v597_v44 = vmul.f32 %v9013_v24, %v15150_v48  ;;  %v658_v32 = vmul.f32 %v15153_v52, %v15152_v34 }
 0x11e   :  { %v4452_v8 = vadd.f32 %v4444_v39, %v4404_v50  ;;  %v4453_v37 = vadd.f32 %v4445_v40, %v4405_v16  ;;  %v659_v10 = vmul.f32 %v15143_v14, %v15152_v34  ;;  %v720_v7 = vmul.f32 %v9028_v62, %v15154_v13  ;;  %v15156_v39 = vld [vmem:[#allocation36_spill] sm:$0xff]  ;;  %v15157_v40 = vld [vmem:[#allocation27_spill] sm:$0xff] }
 0x11f   :  { %v604_v2 = vadd.f32 %v596_v25, %v542_v61  ;;  %v605_v47 = vadd.f32 %v597_v44, %v543_v4  ;;  %v721_v31 = vmul.f32 %v9033_v1, %v15154_v13  ;;  %v782_v46 = vmul.f32 %v9042_v42, %v15155_v51  ;;  %v15159_v61 = vld [vmem:[#allocation37_spill] sm:$0xff] }
 0x120   :  { %v4500_v33 = vadd.f32 %v4492_v53, %v4452_v8  ;;  %v4501_v17 = vadd.f32 %v4493_v38, %v4453_v37  ;;  %v783_v50 = vmul.f32 %v9047_v54, %v15155_v51  ;;  %v844_v36 = vmul.f32 %v15157_v40, %v15156_v39  ;;  %v15160_v37 = vld [vmem:[#allocation38_spill] sm:$0xff] }
 0x121   :  { %v666_v35 = vadd.f32 %v658_v32, %v604_v2  ;;  %v667_v16 = vadd.f32 %v659_v10, %v605_v47  ;;  %v845_v25 = vmul.f32 %v15158_v58, %v15156_v39  ;;  %v906_v4 = vmul.f32 %v9070_v12, %v15159_v61 }
 0x122   :  { %v4556_v44 = vadd.f32 %v4548_v0, %v4500_v33  ;;  %v4557_v60 = vadd.f32 %v4549_v11, %v4501_v17  ;;  %v907_v8 = vmul.f32 %v9075_v45, %v15159_v61  ;;  %v968_v53 = vmul.f32 %v9084_v9, %v15160_v37 }
 0x123   :  { %v728_v38 = vadd.f32 %v720_v7, %v666_v35  ;;  %v729_v55 = vadd.f32 %v721_v31, %v667_v16  ;;  %v969_v32 = vmul.f32 %v9089_v57, %v15160_v37  ;;  %v1020_v10 = vmul.f32 %v15149_v29, %v15147_v30  ;;  %v15161_v31 = vld [vmem:[#allocation44_spill] sm:$0xff]  ;;  %v15162_v16 = vld [vmem:[#allocation17_spill] sm:$0xff] }
 0x124   :  { %v4588_v2 = vmax.f32 %v4148_v22, %v4556_v44  ;;  %v4589_v47 = vmax.f32 %v4149_v18, %v4557_v60  ;;  %v1021_v0 = vmul.f32 %v8984_v56, %v15147_v30  ;;  %v1044_v11 = vmul.f32 %v15151_v19, %v15148_v15 }
 0x125   :  { %v790_v33 = vadd.f32 %v782_v46, %v728_v38  ;;  %v791_v17 = vadd.f32 %v783_v50, %v729_v55  ;;  %v1045_v7 = vmul.f32 %v9013_v24, %v15148_v15  ;;  %v1100_v35 = vmul.f32 %v15150_v48, %v15161_v31 }
 0x126   :  { %v9590_v21 = vadd.f32 %v15162_v16, %v4588_v2  ;;  %v9593_v22 = vadd.f32 %v15162_v16, %v4589_v47  ;;  %v1052_v18 = vadd.f32 %v1044_v11, %v1020_v10  ;;  %v1101_v60 = vmul.f32 %v15150_v48, %v9103_v27 }
 0x127   :  { %v852_v29 = vadd.f32 %v844_v36, %v790_v33  ;;  %v853_v44 = vadd.f32 %v845_v25, %v791_v17  ;;  %v1053_v46 = vadd.f32 %v1045_v7, %v1021_v0  ;;  %v1148_v55 = vmul.f32 %v9028_v62, %v15152_v34  ;;  %v15167_v7 = vld [vmem:[#allocation47_spill] sm:$0xff] }
 0x128   :  { %15163 = vst [vmem:[#allocation28_spill] sm:$0xff] %v9590_v21  ;;  %15164 = vst [vmem:[#allocation30_spill] sm:$0xff] %v9593_v22  ;;  %v14828_v50 = vmax.f32 %v9590_v21, 0.0  ;;  %v14827_v38 = vmax.f32 %v9593_v22, 0.0  ;;  %v1108_v28 = vadd.f32 %v1100_v35, %v1052_v18  ;;  %v1149_v2 = vmul.f32 %v9033_v1, %v15152_v34 }
 0x129   :  { %v914_v47 = vadd.f32 %v906_v4, %v852_v29  ;;  %v915_v16 = vadd.f32 %v907_v8, %v853_v44  ;;  %v1109_v10 = vadd.f32 %v1101_v60, %v1053_v46  ;;  %v1196_v11 = vmul.f32 %v9042_v42, %v15154_v13 }
 0x12a   :  { %v9607_v36 = vand.u32 4294901760, %v14828_v50  ;;  %v9611_v25 = vand.u32 4294901760, %v14827_v38  ;;  %v1156_v0 = vadd.f32 %v1148_v55, %v1108_v28  ;;  %v1197_v33 = vmul.f32 %v9047_v54, %v15154_v13 }
 0x12b   :  { %v9615_v17 = vadd.f32 %v968_v53, %v914_v47  ;;  %v9617_v4 = vadd.f32 %v969_v32, %v915_v16  ;;  %v1157_v8 = vadd.f32 %v1149_v2, %v1109_v10  ;;  %v1252_v35 = vmul.f32 %v15167_v7, %v15155_v51 }
 0x12c   :  { %15165 = vst [vmem:[#allocation23_spill] sm:$0xff] %v9607_v36  ;;  %15166 = vst [vmem:[#allocation33_spill] sm:$0xff] %v9611_v25  ;;  %v9623_v18 = vpack.c.bf16 %v9611_v25, %v9607_v36  ;;  %v1204_v60 = vadd.f32 %v1196_v11, %v1156_v0  ;;  %v1253_v29 = vmul.f32 %v9141_v3, %v15155_v51 }
 0x12d   :  { %v1300_v28 = vmul.f32 %v9070_v12, %v15156_v39  ;;  %v1205_v44 = vadd.f32 %v1197_v33, %v1157_v8  ;;  %v1301_v53 = vmul.f32 %v9075_v45, %v15156_v39  ;;  %v1348_v32 = vmul.f32 %v9084_v9, %v15159_v61 }
 0x12e   :  { %15168 = vst [vmem:[#allocation27_spill] sm:$0xff] %v9623_v18  ;;  %v1349_v16 = vmul.f32 %v9089_v57, %v15159_v61  ;;  %7229 = vmatprep.subr.bf16.mxu1 %v9623_v18  ;;  %v1260_v46 = vadd.f32 %v1252_v35, %v1204_v60  ;;  %v1404_v55 = vmul.f32 %v9158_v41, %v15160_v37  ;;  %v15169_v35 = vld [vmem:[#allocation51_spill] sm:$0xff] }
 0x12f   :  { %v1405_v2 = vmul.f32 %v9163_v26, %v15160_v37  ;;  %v1476_v47 = vmul.f32 %v15151_v19, %v15147_v30  ;;  %v1261_v10 = vadd.f32 %v1253_v29, %v1205_v44  ;;  %v1477_v11 = vmul.f32 %v9013_v24, %v15147_v30  ;;  %7231 = vmatpush3.bf16.msra.mxu1 %v9623_v18 }
 0x130   :  { %v1500_v0 = vmul.f32 %v15148_v15, %v15161_v31  ;;  %v1501_v33 = vmul.f32 %v15148_v15, %v9103_v27  ;;  %v1308_v8 = vadd.f32 %v1300_v28, %v1260_v46  ;;  %v1556_v60 = vmul.f32 %v15169_v35, %v15150_v48  ;;  %v15170_v46 = vld [vmem:[#allocation52_spill] sm:$0xff] }
 0x131   :  { %v1557_v38 = vmul.f32 %v9187_v20, %v15150_v48  ;;  %v1604_v19 = vmul.f32 %v9042_v42, %v15152_v34  ;;  %v1309_v29 = vadd.f32 %v1301_v53, %v1261_v10  ;;  %v1605_v31 = vmul.f32 %v9047_v54, %v15152_v34 }
 0x132   :  { %v1508_v44 = vadd.f32 %v1500_v0, %v1476_v47  ;;  %v1509_v50 = vadd.f32 %v1501_v33, %v1477_v11  ;;  %v1356_v22 = vadd.f32 %v1348_v32, %v1308_v8  ;;  %v1652_v18 = vmul.f32 %v15167_v7, %v15154_v13 }
 0x133   :  { %v1653_v28 = vmul.f32 %v9141_v3, %v15154_v13  ;;  %v1708_v35 = vmul.f32 %v15170_v46, %v15155_v51  ;;  %v1357_v25 = vadd.f32 %v1349_v16, %v1309_v29  ;;  %v1709_v53 = vmul.f32 %v9219_v63, %v15155_v51 }
 0x134   :  { %v1564_v21 = vadd.f32 %v1556_v60, %v1508_v44  ;;  %v1565_v36 = vadd.f32 %v1557_v38, %v1509_v50  ;;  %v1412_v47 = vadd.f32 %v1404_v55, %v1356_v22  ;;  %v1756_v10 = vmul.f32 %v9084_v9, %v15156_v39 }
 0x135   :  { %v1757_v32 = vmul.f32 %v9089_v57, %v15156_v39  ;;  %v1804_v11 = vmul.f32 %v9158_v41, %v15159_v61  ;;  %v1413_v0 = vadd.f32 %v1405_v2, %v1357_v25  ;;  %v1805_v16 = vmul.f32 %v9163_v26, %v15159_v61 }
 0x136   :  { %v1612_v33 = vadd.f32 %v1604_v19, %v1564_v21  ;;  %v1613_v8 = vadd.f32 %v1605_v31, %v1565_v36  ;;  %v1452_v50 = vmax.f32 %v9615_v17, %v1412_v47  ;;  %v1860_v22 = vmul.f32 %v9232_v6, %v15160_v37 }
 0x137   :  { %v1861_v38 = vmul.f32 %v9241_v49, %v15160_v37  ;;  %v1932_v55 = vmul.f32 %v15153_v52, %v15147_v30  ;;  %v1453_v60 = vmax.f32 %v9617_v4, %v1413_v0  ;;  %v1933_v21 = vmul.f32 %v15143_v14, %v15147_v30 }
 0x138   :  { %v1660_v29 = vadd.f32 %v1652_v18, %v1612_v33  ;;  %v1661_v25 = vadd.f32 %v1653_v28, %v1613_v8  ;;  %v1956_v36 = vmul.f32 %v9028_v62, %v15148_v15  ;;  %v1957_v17 = vmul.f32 %v9033_v1, %v15148_v15 }
 0x139   :  { %v2004_v2 = vmul.f32 %v9042_v42, %v15150_v48  ;;  %v2005_v19 = vmul.f32 %v9047_v54, %v15150_v48  ;;  %v2052_v4 = vmul.f32 %v15157_v40, %v15152_v34  ;;  %v2053_v14 = vmul.f32 %v15158_v58, %v15152_v34  ;;  %v9706_v58 = vld [vmem:[%s14697_s0 + $0x30] sm:$0xff] }
 0x13a   :  { %v1716_v52 = vadd.f32 %v1708_v35, %v1660_v29  ;;  %v1717_v44 = vadd.f32 %v1709_v53, %v1661_v25  ;;  %v1964_v18 = vadd.f32 %v1956_v36, %v1932_v55  ;;  %v1965_v31 = vadd.f32 %v1957_v17, %v1933_v21  ;;  %v15171_v29 = vld [vmem:[#allocation53_spill] sm:$0xff] }
 0x13b   :  { %v2100_v28 = vmul.f32 %v9070_v12, %v15154_v13  ;;  %v2101_v47 = vmul.f32 %v9075_v45, %v15154_v13  ;;  %v2148_v35 = vmul.f32 %v9084_v9, %v15155_v51  ;;  %v2149_v53 = vmul.f32 %v9089_v57, %v15155_v51 }
 0x13c   :  { %v1764_v0 = vadd.f32 %v1756_v10, %v1716_v52  ;;  %v1765_v33 = vadd.f32 %v1757_v32, %v1717_v44  ;;  %v2012_v40 = vadd.f32 %v2004_v2, %v1964_v18  ;;  %v2013_v8 = vadd.f32 %v2005_v19, %v1965_v31 }
 0x13d   :  { %v2204_v55 = vmul.f32 %v9706_v58, %v15156_v39  ;;  %v2205_v10 = vmul.f32 %v15171_v29, %v15156_v39  ;;  %v2260_v21 = vmul.f32 %v8984_v56, %v15159_v61  ;;  %v2261_v36 = vmul.f32 %v9283_v23, %v15159_v61 }
 0x13e   :  { %v1812_v32 = vadd.f32 %v1804_v11, %v1764_v0  ;;  %v1813_v25 = vadd.f32 %v1805_v16, %v1765_v33  ;;  %v2060_v17 = vadd.f32 %v2052_v4, %v2012_v40  ;;  %v2061_v2 = vadd.f32 %v2053_v14, %v2013_v8 }
 0x13f   :  { %v2316_v19 = vmul.f32 %v9013_v24, %v15160_v37  ;;  %v2317_v52 = vmul.f32 %v9294_v59, %v15160_v37  ;;  %v2388_v11 = vmul.f32 %v9028_v62, %v15147_v30  ;;  %v2389_v16 = vmul.f32 %v9033_v1, %v15147_v30 }
 0x140   :  { %v1868_v44 = vadd.f32 %v1860_v22, %v1812_v32  ;;  %v1869_v18 = vadd.f32 %v1861_v38, %v1813_v25  ;;  %v2108_v56 = vadd.f32 %v2100_v28, %v2060_v17  ;;  %v2109_v31 = vadd.f32 %v2101_v47, %v2061_v2  ;;  %v9760_v17 = vld [vmem:[%s14697_s0 + $0x150] sm:$0xff] }
 0x141   :  { %v2412_v4 = vmul.f32 %v9042_v42, %v15148_v15  ;;  %v2413_v14 = vmul.f32 %v9047_v54, %v15148_v15  ;;  %v2460_v22 = vmul.f32 %v15167_v7, %v15150_v48  ;;  %v2461_v62 = vmul.f32 %v9141_v3, %v15150_v48 }
 0x142   :  { %v9728_v24 = vmax.f32 %v1452_v50, %v1868_v44  ;;  %v9730_v0 = vmax.f32 %v1453_v60, %v1869_v18  ;;  %v2156_v38 = vadd.f32 %v2148_v35, %v2108_v56  ;;  %v2157_v1 = vadd.f32 %v2149_v53, %v2109_v31  ;;  %v7585_v31 = vld [vmem:[%s14697_s0 + $0x2f0] sm:$0xff] }
 0x143   :  { %v2420_v28 = vadd.f32 %v2412_v4, %v2388_v11  ;;  %v2421_v47 = vadd.f32 %v2413_v14, %v2389_v16  ;;  %v2508_v42 = vmul.f32 %v9070_v12, %v15152_v34  ;;  %v2509_v54 = vmul.f32 %v9075_v45, %v15152_v34  ;;  %v9751_v12 = vld [vmem:[%s14697_s0 + $0xc0] sm:$0xff] }
 0x144   :  { %v2556_v50 = vmul.f32 %v9084_v9, %v15154_v13  ;;  %v2557_v60 = vmul.f32 %v9089_v57, %v15154_v13  ;;  %v2212_v33 = vadd.f32 %v2204_v55, %v2156_v38  ;;  %v2213_v40 = vadd.f32 %v2205_v10, %v2157_v1  ;;  %v9777_v14 = vld [vmem:[%s14697_s0 + $0x300] sm:$0xff] }
 0x145   :  { %v2468_v8 = vadd.f32 %v2460_v22, %v2420_v28  ;;  %v2469_v32 = vadd.f32 %v2461_v62, %v2421_v47  ;;  %v2604_v35 = vmul.f32 %v9158_v41, %v15155_v51  ;;  %v2605_v53 = vmul.f32 %v9163_v26, %v15155_v51 }
 0x146   :  { %v2652_v45 = vmul.f32 %v9751_v12, %v15156_v39  ;;  %v2653_v9 = vmul.f32 %v9283_v23, %v15156_v39  ;;  %v2268_v57 = vadd.f32 %v2260_v21, %v2212_v33  ;;  %v2269_v55 = vadd.f32 %v2261_v36, %v2213_v40 }
 0x147   :  { %v2516_v10 = vadd.f32 %v2508_v42, %v2468_v8  ;;  %v2517_v25 = vadd.f32 %v2509_v54, %v2469_v32  ;;  %v2700_v2 = vmul.f32 %v9760_v17, %v15159_v61  ;;  %v2701_v44 = vmul.f32 %v9294_v59, %v15159_v61 }
 0x148   :  { %v2756_v18 = vmul.f32 %v15160_v37, %v9103_v27  ;;  %v2757_v21 = vmul.f32 %v9337_v43, %v15160_v37  ;;  %v2324_v36 = vadd.f32 %v2316_v19, %v2268_v57  ;;  %v2325_v11 = vadd.f32 %v2317_v52, %v2269_v55 }
 0x149   :  { %v2564_v16 = vadd.f32 %v2556_v50, %v2516_v10  ;;  %v2565_v56 = vadd.f32 %v2557_v60, %v2517_v25  ;;  %v2828_v4 = vmul.f32 %v7585_v31, %v15147_v30  ;;  %v2829_v27 = vmul.f32 %v9777_v14, %v15147_v30 }
 0x14a   :  { %v2852_v19 = vmul.f32 %v15167_v7, %v15148_v15  ;;  %v2853_v52 = vmul.f32 %v9141_v3, %v15148_v15  ;;  %v2364_v22 = vmax.f32 %v9728_v24, %v2324_v36  ;;  %v2365_v62 = vmax.f32 %v9730_v0, %v2325_v11  ;;  %v9794_v3 = vld [vmem:[%s14697_s0 + $0x4a0] sm:$0xff]  ;;  %v9801_v24 = vld [vmem:[%s14697_s0 + $0x4b0] sm:$0xff] }
 0x14b   :  { %v2612_v38 = vadd.f32 %v2604_v35, %v2564_v16  ;;  %v2613_v1 = vadd.f32 %v2605_v53, %v2565_v56  ;;  %v2900_v42 = vmul.f32 %v15170_v46, %v15150_v48  ;;  %v2901_v54 = vmul.f32 %v9219_v63, %v15150_v48  ;;  %v7590_v11 = vld [vmem:[%s14697_s0 + $0x380] sm:$0xff]  ;;  %v7591_v56 = vld [vmem:[%s14697_s0 + $0x390] sm:$0xff] }
 0x14c   :  { %v2860_v28 = vadd.f32 %v2852_v19, %v2828_v4  ;;  %v2861_v47 = vadd.f32 %v2853_v52, %v2829_v27  ;;  %v2948_v7 = vmul.f32 %v9794_v3, %v15152_v34  ;;  %v2949_v46 = vmul.f32 %v9801_v24, %v15152_v34  ;;  %v7592_v27 = vld [vmem:[%s14697_s0 + $0x410] sm:$0xff]  ;;  %v7593_v52 = vld [vmem:[%s14697_s0 + $0x420] sm:$0xff] }
 0x14d   :  { %v2660_v50 = vadd.f32 %v2652_v45, %v2612_v38  ;;  %v2661_v60 = vadd.f32 %v2653_v9, %v2613_v1  ;;  %v2996_v33 = vmul.f32 %v9158_v41, %v15154_v13  ;;  %v2997_v40 = vmul.f32 %v9163_v26, %v15154_v13  ;;  %v9820_v26 = vld [vmem:[%s14697_s0 + $0x31] sm:$0xff] }
 0x14e   :  { %v2908_v0 = vadd.f32 %v2900_v42, %v2860_v28  ;;  %v2909_v63 = vadd.f32 %v2901_v54, %v2861_v47  ;;  %v3044_v35 = vmul.f32 %v9232_v6, %v15155_v51  ;;  %v3045_v53 = vmul.f32 %v9241_v49, %v15155_v51 }
 0x14f   :  { %v2708_v8 = vadd.f32 %v2700_v2, %v2660_v50  ;;  %v2709_v32 = vadd.f32 %v2701_v44, %v2661_v60  ;;  %v3092_v57 = vmul.f32 %v9760_v17, %v15156_v39  ;;  %v3093_v55 = vmul.f32 %v9294_v59, %v15156_v39 }
 0x150   :  { %v2956_v45 = vadd.f32 %v2948_v7, %v2908_v0  ;;  %v2957_v9 = vadd.f32 %v2949_v46, %v2909_v63  ;;  %v3140_v6 = vmul.f32 %v9820_v26, %v15159_v61  ;;  %v3141_v49 = vmul.f32 %v9337_v43, %v15159_v61 }
 0x151   :  { %v2764_v41 = vadd.f32 %v2756_v18, %v2708_v8  ;;  %v2765_v10 = vadd.f32 %v2757_v21, %v2709_v32  ;;  %v3196_v44 = vmul.f32 %v9187_v20, %v15160_v37  ;;  %v3197_v18 = vmul.f32 %v9382_v5, %v15160_v37  ;;  %v15172_v32 = vld [vmem:[#allocation54_spill] sm:$0xff] }
 0x152   :  { %v3004_v25 = vadd.f32 %v2996_v33, %v2956_v45  ;;  %v3005_v2 = vadd.f32 %v2997_v40, %v2957_v9  ;;  %v3268_v16 = vmul.f32 %v7590_v11, %v15147_v30  ;;  %v3269_v31 = vmul.f32 %v7591_v56, %v15147_v30  ;;  %v7594_v40 = vld [vmem:[%s14697_s0 + $0x1e0] sm:$0xff]  ;;  %v15173_v9 = vld [vmem:[#allocation55_spill] sm:$0xff] }
 0x153   :  { %v9830_v21 = vmax.f32 %v2364_v22, %v2764_v41  ;;  %v9832_v36 = vmax.f32 %v2365_v62, %v2765_v10  ;;  %v3292_v19 = vmul.f32 %v7592_v27, %v15148_v15  ;;  %v3293_v22 = vmul.f32 %v7593_v52, %v15148_v15 }
 0x154   :  { %v3052_v20 = vadd.f32 %v3044_v35, %v3004_v25  ;;  %v3053_v4 = vadd.f32 %v3045_v53, %v3005_v2  ;;  %v3340_v62 = vmul.f32 %v9794_v3, %v15150_v48  ;;  %v3341_v38 = vmul.f32 %v9801_v24, %v15150_v48  ;;  %v7595_v53 = vld [vmem:[%s14697_s0 + $0x270] sm:$0xff] }
 0x155   :  { %v3388_v1 = vmul.f32 %v9706_v58, %v15152_v34  ;;  %v3389_v28 = vmul.f32 %v15171_v29, %v15152_v34  ;;  %v3300_v54 = vadd.f32 %v3292_v19, %v3268_v16  ;;  %v3301_v50 = vadd.f32 %v3293_v22, %v3269_v31  ;;  %v15174_v25 = vld [vmem:[#allocation56_spill] sm:$0xff]  ;;  %v7596_v19 = vld [vmem:[%s14697_s0 + $0x381] sm:$0xff] }
 0x156   :  { %v3100_v47 = vadd.f32 %v3092_v57, %v3052_v20  ;;  %v3101_v42 = vadd.f32 %v3093_v55, %v3053_v4  ;;  %v3436_v60 = vmul.f32 %v9751_v12, %v15154_v13  ;;  %v3437_v7 = vmul.f32 %v9283_v23, %v15154_v13 }
 0x157   :  { %v3484_v46 = vmul.f32 %v9760_v17, %v15155_v51  ;;  %v3485_v0 = vmul.f32 %v9294_v59, %v15155_v51  ;;  %v3348_v33 = vadd.f32 %v3340_v62, %v3300_v54  ;;  %v3349_v29 = vadd.f32 %v3341_v38, %v3301_v50 }
 0x158   :  { %v3148_v58 = vadd.f32 %v3140_v6, %v3100_v47  ;;  %v3149_v63 = vadd.f32 %v3141_v49, %v3101_v42  ;;  %v3540_v8 = vmul.f32 %v7594_v40, %v15156_v39  ;;  %v3541_v35 = vmul.f32 %v15172_v32, %v15156_v39 }
 0x159   :  { %v3596_v45 = vmul.f32 %v7595_v53, %v15159_v61  ;;  %v3597_v57 = vmul.f32 %v15173_v9, %v15159_v61  ;;  %v3396_v10 = vadd.f32 %v3388_v1, %v3348_v33  ;;  %v3397_v6 = vadd.f32 %v3389_v28, %v3349_v29 }
 0x15a   :  { %v3204_v55 = vadd.f32 %v3196_v44, %v3148_v58  ;;  %v3205_v41 = vadd.f32 %v3197_v18, %v3149_v63  ;;  %v3652_v49 = vmul.f32 %v9777_v14, %v15160_v37  ;;  %v3653_v2 = vmul.f32 %v15174_v25, %v15160_v37 }
 0x15b   :  { %v3724_v11 = vmul.f32 %v7592_v27, %v15147_v30  ;;  %v3725_v16 = vmul.f32 %v7593_v52, %v15147_v30  ;;  %v3444_v20 = vadd.f32 %v3436_v60, %v3396_v10  ;;  %v3445_v4 = vadd.f32 %v3437_v7, %v3397_v6 }
 0x15c   :  { %v3244_v56 = vmax.f32 %v9830_v21, %v3204_v55  ;;  %v3245_v31 = vmax.f32 %v9832_v36, %v3205_v41  ;;  %v3748_v44 = vmul.f32 %v9794_v3, %v15148_v15  ;;  %v3749_v18 = vmul.f32 %v9801_v24, %v15148_v15  ;;  %v7597_v21 = vld [vmem:[%s14697_s0 + $0x391] sm:$0xff] }
 0x15d   :  { %v3796_v27 = vmul.f32 %v7596_v19, %v15150_v48  ;;  %v3797_v36 = vmul.f32 %v7597_v21, %v15150_v48  ;;  %v3492_v52 = vadd.f32 %v3484_v46, %v3444_v20  ;;  %v3493_v22 = vadd.f32 %v3485_v0, %v3445_v4 }
 0x15e   :  { %v3844_v62 = vmul.f32 %v9751_v12, %v15152_v34  ;;  %v3845_v38 = vmul.f32 %v9283_v23, %v15152_v34  ;;  %v3756_v1 = vadd.f32 %v3748_v44, %v3724_v11  ;;  %v3757_v28 = vadd.f32 %v3749_v18, %v3725_v16 }
 0x15f   :  { %v3892_v47 = vmul.f32 %v9760_v17, %v15154_v13  ;;  %v3893_v42 = vmul.f32 %v9294_v59, %v15154_v13  ;;  %v3548_v54 = vadd.f32 %v3540_v8, %v3492_v52  ;;  %v3549_v50 = vadd.f32 %v3541_v35, %v3493_v22  ;;  %v7598_v8 = vld [vmem:[%s14697_s0 + $0x1e1] sm:$0xff] }
 0x160   :  { %v3940_v60 = vmul.f32 %v9820_v26, %v15155_v51  ;;  %v3941_v7 = vmul.f32 %v9337_v43, %v15155_v51  ;;  %v3804_v12 = vadd.f32 %v3796_v27, %v3756_v1  ;;  %v3805_v46 = vadd.f32 %v3797_v36, %v3757_v28  ;;  %v15175_v35 = vld [vmem:[#allocation31_spill] sm:$0xff] }
 0x161   :  { %v3988_v23 = vmul.f32 %v7595_v53, %v15156_v39  ;;  %v3989_v0 = vmul.f32 %v15173_v9, %v15156_v39  ;;  %v3604_v58 = vadd.f32 %v3596_v45, %v3548_v54  ;;  %v3605_v63 = vadd.f32 %v3597_v57, %v3549_v50 }
 0x162   :  { %v4036_v59 = vmul.f32 %v9777_v14, %v15159_v61  ;;  %v4037_v33 = vmul.f32 %v15174_v25, %v15159_v61  ;;  %v3852_v29 = vadd.f32 %v3844_v62, %v3804_v12  ;;  %v3853_v40 = vadd.f32 %v3845_v38, %v3805_v46  ;;  %v7603_v46 = vld [vmem:[%s14697_s0 + $0x271] sm:$0xff] }
 0x163   :  { %v4092_v32 = vmul.f32 %v7598_v8, %v15160_v37  ;;  %v4093_v53 = vmul.f32 %v15175_v35, %v15160_v37  ;;  %v3660_v9 = vadd.f32 %v3652_v49, %v3604_v58  ;;  %v3661_v45 = vadd.f32 %v3653_v2, %v3605_v63  ;;  %v7599_v49 = vld [vmem:[%s14697_s0 + $0x411] sm:$0xff] }
 0x164   :  { %v4164_v57 = vmul.f32 %v9794_v3, %v15147_v30  ;;  %v4165_v55 = vmul.f32 %v9801_v24, %v15147_v30  ;;  %v3900_v41 = vadd.f32 %v3892_v47, %v3852_v29  ;;  %v3901_v10 = vadd.f32 %v3893_v42, %v3853_v40  ;;  %v7600_v3 = vld [vmem:[%s14697_s0 + $0x421] sm:$0xff]  ;;  %v9993_v40 = vld [vmem:[%s14697_s0 + $0x1f0] sm:$0xff] }
 0x165   :  { %v4188_v6 = vmul.f32 %v7596_v19, %v15148_v15  ;;  %v4189_v11 = vmul.f32 %v7597_v21, %v15148_v15  ;;  %v9929_v16 = vmax.f32 %v3244_v56, %v3660_v9  ;;  %v9931_v20 = vmax.f32 %v3245_v31, %v3661_v45  ;;  %v7601_v31 = vld [vmem:[%s14697_s0 + $0x160] sm:$0xff]  ;;  %15179 = vst [vmem:[#allocation47_spill] sm:$0xff] %v9993_v40 }
 0x166   :  { %v4236_v2 = vmul.f32 %v7599_v49, %v15150_v48  ;;  %v4237_v24 = vmul.f32 %v7600_v3, %v15150_v48  ;;  %v3948_v4 = vadd.f32 %v3940_v60, %v3900_v41  ;;  %v3949_v44 = vadd.f32 %v3941_v7, %v3901_v10  ;;  %v9969_v7 = vld [vmem:[%s14697_s0 + $0x50] sm:$0xff]  ;;  %v10295_v30 = vld [vmem:[%s14697_s0 + $0x180] sm:$0xff] }
 0x167   :  { %v4196_v18 = vadd.f32 %v4188_v6, %v4164_v57  ;;  %v4197_v19 = vadd.f32 %v4189_v11, %v4165_v55  ;;  %v4284_v56 = vmul.f32 %v9760_v17, %v15152_v34  ;;  %v4285_v27 = vmul.f32 %v7601_v31, %v15152_v34  ;;  %v7602_v17 = vld [vmem:[%s14697_s0 + $0xc1] sm:$0xff]  ;;  %v10018_v49 = vld [vmem:[%s14697_s0 + $0x170] sm:$0xff] }
 0x168   :  { %v4332_v21 = vmul.f32 %v9820_v26, %v15154_v13  ;;  %v4333_v36 = vmul.f32 %v9337_v43, %v15154_v13  ;;  %v3996_v52 = vadd.f32 %v3988_v23, %v3948_v4  ;;  %v3997_v22 = vadd.f32 %v3989_v0, %v3949_v44  ;;  %v9964_v43 = vld [vmem:[%s14697_s0 + $0x40] sm:$0xff]  ;;  %v15178_v0 = vld [vmem:[#allocation57_spill] sm:$0xff] }
 0x169   :  { %v4244_v62 = vadd.f32 %v4236_v2, %v4196_v18  ;;  %v4245_v38 = vadd.f32 %v4237_v24, %v4197_v19  ;;  %v4380_v1 = vmul.f32 %v7602_v17, %v15155_v51  ;;  %v4381_v28 = vmul.f32 %v9382_v5, %v15155_v51  ;;  %15176 = vst [vmem:[#allocation43_spill] sm:$0xff] %v9964_v43  ;;  %v9974_v5 = vld [vmem:[%s14697_s0 + $0xd0] sm:$0xff]  ;;  %v10013_v11 = vld [vmem:[%s14697_s0 + $0x160] sm:$0xff] }
 0x16a   :  { %v4428_v47 = vmul.f32 %v9777_v14, %v15156_v39  ;;  %v4429_v26 = vmul.f32 %v15174_v25, %v15156_v39  ;;  %v4044_v42 = vadd.f32 %v4036_v59, %v3996_v52  ;;  %v4045_v54 = vadd.f32 %v4037_v33, %v3997_v22  ;;  %15177 = vst [vmem:[#allocation44_spill] sm:$0xff] %v9974_v5  ;;  %v9979_v14 = vld [vmem:[%s14697_s0 + $0xe0] sm:$0xff]  ;;  %v15184_v24 = vld [vmem:[#allocation20_spill] sm:$0xff] }
 0x16b   :  { %v4292_v50 = vadd.f32 %v4284_v56, %v4244_v62  ;;  %v4293_v60 = vadd.f32 %v4285_v27, %v4245_v38  ;;  %v4476_v25 = vmul.f32 %v7598_v8, %v15159_v61  ;;  %v4477_v12 = vmul.f32 %v15175_v35, %v15159_v61  ;;  %v9998_v8 = vld [vmem:[%s14697_s0 + $0x200] sm:$0xff]  ;;  %v15181_v35 = vld [vmem:[#allocation15_spill] sm:$0xff]  ;;  %15183 = vst [vmem:[#allocation52_spill] sm:$0xff] %v10013_v11  ;;  %v10032_v19 = vld [vmem:[%s14697_s0 + $0x290] sm:$0xff] }
 0x16c   :  { %v4532_v23 = vmul.f32 %v7603_v46, %v15160_v37  ;;  %v4533_v58 = vmul.f32 %v15178_v0, %v15160_v37  ;;  %v4100_v63 = vadd.f32 %v4092_v32, %v4044_v42  ;;  %v4101_v59 = vadd.f32 %v4093_v53, %v4045_v54  ;;  %15180 = vst [vmem:[#allocation51_spill] sm:$0xff] %v9998_v8  ;;  %v15182_v32 = vld [vmem:[#allocation18_spill] sm:$0xff]  ;;  %v15185_v56 = vld [vmem:[#allocation21_spill] sm:$0xff]  ;;  %v15189_v42 = vld [vmem:[#allocation24_spill] sm:$0xff] }
 0x16d   :  { %v4340_v33 = vadd.f32 %v4332_v21, %v4292_v50  ;;  %v4341_v29 = vadd.f32 %v4333_v36, %v4293_v60  ;;  %v508_v9 = vmul.f32 %v15181_v35, %v9964_v43  ;;  %v509_v45 = vmul.f32 %v15181_v35, %v9969_v7  ;;  %v10027_v18 = vld [vmem:[%s14697_s0 + $0x280] sm:$0xff]  ;;  %v10041_v21 = vld [vmem:[%s14697_s0 + $0x310] sm:$0xff]  ;;  %v15190_v0 = vld [vmem:[#allocation25_spill] sm:$0xff] }
 0x16e   :  { %v554_v53 = vmul.f32 %v9974_v5, %v15182_v32  ;;  %v555_v57 = vmul.f32 %v9979_v14, %v15182_v32  ;;  %v4140_v55 = vmax.f32 %v9929_v16, %v4100_v63  ;;  %v4141_v41 = vmax.f32 %v9931_v20, %v4101_v59  ;;  %v10046_v36 = vld [vmem:[%s14697_s0 + $0x320] sm:$0xff]  ;;  %v10069_v60 = vld [vmem:[%s14697_s0 + $0x430] sm:$0xff] }
 0x16f   :  { %v4388_v10 = vadd.f32 %v4380_v1, %v4340_v33  ;;  %v4389_v6 = vadd.f32 %v4381_v28, %v4341_v29  ;;  %v616_v4 = vmul.f32 %v10013_v11, %v15184_v24  ;;  %v617_v16 = vmul.f32 %v10018_v49, %v15184_v24  ;;  %v15186_v62 = vld [vmem:[#allocation22_spill] sm:$0xff]  ;;  %v10235_v34 = vld [vmem:[%s14697_s0 + $0x431] sm:$0xff] }
 0x170   :  { %v562_v2 = vadd.f32 %v554_v53, %v508_v9  ;;  %v563_v3 = vadd.f32 %v555_v57, %v509_v45  ;;  %v678_v31 = vmul.f32 %v9993_v40, %v15185_v56  ;;  %v679_v27 = vmul.f32 %v9998_v8, %v15185_v56  ;;  %v10083_v9 = vld [vmem:[%s14697_s0 + $0x4c0] sm:$0xff]  ;;  %v10088_v45 = vld [vmem:[%s14697_s0 + $0x4d0] sm:$0xff] }
 0x171   :  { %v4436_v20 = vadd.f32 %v4428_v47, %v4388_v10  ;;  %v4437_v44 = vadd.f32 %v4429_v26, %v4389_v6  ;;  %v740_v38 = vmul.f32 %v10027_v18, %v15186_v62  ;;  %v741_v17 = vmul.f32 %v10032_v19, %v15186_v62  ;;  %v10055_v47 = vld [vmem:[%s14697_s0 + $0x3a0] sm:$0xff]  ;;  %v10060_v26 = vld [vmem:[%s14697_s0 + $0x3b0] sm:$0xff] }
 0x172   :  { %v624_v52 = vadd.f32 %v616_v4, %v562_v2  ;;  %v625_v22 = vadd.f32 %v617_v16, %v563_v3  ;;  %15187 = vst [vmem:[#allocation53_spill] sm:$0xff] %v10055_v47  ;;  %15188 = vst [vmem:[#allocation54_spill] sm:$0xff] %v10060_v26  ;;  %v802_v54 = vmul.f32 %v10041_v21, %v15189_v42  ;;  %v15191_v53 = vld [vmem:[#allocation26_spill] sm:$0xff]  ;;  %v15193_v3 = vld [vmem:[#allocation29_spill] sm:$0xff] }
 0x173   :  { %v4484_v1 = vadd.f32 %v4476_v25, %v4436_v20  ;;  %v4485_v28 = vadd.f32 %v4477_v12, %v4437_v44  ;;  %v803_v50 = vmul.f32 %v10046_v36, %v15189_v42  ;;  %v10074_v25 = vld [vmem:[%s14697_s0 + $0x440] sm:$0xff]  ;;  %v864_v63 = vmul.f32 %v10055_v47, %v15190_v0 }
 0x174   :  { %v686_v12 = vadd.f32 %v678_v31, %v624_v52  ;;  %v687_v46 = vadd.f32 %v679_v27, %v625_v22  ;;  %v865_v59 = vmul.f32 %v10060_v26, %v15190_v0  ;;  %v926_v57 = vmul.f32 %v10069_v60, %v15191_v53 }
 0x175   :  { %v4540_v33 = vadd.f32 %v4532_v23, %v4484_v1  ;;  %v4541_v29 = vadd.f32 %v4533_v58, %v4485_v28  ;;  %v927_v10 = vmul.f32 %v10074_v25, %v15191_v53  ;;  %v10097_v23 = vld [vmem:[%s14697_s0 + $0x41] sm:$0xff]  ;;  %v10102_v58 = vld [vmem:[%s14697_s0 + $0x51] sm:$0xff]  ;;  %v988_v4 = vmul.f32 %v10083_v9, %v15193_v3 }
 0x176   :  { %15192 = vst [vmem:[#allocation55_spill] sm:$0xff] %v10097_v23  ;;  %v748_v6 = vadd.f32 %v740_v38, %v686_v12  ;;  %v749_v2 = vadd.f32 %v741_v17, %v687_v46  ;;  %v989_v16 = vmul.f32 %v10088_v45, %v15193_v3  ;;  %v1030_v31 = vmul.f32 %v9974_v5, %v15181_v35  ;;  %v15194_v1 = vld [vmem:[#allocation32_spill] sm:$0xff] }
 0x177   :  { %v4580_v20 = vmax.f32 %v4140_v55, %v4540_v33  ;;  %v4581_v44 = vmax.f32 %v4141_v41, %v4541_v29  ;;  %v1031_v27 = vmul.f32 %v9979_v14, %v15181_v35  ;;  %v1062_v38 = vmul.f32 %v10013_v11, %v15182_v32 }
 0x178   :  { %v810_v52 = vadd.f32 %v802_v54, %v748_v6  ;;  %v811_v22 = vadd.f32 %v803_v50, %v749_v2  ;;  %v1063_v17 = vmul.f32 %v10018_v49, %v15182_v32  ;;  %v1118_v41 = vmul.f32 %v15184_v24, %v10097_v23 }
 0x179   :  { %v10117_v28 = vadd.f32 %v15194_v1, %v4580_v20  ;;  %v10120_v55 = vadd.f32 %v15194_v1, %v4581_v44  ;;  %v1119_v12 = vmul.f32 %v15184_v24, %v10102_v58  ;;  %v1070_v46 = vadd.f32 %v1062_v38, %v1030_v31  ;;  %v10135_v44 = vld [vmem:[%s14697_s0 + $0x1f1] sm:$0xff] }
 0x17a   :  { %v872_v54 = vadd.f32 %v864_v63, %v810_v52  ;;  %v873_v50 = vadd.f32 %v865_v59, %v811_v22  ;;  %v1071_v33 = vadd.f32 %v1063_v17, %v1031_v27  ;;  %v1166_v2 = vmul.f32 %v10027_v18, %v15185_v56  ;;  %15197 = vst [vmem:[#allocation57_spill] sm:$0xff] %v10135_v44  ;;  %v10140_v63 = vld [vmem:[%s14697_s0 + $0x201] sm:$0xff] }
 0x17b   :  { %15195 = vst [vmem:[#allocation56_spill] sm:$0xff] %v10117_v28  ;;  %15196 = vst [vmem:[#allocation31_spill] sm:$0xff] %v10120_v55  ;;  %v14837_v29 = vmax.f32 %v10117_v28, 0.0  ;;  %v14836_v6 = vmax.f32 %v10120_v55, 0.0  ;;  %v1167_v20 = vmul.f32 %v10032_v19, %v15185_v56  ;;  %v1126_v27 = vadd.f32 %v1118_v41, %v1070_v46 }
 0x17c   :  { %v934_v59 = vadd.f32 %v926_v57, %v872_v54  ;;  %v935_v31 = vadd.f32 %v927_v10, %v873_v50  ;;  %v1127_v52 = vadd.f32 %v1119_v12, %v1071_v33  ;;  %v1214_v17 = vmul.f32 %v10041_v21, %v15186_v62  ;;  %v10157_v57 = vld [vmem:[%s14697_s0 + $0x3a1] sm:$0xff]  ;;  %v10162_v10 = vld [vmem:[%s14697_s0 + $0x3b1] sm:$0xff] }
 0x17d   :  { %v10144_v22 = vand.u32 4294901760, %v14837_v29  ;;  %v10148_v38 = vand.u32 4294901760, %v14836_v6  ;;  %v1215_v1 = vmul.f32 %v10046_v36, %v15186_v62  ;;  %v1174_v54 = vadd.f32 %v1166_v2, %v1126_v27 }
 0x17e   :  { %v10164_v41 = vadd.f32 %v988_v4, %v934_v59  ;;  %v10166_v12 = vadd.f32 %v989_v16, %v935_v31  ;;  %v1175_v50 = vadd.f32 %v1167_v20, %v1127_v52  ;;  %v1270_v33 = vmul.f32 %v10135_v44, %v15189_v42  ;;  %v10181_v4 = vld [vmem:[%s14697_s0 + $0xd1] sm:$0xff]  ;;  %v10186_v16 = vld [vmem:[%s14697_s0 + $0xe1] sm:$0xff] }
 0x17f   :  { %15198 = vst [vmem:[#allocation58_spill] sm:$0xff] %v10144_v22  ;;  %15199 = vst [vmem:[#allocation59_spill] sm:$0xff] %v10148_v38  ;;  %v10170_v46 = vpack.c.bf16 %v10148_v38, %v10144_v22  ;;  %v1271_v6 = vmul.f32 %v10140_v63, %v15189_v42  ;;  %v1318_v29 = vmul.f32 %v10069_v60, %v15190_v0  ;;  %v10214_v22 = vld [vmem:[%s14697_s0 + $0x291] sm:$0xff] }
 0x180   :  { %15201 = vst [vmem:[#allocation61_spill] sm:$0xff] %v10181_v4  ;;  %v1222_v2 = vadd.f32 %v1214_v17, %v1174_v54  ;;  %v1223_v20 = vadd.f32 %v1215_v1, %v1175_v50  ;;  %v1319_v59 = vmul.f32 %v10074_v25, %v15190_v0  ;;  %v1366_v31 = vmul.f32 %v10083_v9, %v15191_v53  ;;  %v10205_v17 = vld [vmem:[%s14697_s0 + $0x281] sm:$0xff] }
 0x181   :  { %15200 = vst [vmem:[#allocation60_spill] sm:$0xff] %v10170_v46  ;;  %7373 = vmatprep.subr.bf16.mxu0 %v10170_v46  ;;  %v1367_v27 = vmul.f32 %v10088_v45, %v15191_v53  ;;  %v1422_v52 = vmul.f32 %v10157_v57, %v15193_v3  ;;  %v1423_v55 = vmul.f32 %v10162_v10, %v15193_v3  ;;  %15202 = vst [vmem:[#allocation62_spill] sm:$0xff] %v10205_v17 }
 0x182   :  { %v1486_v1 = vmul.f32 %v10013_v11, %v15181_v35  ;;  %7375 = vmatpush3.bf16.msra.mxu0 %v10170_v46  ;;  %v1278_v54 = vadd.f32 %v1270_v33, %v1222_v2  ;;  %v1279_v50 = vadd.f32 %v1271_v6, %v1223_v20  ;;  %v1487_v38 = vmul.f32 %v10018_v49, %v15181_v35 }
 0x183   :  { %v1518_v28 = vmul.f32 %v15182_v32, %v10097_v23  ;;  %v1519_v46 = vmul.f32 %v15182_v32, %v10102_v58  ;;  %v1574_v37 = vmul.f32 %v10181_v4, %v15184_v24  ;;  %v1575_v6 = vmul.f32 %v10186_v16, %v15184_v24 }
 0x184   :  { %v1622_v33 = vmul.f32 %v10041_v21, %v15185_v56  ;;  %v1326_v2 = vadd.f32 %v1318_v29, %v1278_v54  ;;  %v1327_v20 = vadd.f32 %v1319_v59, %v1279_v50  ;;  %v1623_v61 = vmul.f32 %v10046_v36, %v15185_v56 }
 0x185   :  { %v1526_v23 = vadd.f32 %v1518_v28, %v1486_v1  ;;  %v1527_v39 = vadd.f32 %v1519_v46, %v1487_v38  ;;  %v1670_v51 = vmul.f32 %v10135_v44, %v15186_v62  ;;  %v1671_v13 = vmul.f32 %v10140_v63, %v15186_v62  ;;  %v10240_v28 = vld [vmem:[%s14697_s0 + $0x441] sm:$0xff] }
 0x186   :  { %v1726_v4 = vmul.f32 %v10205_v17, %v15189_v42  ;;  %v1374_v29 = vadd.f32 %v1366_v31, %v1326_v2  ;;  %v1375_v38 = vadd.f32 %v1367_v27, %v1327_v20  ;;  %v1727_v59 = vmul.f32 %v10214_v22, %v15189_v42 }
 0x187   :  { %v1582_v46 = vadd.f32 %v1574_v37, %v1526_v23  ;;  %v1583_v1 = vadd.f32 %v1575_v6, %v1527_v39  ;;  %v1774_v54 = vmul.f32 %v10083_v9, %v15190_v0  ;;  %v1775_v50 = vmul.f32 %v10088_v45, %v15190_v0 }
 0x188   :  { %v1822_v11 = vmul.f32 %v10157_v57, %v15191_v53  ;;  %v1430_v48 = vadd.f32 %v1422_v52, %v1374_v29  ;;  %v1431_v5 = vadd.f32 %v1423_v55, %v1375_v38  ;;  %v1823_v31 = vmul.f32 %v10162_v10, %v15191_v53 }
 0x189   :  { %v1630_v15 = vadd.f32 %v1622_v33, %v1582_v46  ;;  %v1631_v37 = vadd.f32 %v1623_v61, %v1583_v1  ;;  %v1878_v23 = vmul.f32 %v10235_v34, %v15193_v3  ;;  %v1879_v39 = vmul.f32 %v10240_v28, %v15193_v3 }
 0x18a   :  { %v1942_v27 = vmul.f32 %v9993_v40, %v15181_v35  ;;  %v1462_v6 = vmax.f32 %v10164_v41, %v1430_v48  ;;  %v1463_v2 = vmax.f32 %v10166_v12, %v1431_v5  ;;  %v1943_v55 = vmul.f32 %v9998_v8, %v15181_v35  ;;  %v10282_v5 = vld [vmem:[%s14697_s0 + $0xf0] sm:$0xff] }
 0x18b   :  { %v1678_v52 = vadd.f32 %v1670_v51, %v1630_v15  ;;  %v1679_v33 = vadd.f32 %v1671_v13, %v1631_v37  ;;  %v1974_v61 = vmul.f32 %v10027_v18, %v15182_v32  ;;  %v1975_v20 = vmul.f32 %v10032_v19, %v15182_v32  ;;  %v10277_v13 = vld [vmem:[%s14697_s0 + $0x60] sm:$0xff] }
 0x18c   :  { %v2022_v29 = vmul.f32 %v10041_v21, %v15184_v24  ;;  %v2023_v48 = vmul.f32 %v10046_v36, %v15184_v24  ;;  %v2070_v15 = vmul.f32 %v10055_v47, %v15185_v56  ;;  %v2071_v51 = vmul.f32 %v10060_v26, %v15185_v56  ;;  %15203 = vst [vmem:[#allocation63_spill] sm:$0xff] %v10277_v13 }
 0x18d   :  { %v1734_v38 = vadd.f32 %v1726_v4, %v1678_v52  ;;  %v1735_v41 = vadd.f32 %v1727_v59, %v1679_v33  ;;  %v1982_v12 = vadd.f32 %v1974_v61, %v1942_v27  ;;  %v1983_v4 = vadd.f32 %v1975_v20, %v1943_v55 }
 0x18e   :  { %v2118_v46 = vmul.f32 %v10069_v60, %v15186_v62  ;;  %v2119_v37 = vmul.f32 %v10074_v25, %v15186_v62  ;;  %v2166_v52 = vmul.f32 %v10083_v9, %v15189_v42  ;;  %v2167_v40 = vmul.f32 %v10088_v45, %v15189_v42 }
 0x18f   :  { %v1782_v1 = vadd.f32 %v1774_v54, %v1734_v38  ;;  %v1783_v59 = vadd.f32 %v1775_v50, %v1735_v41  ;;  %v2030_v27 = vadd.f32 %v2022_v29, %v1982_v12  ;;  %v2031_v55 = vadd.f32 %v2023_v48, %v1983_v4 }
 0x190   :  { %v2222_v54 = vmul.f32 %v15190_v0, %v9969_v7  ;;  %v2223_v61 = vmul.f32 %v10277_v13, %v15190_v0  ;;  %v2278_v20 = vmul.f32 %v9979_v14, %v15191_v53  ;;  %v2279_v38 = vmul.f32 %v10282_v5, %v15191_v53 }
 0x191   :  { %v1830_v33 = vadd.f32 %v1822_v11, %v1782_v1  ;;  %v1831_v43 = vadd.f32 %v1823_v31, %v1783_v59  ;;  %v2078_v8 = vadd.f32 %v2070_v15, %v2030_v27  ;;  %v2079_v26 = vadd.f32 %v2071_v51, %v2031_v55 }
 0x192   :  { %v2334_v50 = vmul.f32 %v10018_v49, %v15193_v3  ;;  %v2335_v48 = vmul.f32 %v10295_v30, %v15193_v3  ;;  %v2398_v11 = vmul.f32 %v10027_v18, %v15181_v35  ;;  %v2399_v41 = vmul.f32 %v10032_v19, %v15181_v35 }
 0x193   :  { %v1886_v29 = vadd.f32 %v1878_v23, %v1830_v33  ;;  %v1887_v12 = vadd.f32 %v1879_v39, %v1831_v43  ;;  %v2126_v4 = vadd.f32 %v2118_v46, %v2078_v8  ;;  %v2127_v1 = vadd.f32 %v2119_v37, %v2079_v26 }
 0x194   :  { %v2430_v31 = vmul.f32 %v10041_v21, %v15182_v32  ;;  %v2431_v23 = vmul.f32 %v10046_v36, %v15182_v32  ;;  %v2478_v51 = vmul.f32 %v10135_v44, %v15184_v24  ;;  %v2479_v59 = vmul.f32 %v10140_v63, %v15184_v24 }
 0x195   :  { %v10315_v15 = vmax.f32 %v1462_v6, %v1886_v29  ;;  %v10323_v27 = vmax.f32 %v1463_v2, %v1887_v12  ;;  %v2174_v55 = vadd.f32 %v2166_v52, %v2126_v4  ;;  %v2175_v43 = vadd.f32 %v2167_v40, %v2127_v1  ;;  %v10336_v40 = vld [vmem:[%s14697_s0 + $0x61] sm:$0xff] }
 0x196   :  { %v2438_v8 = vadd.f32 %v2430_v31, %v2398_v11  ;;  %v2439_v26 = vadd.f32 %v2431_v23, %v2399_v41  ;;  %v2526_v39 = vmul.f32 %v10069_v60, %v15185_v56  ;;  %v2527_v6 = vmul.f32 %v10074_v25, %v15185_v56 }
 0x197   :  { %v2574_v46 = vmul.f32 %v10083_v9, %v15186_v62  ;;  %v2230_v37 = vadd.f32 %v2222_v54, %v2174_v55  ;;  %v2231_v33 = vadd.f32 %v2223_v61, %v2175_v43  ;;  %v2575_v2 = vmul.f32 %v10088_v45, %v15186_v62 }
 0x198   :  { %v2486_v29 = vadd.f32 %v2478_v51, %v2438_v8  ;;  %v2487_v52 = vadd.f32 %v2479_v59, %v2439_v26  ;;  %v2622_v11 = vmul.f32 %v10157_v57, %v15189_v42  ;;  %v2623_v41 = vmul.f32 %v10162_v10, %v15189_v42 }
 0x199   :  { %v2670_v54 = vmul.f32 %v9979_v14, %v15190_v0  ;;  %v2286_v61 = vadd.f32 %v2278_v20, %v2230_v37  ;;  %v2287_v12 = vadd.f32 %v2279_v38, %v2231_v33  ;;  %v2671_v1 = vmul.f32 %v10282_v5, %v15190_v0 }
 0x19a   :  { %v2534_v4 = vadd.f32 %v2526_v39, %v2486_v29  ;;  %v2535_v31 = vadd.f32 %v2527_v6, %v2487_v52  ;;  %v2718_v23 = vmul.f32 %v10018_v49, %v15191_v53  ;;  %v2719_v51 = vmul.f32 %v10295_v30, %v15191_v53 }
 0x19b   :  { %v2774_v59 = vmul.f32 %v15193_v3, %v10102_v58  ;;  %v2342_v55 = vadd.f32 %v2334_v50, %v2286_v61  ;;  %v2343_v43 = vadd.f32 %v2335_v48, %v2287_v12  ;;  %v2775_v20 = vmul.f32 %v10336_v40, %v15193_v3 }
 0x19c   :  { %v2582_v8 = vadd.f32 %v2574_v46, %v2534_v4  ;;  %v2583_v38 = vadd.f32 %v2575_v2, %v2535_v31  ;;  %v2838_v26 = vmul.f32 %v10041_v21, %v15181_v35  ;;  %v2839_v39 = vmul.f32 %v10046_v36, %v15181_v35 }
 0x19d   :  { %v2870_v6 = vmul.f32 %v10135_v44, %v15182_v32  ;;  %v2374_v37 = vmax.f32 %v10315_v15, %v2342_v55  ;;  %v2375_v33 = vmax.f32 %v10323_v27, %v2343_v43  ;;  %v2871_v48 = vmul.f32 %v10140_v63, %v15182_v32  ;;  %v10379_v55 = vld [vmem:[%s14697_s0 + $0xf1] sm:$0xff] }
 0x19e   :  { %v2630_v50 = vadd.f32 %v2622_v11, %v2582_v8  ;;  %v2631_v46 = vadd.f32 %v2623_v41, %v2583_v38  ;;  %v2918_v2 = vmul.f32 %v10205_v17, %v15184_v24  ;;  %v2919_v52 = vmul.f32 %v10214_v22, %v15184_v24  ;;  %15204 = vst [vmem:[#allocation64_spill] sm:$0xff] %v10379_v55 }
 0x19f   :  { %v2878_v29 = vadd.f32 %v2870_v6, %v2838_v26  ;;  %v2879_v12 = vadd.f32 %v2871_v48, %v2839_v39  ;;  %v2966_v4 = vmul.f32 %v10083_v9, %v15185_v56  ;;  %v2967_v15 = vmul.f32 %v10088_v45, %v15185_v56 }
 0x1a0   :  { %v2678_v61 = vadd.f32 %v2670_v54, %v2630_v50  ;;  %v2679_v27 = vadd.f32 %v2671_v1, %v2631_v46  ;;  %v3014_v41 = vmul.f32 %v10157_v57, %v15186_v62  ;;  %v3015_v31 = vmul.f32 %v10162_v10, %v15186_v62 }
 0x1a1   :  { %v2926_v11 = vadd.f32 %v2918_v2, %v2878_v29  ;;  %v2927_v43 = vadd.f32 %v2919_v52, %v2879_v12  ;;  %v3062_v8 = vmul.f32 %v10235_v34, %v15189_v42  ;;  %v3063_v1 = vmul.f32 %v10240_v28, %v15189_v42 }
 0x1a2   :  { %v2726_v54 = vadd.f32 %v2718_v23, %v2678_v61  ;;  %v2727_v38 = vadd.f32 %v2719_v51, %v2679_v27  ;;  %v3110_v39 = vmul.f32 %v10018_v49, %v15190_v0  ;;  %v3111_v6 = vmul.f32 %v10295_v30, %v15190_v0 }
 0x1a3   :  { %v2974_v26 = vadd.f32 %v2966_v4, %v2926_v11  ;;  %v2975_v48 = vadd.f32 %v2967_v15, %v2927_v43  ;;  %v3158_v23 = vmul.f32 %v15191_v53, %v10102_v58  ;;  %v3159_v46 = vmul.f32 %v10336_v40, %v15191_v53  ;;  %v15205_v4 = vld [vmem:[#allocation54_spill] sm:$0xff] }
 0x1a4   :  { %v2782_v50 = vadd.f32 %v2774_v59, %v2726_v54  ;;  %v2783_v29 = vadd.f32 %v2775_v20, %v2727_v38  ;;  %v3214_v51 = vmul.f32 %v10186_v16, %v15193_v3  ;;  %v3215_v52 = vmul.f32 %v10379_v55, %v15193_v3 }
 0x1a5   :  { %v3022_v2 = vadd.f32 %v3014_v41, %v2974_v26  ;;  %v3023_v12 = vadd.f32 %v3015_v31, %v2975_v48  ;;  %v3278_v59 = vmul.f32 %v10055_v47, %v15181_v35  ;;  %v3279_v15 = vmul.f32 %v15205_v4, %v15181_v35 }
 0x1a6   :  { %v10397_v61 = vmax.f32 %v2374_v37, %v2782_v50  ;;  %v10403_v27 = vmax.f32 %v2375_v33, %v2783_v29  ;;  %v3310_v20 = vmul.f32 %v10069_v60, %v15182_v32  ;;  %v3311_v41 = vmul.f32 %v10074_v25, %v15182_v32  ;;  %v10418_v33 = vld [vmem:[%s14697_s0 + $0x210] sm:$0xff]  ;;  %v10425_v50 = vld [vmem:[%s14697_s0 + $0x2a0] sm:$0xff] }
 0x1a7   :  { %v3070_v11 = vadd.f32 %v3062_v8, %v3022_v2  ;;  %v3071_v54 = vadd.f32 %v3063_v1, %v3023_v12  ;;  %v3358_v37 = vmul.f32 %v10083_v9, %v15184_v24  ;;  %v3359_v31 = vmul.f32 %v10088_v45, %v15184_v24  ;;  %15206 = vst [vmem:[#allocation65_spill] sm:$0xff] %v10418_v33  ;;  %v10436_v12 = vld [vmem:[%s14697_s0 + $0x330] sm:$0xff] }
 0x1a8   :  { %v3406_v43 = vmul.f32 %v15185_v56, %v9969_v7  ;;  %v3318_v38 = vadd.f32 %v3310_v20, %v3278_v59  ;;  %v3319_v26 = vadd.f32 %v3311_v41, %v3279_v15  ;;  %v3407_v1 = vmul.f32 %v10277_v13, %v15185_v56  ;;  %15207 = vst [vmem:[#allocation66_spill] sm:$0xff] %v10425_v50  ;;  %v15209_v41 = vld [vmem:[#allocation51_spill] sm:$0xff] }
 0x1a9   :  { %v3118_v8 = vadd.f32 %v3110_v39, %v3070_v11  ;;  %v3119_v48 = vadd.f32 %v3111_v6, %v3071_v54  ;;  %v3454_v29 = vmul.f32 %v9979_v14, %v15186_v62  ;;  %v3455_v2 = vmul.f32 %v10282_v5, %v15186_v62  ;;  %15208 = vst [vmem:[#allocation67_spill] sm:$0xff] %v10436_v12 }
 0x1aa   :  { %v3502_v39 = vmul.f32 %v10018_v49, %v15189_v42  ;;  %v3366_v15 = vadd.f32 %v3358_v37, %v3318_v38  ;;  %v3367_v11 = vadd.f32 %v3359_v31, %v3319_v26  ;;  %v3503_v6 = vmul.f32 %v10295_v30, %v15189_v42 }
 0x1ab   :  { %v3166_v59 = vadd.f32 %v3158_v23, %v3118_v8  ;;  %v3167_v20 = vadd.f32 %v3159_v46, %v3119_v48  ;;  %v3558_v54 = vmul.f32 %v15209_v41, %v15190_v0  ;;  %v3559_v13 = vmul.f32 %v10418_v33, %v15190_v0 }
 0x1ac   :  { %v3614_v17 = vmul.f32 %v10032_v19, %v15191_v53  ;;  %v3414_v4 = vadd.f32 %v3406_v43, %v3366_v15  ;;  %v3415_v47 = vadd.f32 %v3407_v1, %v3367_v11  ;;  %v3615_v23 = vmul.f32 %v10425_v50, %v15191_v53 }
 0x1ad   :  { %v3222_v44 = vadd.f32 %v3214_v51, %v3166_v59  ;;  %v3223_v37 = vadd.f32 %v3215_v52, %v3167_v20  ;;  %v3670_v31 = vmul.f32 %v10046_v36, %v15193_v3  ;;  %v3671_v46 = vmul.f32 %v10436_v12, %v15193_v3 }
 0x1ae   :  { %v3734_v8 = vmul.f32 %v10069_v60, %v15181_v35  ;;  %v3462_v26 = vadd.f32 %v3454_v29, %v3414_v4  ;;  %v3463_v48 = vadd.f32 %v3455_v2, %v3415_v47  ;;  %v3735_v51 = vmul.f32 %v10074_v25, %v15181_v35 }
 0x1af   :  { %v3254_v38 = vmax.f32 %v10397_v61, %v3222_v44  ;;  %v3255_v43 = vmax.f32 %v10403_v27, %v3223_v37  ;;  %v3766_v52 = vmul.f32 %v10083_v9, %v15182_v32  ;;  %v3767_v1 = vmul.f32 %v10088_v45, %v15182_v32  ;;  %v10479_v37 = vld [vmem:[%s14697_s0 + $0x211] sm:$0xff] }
 0x1b0   :  { %v3814_v59 = vmul.f32 %v10157_v57, %v15184_v24  ;;  %v3510_v15 = vadd.f32 %v3502_v39, %v3462_v26  ;;  %v3511_v11 = vadd.f32 %v3503_v6, %v3463_v48  ;;  %v3815_v44 = vmul.f32 %v10162_v10, %v15184_v24  ;;  %15210 = vst [vmem:[#allocation51_spill] sm:$0xff] %v10479_v37 }
 0x1b1   :  { %v3862_v47 = vmul.f32 %v9979_v14, %v15185_v56  ;;  %v3774_v61 = vadd.f32 %v3766_v52, %v3734_v8  ;;  %v3775_v4 = vadd.f32 %v3767_v1, %v3735_v51  ;;  %v3863_v27 = vmul.f32 %v10282_v5, %v15185_v56 }
 0x1b2   :  { %v3910_v29 = vmul.f32 %v10018_v49, %v15186_v62  ;;  %v3566_v2 = vadd.f32 %v3558_v54, %v3510_v15  ;;  %v3567_v20 = vadd.f32 %v3559_v13, %v3511_v11  ;;  %v3911_v39 = vmul.f32 %v10295_v30, %v15186_v62 }
 0x1b3   :  { %v3958_v6 = vmul.f32 %v15189_v42, %v10102_v58  ;;  %v3822_v8 = vadd.f32 %v3814_v59, %v3774_v61  ;;  %v3823_v26 = vadd.f32 %v3815_v44, %v3775_v4  ;;  %v3959_v48 = vmul.f32 %v10336_v40, %v15189_v42 }
 0x1b4   :  { %v4006_v54 = vmul.f32 %v10032_v19, %v15190_v0  ;;  %v3622_v13 = vadd.f32 %v3614_v17, %v3566_v2  ;;  %v3623_v51 = vadd.f32 %v3615_v23, %v3567_v20  ;;  %v4007_v52 = vmul.f32 %v10425_v50, %v15190_v0 }
 0x1b5   :  { %v4054_v1 = vmul.f32 %v10046_v36, %v15191_v53  ;;  %v3870_v15 = vadd.f32 %v3862_v47, %v3822_v8  ;;  %v3871_v11 = vadd.f32 %v3863_v27, %v3823_v26  ;;  %v4055_v59 = vmul.f32 %v10436_v12, %v15191_v53 }
 0x1b6   :  { %v4110_v44 = vmul.f32 %v10140_v63, %v15193_v3  ;;  %v3678_v61 = vadd.f32 %v3670_v31, %v3622_v13  ;;  %v3679_v4 = vadd.f32 %v3671_v46, %v3623_v51  ;;  %v4111_v17 = vmul.f32 %v10479_v37, %v15193_v3 }
 0x1b7   :  { %v4174_v23 = vmul.f32 %v10083_v9, %v15181_v35  ;;  %v3918_v2 = vadd.f32 %v3910_v29, %v3870_v15  ;;  %v3919_v20 = vadd.f32 %v3911_v39, %v3871_v11  ;;  %v4175_v47 = vmul.f32 %v10088_v45, %v15181_v35 }
 0x1b8   :  { %v4206_v27 = vmul.f32 %v10157_v57, %v15182_v32  ;;  %v10501_v8 = vmax.f32 %v3254_v38, %v3678_v61  ;;  %v10503_v26 = vmax.f32 %v3255_v43, %v3679_v4  ;;  %v4207_v31 = vmul.f32 %v10162_v10, %v15182_v32 }
 0x1b9   :  { %v4254_v46 = vmul.f32 %v10235_v34, %v15184_v24  ;;  %v3966_v13 = vadd.f32 %v3958_v6, %v3918_v2  ;;  %v3967_v51 = vadd.f32 %v3959_v48, %v3919_v20  ;;  %v4255_v39 = vmul.f32 %v10240_v28, %v15184_v24  ;;  %v10522_v48 = vld [vmem:[%s14697_s0 + $0x2a1] sm:$0xff] }
 0x1ba   :  { %v4214_v29 = vadd.f32 %v4206_v27, %v4174_v23  ;;  %v4215_v15 = vadd.f32 %v4207_v31, %v4175_v47  ;;  %v4302_v11 = vmul.f32 %v10018_v49, %v15185_v56  ;;  %v4303_v38 = vmul.f32 %v10295_v30, %v15185_v56  ;;  %15211 = vst [vmem:[#allocation68_spill] sm:$0xff] %v10522_v48  ;;  %v15219_v56 = vld [vmem:[#allocation47_spill] sm:$0xff] }
 0x1bb   :  { %v4350_v43 = vmul.f32 %v15186_v62, %v10102_v58  ;;  %v4014_v61 = vadd.f32 %v4006_v54, %v3966_v13  ;;  %v4015_v4 = vadd.f32 %v4007_v52, %v3967_v51  ;;  %v4351_v6 = vmul.f32 %v10336_v40, %v15186_v62 }
 0x1bc   :  { %v4262_v32 = vadd.f32 %v4254_v46, %v4214_v29  ;;  %v4263_v23 = vadd.f32 %v4255_v39, %v4215_v15  ;;  %v4398_v2 = vmul.f32 %v10186_v16, %v15189_v42  ;;  %v4399_v20 = vmul.f32 %v10379_v55, %v15189_v42 }
 0x1bd   :  { %v4446_v54 = vmul.f32 %v10046_v36, %v15190_v0  ;;  %v4062_v52 = vadd.f32 %v4054_v1, %v4014_v61  ;;  %v4063_v47 = vadd.f32 %v4055_v59, %v4015_v4  ;;  %v4447_v31 = vmul.f32 %v10436_v12, %v15190_v0  ;;  %v15212_v59 = vld [vmem:[#allocation43_spill] sm:$0xff]  ;;  %v15214_v4 = vld [vmem:[#allocation12_spill] sm:$0xff]  ;;  %v15226_v12 = vld [vmem:[#allocation38_spill] sm:$0xff] }
 0x1be   :  { %v4310_v27 = vadd.f32 %v4302_v11, %v4262_v32  ;;  %v4311_v46 = vadd.f32 %v4303_v38, %v4263_v23  ;;  %v4494_v13 = vmul.f32 %v10140_v63, %v15191_v53  ;;  %v4495_v51 = vmul.f32 %v10479_v37, %v15191_v53  ;;  %v15213_v11 = vld [vmem:[#allocation34_spill] sm:$0xff]  ;;  %v15215_v23 = vld [vmem:[#allocation44_spill] sm:$0xff]  ;;  %v15225_v37 = vld [vmem:[#allocation37_spill] sm:$0xff] }
 0x1bf   :  { %v4550_v29 = vmul.f32 %v10214_v22, %v15193_v3  ;;  %v4118_v39 = vadd.f32 %v4110_v44, %v4062_v52  ;;  %v4119_v15 = vadd.f32 %v4111_v17, %v4063_v47  ;;  %v4551_v1 = vmul.f32 %v10522_v48, %v15193_v3  ;;  %v15217_v47 = vld [vmem:[#allocation52_spill] sm:$0xff]  ;;  %v15218_v3 = vld [vmem:[#allocation13_spill] sm:$0xff] }
 0x1c0   :  { %v4358_v42 = vadd.f32 %v4350_v43, %v4310_v27  ;;  %v4359_v32 = vadd.f32 %v4351_v6, %v4311_v46  ;;  %v498_v61 = vmul.f32 %v15213_v11, %v15212_v59  ;;  %v499_v38 = vmul.f32 %v15213_v11, %v9969_v7  ;;  %v15216_v6 = vld [vmem:[#allocation35_spill] sm:$0xff]  ;;  %v15223_v48 = vld [vmem:[#allocation53_spill] sm:$0xff] }
 0x1c1   :  { %v536_v0 = vmul.f32 %v15215_v23, %v15214_v4  ;;  %v4150_v53 = vmax.f32 %v10501_v8, %v4118_v39  ;;  %v4151_v62 = vmax.f32 %v10503_v26, %v4119_v15  ;;  %v537_v17 = vmul.f32 %v9979_v14, %v15214_v4 }
 0x1c2   :  { %v4406_v44 = vadd.f32 %v4398_v2, %v4358_v42  ;;  %v4407_v43 = vadd.f32 %v4399_v20, %v4359_v32  ;;  %v598_v27 = vmul.f32 %v15217_v47, %v15216_v6  ;;  %v599_v46 = vmul.f32 %v10018_v49, %v15216_v6  ;;  %v15220_v2 = vld [vmem:[#allocation14_spill] sm:$0xff]  ;;  %v15221_v32 = vld [vmem:[#allocation16_spill] sm:$0xff] }
 0x1c3   :  { %v544_v52 = vadd.f32 %v536_v0, %v498_v61  ;;  %v545_v59 = vadd.f32 %v537_v17, %v499_v38  ;;  %v660_v24 = vmul.f32 %v15219_v56, %v15218_v3  ;;  %v661_v8 = vmul.f32 %v15209_v41, %v15218_v3  ;;  %v15222_v17 = vld [vmem:[#allocation36_spill] sm:$0xff] }
 0x1c4   :  { %v4454_v7 = vadd.f32 %v4446_v54, %v4406_v44  ;;  %v4455_v42 = vadd.f32 %v4447_v31, %v4407_v43  ;;  %v722_v20 = vmul.f32 %v10027_v18, %v15220_v2  ;;  %v723_v0 = vmul.f32 %v10032_v19, %v15220_v2  ;;  %v15224_v43 = vld [vmem:[#allocation54_spill] sm:$0xff] }
 0x1c5   :  { %v606_v26 = vadd.f32 %v598_v27, %v544_v52  ;;  %v607_v15 = vadd.f32 %v599_v46, %v545_v59  ;;  %v784_v54 = vmul.f32 %v10041_v21, %v15221_v32  ;;  %v785_v61 = vmul.f32 %v10046_v36, %v15221_v32 }
 0x1c6   :  { %v4502_v39 = vadd.f32 %v4494_v13, %v4454_v7  ;;  %v4503_v38 = vadd.f32 %v4495_v51, %v4455_v42  ;;  %v846_v31 = vmul.f32 %v15223_v48, %v15222_v17  ;;  %v847_v52 = vmul.f32 %v15224_v43, %v15222_v17 }
 0x1c7   :  { %v668_v44 = vadd.f32 %v660_v24, %v606_v26  ;;  %v669_v35 = vadd.f32 %v661_v8, %v607_v15  ;;  %v908_v13 = vmul.f32 %v10069_v60, %v15225_v37  ;;  %v909_v46 = vmul.f32 %v10074_v25, %v15225_v37 }
 0x1c8   :  { %v4558_v27 = vadd.f32 %v4550_v29, %v4502_v39  ;;  %v4559_v7 = vadd.f32 %v4551_v1, %v4503_v38  ;;  %v970_v51 = vmul.f32 %v10083_v9, %v15226_v12  ;;  %v971_v24 = vmul.f32 %v10088_v45, %v15226_v12  ;;  %v15227_v38 = vld [vmem:[#allocation17_spill] sm:$0xff] }
 0x1c9   :  { %v730_v59 = vadd.f32 %v722_v20, %v668_v44  ;;  %v731_v26 = vadd.f32 %v723_v0, %v669_v35  ;;  %v1022_v29 = vmul.f32 %v15215_v23, %v15213_v11  ;;  %v1023_v8 = vmul.f32 %v9979_v14, %v15213_v11 }
 0x1ca   :  { %v4590_v42 = vmax.f32 %v4150_v53, %v4558_v27  ;;  %v4591_v39 = vmax.f32 %v4151_v62, %v4559_v7  ;;  %v1046_v1 = vmul.f32 %v15217_v47, %v15214_v4  ;;  %v1047_v20 = vmul.f32 %v10018_v49, %v15214_v4  ;;  %v15229_v53 = vld [vmem:[#allocation55_spill] sm:$0xff] }
 0x1cb   :  { %v792_v15 = vadd.f32 %v784_v54, %v730_v59  ;;  %v793_v50 = vadd.f32 %v785_v61, %v731_v26  ;;  %v1102_v35 = vmul.f32 %v15216_v6, %v15229_v53  ;;  %v1103_v23 = vmul.f32 %v15216_v6, %v10102_v58 }
 0x1cc   :  { %v10587_v44 = vadd.f32 %v15227_v38, %v4590_v42  ;;  %v10594_v14 = vadd.f32 %v15227_v38, %v4591_v39  ;;  %v1054_v0 = vadd.f32 %v1046_v1, %v1022_v29  ;;  %v1055_v54 = vadd.f32 %v1047_v20, %v1023_v8 }
 0x1cd   :  { %v854_v62 = vadd.f32 %v846_v31, %v792_v15  ;;  %v855_v7 = vadd.f32 %v847_v52, %v793_v50  ;;  %v1150_v59 = vmul.f32 %v10027_v18, %v15218_v3  ;;  %v1151_v61 = vmul.f32 %v10032_v19, %v15218_v3 }
 0x1ce   :  { %15228 = vst [vmem:[#allocation43_spill] sm:$0xff] %v10587_v44  ;;  %15230 = vst [vmem:[#allocation44_spill] sm:$0xff] %v10594_v14  ;;  %v14895_v27 = vmax.f32 %v10587_v44, 0.0  ;;  %v14894_v42 = vmax.f32 %v10594_v14, 0.0  ;;  %v1110_v33 = vadd.f32 %v1102_v35, %v1054_v0  ;;  %v1111_v55 = vadd.f32 %v1103_v23, %v1055_v54 }
 0x1cf   :  { %v916_v26 = vadd.f32 %v908_v13, %v854_v62  ;;  %v917_v31 = vadd.f32 %v909_v46, %v855_v7  ;;  %v1198_v29 = vmul.f32 %v10041_v21, %v15220_v2  ;;  %v1199_v50 = vmul.f32 %v10046_v36, %v15220_v2  ;;  %v15233_v13 = vld [vmem:[#allocation57_spill] sm:$0xff] }
 0x1d0   :  { %v10604_v39 = vand.u32 4294901760, %v14895_v27  ;;  %v10612_v52 = vand.u32 4294901760, %v14894_v42  ;;  %v1158_v8 = vadd.f32 %v1150_v59, %v1110_v33  ;;  %v1159_v15 = vadd.f32 %v1151_v61, %v1111_v55  ;;  %v15236_v27 = vld [vmem:[#allocation62_spill] sm:$0xff] }
 0x1d1   :  { %v1254_v1 = vmul.f32 %v15233_v13, %v15221_v32  ;;  %v1255_v20 = vmul.f32 %v10140_v63, %v15221_v32  ;;  %v1302_v46 = vmul.f32 %v10069_v60, %v15222_v17  ;;  %v1303_v0 = vmul.f32 %v10074_v25, %v15222_v17 }
 0x1d2   :  { %15231 = vst [vmem:[#allocation52_spill] sm:$0xff] %v10604_v39  ;;  %15232 = vst [vmem:[#allocation47_spill] sm:$0xff] %v10612_v52  ;;  %v10622_v35 = vpack.c.bf16 %v10612_v52, %v10604_v39  ;;  %v1206_v23 = vadd.f32 %v1198_v29, %v1158_v8  ;;  %v1207_v62 = vadd.f32 %v1199_v50, %v1159_v15 }
 0x1d3   :  { %v10626_v33 = vadd.f32 %v970_v51, %v916_v26  ;;  %v10628_v55 = vadd.f32 %v971_v24, %v917_v31  ;;  %v1350_v54 = vmul.f32 %v10083_v9, %v15225_v37  ;;  %v1351_v7 = vmul.f32 %v10088_v45, %v15225_v37  ;;  %v15235_v26 = vld [vmem:[#allocation61_spill] sm:$0xff] }
 0x1d4   :  { %15234 = vst [vmem:[#allocation53_spill] sm:$0xff] %v10622_v35  ;;  %7233 = vmatprep.subr.bf16.mxu1 %v10622_v35  ;;  %v1262_v59 = vadd.f32 %v1254_v1, %v1206_v23  ;;  %v1263_v61 = vadd.f32 %v1255_v20, %v1207_v62  ;;  %v1478_v29 = vmul.f32 %v15217_v47, %v15213_v11 }
 0x1d5   :  { %v1479_v50 = vmul.f32 %v10018_v49, %v15213_v11  ;;  %v1502_v51 = vmul.f32 %v15214_v4, %v15229_v53  ;;  %v1503_v24 = vmul.f32 %v15214_v4, %v10102_v58  ;;  %v1558_v31 = vmul.f32 %v15235_v26, %v15216_v6  ;;  %7235 = vmatpush3.bf16.msra.mxu1 %v10622_v35 }
 0x1d6   :  { %v1559_v8 = vmul.f32 %v10186_v16, %v15216_v6  ;;  %v1310_v15 = vadd.f32 %v1302_v46, %v1262_v59  ;;  %v1311_v1 = vadd.f32 %v1303_v0, %v1263_v61  ;;  %v1406_v47 = vmul.f32 %v10157_v57, %v15226_v12 }
 0x1d7   :  { %v1407_v49 = vmul.f32 %v10162_v10, %v15226_v12  ;;  %v1510_v53 = vadd.f32 %v1502_v51, %v1478_v29  ;;  %v1511_v20 = vadd.f32 %v1503_v24, %v1479_v50  ;;  %v1606_v23 = vmul.f32 %v10041_v21, %v15218_v3 }
 0x1d8   :  { %v1607_v62 = vmul.f32 %v10046_v36, %v15218_v3  ;;  %v1358_v26 = vadd.f32 %v1350_v54, %v1310_v15  ;;  %v1359_v42 = vadd.f32 %v1351_v7, %v1311_v1  ;;  %v1654_v46 = vmul.f32 %v15233_v13, %v15220_v2 }
 0x1d9   :  { %v1655_v0 = vmul.f32 %v10140_v63, %v15220_v2  ;;  %v1566_v59 = vadd.f32 %v1558_v31, %v1510_v53  ;;  %v1567_v61 = vadd.f32 %v1559_v8, %v1511_v20  ;;  %v1710_v29 = vmul.f32 %v15236_v27, %v15221_v32 }
 0x1da   :  { %v1711_v50 = vmul.f32 %v10214_v22, %v15221_v32  ;;  %v10664_v51 = vadd.f32 %v1406_v47, %v1358_v26  ;;  %v10666_v24 = vadd.f32 %v1407_v49, %v1359_v42  ;;  %v1758_v54 = vmul.f32 %v10083_v9, %v15222_v17 }
 0x1db   :  { %v1759_v7 = vmul.f32 %v10088_v45, %v15222_v17  ;;  %v1614_v15 = vadd.f32 %v1606_v23, %v1566_v59  ;;  %v1615_v1 = vadd.f32 %v1607_v62, %v1567_v61  ;;  %v1806_v31 = vmul.f32 %v10157_v57, %v15225_v37 }
 0x1dc   :  { %v1807_v8 = vmul.f32 %v10162_v10, %v15225_v37  ;;  %v1862_v47 = vmul.f32 %v10235_v34, %v15226_v12  ;;  %v1863_v42 = vmul.f32 %v10240_v28, %v15226_v12  ;;  %v1934_v49 = vmul.f32 %v15219_v56, %v15213_v11 }
 0x1dd   :  { %v1935_v53 = vmul.f32 %v15209_v41, %v15213_v11  ;;  %v1662_v20 = vadd.f32 %v1654_v46, %v1614_v15  ;;  %v1663_v23 = vadd.f32 %v1655_v0, %v1615_v1  ;;  %v1958_v62 = vmul.f32 %v10027_v18, %v15214_v4 }
 0x1de   :  { %v1959_v26 = vmul.f32 %v10032_v19, %v15214_v4  ;;  %v2006_v59 = vmul.f32 %v10041_v21, %v15216_v6  ;;  %v2007_v61 = vmul.f32 %v10046_v36, %v15216_v6  ;;  %v2054_v56 = vmul.f32 %v15223_v48, %v15218_v3 }
 0x1df   :  { %v2055_v41 = vmul.f32 %v15224_v43, %v15218_v3  ;;  %v1718_v46 = vadd.f32 %v1710_v29, %v1662_v20  ;;  %v1719_v0 = vadd.f32 %v1711_v50, %v1663_v23  ;;  %v1966_v15 = vadd.f32 %v1958_v62, %v1934_v49  ;;  %v10720_v20 = vld [vmem:[%s14697_s0 + $0xe0] sm:$0xff] }
 0x1e0   :  { %v1967_v1 = vadd.f32 %v1959_v26, %v1935_v53  ;;  %v1454_v35 = vmax.f32 %v10626_v33, %v10664_v51  ;;  %v1455_v14 = vmax.f32 %v10628_v55, %v10666_v24  ;;  %v2102_v52 = vmul.f32 %v10069_v60, %v15220_v2  ;;  %v10711_v33 = vld [vmem:[%s14697_s0 + $0x50] sm:$0xff]  ;;  %v15237_v51 = vld [vmem:[#allocation63_spill] sm:$0xff] }
 0x1e1   :  { %v2103_v44 = vmul.f32 %v10074_v25, %v15220_v2  ;;  %v1766_v48 = vadd.f32 %v1758_v54, %v1718_v46  ;;  %v1767_v39 = vadd.f32 %v1759_v7, %v1719_v0  ;;  %v2014_v38 = vadd.f32 %v2006_v59, %v1966_v15 }
 0x1e2   :  { %v2015_v43 = vadd.f32 %v2007_v61, %v1967_v1  ;;  %v2150_v29 = vmul.f32 %v10083_v9, %v15221_v32  ;;  %v2151_v50 = vmul.f32 %v10088_v45, %v15221_v32  ;;  %v2206_v55 = vmul.f32 %v10711_v33, %v15222_v17 }
 0x1e3   :  { %v2207_v24 = vmul.f32 %v15237_v51, %v15222_v17  ;;  %v1814_v54 = vadd.f32 %v1806_v31, %v1766_v48  ;;  %v1815_v7 = vadd.f32 %v1807_v8, %v1767_v39  ;;  %v2062_v49 = vadd.f32 %v2054_v56, %v2014_v38 }
 0x1e4   :  { %v2063_v53 = vadd.f32 %v2055_v41, %v2015_v43  ;;  %v2262_v23 = vmul.f32 %v10720_v20, %v15225_v37  ;;  %v2263_v62 = vmul.f32 %v10282_v5, %v15225_v37  ;;  %v2390_v26 = vmul.f32 %v10027_v18, %v15213_v11 }
 0x1e5   :  { %v2391_v31 = vmul.f32 %v10032_v19, %v15213_v11  ;;  %v1870_v39 = vadd.f32 %v1862_v47, %v1814_v54  ;;  %v1871_v38 = vadd.f32 %v1863_v42, %v1815_v7  ;;  %v2110_v8 = vadd.f32 %v2102_v52, %v2062_v49  ;;  %v10741_v19 = vld [vmem:[%s14697_s0 + $0x170] sm:$0xff] }
 0x1e6   :  { %v2111_v59 = vadd.f32 %v2103_v44, %v2063_v53  ;;  %v2414_v61 = vmul.f32 %v10041_v21, %v15214_v4  ;;  %v2415_v56 = vmul.f32 %v10046_v36, %v15214_v4  ;;  %v2462_v41 = vmul.f32 %v15233_v13, %v15216_v6 }
 0x1e7   :  { %v2463_v46 = vmul.f32 %v10140_v63, %v15216_v6  ;;  %v2158_v18 = vadd.f32 %v2150_v29, %v2110_v8  ;;  %v2318_v44 = vmul.f32 %v10741_v19, %v15226_v12  ;;  %v2319_v21 = vmul.f32 %v10295_v30, %v15226_v12  ;;  %v10782_v8 = vld [vmem:[%s14697_s0 + $0x320] sm:$0xff] }
 0x1e8   :  { %v2159_v0 = vadd.f32 %v2151_v50, %v2111_v59  ;;  %v2422_v36 = vadd.f32 %v2414_v61, %v2390_v26  ;;  %v2423_v52 = vadd.f32 %v2415_v56, %v2391_v31  ;;  %v2510_v47 = vmul.f32 %v10069_v60, %v15218_v3 }
 0x1e9   :  { %v2511_v42 = vmul.f32 %v10074_v25, %v15218_v3  ;;  %v10751_v15 = vmax.f32 %v1454_v35, %v1870_v39  ;;  %v10753_v1 = vmax.f32 %v1455_v14, %v1871_v38  ;;  %v2214_v48 = vadd.f32 %v2206_v55, %v2158_v18  ;;  %v7607_v39 = vld [vmem:[%s14697_s0 + $0x310] sm:$0xff] }
 0x1ea   :  { %v2215_v43 = vadd.f32 %v2207_v24, %v2159_v0  ;;  %v2470_v29 = vadd.f32 %v2462_v41, %v2422_v36  ;;  %v2471_v50 = vadd.f32 %v2463_v46, %v2423_v52  ;;  %v2558_v54 = vmul.f32 %v10083_v9, %v15220_v2 }
 0x1eb   :  { %v2559_v7 = vmul.f32 %v10088_v45, %v15220_v2  ;;  %v2270_v49 = vadd.f32 %v2262_v23, %v2214_v48  ;;  %v2606_v60 = vmul.f32 %v10157_v57, %v15221_v32  ;;  %v2607_v25 = vmul.f32 %v10162_v10, %v15221_v32 }
 0x1ec   :  { %v2271_v53 = vadd.f32 %v2263_v62, %v2215_v43  ;;  %v2518_v14 = vadd.f32 %v2510_v47, %v2470_v29  ;;  %v2519_v35 = vadd.f32 %v2511_v42, %v2471_v50  ;;  %v2654_v55 = vmul.f32 %v10720_v20, %v15222_v17 }
 0x1ed   :  { %v2655_v24 = vmul.f32 %v10282_v5, %v15222_v17  ;;  %v10767_v9 = vadd.f32 %v2318_v44, %v2270_v49  ;;  %v2702_v45 = vmul.f32 %v10741_v19, %v15225_v37  ;;  %v2703_v23 = vmul.f32 %v10295_v30, %v15225_v37 }
 0x1ee   :  { %v10769_v26 = vadd.f32 %v2319_v21, %v2271_v53  ;;  %v2566_v62 = vadd.f32 %v2558_v54, %v2518_v14  ;;  %v2567_v31 = vadd.f32 %v2559_v7, %v2519_v35  ;;  %v2830_v38 = vmul.f32 %v7607_v39, %v15213_v11 }
 0x1ef   :  { %v2831_v59 = vmul.f32 %v10782_v8, %v15213_v11  ;;  %v2758_v61 = vmul.f32 %v15226_v12, %v10102_v58  ;;  %v2759_v56 = vmul.f32 %v10336_v40, %v15226_v12  ;;  %v2854_v41 = vmul.f32 %v15233_v13, %v15214_v4  ;;  %v10801_v58 = vld [vmem:[%s14697_s0 + $0x4c0] sm:$0xff] }
 0x1f0   :  { %v2855_v46 = vmul.f32 %v10140_v63, %v15214_v4  ;;  %v2614_v18 = vadd.f32 %v2606_v60, %v2566_v62  ;;  %v2615_v0 = vadd.f32 %v2607_v25, %v2567_v31  ;;  %v2902_v44 = vmul.f32 %v15236_v27, %v15216_v6  ;;  %v10808_v63 = vld [vmem:[%s14697_s0 + $0x4d0] sm:$0xff] }
 0x1f1   :  { %v2903_v21 = vmul.f32 %v10214_v22, %v15216_v6  ;;  %v2862_v36 = vadd.f32 %v2854_v41, %v2830_v38  ;;  %v2950_v13 = vmul.f32 %v10801_v58, %v15218_v3  ;;  %v2951_v27 = vmul.f32 %v10808_v63, %v15218_v3  ;;  %v15238_v31 = vld [vmem:[#allocation64_spill] sm:$0xff] }
 0x1f2   :  { %v2863_v52 = vadd.f32 %v2855_v46, %v2831_v59  ;;  %v2366_v22 = vmax.f32 %v10751_v15, %v10767_v9  ;;  %v2367_v47 = vmax.f32 %v10753_v1, %v10769_v26  ;;  %v2662_v42 = vadd.f32 %v2654_v55, %v2614_v18  ;;  %v7612_v9 = vld [vmem:[%s14697_s0 + $0x3a0] sm:$0xff]  ;;  %v7614_v38 = vld [vmem:[%s14697_s0 + $0x430] sm:$0xff] }
 0x1f3   :  { %v2663_v48 = vadd.f32 %v2655_v24, %v2615_v0  ;;  %v2910_v43 = vadd.f32 %v2902_v44, %v2862_v36  ;;  %v2998_v50 = vmul.f32 %v10157_v57, %v15220_v2  ;;  %v2999_v54 = vmul.f32 %v10162_v10, %v15220_v2  ;;  %v10831_v10 = vld [vmem:[%s14697_s0 + $0x51] sm:$0xff] }
 0x1f4   :  { %v2911_v29 = vadd.f32 %v2903_v21, %v2863_v52  ;;  %v2710_v7 = vadd.f32 %v2702_v45, %v2662_v42  ;;  %v3046_v53 = vmul.f32 %v10235_v34, %v15221_v32  ;;  %v3047_v15 = vmul.f32 %v10240_v28, %v15221_v32  ;;  %v7613_v45 = vld [vmem:[%s14697_s0 + $0x3b0] sm:$0xff] }
 0x1f5   :  { %v2711_v49 = vadd.f32 %v2703_v23, %v2663_v48  ;;  %v2958_v60 = vadd.f32 %v2950_v13, %v2910_v43  ;;  %v3094_v25 = vmul.f32 %v10741_v19, %v15222_v17  ;;  %v3095_v14 = vmul.f32 %v10295_v30, %v15222_v17 }
 0x1f6   :  { %v2959_v1 = vadd.f32 %v2951_v27, %v2911_v29  ;;  %v2766_v57 = vadd.f32 %v2758_v61, %v2710_v7  ;;  %v3142_v34 = vmul.f32 %v10831_v10, %v15225_v37  ;;  %v3143_v28 = vmul.f32 %v10336_v40, %v15225_v37  ;;  %v7615_v61 = vld [vmem:[%s14697_s0 + $0x440] sm:$0xff] }
 0x1f7   :  { %v2767_v35 = vadd.f32 %v2759_v56, %v2711_v49  ;;  %v3006_v55 = vadd.f32 %v2998_v50, %v2958_v60  ;;  %v3270_v26 = vmul.f32 %v7612_v9, %v15213_v11  ;;  %v3271_v23 = vmul.f32 %v7613_v45, %v15213_v11  ;;  %v7616_v49 = vld [vmem:[%s14697_s0 + $0x200] sm:$0xff]  ;;  %v15241_v45 = vld [vmem:[#allocation67_spill] sm:$0xff] }
 0x1f8   :  { %v3007_v24 = vadd.f32 %v2999_v54, %v2959_v1  ;;  %v3198_v62 = vmul.f32 %v10186_v16, %v15226_v12  ;;  %v3199_v39 = vmul.f32 %v15238_v31, %v15226_v12  ;;  %v3294_v59 = vmul.f32 %v7614_v38, %v15214_v4 }
 0x1f9   :  { %v3295_v56 = vmul.f32 %v7615_v61, %v15214_v4  ;;  %v3054_v41 = vadd.f32 %v3046_v53, %v3006_v55  ;;  %v3342_v16 = vmul.f32 %v10801_v58, %v15216_v6  ;;  %v3343_v18 = vmul.f32 %v10808_v63, %v15216_v6 }
 0x1fa   :  { %v3055_v46 = vadd.f32 %v3047_v15, %v3007_v24  ;;  %v3302_v0 = vadd.f32 %v3294_v59, %v3270_v26  ;;  %v3390_v21 = vmul.f32 %v10711_v33, %v15218_v3  ;;  %v3391_v36 = vmul.f32 %v15237_v51, %v15218_v3  ;;  %v15239_v15 = vld [vmem:[#allocation65_spill] sm:$0xff] }
 0x1fb   :  { %v3303_v44 = vadd.f32 %v3295_v56, %v3271_v23  ;;  %v10865_v52 = vmax.f32 %v2366_v22, %v2766_v57  ;;  %v10867_v13 = vmax.f32 %v2367_v47, %v2767_v35  ;;  %v3102_v27 = vadd.f32 %v3094_v25, %v3054_v41  ;;  %v15240_v35 = vld [vmem:[#allocation66_spill] sm:$0xff]  ;;  %v7619_v41 = vld [vmem:[%s14697_s0 + $0x3b1] sm:$0xff] }
 0x1fc   :  { %v3103_v42 = vadd.f32 %v3095_v14, %v3055_v46  ;;  %v3350_v48 = vadd.f32 %v3342_v16, %v3302_v0  ;;  %v3438_v29 = vmul.f32 %v10720_v20, %v15220_v2  ;;  %v3439_v50 = vmul.f32 %v10282_v5, %v15220_v2  ;;  %v7617_v14 = vld [vmem:[%s14697_s0 + $0x290] sm:$0xff] }
 0x1fd   :  { %v3351_v43 = vadd.f32 %v3343_v18, %v3303_v44  ;;  %v3150_v54 = vadd.f32 %v3142_v34, %v3102_v27  ;;  %v3486_v33 = vmul.f32 %v10741_v19, %v15221_v32  ;;  %v3487_v51 = vmul.f32 %v10295_v30, %v15221_v32 }
 0x1fe   :  { %v3151_v7 = vadd.f32 %v3143_v28, %v3103_v42  ;;  %v3398_v22 = vadd.f32 %v3390_v21, %v3350_v48  ;;  %v3542_v53 = vmul.f32 %v7616_v49, %v15222_v17  ;;  %v3543_v60 = vmul.f32 %v15239_v15, %v15222_v17 }
 0x1ff   :  { %v3399_v47 = vadd.f32 %v3391_v36, %v3351_v43  ;;  %v10883_v1 = vadd.f32 %v3198_v62, %v3150_v54  ;;  %v3598_v57 = vmul.f32 %v7617_v14, %v15225_v37  ;;  %v3599_v34 = vmul.f32 %v15240_v35, %v15225_v37 }
 0x200   :  { %v10885_v25 = vadd.f32 %v3199_v39, %v3151_v7  ;;  %v3446_v28 = vadd.f32 %v3438_v29, %v3398_v22  ;;  %v3726_v24 = vmul.f32 %v7614_v38, %v15213_v11  ;;  %v3727_v9 = vmul.f32 %v7615_v61, %v15213_v11  ;;  %v7618_v38 = vld [vmem:[%s14697_s0 + $0x3a1] sm:$0xff] }
 0x201   :  { %v3447_v55 = vadd.f32 %v3439_v50, %v3399_v47  ;;  %v3654_v26 = vmul.f32 %v10782_v8, %v15226_v12  ;;  %v3655_v23 = vmul.f32 %v15241_v45, %v15226_v12  ;;  %v3750_v62 = vmul.f32 %v10801_v58, %v15214_v4 }
 0x202   :  { %v3751_v39 = vmul.f32 %v10808_v63, %v15214_v4  ;;  %v3494_v59 = vadd.f32 %v3486_v33, %v3446_v28  ;;  %v3798_v61 = vmul.f32 %v7618_v38, %v15216_v6  ;;  %v3799_v46 = vmul.f32 %v7619_v41, %v15216_v6 }
 0x203   :  { %v3495_v56 = vadd.f32 %v3487_v51, %v3447_v55  ;;  %v3758_v16 = vadd.f32 %v3750_v62, %v3726_v24  ;;  %v3846_v0 = vmul.f32 %v10720_v20, %v15218_v3  ;;  %v3847_v44 = vmul.f32 %v10282_v5, %v15218_v3 }
 0x204   :  { %v3759_v18 = vadd.f32 %v3751_v39, %v3727_v9  ;;  %v3246_v21 = vmax.f32 %v10865_v52, %v10883_v1  ;;  %v3247_v36 = vmax.f32 %v10867_v13, %v10885_v25  ;;  %v3550_v27 = vadd.f32 %v3542_v53, %v3494_v59 }
 0x205   :  { %v3551_v42 = vadd.f32 %v3543_v60, %v3495_v56  ;;  %v3806_v48 = vadd.f32 %v3798_v61, %v3758_v16  ;;  %v3894_v29 = vmul.f32 %v10741_v19, %v15220_v2  ;;  %v3895_v50 = vmul.f32 %v10295_v30, %v15220_v2 }
 0x206   :  { %v3807_v43 = vadd.f32 %v3799_v46, %v3759_v18  ;;  %v3606_v20 = vadd.f32 %v3598_v57, %v3550_v27  ;;  %v3942_v5 = vmul.f32 %v10831_v10, %v15221_v32  ;;  %v3943_v52 = vmul.f32 %v10336_v40, %v15221_v32 }
 0x207   :  { %v3607_v54 = vadd.f32 %v3599_v34, %v3551_v42  ;;  %v3854_v7 = vadd.f32 %v3846_v0, %v3806_v48  ;;  %v3990_v33 = vmul.f32 %v7617_v14, %v15222_v17  ;;  %v3991_v51 = vmul.f32 %v15240_v35, %v15222_v17  ;;  %v7620_v14 = vld [vmem:[%s14697_s0 + $0x201] sm:$0xff] }
 0x208   :  { %v3855_v13 = vadd.f32 %v3847_v44, %v3807_v43  ;;  %v3662_v22 = vadd.f32 %v3654_v26, %v3606_v20  ;;  %v4038_v49 = vmul.f32 %v10782_v8, %v15225_v37  ;;  %v4039_v53 = vmul.f32 %v15241_v45, %v15225_v37  ;;  %v15242_v35 = vld [vmem:[#allocation51_spill] sm:$0xff] }
 0x209   :  { %v3663_v47 = vadd.f32 %v3655_v23, %v3607_v54  ;;  %v3902_v15 = vadd.f32 %v3894_v29, %v3854_v7  ;;  %v4166_v1 = vmul.f32 %v10801_v58, %v15213_v11  ;;  %v4167_v25 = vmul.f32 %v10808_v63, %v15213_v11  ;;  %v7621_v58 = vld [vmem:[%s14697_s0 + $0x431] sm:$0xff]  ;;  %v7622_v26 = vld [vmem:[%s14697_s0 + $0x441] sm:$0xff] }
 0x20a   :  { %v3903_v60 = vadd.f32 %v3895_v50, %v3855_v13  ;;  %v4094_v57 = vmul.f32 %v7620_v14, %v15226_v12  ;;  %v4095_v34 = vmul.f32 %v15242_v35, %v15226_v12  ;;  %v4190_v28 = vmul.f32 %v7618_v38, %v15214_v4  ;;  %v10994_v50 = vld [vmem:[%s14697_s0 + $0x100] sm:$0xff] }
 0x20b   :  { %v4191_v55 = vmul.f32 %v7619_v41, %v15214_v4  ;;  %v3950_v24 = vadd.f32 %v3942_v5, %v3902_v15  ;;  %v4238_v63 = vmul.f32 %v7621_v58, %v15216_v6  ;;  %v4239_v23 = vmul.f32 %v7622_v26, %v15216_v6  ;;  %v11007_v13 = vld [vmem:[%s14697_s0 + $0x220] sm:$0xff] }
 0x20c   :  { %v3951_v9 = vadd.f32 %v3943_v52, %v3903_v60  ;;  %v4198_v62 = vadd.f32 %v4190_v28, %v4166_v1  ;;  %v4286_v59 = vmul.f32 %v10741_v19, %v15218_v3  ;;  %v4287_v56 = vmul.f32 %v10295_v30, %v15218_v3  ;;  %v7623_v30 = vld [vmem:[%s14697_s0 + $0xe1] sm:$0xff]  ;;  %v11027_v1 = vld [vmem:[%s14697_s0 + $0x190] sm:$0xff] }
 0x20d   :  { %v4199_v39 = vadd.f32 %v4191_v55, %v4167_v25  ;;  %v10958_v38 = vmax.f32 %v3246_v21, %v3662_v22  ;;  %v10960_v61 = vmax.f32 %v3247_v36, %v3663_v47  ;;  %v3998_v41 = vadd.f32 %v3990_v33, %v3950_v24  ;;  %v10975_v36 = vld [vmem:[%s14697_s0 + $0x60] sm:$0xff]  ;;  %v15246_v33 = vld [vmem:[#allocation15_spill] sm:$0xff]  ;;  %v7624_v47 = vld [vmem:[%s14697_s0 + $0x291] sm:$0xff] }
 0x20e   :  { %v3999_v46 = vadd.f32 %v3991_v51, %v3951_v9  ;;  %v4246_v16 = vadd.f32 %v4238_v63, %v4198_v62  ;;  %v4334_v0 = vmul.f32 %v10831_v10, %v15220_v2  ;;  %v4335_v44 = vmul.f32 %v10336_v40, %v15220_v2  ;;  %15243 = vst [vmem:[#allocation54_spill] sm:$0xff] %v10975_v36  ;;  %v10980_v40 = vld [vmem:[%s14697_s0 + $0x70] sm:$0xff]  ;;  %v11022_v60 = vld [vmem:[%s14697_s0 + $0x180] sm:$0xff]  ;;  %v15251_v63 = vld [vmem:[#allocation21_spill] sm:$0xff] }
 0x20f   :  { %v4247_v18 = vadd.f32 %v4239_v23, %v4199_v39  ;;  %v4046_v27 = vadd.f32 %v4038_v49, %v3998_v41  ;;  %v4382_v19 = vmul.f32 %v7623_v30, %v15221_v32  ;;  %v4383_v21 = vmul.f32 %v15238_v31, %v15221_v32  ;;  %v10989_v31 = vld [vmem:[%s14697_s0 + $0xf0] sm:$0xff]  ;;  %15248 = vst [vmem:[#allocation61_spill] sm:$0xff] %v11022_v60  ;;  %v15249_v25 = vld [vmem:[#allocation18_spill] sm:$0xff] }
 0x210   :  { %v4047_v42 = vadd.f32 %v4039_v53, %v3999_v46  ;;  %v4294_v10 = vadd.f32 %v4286_v59, %v4246_v16  ;;  %v4430_v43 = vmul.f32 %v10782_v8, %v15222_v17  ;;  %v4431_v29 = vmul.f32 %v15241_v45, %v15222_v17  ;;  %15244 = vst [vmem:[#allocation55_spill] sm:$0xff] %v10989_v31  ;;  %v11002_v45 = vld [vmem:[%s14697_s0 + $0x210] sm:$0xff]  ;;  %v11046_v41 = vld [vmem:[%s14697_s0 + $0x2a0] sm:$0xff] }
 0x211   :  { %v4295_v48 = vadd.f32 %v4287_v56, %v4247_v18  ;;  %v4102_v20 = vadd.f32 %v4094_v57, %v4046_v27  ;;  %v4478_v5 = vmul.f32 %v7620_v14, %v15225_v37  ;;  %v4479_v8 = vmul.f32 %v15242_v35, %v15225_v37  ;;  %15245 = vst [vmem:[#allocation57_spill] sm:$0xff] %v11002_v45  ;;  %v15247_v53 = vld [vmem:[#allocation68_spill] sm:$0xff] }
 0x212   :  { %v4103_v54 = vadd.f32 %v4095_v34, %v4047_v42  ;;  %v4342_v52 = vadd.f32 %v4334_v0, %v4294_v10  ;;  %v510_v51 = vmul.f32 %v15246_v33, %v10975_v36  ;;  %v511_v22 = vmul.f32 %v15246_v33, %v10980_v40  ;;  %v15250_v28 = vld [vmem:[#allocation20_spill] sm:$0xff]  ;;  %15252 = vst [vmem:[#allocation62_spill] sm:$0xff] %v11046_v41  ;;  %v15254_v0 = vld [vmem:[#allocation22_spill] sm:$0xff] }
 0x213   :  { %v4343_v7 = vadd.f32 %v4335_v44, %v4295_v48  ;;  %v4534_v49 = vmul.f32 %v7624_v47, %v15226_v12  ;;  %v4535_v15 = vmul.f32 %v15247_v53, %v15226_v12  ;;  %v556_v14 = vmul.f32 %v10989_v31, %v15249_v25  ;;  %v11051_v46 = vld [vmem:[%s14697_s0 + $0x2b0] sm:$0xff]  ;;  %v11098_v47 = vld [vmem:[%s14697_s0 + $0x61] sm:$0xff] }
 0x214   :  { %v557_v57 = vmul.f32 %v10994_v50, %v15249_v25  ;;  %v4390_v35 = vadd.f32 %v4382_v19, %v4342_v52  ;;  %v618_v55 = vmul.f32 %v11022_v60, %v15250_v28  ;;  %v619_v24 = vmul.f32 %v11027_v1, %v15250_v28  ;;  %15253 = vst [vmem:[#allocation63_spill] sm:$0xff] %v11051_v46  ;;  %v11056_v16 = vld [vmem:[%s14697_s0 + $0x330] sm:$0xff]  ;;  %v11070_v19 = vld [vmem:[%s14697_s0 + $0x3c0] sm:$0xff] }
 0x215   :  { %v4391_v34 = vadd.f32 %v4383_v21, %v4343_v7  ;;  %v564_v9 = vadd.f32 %v556_v14, %v510_v51  ;;  %v680_v26 = vmul.f32 %v11002_v45, %v15251_v63  ;;  %v681_v23 = vmul.f32 %v11007_v13, %v15251_v63  ;;  %v11075_v21 = vld [vmem:[%s14697_s0 + $0x3d0] sm:$0xff]  ;;  %15259 = vst [vmem:[#allocation66_spill] sm:$0xff] %v11098_v47  ;;  %v15260_v14 = vld [vmem:[#allocation26_spill] sm:$0xff] }
 0x216   :  { %v565_v58 = vadd.f32 %v557_v57, %v511_v22  ;;  %v4142_v62 = vmax.f32 %v10958_v38, %v4102_v20  ;;  %v4143_v39 = vmax.f32 %v10960_v61, %v4103_v54  ;;  %v4438_v59 = vadd.f32 %v4430_v43, %v4390_v35  ;;  %v11061_v38 = vld [vmem:[%s14697_s0 + $0x340] sm:$0xff]  ;;  %v15255_v10 = vld [vmem:[#allocation24_spill] sm:$0xff] }
 0x217   :  { %v4439_v56 = vadd.f32 %v4431_v29, %v4391_v34  ;;  %v626_v61 = vadd.f32 %v618_v55, %v564_v9  ;;  %v742_v44 = vmul.f32 %v11046_v41, %v15254_v0  ;;  %v743_v27 = vmul.f32 %v11051_v46, %v15254_v0  ;;  %v11084_v29 = vld [vmem:[%s14697_s0 + $0x450] sm:$0xff]  ;;  %v11089_v20 = vld [vmem:[%s14697_s0 + $0x460] sm:$0xff] }
 0x218   :  { %v627_v18 = vadd.f32 %v619_v24, %v565_v58  ;;  %v4486_v42 = vadd.f32 %v4478_v5, %v4438_v59  ;;  %v804_v48 = vmul.f32 %v11056_v16, %v15255_v10  ;;  %v805_v43 = vmul.f32 %v11061_v38, %v15255_v10  ;;  %15256 = vst [vmem:[#allocation64_spill] sm:$0xff] %v11084_v29  ;;  %v11103_v53 = vld [vmem:[%s14697_s0 + $0x71] sm:$0xff] }
 0x219   :  { %v4487_v30 = vadd.f32 %v4479_v8, %v4439_v56  ;;  %15257 = vst [vmem:[#allocation65_spill] sm:$0xff] %v11089_v20  ;;  %v688_v54 = vadd.f32 %v680_v26, %v626_v61  ;;  %v15258_v8 = vld [vmem:[#allocation25_spill] sm:$0xff]  ;;  %v928_v57 = vmul.f32 %v11084_v29, %v15260_v14  ;;  %v929_v35 = vmul.f32 %v11089_v20, %v15260_v14 }
 0x21a   :  { %v689_v5 = vadd.f32 %v681_v23, %v627_v18  ;;  %v866_v52 = vmul.f32 %v11070_v19, %v15258_v8  ;;  %v867_v7 = vmul.f32 %v11075_v21, %v15258_v8  ;;  %v4542_v51 = vadd.f32 %v4534_v49, %v4486_v42  ;;  %v15261_v18 = vld [vmem:[#allocation32_spill] sm:$0xff] }
 0x21b   :  { %v4543_v22 = vadd.f32 %v4535_v15, %v4487_v30  ;;  %v750_v34 = vadd.f32 %v742_v44, %v688_v54  ;;  %v1032_v49 = vmul.f32 %v10989_v31, %v15246_v33  ;;  %v1033_v15 = vmul.f32 %v10994_v50, %v15246_v33  ;;  %v11233_v12 = vld [vmem:[%s14697_s0 + $0x2b1] sm:$0xff] }
 0x21c   :  { %v751_v55 = vadd.f32 %v743_v27, %v689_v5  ;;  %v4582_v24 = vmax.f32 %v4142_v62, %v4542_v51  ;;  %v1064_v58 = vmul.f32 %v11022_v60, %v15249_v25  ;;  %v1065_v26 = vmul.f32 %v11027_v1, %v15249_v25  ;;  %v11136_v51 = vld [vmem:[%s14697_s0 + $0x211] sm:$0xff] }
 0x21d   :  { %v4583_v9 = vmax.f32 %v4143_v39, %v4543_v22  ;;  %v812_v23 = vadd.f32 %v804_v48, %v750_v34  ;;  %v1120_v56 = vmul.f32 %v15250_v28, %v11098_v47  ;;  %v1121_v61 = vmul.f32 %v15250_v28, %v11103_v53  ;;  %15264 = vst [vmem:[#allocation15_spill] sm:$0xff] %v11136_v51  ;;  %v11246_v32 = vld [vmem:[%s14697_s0 + $0x451] sm:$0xff] }
 0x21e   :  { %v813_v59 = vadd.f32 %v805_v43, %v751_v55  ;;  %v11122_v44 = vadd.f32 %v15261_v18, %v4582_v24  ;;  %v1072_v39 = vadd.f32 %v1064_v58, %v1032_v49  ;;  %v1073_v27 = vadd.f32 %v1065_v26, %v1033_v15  ;;  %v15265_v49 = vld [vmem:[#allocation29_spill] sm:$0xff] }
 0x21f   :  { %v11125_v62 = vadd.f32 %v15261_v18, %v4583_v9  ;;  %v874_v42 = vadd.f32 %v866_v52, %v812_v23  ;;  %v1168_v48 = vmul.f32 %v11046_v41, %v15251_v63  ;;  %v1169_v43 = vmul.f32 %v11051_v46, %v15251_v63  ;;  %v11141_v52 = vld [vmem:[%s14697_s0 + $0x221] sm:$0xff] }
 0x220   :  { %15262 = vst [vmem:[#allocation67_spill] sm:$0xff] %v11122_v44  ;;  %v875_v30 = vadd.f32 %v867_v7, %v813_v59  ;;  %v14904_v54 = vmax.f32 %v11122_v44, 0.0  ;;  %v11146_v7 = vld [vmem:[%s14697_s0 + $0x4e0] sm:$0xff]  ;;  %v1128_v22 = vadd.f32 %v1120_v56, %v1072_v39  ;;  %v1129_v34 = vadd.f32 %v1121_v61, %v1073_v27 }
 0x221   :  { %15263 = vst [vmem:[#allocation51_spill] sm:$0xff] %v11125_v62  ;;  %v14903_v5 = vmax.f32 %v11125_v62, 0.0  ;;  %v936_v55 = vadd.f32 %v928_v57, %v874_v42  ;;  %v990_v15 = vmul.f32 %v11146_v7, %v15265_v49  ;;  %v1216_v24 = vmul.f32 %v11056_v16, %v15254_v0  ;;  %v11165_v57 = vld [vmem:[%s14697_s0 + $0x4f0] sm:$0xff]  ;;  %v11170_v56 = vld [vmem:[%s14697_s0 + $0x3c1] sm:$0xff] }
 0x222   :  { %v1217_v9 = vmul.f32 %v11061_v38, %v15254_v0  ;;  %v11156_v58 = vand.u32 4294901760, %v14904_v54  ;;  %v1176_v23 = vadd.f32 %v1168_v48, %v1128_v22  ;;  %v1177_v59 = vadd.f32 %v1169_v43, %v1129_v34  ;;  %v11185_v48 = vld [vmem:[%s14697_s0 + $0xf1] sm:$0xff]  ;;  %v11192_v22 = vld [vmem:[%s14697_s0 + $0x101] sm:$0xff] }
 0x223   :  { %v11160_v26 = vand.u32 4294901760, %v14903_v5  ;;  %v937_v61 = vadd.f32 %v929_v35, %v875_v30  ;;  %v991_v39 = vmul.f32 %v11165_v57, %v15265_v49  ;;  %v1272_v27 = vmul.f32 %v11136_v51, %v15255_v10  ;;  %15269 = vst [vmem:[#allocation21_spill] sm:$0xff] %v11185_v48  ;;  %v11197_v34 = vld [vmem:[%s14697_s0 + $0x3d1] sm:$0xff] }
 0x224   :  { %15266 = vst [vmem:[#allocation68_spill] sm:$0xff] %v11156_v58  ;;  %v1273_v42 = vmul.f32 %v11141_v52, %v15255_v10  ;;  %v1224_v43 = vadd.f32 %v1216_v24, %v1176_v23  ;;  %v1225_v35 = vadd.f32 %v1217_v9, %v1177_v59  ;;  %v1320_v30 = vmul.f32 %v11084_v29, %v15258_v8 }
 0x225   :  { %15267 = vst [vmem:[#allocation18_spill] sm:$0xff] %v11160_v26  ;;  %v11180_v5 = vpack.c.bf16 %v11160_v26, %v11156_v58  ;;  %v11199_v54 = vadd.f32 %v990_v15, %v936_v55  ;;  %v1321_v62 = vmul.f32 %v11089_v20, %v15258_v8  ;;  %v1368_v24 = vmul.f32 %v11146_v7, %v15260_v14 }
 0x226   :  { %v1369_v9 = vmul.f32 %v11165_v57, %v15260_v14  ;;  %v1280_v23 = vadd.f32 %v1272_v27, %v1224_v43  ;;  %v1281_v59 = vadd.f32 %v1273_v42, %v1225_v35  ;;  %v1424_v26 = vmul.f32 %v11170_v56, %v15265_v49  ;;  %v11224_v42 = vld [vmem:[%s14697_s0 + $0x2a1] sm:$0xff] }
 0x227   :  { %15268 = vst [vmem:[#allocation20_spill] sm:$0xff] %v11180_v5  ;;  %7377 = vmatprep.subr.bf16.mxu0 %v11180_v5  ;;  %v1488_v55 = vmul.f32 %v11022_v60, %v15246_v33  ;;  %v1489_v15 = vmul.f32 %v11027_v1, %v15246_v33  ;;  %v1520_v44 = vmul.f32 %v15249_v25, %v11098_v47  ;;  %15270 = vst [vmem:[#allocation22_spill] sm:$0xff] %v11224_v42 }
 0x228   :  { %7379 = vmatpush3.bf16.msra.mxu0 %v11180_v5  ;;  %v1521_v58 = vmul.f32 %v15249_v25, %v11103_v53  ;;  %v1576_v27 = vmul.f32 %v11185_v48, %v15250_v28  ;;  %v1328_v43 = vadd.f32 %v1320_v30, %v1280_v23  ;;  %v1329_v35 = vadd.f32 %v1321_v62, %v1281_v59 }
 0x229   :  { %v1425_v5 = vmul.f32 %v11197_v34, %v15265_v49  ;;  %v1577_v18 = vmul.f32 %v11192_v22, %v15250_v28  ;;  %v1528_v47 = vadd.f32 %v1520_v44, %v1488_v55  ;;  %v1624_v37 = vmul.f32 %v11056_v16, %v15251_v63 }
 0x22a   :  { %v1529_v48 = vadd.f32 %v1521_v58, %v1489_v15  ;;  %v1625_v30 = vmul.f32 %v11061_v38, %v15251_v63  ;;  %v11239_v62 = vadd.f32 %v991_v39, %v937_v61  ;;  %v1376_v23 = vadd.f32 %v1368_v24, %v1328_v43 }
 0x22b   :  { %v1377_v59 = vadd.f32 %v1369_v9, %v1329_v35  ;;  %v1672_v17 = vmul.f32 %v11136_v51, %v15254_v0  ;;  %v1584_v44 = vadd.f32 %v1576_v27, %v1528_v47  ;;  %v1673_v55 = vmul.f32 %v11141_v52, %v15254_v0 }
 0x22c   :  { %v1585_v58 = vadd.f32 %v1577_v18, %v1529_v48  ;;  %v1728_v15 = vmul.f32 %v11224_v42, %v15255_v10  ;;  %v11252_v61 = vadd.f32 %v1424_v26, %v1376_v23  ;;  %v1729_v24 = vmul.f32 %v11233_v12, %v15255_v10 }
 0x22d   :  { %v11254_v39 = vadd.f32 %v1425_v5, %v1377_v59  ;;  %v1776_v9 = vmul.f32 %v11146_v7, %v15258_v8  ;;  %v1632_v43 = vadd.f32 %v1624_v37, %v1584_v44  ;;  %v1777_v47 = vmul.f32 %v11165_v57, %v15258_v8  ;;  %v11275_v37 = vld [vmem:[%s14697_s0 + $0x461] sm:$0xff] }
 0x22e   :  { %v1633_v35 = vadd.f32 %v1625_v30, %v1585_v58  ;;  %v1824_v18 = vmul.f32 %v11170_v56, %v15260_v14  ;;  %v1464_v26 = vmax.f32 %v11199_v54, %v11252_v61  ;;  %v1825_v5 = vmul.f32 %v11197_v34, %v15260_v14 }
 0x22f   :  { %v1880_v48 = vmul.f32 %v11246_v32, %v15265_v49  ;;  %v1944_v27 = vmul.f32 %v11002_v45, %v15246_v33  ;;  %v1680_v30 = vadd.f32 %v1672_v17, %v1632_v43  ;;  %v1945_v59 = vmul.f32 %v11007_v13, %v15246_v33  ;;  %v11294_v45 = vld [vmem:[%s14697_s0 + $0x80] sm:$0xff] }
 0x230   :  { %v1681_v23 = vadd.f32 %v1673_v55, %v1633_v35  ;;  %v1976_v54 = vmul.f32 %v11046_v41, %v15249_v25  ;;  %v1465_v44 = vmax.f32 %v11239_v62, %v11254_v39  ;;  %v1977_v58 = vmul.f32 %v11051_v46, %v15249_v25  ;;  %15271 = vst [vmem:[#allocation24_spill] sm:$0xff] %v11294_v45 }
 0x231   :  { %v2024_v61 = vmul.f32 %v11056_v16, %v15250_v28  ;;  %v2025_v2 = vmul.f32 %v11061_v38, %v15250_v28  ;;  %v1736_v17 = vadd.f32 %v1728_v15, %v1680_v30  ;;  %v2072_v35 = vmul.f32 %v11070_v19, %v15251_v63 }
 0x232   :  { %v1737_v55 = vadd.f32 %v1729_v24, %v1681_v23  ;;  %v1984_v43 = vadd.f32 %v1976_v54, %v1944_v27  ;;  %v1881_v62 = vmul.f32 %v11275_v37, %v15265_v49  ;;  %v1985_v39 = vadd.f32 %v1977_v58, %v1945_v59  ;;  %v11305_v24 = vld [vmem:[%s14697_s0 + $0x110] sm:$0xff] }
 0x233   :  { %v2073_v3 = vmul.f32 %v11075_v21, %v15251_v63  ;;  %v2120_v15 = vmul.f32 %v11084_v29, %v15254_v0  ;;  %v1784_v27 = vadd.f32 %v1776_v9, %v1736_v17  ;;  %v2121_v54 = vmul.f32 %v11089_v20, %v15254_v0 }
 0x234   :  { %v1785_v30 = vadd.f32 %v1777_v47, %v1737_v55  ;;  %v2032_v23 = vadd.f32 %v2024_v61, %v1984_v43  ;;  %v2033_v60 = vadd.f32 %v2025_v2, %v1985_v39  ;;  %v2168_v59 = vmul.f32 %v11146_v7, %v15255_v10  ;;  %v11320_v47 = vld [vmem:[%s14697_s0 + $0x1a0] sm:$0xff] }
 0x235   :  { %v2169_v58 = vmul.f32 %v11165_v57, %v15255_v10  ;;  %v2224_v6 = vmul.f32 %v15258_v8, %v10980_v40  ;;  %v1832_v31 = vadd.f32 %v1824_v18, %v1784_v27  ;;  %v2225_v9 = vmul.f32 %v11294_v45, %v15258_v8 }
 0x236   :  { %v1833_v4 = vadd.f32 %v1825_v5, %v1785_v30  ;;  %v2080_v11 = vadd.f32 %v2072_v35, %v2032_v23  ;;  %v2081_v2 = vadd.f32 %v2073_v3, %v2033_v60  ;;  %v2280_v61 = vmul.f32 %v10994_v50, %v15260_v14 }
 0x237   :  { %v2281_v17 = vmul.f32 %v11305_v24, %v15260_v14  ;;  %v2400_v18 = vmul.f32 %v11046_v41, %v15246_v33  ;;  %v1888_v5 = vadd.f32 %v1880_v48, %v1832_v31  ;;  %v2336_v43 = vmul.f32 %v11027_v1, %v15265_v49 }
 0x238   :  { %v2128_v55 = vadd.f32 %v2120_v15, %v2080_v11  ;;  %v2401_v35 = vmul.f32 %v11051_v46, %v15246_v33  ;;  %v2129_v39 = vadd.f32 %v2121_v54, %v2081_v2  ;;  %v2432_v3 = vmul.f32 %v11056_v16, %v15249_v25 }
 0x239   :  { %v2433_v60 = vmul.f32 %v11061_v38, %v15249_v25  ;;  %v2480_v27 = vmul.f32 %v11136_v51, %v15250_v28  ;;  %v1889_v30 = vadd.f32 %v1881_v62, %v1833_v4  ;;  %v2337_v11 = vmul.f32 %v11320_v47, %v15265_v49 }
 0x23a   :  { %v2176_v23 = vadd.f32 %v2168_v59, %v2128_v55  ;;  %v2481_v31 = vmul.f32 %v11141_v52, %v15250_v28  ;;  %v2177_v48 = vadd.f32 %v2169_v58, %v2129_v39  ;;  %v2440_v15 = vadd.f32 %v2432_v3, %v2400_v18 }
 0x23b   :  { %v2441_v54 = vadd.f32 %v2433_v60, %v2401_v35  ;;  %v2528_v2 = vmul.f32 %v11084_v29, %v15251_v63  ;;  %v11344_v41 = vmax.f32 %v1464_v26, %v1888_v5  ;;  %v2529_v46 = vmul.f32 %v11089_v20, %v15251_v63  ;;  %v11361_v5 = vld [vmem:[%s14697_s0 + $0x81] sm:$0xff] }
 0x23c   :  { %v2232_v36 = vadd.f32 %v2224_v6, %v2176_v23  ;;  %v2576_v4 = vmul.f32 %v11146_v7, %v15254_v0  ;;  %v2233_v62 = vadd.f32 %v2225_v9, %v2177_v48  ;;  %v2488_v59 = vadd.f32 %v2480_v27, %v2440_v15 }
 0x23d   :  { %v2489_v55 = vadd.f32 %v2481_v31, %v2441_v54  ;;  %v2577_v58 = vmul.f32 %v11165_v57, %v15254_v0  ;;  %v11352_v18 = vmax.f32 %v1465_v44, %v1889_v30  ;;  %v2624_v26 = vmul.f32 %v11170_v56, %v15255_v10 }
 0x23e   :  { %v2288_v35 = vadd.f32 %v2280_v61, %v2232_v36  ;;  %v2625_v6 = vmul.f32 %v11197_v34, %v15255_v10  ;;  %v2289_v9 = vadd.f32 %v2281_v17, %v2233_v62  ;;  %v2536_v39 = vadd.f32 %v2528_v2, %v2488_v59 }
 0x23f   :  { %v2537_v3 = vadd.f32 %v2529_v46, %v2489_v55  ;;  %v2672_v60 = vmul.f32 %v10994_v50, %v15258_v8  ;;  %v2673_v36 = vmul.f32 %v11305_v24, %v15258_v8  ;;  %v2720_v61 = vmul.f32 %v11027_v1, %v15260_v14 }
 0x240   :  { %v2344_v44 = vadd.f32 %v2336_v43, %v2288_v35  ;;  %v2721_v27 = vmul.f32 %v11320_v47, %v15260_v14  ;;  %v2584_v30 = vadd.f32 %v2576_v4, %v2536_v39  ;;  %v2776_v17 = vmul.f32 %v15265_v49, %v11103_v53 }
 0x241   :  { %v2585_v23 = vadd.f32 %v2577_v58, %v2537_v3  ;;  %v2840_v46 = vmul.f32 %v11056_v16, %v15246_v33  ;;  %v2777_v43 = vmul.f32 %v11361_v5, %v15265_v49  ;;  %v2841_v31 = vmul.f32 %v11061_v38, %v15246_v33 }
 0x242   :  { %v2872_v48 = vmul.f32 %v11136_v51, %v15249_v25  ;;  %v2873_v15 = vmul.f32 %v11141_v52, %v15249_v25  ;;  %v2345_v54 = vadd.f32 %v2337_v11, %v2289_v9  ;;  %v2632_v2 = vadd.f32 %v2624_v26, %v2584_v30 }
 0x243   :  { %v2633_v4 = vadd.f32 %v2625_v6, %v2585_v23  ;;  %v2920_v62 = vmul.f32 %v11224_v42, %v15250_v28  ;;  %v2921_v58 = vmul.f32 %v11233_v12, %v15250_v28  ;;  %v2968_v35 = vmul.f32 %v11146_v7, %v15251_v63 }
 0x244   :  { %v2880_v59 = vadd.f32 %v2872_v48, %v2840_v46  ;;  %v2881_v55 = vadd.f32 %v2873_v15, %v2841_v31  ;;  %v2376_v39 = vmax.f32 %v11344_v41, %v2344_v44  ;;  %v2680_v3 = vadd.f32 %v2672_v60, %v2632_v2  ;;  %v11402_v60 = vld [vmem:[%s14697_s0 + $0x111] sm:$0xff] }
 0x245   :  { %v2681_v51 = vadd.f32 %v2673_v36, %v2633_v4  ;;  %v2969_v11 = vmul.f32 %v11165_v57, %v15251_v63  ;;  %v3016_v9 = vmul.f32 %v11170_v56, %v15254_v0  ;;  %v3017_v30 = vmul.f32 %v11197_v34, %v15254_v0  ;;  %15272 = vst [vmem:[#allocation25_spill] sm:$0xff] %v11402_v60 }
 0x246   :  { %v2928_v26 = vadd.f32 %v2920_v62, %v2880_v59  ;;  %v2929_v6 = vadd.f32 %v2921_v58, %v2881_v55  ;;  %v2377_v23 = vmax.f32 %v11352_v18, %v2345_v54  ;;  %v2728_v46 = vadd.f32 %v2720_v61, %v2680_v3 }
 0x247   :  { %v2729_v31 = vadd.f32 %v2721_v27, %v2681_v51  ;;  %v3064_v41 = vmul.f32 %v11246_v32, %v15255_v10  ;;  %v3065_v48 = vmul.f32 %v11275_v37, %v15255_v10  ;;  %v3112_v15 = vmul.f32 %v11027_v1, %v15258_v8 }
 0x248   :  { %v2976_v44 = vadd.f32 %v2968_v35, %v2928_v26  ;;  %v2977_v36 = vadd.f32 %v2969_v11, %v2929_v6  ;;  %v2784_v2 = vadd.f32 %v2776_v17, %v2728_v46  ;;  %v3113_v51 = vmul.f32 %v11320_v47, %v15258_v8  ;;  %v11437_v46 = vld [vmem:[%s14697_s0 + $0x230] sm:$0xff] }
 0x249   :  { %v2785_v18 = vadd.f32 %v2777_v43, %v2729_v31  ;;  %v3160_v61 = vmul.f32 %v15260_v14, %v11103_v53  ;;  %v3161_v4 = vmul.f32 %v11361_v5, %v15260_v14  ;;  %v3280_v62 = vmul.f32 %v11070_v19, %v15246_v33  ;;  %15273 = vst [vmem:[#allocation26_spill] sm:$0xff] %v11437_v46 }
 0x24a   :  { %v3024_v27 = vadd.f32 %v3016_v9, %v2976_v44  ;;  %v3025_v54 = vadd.f32 %v3017_v30, %v2977_v36  ;;  %v3216_v59 = vmul.f32 %v11192_v22, %v15265_v49  ;;  %v3217_v17 = vmul.f32 %v11402_v60, %v15265_v49 }
 0x24b   :  { %v3281_v43 = vmul.f32 %v11075_v21, %v15246_v33  ;;  %v3312_v55 = vmul.f32 %v11084_v29, %v15249_v25  ;;  %v3313_v3 = vmul.f32 %v11089_v20, %v15249_v25  ;;  %v3360_v11 = vmul.f32 %v11146_v7, %v15250_v28 }
 0x24c   :  { %v3072_v58 = vadd.f32 %v3064_v41, %v3024_v27  ;;  %v3073_v35 = vadd.f32 %v3065_v48, %v3025_v54  ;;  %v11428_v26 = vmax.f32 %v2376_v39, %v2784_v2  ;;  %v3361_v9 = vmul.f32 %v11165_v57, %v15250_v28  ;;  %v11444_v39 = vld [vmem:[%s14697_s0 + $0x2c0] sm:$0xff] }
 0x24d   :  { %v3320_v6 = vadd.f32 %v3312_v55, %v3280_v62  ;;  %v3408_v30 = vmul.f32 %v15251_v63, %v10980_v40  ;;  %v3321_v44 = vadd.f32 %v3313_v3, %v3281_v43  ;;  %v3409_v36 = vmul.f32 %v11294_v45, %v15251_v63  ;;  %15274 = vst [vmem:[#allocation29_spill] sm:$0xff] %v11444_v39  ;;  %v11457_v55 = vld [vmem:[%s14697_s0 + $0x350] sm:$0xff]  ;;  %v15276_v3 = vld [vmem:[#allocation63_spill] sm:$0xff] }
 0x24e   :  { %v3120_v31 = vadd.f32 %v3112_v15, %v3072_v58  ;;  %v3121_v41 = vadd.f32 %v3113_v51, %v3073_v35  ;;  %v11446_v48 = vmax.f32 %v2377_v23, %v2785_v18  ;;  %v3456_v27 = vmul.f32 %v10994_v50, %v15254_v0  ;;  %15275 = vst [vmem:[#allocation69_spill] sm:$0xff] %v11457_v55 }
 0x24f   :  { %v3368_v2 = vadd.f32 %v3360_v11, %v3320_v6  ;;  %v3457_v54 = vmul.f32 %v11305_v24, %v15254_v0  ;;  %v3369_v62 = vadd.f32 %v3361_v9, %v3321_v44  ;;  %v3504_v43 = vmul.f32 %v11027_v1, %v15255_v10 }
 0x250   :  { %v3168_v15 = vadd.f32 %v3160_v61, %v3120_v31  ;;  %v3169_v51 = vadd.f32 %v3161_v4, %v3121_v41  ;;  %v3505_v18 = vmul.f32 %v11320_v47, %v15255_v10  ;;  %v3560_v58 = vmul.f32 %v11007_v13, %v15258_v8 }
 0x251   :  { %v3416_v23 = vadd.f32 %v3408_v30, %v3368_v2  ;;  %v3561_v61 = vmul.f32 %v11437_v46, %v15258_v8  ;;  %v3417_v35 = vadd.f32 %v3409_v36, %v3369_v62  ;;  %v3616_v11 = vmul.f32 %v15276_v3, %v15260_v14 }
 0x252   :  { %v3224_v4 = vadd.f32 %v3216_v59, %v3168_v15  ;;  %v3617_v6 = vmul.f32 %v11444_v39, %v15260_v14  ;;  %v3225_v9 = vadd.f32 %v3217_v17, %v3169_v51  ;;  %v3736_v30 = vmul.f32 %v11084_v29, %v15246_v33 }
 0x253   :  { %v3464_v31 = vadd.f32 %v3456_v27, %v3416_v23  ;;  %v3737_v41 = vmul.f32 %v11089_v20, %v15246_v33  ;;  %v3465_v44 = vadd.f32 %v3457_v54, %v3417_v35  ;;  %v3672_v2 = vmul.f32 %v11061_v38, %v15265_v49 }
 0x254   :  { %v3673_v59 = vmul.f32 %v11457_v55, %v15265_v49  ;;  %v3768_v36 = vmul.f32 %v11146_v7, %v15249_v25  ;;  %v3769_v17 = vmul.f32 %v11165_v57, %v15249_v25  ;;  %v3816_v27 = vmul.f32 %v11170_v56, %v15250_v28 }
 0x255   :  { %v3512_v15 = vadd.f32 %v3504_v43, %v3464_v31  ;;  %v3817_v51 = vmul.f32 %v11197_v34, %v15250_v28  ;;  %v3256_v54 = vmax.f32 %v11428_v26, %v3224_v4  ;;  %v3513_v62 = vadd.f32 %v3505_v18, %v3465_v44 }
 0x256   :  { %v3776_v23 = vadd.f32 %v3768_v36, %v3736_v30  ;;  %v3864_v35 = vmul.f32 %v10994_v50, %v15251_v63  ;;  %v3257_v46 = vmax.f32 %v11446_v48, %v3225_v9  ;;  %v3777_v43 = vadd.f32 %v3769_v17, %v3737_v41 }
 0x257   :  { %v3568_v45 = vadd.f32 %v3560_v58, %v3512_v15  ;;  %v3865_v31 = vmul.f32 %v11305_v24, %v15251_v63  ;;  %v3569_v42 = vadd.f32 %v3561_v61, %v3513_v62  ;;  %v3912_v29 = vmul.f32 %v11027_v1, %v15254_v0  ;;  %v11502_v58 = vld [vmem:[%s14697_s0 + $0x231] sm:$0xff] }
 0x258   :  { %v3824_v20 = vadd.f32 %v3816_v27, %v3776_v23  ;;  %v3913_v26 = vmul.f32 %v11320_v47, %v15254_v0  ;;  %v3825_v4 = vadd.f32 %v3817_v51, %v3777_v43  ;;  %v3960_v30 = vmul.f32 %v15255_v10, %v11103_v53  ;;  %15277 = vst [vmem:[#allocation63_spill] sm:$0xff] %v11502_v58 }
 0x259   :  { %v3624_v18 = vadd.f32 %v3616_v11, %v3568_v45  ;;  %v3961_v48 = vmul.f32 %v11361_v5, %v15255_v10  ;;  %v3625_v61 = vadd.f32 %v3617_v6, %v3569_v42  ;;  %v4008_v41 = vmul.f32 %v15276_v3, %v15258_v8 }
 0x25a   :  { %v3872_v9 = vadd.f32 %v3864_v35, %v3824_v20  ;;  %v4009_v45 = vmul.f32 %v11444_v39, %v15258_v8  ;;  %v3873_v44 = vadd.f32 %v3865_v31, %v3825_v4  ;;  %v4056_v36 = vmul.f32 %v11061_v38, %v15260_v14 }
 0x25b   :  { %v3680_v11 = vadd.f32 %v3672_v2, %v3624_v18  ;;  %v4057_v15 = vmul.f32 %v11457_v55, %v15260_v14  ;;  %v4112_v27 = vmul.f32 %v11141_v52, %v15265_v49  ;;  %v4176_v20 = vmul.f32 %v11146_v7, %v15246_v33 }
 0x25c   :  { %v3920_v17 = vadd.f32 %v3912_v29, %v3872_v9  ;;  %v4177_v42 = vmul.f32 %v11165_v57, %v15246_v33  ;;  %v3921_v6 = vadd.f32 %v3913_v26, %v3873_v44  ;;  %v4113_v2 = vmul.f32 %v11502_v58, %v15265_v49 }
 0x25d   :  { %v4208_v51 = vmul.f32 %v11170_v56, %v15249_v25  ;;  %v4209_v62 = vmul.f32 %v11197_v34, %v15249_v25  ;;  %v3681_v29 = vadd.f32 %v3673_v59, %v3625_v61  ;;  %v4256_v35 = vmul.f32 %v11246_v32, %v15250_v28 }
 0x25e   :  { %v3968_v23 = vadd.f32 %v3960_v30, %v3920_v17  ;;  %v4257_v43 = vmul.f32 %v11275_v37, %v15250_v28  ;;  %v3969_v31 = vadd.f32 %v3961_v48, %v3921_v6  ;;  %v4304_v18 = vmul.f32 %v11027_v1, %v15251_v63 }
 0x25f   :  { %v4216_v33 = vadd.f32 %v4208_v51, %v4176_v20  ;;  %v4217_v26 = vadd.f32 %v4209_v62, %v4177_v42  ;;  %v3712_v4 = vmax.f32 %v3256_v54, %v3680_v11  ;;  %v4305_v44 = vmul.f32 %v11320_v47, %v15251_v63  ;;  %v11543_v63 = vld [vmem:[%s14697_s0 + $0x2c1] sm:$0xff] }
 0x260   :  { %v4016_v9 = vadd.f32 %v4008_v41, %v3968_v23  ;;  %v4352_v25 = vmul.f32 %v15254_v0, %v11103_v53  ;;  %v4017_v59 = vadd.f32 %v4009_v45, %v3969_v31  ;;  %v4353_v28 = vmul.f32 %v11361_v5, %v15254_v0  ;;  %15278 = vst [vmem:[#allocation70_spill] sm:$0xff] %v11543_v63  ;;  %v15279_v62 = vld [vmem:[#allocation54_spill] sm:$0xff] }
 0x261   :  { %v4264_v30 = vadd.f32 %v4256_v35, %v4216_v33  ;;  %v4265_v61 = vadd.f32 %v4257_v43, %v4217_v26  ;;  %v3713_v48 = vmax.f32 %v3257_v46, %v3681_v29  ;;  %v4400_v20 = vmul.f32 %v11192_v22, %v15255_v10  ;;  %v15280_v29 = vld [vmem:[#allocation34_spill] sm:$0xff]  ;;  %v15281_v35 = vld [vmem:[#allocation12_spill] sm:$0xff]  ;;  %v15282_v43 = vld [vmem:[#allocation55_spill] sm:$0xff] }
 0x262   :  { %v4064_v17 = vadd.f32 %v4056_v36, %v4016_v9  ;;  %v4401_v54 = vmul.f32 %v11402_v60, %v15255_v10  ;;  %v4065_v41 = vadd.f32 %v4057_v15, %v4017_v59  ;;  %v4448_v42 = vmul.f32 %v11061_v38, %v15258_v8  ;;  %v15283_v9 = vld [vmem:[#allocation35_spill] sm:$0xff] }
 0x263   :  { %v4312_v45 = vadd.f32 %v4304_v18, %v4264_v30  ;;  %v4313_v11 = vadd.f32 %v4305_v44, %v4265_v61  ;;  %v4449_v46 = vmul.f32 %v11457_v55, %v15258_v8  ;;  %v4496_v36 = vmul.f32 %v11141_v52, %v15260_v14  ;;  %v15284_v44 = vld [vmem:[#allocation61_spill] sm:$0xff] }
 0x264   :  { %v4120_v0 = vadd.f32 %v4112_v27, %v4064_v17  ;;  %v4497_v10 = vmul.f32 %v11502_v58, %v15260_v14  ;;  %v4552_v15 = vmul.f32 %v11233_v12, %v15265_v49  ;;  %v500_v23 = vmul.f32 %v15280_v29, %v15279_v62  ;;  %v15285_v61 = vld [vmem:[#allocation13_spill] sm:$0xff] }
 0x265   :  { %v4360_v6 = vadd.f32 %v4352_v25, %v4312_v45  ;;  %v4361_v51 = vadd.f32 %v4353_v28, %v4313_v11  ;;  %v4553_v27 = vmul.f32 %v11543_v63, %v15265_v49  ;;  %v501_v8 = vmul.f32 %v15280_v29, %v10980_v40  ;;  %v15286_v28 = vld [vmem:[#allocation57_spill] sm:$0xff] }
 0x266   :  { %v538_v31 = vmul.f32 %v15282_v43, %v15281_v35  ;;  %v539_v14 = vmul.f32 %v10994_v50, %v15281_v35  ;;  %v4121_v33 = vadd.f32 %v4113_v2, %v4065_v41  ;;  %v600_v25 = vmul.f32 %v15284_v44, %v15283_v9  ;;  %v15288_v41 = vld [vmem:[#allocation62_spill] sm:$0xff] }
 0x267   :  { %v4408_v26 = vadd.f32 %v4400_v20, %v4360_v6  ;;  %v4409_v18 = vadd.f32 %v4401_v54, %v4361_v51  ;;  %v601_v49 = vmul.f32 %v11027_v1, %v15283_v9  ;;  %v662_v40 = vmul.f32 %v15286_v28, %v15285_v61  ;;  %v15287_v54 = vld [vmem:[#allocation14_spill] sm:$0xff] }
 0x268   :  { %v546_v59 = vadd.f32 %v538_v31, %v500_v23  ;;  %v547_v30 = vadd.f32 %v539_v14, %v501_v8  ;;  %v4152_v17 = vmax.f32 %v3712_v4, %v4120_v0  ;;  %v663_v62 = vmul.f32 %v11007_v13, %v15285_v61  ;;  %v15289_v14 = vld [vmem:[#allocation16_spill] sm:$0xff] }
 0x269   :  { %v4456_v45 = vadd.f32 %v4448_v42, %v4408_v26  ;;  %v4457_v11 = vadd.f32 %v4449_v46, %v4409_v18  ;;  %v724_v6 = vmul.f32 %v15288_v41, %v15287_v54  ;;  %v725_v51 = vmul.f32 %v15276_v3, %v15287_v54  ;;  %v15290_v46 = vld [vmem:[#allocation36_spill] sm:$0xff] }
 0x26a   :  { %v608_v2 = vadd.f32 %v600_v25, %v546_v59  ;;  %v609_v20 = vadd.f32 %v601_v49, %v547_v30  ;;  %v4153_v23 = vmax.f32 %v3713_v48, %v4121_v33  ;;  %v786_v63 = vmul.f32 %v11056_v16, %v15289_v14  ;;  %v15291_v30 = vld [vmem:[#allocation37_spill] sm:$0xff]  ;;  %v15292_v48 = vld [vmem:[#allocation64_spill] sm:$0xff] }
 0x26b   :  { %v4504_v8 = vadd.f32 %v4496_v36, %v4456_v45  ;;  %v4505_v31 = vadd.f32 %v4497_v10, %v4457_v11  ;;  %v787_v0 = vmul.f32 %v11061_v38, %v15289_v14  ;;  %v848_v26 = vmul.f32 %v11070_v19, %v15290_v46  ;;  %v15293_v49 = vld [vmem:[#allocation65_spill] sm:$0xff] }
 0x26c   :  { %v670_v4 = vadd.f32 %v662_v40, %v608_v2  ;;  %v671_v42 = vadd.f32 %v663_v62, %v609_v20  ;;  %v849_v59 = vmul.f32 %v11075_v21, %v15290_v46  ;;  %v910_v36 = vmul.f32 %v15292_v48, %v15291_v30 }
 0x26d   :  { %v4560_v18 = vadd.f32 %v4552_v15, %v4504_v8  ;;  %v4561_v25 = vadd.f32 %v4553_v27, %v4505_v31  ;;  %v911_v40 = vmul.f32 %v15293_v49, %v15291_v30  ;;  %v1024_v45 = vmul.f32 %v15282_v43, %v15280_v29  ;;  %v15295_v31 = vld [vmem:[#allocation17_spill] sm:$0xff] }
 0x26e   :  { %v732_v10 = vadd.f32 %v724_v6, %v670_v4  ;;  %v733_v33 = vadd.f32 %v725_v51, %v671_v42  ;;  %v1025_v15 = vmul.f32 %v10994_v50, %v15280_v29  ;;  %v1048_v27 = vmul.f32 %v15284_v44, %v15281_v35  ;;  %v15294_v51 = vld [vmem:[#allocation66_spill] sm:$0xff] }
 0x26f   :  { %v4592_v11 = vmax.f32 %v4152_v17, %v4560_v18  ;;  %v4593_v62 = vmax.f32 %v4153_v23, %v4561_v25  ;;  %v1049_v6 = vmul.f32 %v11027_v1, %v15281_v35  ;;  %v1104_v8 = vmul.f32 %v15283_v9, %v15294_v51 }
 0x270   :  { %v794_v2 = vadd.f32 %v786_v63, %v732_v10  ;;  %v795_v20 = vadd.f32 %v787_v0, %v733_v33  ;;  %v1056_v17 = vadd.f32 %v1048_v27, %v1024_v45  ;;  %v1105_v50 = vmul.f32 %v15283_v9, %v11103_v53 }
 0x271   :  { %v11600_v4 = vadd.f32 %v15295_v31, %v4592_v11  ;;  %v11603_v43 = vadd.f32 %v15295_v31, %v4593_v62  ;;  %v1057_v63 = vadd.f32 %v1049_v6, %v1025_v15  ;;  %v1152_v0 = vmul.f32 %v15288_v41, %v15285_v61  ;;  %v15298_v11 = vld [vmem:[#allocation38_spill] sm:$0xff] }
 0x272   :  { %v856_v23 = vadd.f32 %v848_v26, %v794_v2  ;;  %v857_v42 = vadd.f32 %v849_v59, %v795_v20  ;;  %v1112_v10 = vadd.f32 %v1104_v8, %v1056_v17  ;;  %v1153_v33 = vmul.f32 %v15276_v3, %v15285_v61  ;;  %v15301_v17 = vld [vmem:[#allocation15_spill] sm:$0xff] }
 0x273   :  { %15296 = vst [vmem:[#allocation54_spill] sm:$0xff] %v11600_v4  ;;  %15297 = vst [vmem:[#allocation34_spill] sm:$0xff] %v11603_v43  ;;  %v14947_v18 = vmax.f32 %v11600_v4, 0.0  ;;  %v14949_v25 = vmax.f32 %v11603_v43, 0.0  ;;  %v972_v45 = vmul.f32 %v11146_v7, %v15298_v11  ;;  %v973_v62 = vmul.f32 %v11165_v57, %v15298_v11 }
 0x274   :  { %v1113_v26 = vadd.f32 %v1105_v50, %v1057_v63  ;;  %v1200_v59 = vmul.f32 %v11056_v16, %v15287_v54  ;;  %v1160_v2 = vadd.f32 %v1152_v0, %v1112_v10  ;;  %v1201_v20 = vmul.f32 %v11061_v38, %v15287_v54 }
 0x275   :  { %v11621_v15 = vand.u32 4294901760, %v14947_v18  ;;  %v11625_v27 = vand.u32 4294901760, %v14949_v25  ;;  %v918_v6 = vadd.f32 %v910_v36, %v856_v23  ;;  %v919_v8 = vadd.f32 %v911_v40, %v857_v42 }
 0x276   :  { %v1161_v31 = vadd.f32 %v1153_v33, %v1113_v26  ;;  %v1256_v50 = vmul.f32 %v15301_v17, %v15289_v14  ;;  %v1208_v18 = vadd.f32 %v1200_v59, %v1160_v2  ;;  %v1257_v43 = vmul.f32 %v11141_v52, %v15289_v14 }
 0x277   :  { %15299 = vst [vmem:[#allocation12_spill] sm:$0xff] %v11621_v15  ;;  %15300 = vst [vmem:[#allocation55_spill] sm:$0xff] %v11625_v27  ;;  %v11633_v63 = vpack.c.bf16 %v11625_v27, %v11621_v15  ;;  %v1304_v0 = vmul.f32 %v15292_v48, %v15290_v46  ;;  %v1305_v36 = vmul.f32 %v15293_v49, %v15290_v46 }
 0x278   :  { %v1209_v10 = vadd.f32 %v1201_v20, %v1161_v31  ;;  %v1352_v40 = vmul.f32 %v11146_v7, %v15291_v30  ;;  %v1353_v23 = vmul.f32 %v11165_v57, %v15291_v30  ;;  %v1264_v42 = vadd.f32 %v1256_v50, %v1208_v18  ;;  %v15303_v50 = vld [vmem:[#allocation21_spill] sm:$0xff] }
 0x279   :  { %15302 = vst [vmem:[#allocation35_spill] sm:$0xff] %v11633_v63  ;;  %7237 = vmatprep.subr.bf16.mxu1 %v11633_v63  ;;  %v1408_v33 = vmul.f32 %v11170_v56, %v15298_v11  ;;  %v1409_v26 = vmul.f32 %v11197_v34, %v15298_v11  ;;  %v1480_v59 = vmul.f32 %v15284_v44, %v15280_v29 }
 0x27a   :  { %v1265_v2 = vadd.f32 %v1257_v43, %v1209_v10  ;;  %v1481_v20 = vmul.f32 %v11027_v1, %v15280_v29  ;;  %v1504_v31 = vmul.f32 %v15281_v35, %v15294_v51  ;;  %v1505_v25 = vmul.f32 %v15281_v35, %v11103_v53  ;;  %7239 = vmatpush3.bf16.msra.mxu1 %v11633_v63 }
 0x27b   :  { %v1312_v18 = vadd.f32 %v1304_v0, %v1264_v42  ;;  %v1560_v27 = vmul.f32 %v15303_v50, %v15283_v9  ;;  %v1561_v4 = vmul.f32 %v11192_v22, %v15283_v9  ;;  %v1608_v44 = vmul.f32 %v11056_v16, %v15285_v61 }
 0x27c   :  { %v1313_v43 = vadd.f32 %v1305_v36, %v1265_v2  ;;  %v1512_v10 = vadd.f32 %v1504_v31, %v1480_v59  ;;  %v1513_v15 = vadd.f32 %v1505_v25, %v1481_v20  ;;  %v1609_v51 = vmul.f32 %v11061_v38, %v15285_v61  ;;  %v15304_v25 = vld [vmem:[#allocation22_spill] sm:$0xff] }
 0x27d   :  { %v11667_v58 = vadd.f32 %v972_v45, %v918_v6  ;;  %v11669_v55 = vadd.f32 %v973_v62, %v919_v8  ;;  %v1360_v0 = vadd.f32 %v1352_v40, %v1312_v18  ;;  %v1656_v42 = vmul.f32 %v15301_v17, %v15287_v54 }
 0x27e   :  { %v1361_v50 = vadd.f32 %v1353_v23, %v1313_v43  ;;  %v1568_v63 = vadd.f32 %v1560_v27, %v1512_v10  ;;  %v1569_v39 = vadd.f32 %v1561_v4, %v1513_v15  ;;  %v1657_v60 = vmul.f32 %v11141_v52, %v15287_v54 }
 0x27f   :  { %v11675_v36 = vadd.f32 %v1408_v33, %v1360_v0  ;;  %v1712_v59 = vmul.f32 %v15304_v25, %v15289_v14  ;;  %v1713_v45 = vmul.f32 %v11233_v12, %v15289_v14  ;;  %v1760_v62 = vmul.f32 %v11146_v7, %v15290_v46 }
 0x280   :  { %v11683_v6 = vadd.f32 %v1409_v26, %v1361_v50  ;;  %v1616_v8 = vadd.f32 %v1608_v44, %v1568_v63  ;;  %v1617_v40 = vadd.f32 %v1609_v51, %v1569_v39  ;;  %v1761_v4 = vmul.f32 %v11165_v57, %v15290_v46 }
 0x281   :  { %v1456_v15 = vmax.f32 %v11667_v58, %v11675_v36  ;;  %v1808_v27 = vmul.f32 %v11170_v56, %v15291_v30  ;;  %v1809_v23 = vmul.f32 %v11197_v34, %v15291_v30  ;;  %v1936_v33 = vmul.f32 %v15286_v28, %v15280_v29 }
 0x282   :  { %v1664_v2 = vadd.f32 %v1656_v42, %v1616_v8  ;;  %v1665_v26 = vadd.f32 %v1657_v60, %v1617_v40  ;;  %v1864_v39 = vmul.f32 %v11246_v32, %v15298_v11  ;;  %v1937_v63 = vmul.f32 %v11007_v13, %v15280_v29 }
 0x283   :  { %v1960_v58 = vmul.f32 %v15288_v41, %v15281_v35  ;;  %v1961_v20 = vmul.f32 %v15276_v3, %v15281_v35  ;;  %v2008_v31 = vmul.f32 %v11056_v16, %v15283_v9  ;;  %v2009_v28 = vmul.f32 %v11061_v38, %v15283_v9 }
 0x284   :  { %v1457_v60 = vmax.f32 %v11669_v55, %v11683_v6  ;;  %v1720_v18 = vadd.f32 %v1712_v59, %v1664_v2  ;;  %v1721_v44 = vadd.f32 %v1713_v45, %v1665_v26  ;;  %v1865_v13 = vmul.f32 %v11275_v37, %v15298_v11 }
 0x285   :  { %v1968_v43 = vadd.f32 %v1960_v58, %v1936_v33  ;;  %v1969_v10 = vadd.f32 %v1961_v20, %v1937_v63  ;;  %v2056_v51 = vmul.f32 %v11070_v19, %v15285_v61  ;;  %v2057_v0 = vmul.f32 %v11075_v21, %v15285_v61  ;;  %v11726_v21 = vld [vmem:[%s14697_s0 + $0x70] sm:$0xff]  ;;  %v11735_v63 = vld [vmem:[%s14697_s0 + $0x100] sm:$0xff] }
 0x286   :  { %v1768_v42 = vadd.f32 %v1760_v62, %v1720_v18  ;;  %v1769_v50 = vadd.f32 %v1761_v4, %v1721_v44  ;;  %v2104_v36 = vmul.f32 %v15292_v48, %v15287_v54  ;;  %v2105_v55 = vmul.f32 %v15293_v49, %v15287_v54  ;;  %v15305_v4 = vld [vmem:[#allocation24_spill] sm:$0xff] }
 0x287   :  { %v2016_v59 = vadd.f32 %v2008_v31, %v1968_v43  ;;  %v2017_v45 = vadd.f32 %v2009_v28, %v1969_v10  ;;  %v2152_v6 = vmul.f32 %v11146_v7, %v15289_v14  ;;  %v2153_v8 = vmul.f32 %v11165_v57, %v15289_v14 }
 0x288   :  { %v1816_v19 = vadd.f32 %v1808_v27, %v1768_v42  ;;  %v1817_v40 = vadd.f32 %v1809_v23, %v1769_v50  ;;  %v2208_v62 = vmul.f32 %v11726_v21, %v15290_v46  ;;  %v2209_v33 = vmul.f32 %v15305_v4, %v15290_v46 }
 0x289   :  { %v2064_v2 = vadd.f32 %v2056_v51, %v2016_v59  ;;  %v2065_v26 = vadd.f32 %v2057_v0, %v2017_v45  ;;  %v2264_v27 = vmul.f32 %v11735_v63, %v15291_v30  ;;  %v2265_v23 = vmul.f32 %v11305_v24, %v15291_v30 }
 0x28a   :  { %v2320_v58 = vmul.f32 %v11027_v1, %v15298_v11  ;;  %v2321_v20 = vmul.f32 %v11320_v47, %v15298_v11  ;;  %v2392_v31 = vmul.f32 %v15288_v41, %v15280_v29  ;;  %v2393_v28 = vmul.f32 %v15276_v3, %v15280_v29 }
 0x28b   :  { %v2112_v18 = vadd.f32 %v2104_v36, %v2064_v2  ;;  %v2113_v44 = vadd.f32 %v2105_v55, %v2065_v26  ;;  %v2416_v43 = vmul.f32 %v11056_v16, %v15281_v35  ;;  %v2417_v10 = vmul.f32 %v11061_v38, %v15281_v35 }
 0x28c   :  { %v1872_v51 = vadd.f32 %v1864_v39, %v1816_v19  ;;  %v1873_v0 = vadd.f32 %v1865_v13, %v1817_v40  ;;  %v2464_v1 = vmul.f32 %v15301_v17, %v15283_v9  ;;  %v2465_v42 = vmul.f32 %v11141_v52, %v15283_v9 }
 0x28d   :  { %v2160_v41 = vadd.f32 %v2152_v6, %v2112_v18  ;;  %v2161_v50 = vadd.f32 %v2153_v8, %v2113_v44  ;;  %v2424_v59 = vadd.f32 %v2416_v43, %v2392_v31  ;;  %v2425_v3 = vadd.f32 %v2417_v10, %v2393_v28  ;;  %v7628_v43 = vld [vmem:[%s14697_s0 + $0x330] sm:$0xff] }
 0x28e   :  { %v2512_v36 = vmul.f32 %v15292_v48, %v15285_v61  ;;  %v2513_v16 = vmul.f32 %v15293_v49, %v15285_v61  ;;  %v2560_v38 = vmul.f32 %v11146_v7, %v15287_v54  ;;  %v2561_v39 = vmul.f32 %v11165_v57, %v15287_v54 }
 0x28f   :  { %v2216_v13 = vadd.f32 %v2208_v62, %v2160_v41  ;;  %v2217_v55 = vadd.f32 %v2209_v33, %v2161_v50  ;;  %v2472_v45 = vadd.f32 %v2464_v1, %v2424_v59  ;;  %v2473_v19 = vadd.f32 %v2465_v42, %v2425_v3 }
 0x290   :  { %v11765_v6 = vmax.f32 %v1456_v15, %v1872_v51  ;;  %v11767_v8 = vmax.f32 %v1457_v60, %v1873_v0  ;;  %v2608_v48 = vmul.f32 %v11170_v56, %v15289_v14  ;;  %v2609_v49 = vmul.f32 %v11197_v34, %v15289_v14  ;;  %v11780_v15 = vld [vmem:[%s14697_s0 + $0x190] sm:$0xff]  ;;  %v11797_v51 = vld [vmem:[%s14697_s0 + $0x340] sm:$0xff] }
 0x291   :  { %v2272_v40 = vadd.f32 %v2264_v27, %v2216_v13  ;;  %v2273_v2 = vadd.f32 %v2265_v23, %v2217_v55  ;;  %v2520_v26 = vadd.f32 %v2512_v36, %v2472_v45  ;;  %v2521_v31 = vadd.f32 %v2513_v16, %v2473_v19 }
 0x292   :  { %v2656_v62 = vmul.f32 %v11735_v63, %v15290_v46  ;;  %v2657_v33 = vmul.f32 %v11305_v24, %v15290_v46  ;;  %v2704_v60 = vmul.f32 %v11780_v15, %v15291_v30  ;;  %v2705_v27 = vmul.f32 %v11320_v47, %v15291_v30 }
 0x293   :  { %v2568_v23 = vadd.f32 %v2560_v38, %v2520_v26  ;;  %v2569_v28 = vadd.f32 %v2561_v39, %v2521_v31  ;;  %v2760_v18 = vmul.f32 %v15298_v11, %v11103_v53  ;;  %v2761_v44 = vmul.f32 %v11361_v5, %v15298_v11  ;;  %v11830_v31 = vld [vmem:[%s14697_s0 + $0x71] sm:$0xff] }
 0x294   :  { %v2832_v10 = vmul.f32 %v7628_v43, %v15280_v29  ;;  %v2833_v0 = vmul.f32 %v11797_v51, %v15280_v29  ;;  %v2856_v53 = vmul.f32 %v15301_v17, %v15281_v35  ;;  %v2857_v1 = vmul.f32 %v11141_v52, %v15281_v35 }
 0x295   :  { %v2328_v42 = vadd.f32 %v2320_v58, %v2272_v40  ;;  %v2329_v41 = vadd.f32 %v2321_v20, %v2273_v2  ;;  %v2616_v50 = vadd.f32 %v2608_v48, %v2568_v23  ;;  %v2617_v59 = vadd.f32 %v2609_v49, %v2569_v28  ;;  %v7632_v28 = vld [vmem:[%s14697_s0 + $0x3d0] sm:$0xff] }
 0x296   :  { %v2864_v3 = vadd.f32 %v2856_v53, %v2832_v10  ;;  %v2865_v36 = vadd.f32 %v2857_v1, %v2833_v0  ;;  %v2904_v16 = vmul.f32 %v15304_v25, %v15283_v9  ;;  %v2905_v38 = vmul.f32 %v11233_v12, %v15283_v9  ;;  %v7634_v0 = vld [vmem:[%s14697_s0 + $0x460] sm:$0xff] }
 0x297   :  { %v2664_v39 = vadd.f32 %v2656_v62, %v2616_v50  ;;  %v2665_v13 = vadd.f32 %v2657_v33, %v2617_v59  ;;  %v2952_v17 = vmul.f32 %v11146_v7, %v15285_v61  ;;  %v2953_v52 = vmul.f32 %v11165_v57, %v15285_v61  ;;  %v15306_v33 = vld [vmem:[#allocation25_spill] sm:$0xff]  ;;  %v11859_v1 = vld [vmem:[%s14697_s0 + $0x4e0] sm:$0xff] }
 0x298   :  { %v2912_v58 = vadd.f32 %v2904_v16, %v2864_v3  ;;  %v2913_v20 = vadd.f32 %v2905_v38, %v2865_v36  ;;  %v3000_v55 = vmul.f32 %v11170_v56, %v15287_v54  ;;  %v3001_v45 = vmul.f32 %v11197_v34, %v15287_v54 }
 0x299   :  { %v2368_v25 = vmax.f32 %v11765_v6, %v2328_v42  ;;  %v2369_v12 = vmax.f32 %v11767_v8, %v2329_v41  ;;  %v2712_v19 = vadd.f32 %v2704_v60, %v2664_v39  ;;  %v2713_v48 = vadd.f32 %v2705_v27, %v2665_v13  ;;  %v7631_v27 = vld [vmem:[%s14697_s0 + $0x3c0] sm:$0xff]  ;;  %v11866_v41 = vld [vmem:[%s14697_s0 + $0x4f0] sm:$0xff] }
 0x29a   :  { %v2960_v49 = vadd.f32 %v2952_v17, %v2912_v58  ;;  %v2961_v40 = vadd.f32 %v2953_v52, %v2913_v20  ;;  %v3048_v7 = vmul.f32 %v11246_v32, %v15289_v14  ;;  %v3049_v57 = vmul.f32 %v11275_v37, %v15289_v14 }
 0x29b   :  { %v2768_v2 = vadd.f32 %v2760_v18, %v2712_v19  ;;  %v2769_v26 = vadd.f32 %v2761_v44, %v2713_v48  ;;  %v3096_v56 = vmul.f32 %v11780_v15, %v15290_v46  ;;  %v3097_v34 = vmul.f32 %v11320_v47, %v15290_v46  ;;  %v15307_v48 = vld [vmem:[#allocation26_spill] sm:$0xff] }
 0x29c   :  { %v3008_v6 = vadd.f32 %v3000_v55, %v2960_v49  ;;  %v3009_v8 = vadd.f32 %v3001_v45, %v2961_v40  ;;  %v3144_v32 = vmul.f32 %v11830_v31, %v15291_v30  ;;  %v3145_v37 = vmul.f32 %v11361_v5, %v15291_v30 }
 0x29d   :  { %v3200_v62 = vmul.f32 %v11192_v22, %v15298_v11  ;;  %v3201_v60 = vmul.f32 %v15306_v33, %v15298_v11  ;;  %v3272_v23 = vmul.f32 %v7631_v27, %v15280_v29  ;;  %v3273_v18 = vmul.f32 %v7632_v28, %v15280_v29  ;;  %v7633_v22 = vld [vmem:[%s14697_s0 + $0x450] sm:$0xff]  ;;  %v15309_v27 = vld [vmem:[#allocation69_spill] sm:$0xff] }
 0x29e   :  { %v3056_v44 = vadd.f32 %v3048_v7, %v3008_v6  ;;  %v3057_v43 = vadd.f32 %v3049_v57, %v3009_v8  ;;  %v3296_v10 = vmul.f32 %v7633_v22, %v15281_v35  ;;  %v3297_v53 = vmul.f32 %v7634_v0, %v15281_v35 }
 0x29f   :  { %v3344_v42 = vmul.f32 %v11859_v1, %v15283_v9  ;;  %v3345_v50 = vmul.f32 %v11866_v41, %v15283_v9  ;;  %v3392_v59 = vmul.f32 %v11726_v21, %v15285_v61  ;;  %v3393_v3 = vmul.f32 %v15305_v4, %v15285_v61 }
 0x2a0   :  { %v3104_v36 = vadd.f32 %v3096_v56, %v3056_v44  ;;  %v3105_v16 = vadd.f32 %v3097_v34, %v3057_v43  ;;  %v3304_v38 = vadd.f32 %v3296_v10, %v3272_v23  ;;  %v3305_v39 = vadd.f32 %v3297_v53, %v3273_v18  ;;  %v15308_v34 = vld [vmem:[#allocation29_spill] sm:$0xff]  ;;  %v7639_v44 = vld [vmem:[%s14697_s0 + $0x3c1] sm:$0xff] }
 0x2a1   :  { %v11874_v13 = vmax.f32 %v2368_v25, %v2768_v2  ;;  %v11876_v17 = vmax.f32 %v2369_v12, %v2769_v26  ;;  %v3440_v52 = vmul.f32 %v11735_v63, %v15287_v54  ;;  %v3441_v58 = vmul.f32 %v11305_v24, %v15287_v54  ;;  %v7637_v25 = vld [vmem:[%s14697_s0 + $0x220] sm:$0xff]  ;;  %v7638_v26 = vld [vmem:[%s14697_s0 + $0x2b0] sm:$0xff] }
 0x2a2   :  { %v3152_v20 = vadd.f32 %v3144_v32, %v3104_v36  ;;  %v3153_v55 = vadd.f32 %v3145_v37, %v3105_v16  ;;  %v3352_v21 = vadd.f32 %v3344_v42, %v3304_v38  ;;  %v3353_v45 = vadd.f32 %v3345_v50, %v3305_v39 }
 0x2a3   :  { %v3488_v4 = vmul.f32 %v11780_v15, %v15289_v14  ;;  %v3489_v19 = vmul.f32 %v11320_v47, %v15289_v14  ;;  %v3544_v12 = vmul.f32 %v7637_v25, %v15290_v46  ;;  %v3545_v49 = vmul.f32 %v15307_v48, %v15290_v46  ;;  %v7641_v48 = vld [vmem:[%s14697_s0 + $0x221] sm:$0xff] }
 0x2a4   :  { %v11892_v40 = vadd.f32 %v3200_v62, %v3152_v20  ;;  %v11894_v7 = vadd.f32 %v3201_v60, %v3153_v55  ;;  %v3400_v57 = vadd.f32 %v3392_v59, %v3352_v21  ;;  %v3401_v2 = vadd.f32 %v3393_v3, %v3353_v45 }
 0x2a5   :  { %v3600_v56 = vmul.f32 %v7638_v26, %v15291_v30  ;;  %v3601_v6 = vmul.f32 %v15308_v34, %v15291_v30  ;;  %v3728_v8 = vmul.f32 %v7633_v22, %v15280_v29  ;;  %v3729_v32 = vmul.f32 %v7634_v0, %v15280_v29  ;;  %v7640_v22 = vld [vmem:[%s14697_s0 + $0x3d1] sm:$0xff] }
 0x2a6   :  { %v3448_v37 = vadd.f32 %v3440_v52, %v3400_v57  ;;  %v3449_v62 = vadd.f32 %v3441_v58, %v3401_v2  ;;  %v3656_v60 = vmul.f32 %v11797_v51, %v15298_v11  ;;  %v3657_v23 = vmul.f32 %v15309_v27, %v15298_v11 }
 0x2a7   :  { %v3752_v28 = vmul.f32 %v11859_v1, %v15281_v35  ;;  %v3753_v18 = vmul.f32 %v11866_v41, %v15281_v35  ;;  %v3800_v43 = vmul.f32 %v7639_v44, %v15283_v9  ;;  %v3801_v10 = vmul.f32 %v7640_v22, %v15283_v9 }
 0x2a8   :  { %v3248_v0 = vmax.f32 %v11874_v13, %v11892_v40  ;;  %v3249_v53 = vmax.f32 %v11876_v17, %v11894_v7  ;;  %v3496_v42 = vadd.f32 %v3488_v4, %v3448_v37  ;;  %v3497_v50 = vadd.f32 %v3489_v19, %v3449_v62  ;;  %v15310_v40 = vld [vmem:[#allocation63_spill] sm:$0xff]  ;;  %v7642_v37 = vld [vmem:[%s14697_s0 + $0x451] sm:$0xff] }
 0x2a9   :  { %v3760_v59 = vadd.f32 %v3752_v28, %v3728_v8  ;;  %v3761_v3 = vadd.f32 %v3753_v18, %v3729_v32  ;;  %v3848_v36 = vmul.f32 %v11735_v63, %v15285_v61  ;;  %v3849_v16 = vmul.f32 %v11305_v24, %v15285_v61 }
 0x2aa   :  { %v3552_v38 = vadd.f32 %v3544_v12, %v3496_v42  ;;  %v3553_v39 = vadd.f32 %v3545_v49, %v3497_v50  ;;  %v3896_v52 = vmul.f32 %v11780_v15, %v15287_v54  ;;  %v3897_v13 = vmul.f32 %v11320_v47, %v15287_v54 }
 0x2ab   :  { %v3808_v58 = vadd.f32 %v3800_v43, %v3760_v59  ;;  %v3809_v17 = vadd.f32 %v3801_v10, %v3761_v3  ;;  %v3944_v20 = vmul.f32 %v11830_v31, %v15289_v14  ;;  %v3945_v55 = vmul.f32 %v11361_v5, %v15289_v14  ;;  %v7644_v3 = vld [vmem:[%s14697_s0 + $0x101] sm:$0xff] }
 0x2ac   :  { %v3608_v63 = vadd.f32 %v3600_v56, %v3552_v38  ;;  %v3609_v21 = vadd.f32 %v3601_v6, %v3553_v39  ;;  %v3992_v24 = vmul.f32 %v7638_v26, %v15290_v46  ;;  %v3993_v45 = vmul.f32 %v15308_v34, %v15290_v46 }
 0x2ad   :  { %v3856_v4 = vadd.f32 %v3848_v36, %v3808_v58  ;;  %v3857_v19 = vadd.f32 %v3849_v16, %v3809_v17  ;;  %v4040_v25 = vmul.f32 %v11797_v51, %v15291_v30  ;;  %v4041_v12 = vmul.f32 %v15309_v27, %v15291_v30 }
 0x2ae   :  { %v4096_v49 = vmul.f32 %v7641_v48, %v15298_v11  ;;  %v4097_v7 = vmul.f32 %v15310_v40, %v15298_v11  ;;  %v4168_v57 = vmul.f32 %v11859_v1, %v15280_v29  ;;  %v4169_v2 = vmul.f32 %v11866_v41, %v15280_v29  ;;  %v7643_v1 = vld [vmem:[%s14697_s0 + $0x461] sm:$0xff] }
 0x2af   :  { %v3904_v26 = vadd.f32 %v3896_v52, %v3856_v4  ;;  %v3905_v56 = vadd.f32 %v3897_v13, %v3857_v19  ;;  %v4192_v34 = vmul.f32 %v7639_v44, %v15281_v35  ;;  %v4193_v6 = vmul.f32 %v7640_v22, %v15281_v35  ;;  %v15312_v13 = vld [vmem:[#allocation39_spill] sm:$0xff]  ;;  %v15319_v4 = vld [vmem:[#allocation70_spill] sm:$0xff] }
 0x2b0   :  { %v3664_v8 = vadd.f32 %v3656_v60, %v3608_v63  ;;  %v3665_v32 = vadd.f32 %v3657_v23, %v3609_v21  ;;  %v4240_v62 = vmul.f32 %v7642_v37, %v15283_v9  ;;  %v4241_v29 = vmul.f32 %v7643_v1, %v15283_v9 }
 0x2b1   :  { %v3952_v41 = vadd.f32 %v3944_v20, %v3904_v26  ;;  %v3953_v28 = vadd.f32 %v3945_v55, %v3905_v56  ;;  %v4200_v18 = vadd.f32 %v4192_v34, %v4168_v57  ;;  %v4201_v44 = vadd.f32 %v4193_v6, %v4169_v2  ;;  %v15315_v20 = vld [vmem:[#allocation41_spill] sm:$0xff]  ;;  %v15316_v55 = vld [vmem:[#allocation40_spill] sm:$0xff] }
 0x2b2   :  { %v4288_v35 = vmul.f32 %v11780_v15, %v15285_v61  ;;  %v4289_v60 = vmul.f32 %v11320_v47, %v15285_v61  ;;  %v4336_v23 = vmul.f32 %v11830_v31, %v15287_v54  ;;  %v4337_v43 = vmul.f32 %v11361_v5, %v15287_v54 }
 0x2b3   :  { %v4000_v22 = vadd.f32 %v3992_v24, %v3952_v41  ;;  %v4001_v10 = vadd.f32 %v3993_v45, %v3953_v28  ;;  %v4248_v42 = vadd.f32 %v4240_v62, %v4200_v18  ;;  %v4249_v9 = vadd.f32 %v4241_v29, %v4201_v44  ;;  %v4621_v18 = vld [vmem:[%s14700_s3 + $0x8] sm:$0x3] }
 0x2b4   :  { %v3704_v50 = vmax.f32 %v3248_v0, %v3664_v8  ;;  %v3705_v59 = vmax.f32 %v3249_v53, %v3665_v32  ;;  %v4384_v15 = vmul.f32 %v7644_v3, %v15289_v14  ;;  %v4385_v47 = vmul.f32 %v15306_v33, %v15289_v14  ;;  %v7645_v14 = vld [vmem:[%s14697_s0 + $0x2b1] sm:$0xff] }
 0x2b5   :  { %v4048_v61 = vadd.f32 %v4040_v25, %v4000_v22  ;;  %v4049_v31 = vadd.f32 %v4041_v12, %v4001_v10  ;;  %v4296_v36 = vadd.f32 %v4288_v35, %v4248_v42  ;;  %v4297_v16 = vadd.f32 %v4289_v60, %v4249_v9  ;;  %v15320_v25 = vld [vmem:[#allocation48_spill] sm:$0xff]  ;;  %v15321_v12 = vld [vmem:[#allocation45_spill] sm:$0xff] }
 0x2b6   :  { %v4432_v5 = vmul.f32 %v11797_v51, %v15290_v46  ;;  %v4433_v54 = vmul.f32 %v15309_v27, %v15290_v46  ;;  %v4480_v0 = vmul.f32 %v7641_v48, %v15291_v30  ;;  %v4481_v53 = vmul.f32 %v15310_v40, %v15291_v30  ;;  %v6697_v51 = vld [vmem:[%s14700_s3 + $0x10] sm:$0xff]  ;;  %v4620_v46 = vld [vmem:[%s14700_s3] sm:$0xff]  ;;  %v15311_v30 = vld [vmem:[#allocation19_spill] sm:$0xff] }
 0x2b7   :  { %v4104_v38 = vadd.f32 %v4096_v49, %v4048_v61  ;;  %v4344_v39 = vadd.f32 %v4336_v23, %v4296_v36  ;;  %v4345_v52 = vadd.f32 %v4337_v43, %v4297_v16  ;;  %v4536_v33 = vmul.f32 %v7645_v14, %v15298_v11  ;;  %v15327_v9 = vld [vmem:[#allocation49_spill] sm:$0xff]  ;;  %v15338_v14 = vld [vmem:[#allocation30_spill] sm:$0xff] }
 0x2b8   :  { %v4105_v27 = vadd.f32 %v4097_v7, %v4049_v31  ;;  %v15313_v58 = vmax.f32 %v15312_v13, 0.0  ;;  %v15317_v63 = vmax.f32 %v15316_v55, 0.0  ;;  %v4537_v19 = vmul.f32 %v15319_v4, %v15298_v11  ;;  %v6698_v11 = vld [vmem:[%s14700_s3 + $0x18] sm:$0x3] }
 0x2b9   :  { %v4392_v24 = vadd.f32 %v4384_v15, %v4344_v39  ;;  %v4393_v45 = vadd.f32 %v4385_v47, %v4345_v52  ;;  %v15322_v48 = vmax.f32 %v15321_v12, 0.0  ;;  %v4645_v40 = vsel %vm4643_vm0, %v6697_v51, 0  ;;  %v15337_v52 = vld [vmem:[#allocation33_spill] sm:$0xff] }
 0x2ba   :  { %v11997_v17 = vsub.f32 %v15313_v58, %v15311_v30  ;;  %v12002_v21 = vsub.f32 %v15317_v63, %v15315_v20  ;;  %v5231_v2 = vsel %vm4643_vm0, %v4620_v46, 0  ;;  %v12015_v34 = vand.u32 4294901760, %v4645_v40  ;;  %v15341_v46 = vld [vmem:[#allocation32_spill] sm:$0xff]  ;;  %v15342_v58 = vld [vmem:[#allocation58_spill] sm:$0xff] }
 0x2bb   :  { %v12009_v49 = vsub.f32 %v15322_v48, %v15320_v25  ;;  %v4440_v26 = vadd.f32 %v4432_v5, %v4392_v24  ;;  %v4441_v56 = vadd.f32 %v4433_v54, %v4393_v45  ;;  %v12017_v6 = vand.u32 4294901760, %v5231_v2  ;;  %v15343_v20 = vld [vmem:[#allocation56_spill] sm:$0xff] }
 0x2bc   :  { %15314 = vst [vmem:[#allocation61_spill] sm:$0xff] %v11997_v17  ;;  %15318 = vst [vmem:[#allocation13_spill] sm:$0xff] %v12002_v21  ;;  %v14980_v7 = vand.u32 4294901760, %v11997_v17  ;;  %v14979_v57 = vand.u32 4294901760, %v12002_v21  ;;  %v4144_v8 = vmax.f32 %v3704_v50, %v4104_v38  ;;  %v4145_v32 = vmax.f32 %v3705_v59, %v4105_v27  ;;  %v15328_v50 = vld [vmem:[#allocation46_spill] sm:$0xff] }
 0x2bd   :  { %15323 = vst [vmem:[#allocation57_spill] sm:$0xff] %v12009_v49  ;;  %15324 = vst [vmem:[#allocation14_spill] sm:$0xff] %v12015_v34  ;;  %v4488_v1 = vadd.f32 %v4480_v0, %v4440_v26  ;;  %v4489_v29 = vadd.f32 %v4481_v53, %v4441_v56  ;;  %v12029_v41 = vsub.f32 %v4645_v40, %v12015_v34  ;;  %v4648_v60 = vsel %vm4643_vm0, %v6698_v11, 0  ;;  %v15333_v0 = vld [vmem:[#allocation23_spill] sm:$0xff]  ;;  %v15334_v53 = vld [vmem:[#allocation28_spill] sm:$0xff] }
 0x2be   :  { %15325 = vst [vmem:[#allocation62_spill] sm:$0xff] %v12017_v6  ;;  %v4747_v37 = vsub.f32 %v11997_v17, %v14980_v7  ;;  %v4754_v62 = vsub.f32 %v12002_v21, %v14979_v57  ;;  %v12032_v28 = vsub.f32 %v5231_v2, %v12017_v6  ;;  %v15329_v59 = vmax.f32 %v15328_v50, 0.0  ;;  %v15347_v40 = vld [vmem:[#allocation59_spill] sm:$0xff] }
 0x2bf   :  { %v4544_v23 = vadd.f32 %v4536_v33, %v4488_v1  ;;  %v4545_v43 = vadd.f32 %v4537_v19, %v4489_v29  ;;  %v14982_v22 = vand.u32 4294901760, %v12029_v41  ;;  %v12045_v15 = vand.u32 4294901760, %v4648_v60  ;;  %v15348_v2 = vld [vmem:[#allocation31_spill] sm:$0xff] }
 0x2c0   :  { %15326 = vst [vmem:[#allocation16_spill] sm:$0xff] %v12032_v28  ;;  %v4748_v44 = vand.u32 4294901760, %v4747_v37  ;;  %v4755_v35 = vand.u32 4294901760, %v4754_v62  ;;  %v14972_v10 = vand.u32 4294901760, %v12032_v28  ;;  %v12043_v3 = vsub.f32 %v15329_v59, %v15327_v9  ;;  %v7664_v28 = vld [vmem:[%s14697_s0 + $0x1] sm:$0xff] }
 0x2c1   :  { %15331 = vst [vmem:[#allocation37_spill] sm:$0xff] %v12045_v15  ;;  %v5234_v47 = vsel %vm4643_vm0, %v4621_v18, 0  ;;  %v4584_v61 = vmax.f32 %v4144_v8, %v4544_v23  ;;  %v4585_v31 = vmax.f32 %v4145_v32, %v4545_v43  ;;  %v4726_v36 = vsub.f32 %v12029_v41, %v14982_v22  ;;  %v15351_v18 = vld [vmem:[#allocation52_spill] sm:$0xff] }
 0x2c2   :  { %v7240_v42 = vpack.c.bf16 %v4755_v35, %v4748_v44  ;;  %15330 = vst [vmem:[#allocation36_spill] sm:$0xff] %v12043_v3  ;;  %7069 = vmatprep.mubr.f32.mxu0 %v14972_v10  ;;  %v14971_v16 = vand.u32 4294901760, %v12009_v49  ;;  %v12055_v5 = vsub.f32 %v4648_v60, %v12045_v15  ;;  %v12057_v54 = vand.u32 4294901760, %v5234_v47  ;;  %v15352_v44 = vld [vmem:[#allocation43_spill] sm:$0xff] }
 0x2c3   :  { %v15335_v38 = vmax.f32 %v15334_v53, 0.0  ;;  %v15339_v33 = vmax.f32 %v15338_v14, 0.0  ;;  %v4610_v27 = vadd.f32 %v15341_v46, %v4584_v61  ;;  %v4611_v30 = vadd.f32 %v15341_v46, %v4585_v31  ;;  %v15356_v31 = vld [vmem:[#allocation47_spill] sm:$0xff]  ;;  %v15360_v14 = vld [vmem:[#allocation68_spill] sm:$0xff] }
 0x2c4   :  { %7241 = vmatprep.subr.bf16.mxu1 %v7240_v42  ;;  %15332 = vst [vmem:[#allocation64_spill] sm:$0xff] %v12057_v54  ;;  %v4727_v13 = vand.u32 4294901760, %v4726_v36  ;;  %v15344_v55 = vmax.f32 %v15343_v20, 0.0  ;;  %v14970_v24 = vand.u32 4294901760, %v12043_v3  ;;  %v14981_v45 = vand.u32 4294901760, %v12055_v5  ;;  %v15357_v36 = vld [vmem:[#allocation44_spill] sm:$0xff] }
 0x2c5   :  { %v12062_v39 = vsub.f32 %v15335_v38, %v15333_v0  ;;  %v12067_v51 = vsub.f32 %v15339_v33, %v15337_v52  ;;  %v4618_v25 = vmax.f32 %v4610_v27, 0.0  ;;  %v4619_v12 = vmax.f32 %v4611_v30, 0.0  ;;  %v15361_v33 = vld [vmem:[#allocation67_spill] sm:$0xff]  ;;  %v15364_v30 = vld [vmem:[#allocation18_spill] sm:$0xff] }
 0x2c6   :  { %v12074_v63 = vsub.f32 %v15344_v55, %v15342_v58  ;;  %6898 = vmatprep.mubr.f32.mxu1 %v4727_v13  ;;  %v12081_v48 = vsub.f32 %v5234_v47, %v12057_v54  ;;  %v15349_v26 = vmax.f32 %v15348_v2, 0.0  ;;  %v4736_v11 = vsub.f32 %v12055_v5, %v14981_v45  ;;  %v15365_v13 = vld [vmem:[#allocation51_spill] sm:$0xff]  ;;  %v15368_v2 = vld [vmem:[#allocation12_spill] sm:$0xff]  ;;  %v12323_v45 = vld [vmem:[%s14697_s0 + $0x360] sm:$0xff] }
 0x2c7   :  { %15336 = vst [vmem:[#allocation65_spill] sm:$0xff] %v12062_v39  ;;  %15340 = vst [vmem:[#allocation66_spill] sm:$0xff] %v12067_v51  ;;  %v14978_v4 = vand.u32 4294901760, %v12062_v39  ;;  %v14977_v19 = vand.u32 4294901760, %v12067_v51  ;;  %v5255_v62 = vand.u32 4294901760, %v4618_v25  ;;  %v5258_v1 = vand.u32 4294901760, %v4619_v12 }
 0x2c8   :  { %15345 = vst [vmem:[#allocation17_spill] sm:$0xff] %v12074_v63  ;;  %15346 = vst [vmem:[#allocation38_spill] sm:$0xff] %v12081_v48  ;;  %v12086_v56 = vsub.f32 %v15349_v26, %v15347_v40  ;;  %v14969_v37 = vand.u32 4294901760, %v12074_v63  ;;  %v15353_v35 = vmax.f32 %v15352_v44, 0.0  ;;  %v7384_v23 = vpack.c.bf16 %v14970_v24, %v14971_v16  ;;  %v15369_v26 = vld [vmem:[#allocation54_spill] sm:$0xff] }
 0x2c9   :  { %v4761_v8 = vsub.f32 %v12062_v39, %v14978_v4  ;;  %v4768_v32 = vsub.f32 %v12067_v51, %v14977_v19  ;;  %v4737_v43 = vand.u32 4294901760, %v4736_v11  ;;  %v12110_v59 = vpack.c.bf16 %v5258_v1, %v5255_v62 }
 0x2ca   :  { %15350 = vst [vmem:[#allocation15_spill] sm:$0xff] %v12086_v56  ;;  %v14968_v29 = vand.u32 4294901760, %v12086_v56  ;;  %v12102_v60 = vsub.f32 %v15353_v35, %v15351_v18  ;;  %v14967_v47 = vand.u32 4294901760, %v12081_v48  ;;  %v15358_v0 = vmax.f32 %v15357_v36, 0.0  ;;  %v15373_v18 = vld [vmem:[#allocation34_spill] sm:$0xff] }
 0x2cb   :  { %v4762_v9 = vand.u32 4294901760, %v4761_v8  ;;  %v4769_v50 = vand.u32 4294901760, %v4768_v32  ;;  %15355 = vst [vmem:[#allocation22_spill] sm:$0xff] %v12110_v59  ;;  %6899 = vmatmul.mubr.f32.vlgmr.msra.gmra.mrb[0].mxu1 %v4737_v43  ;;  %v15362_v46 = vmax.f32 %v15361_v33, 0.0  ;;  %v15366_v58 = vmax.f32 %v15365_v13, 0.0  ;;  %7381 = vmatprep.subr.bf16.mxu0 %v12110_v59  ;;  %v15372_v32 = vld [vmem:[#allocation55_spill] sm:$0xff] }
 0x2cc   :  { %15354 = vst [vmem:[#allocation21_spill] sm:$0xff] %v12102_v60  ;;  %v14976_v61 = vand.u32 4294901760, %v12102_v60  ;;  %v12117_v53 = vsub.f32 %v15358_v0, %v15356_v31  ;;  %v12125_v52 = vpack.c.bf16 %v14968_v29, %v14969_v37  ;;  %7243 = vmatpush3.bf16.msra.mxu1 %v7240_v42  ;;  %v15370_v11 = vmax.f32 %v15369_v26, 0.0  ;;  %7383 = vmatpush3.bf16.msra.mxu0 %v12110_v59  ;;  %v12271_v29 = vld [vmem:[%s14697_s0 + $0x1b0] sm:$0xff] }
 0x2cd   :  { %v7244_v38 = vpack.c.bf16 %v4769_v50, %v4762_v9  ;;  %v12130_v27 = vsub.f32 %v15362_v46, %v15360_v14  ;;  %v12135_v20 = vsub.f32 %v15366_v58, %v15364_v30  ;;  %v15374_v44 = vmax.f32 %v15373_v18, 0.0  ;;  %7385 = vmatprep.subr.bf16.mxu0 %v7384_v23  ;;  %6917 = vmatprep.mubr.f32.mxu1 %v12015_v34 }
 0x2ce   :  { %15359 = vst [vmem:[#allocation24_spill] sm:$0xff] %v12117_v53  ;;  %v4775_v55 = vsub.f32 %v12102_v60, %v14976_v61  ;;  %v14975_v40 = vand.u32 4294901760, %v12117_v53  ;;  %v12149_v8 = vsub.f32 %v15370_v11, %v15368_v2  ;;  %v12159_v9 = vsub.f32 %v4618_v25, %v5255_v62  ;;  %v12299_v61 = vld [vmem:[%s14697_s0 + $0x250] sm:$0xff] }
 0x2cf   :  { %15363 = vst [vmem:[#allocation25_spill] sm:$0xff] %v12130_v27  ;;  %15367 = vst [vmem:[#allocation26_spill] sm:$0xff] %v12135_v20  ;;  %v12154_v35 = vsub.f32 %v15374_v44, %v15372_v32  ;;  %7245 = vmatprep.subr.bf16.mxu1 %v7244_v38  ;;  %v14966_v42 = vand.u32 4294901760, %v12130_v27  ;;  %v14965_v43 = vand.u32 4294901760, %v12135_v20  ;;  %v12161_v50 = vsub.f32 %v4619_v12, %v5258_v1  ;;  %v7646_v32 = vld [vmem:[%s14697_s0] sm:$0xff]  ;;  %v12229_v44 = vld [vmem:[%s14697_s0 + $0x10] sm:$0xff] }
 0x2d0   :  { %15371 = vst [vmem:[#allocation29_spill] sm:$0xff] %v12149_v8  ;;  %15376 = vst [vmem:[#allocation63_spill] sm:$0xff] %v12159_v9  ;;  %v4776_v31 = vand.u32 4294901760, %v4775_v55  ;;  %v4782_v36 = vsub.f32 %v12117_v53, %v14975_v40  ;;  %v14974_v0 = vand.u32 4294901760, %v12149_v8  ;;  %v14964_v12 = vand.u32 4294901760, %v12159_v9  ;;  %7070 = vmatmul.mubr.f32.vlgmr.msra.gmra.mrb[0].mxu0 %v14967_v47  ;;  %7247 = vmatpush3.bf16.msra.mxu1 %v7244_v38 }
 0x2d1   :  { %15375 = vst [vmem:[#allocation69_spill] sm:$0xff] %v12154_v35  ;;  %15377 = vst [vmem:[#allocation19_spill] sm:$0xff] %v12161_v50  ;;  %v14973_v14 = vand.u32 4294901760, %v12154_v35  ;;  %v12177_v25 = vpack.c.bf16 %v14965_v43, %v14966_v42  ;;  %v14963_v62 = vand.u32 4294901760, %v12161_v50  ;;  %v12183_v1 = vpack.c.bf16 %v12002_v21, %v11997_v17  ;;  %7387 = vmatpush3.bf16.msra.mxu0 %v7384_v23  ;;  %v12256_v42 = vld [vmem:[%s14697_s0 + $0x120] sm:$0xff]  ;;  %v12330_v50 = vld [vmem:[%s14697_s0 + $0x370] sm:$0xff] }
 0x2d2   :  { %v4783_v33 = vand.u32 4294901760, %v4782_v36  ;;  %v4789_v46 = vsub.f32 %v12149_v8, %v14974_v0  ;;  %v12197_v13 = vpack.c.bf16 %v12067_v51, %v12062_v39  ;;  %7088 = vmatprep.mubr.f32.mxu0 %v12017_v6  ;;  %v12208_v58 = vpack.c.bf16 %v12117_v53, %v12102_v60  ;;  %7389 = vmatprep.subr.bf16.mxu0 %v12125_v52 }
 0x2d3   :  { %v4796_v30 = vsub.f32 %v12154_v35, %v14973_v14  ;;  %v12203_v38 = vpack.c.bf16 %v14963_v62, %v14964_v12  ;;  %v12212_v55 = vpack.c.bf16 %v12154_v35, %v12149_v8  ;;  %v12215_v23 = vstv %s12108_s10  ;;  %v12289_v14 = vld [vmem:[%s14697_s0 + $0x240] sm:$0xff] }
 0x2d4   :  { %v7248_v2 = vpack.c.bf16 %v4783_v33, %v4776_v31  ;;  %v4790_v26 = vand.u32 4294901760, %v4789_v46  ;;  %v514_v18 = vmul.f32 %v7646_v32, %v12215_v23  ;;  %v515_v36 = vmul.f32 %v12229_v44, %v12215_v23  ;;  %v7648_v46 = vld [vmem:[%s14697_s0 + $0x90] sm:$0xff]  ;;  %v12249_v32 = vld [vmem:[%s14697_s0 + $0xa0] sm:$0xff] }
 0x2d5   :  { %v4797_v11 = vand.u32 4294901760, %v4796_v30  ;;  %v12234_v62 = vstv %s12119_s11  ;;  %v12237_v12 = vstv %s12137_s12  ;;  %v12240_v31 = vstv %s12139_s13  ;;  %7391 = vmatpush3.bf16.msra.mxu0 %v12125_v52  ;;  %v12278_v52 = vld [vmem:[%s14697_s0 + $0x1c0] sm:$0xff] }
 0x2d6   :  { %7249 = vmatprep.subr.bf16.mxu1 %v7248_v2  ;;  %v568_v30 = vmul.f32 %v7648_v46, %v12234_v62  ;;  %v569_v43 = vmul.f32 %v12249_v32, %v12234_v62  ;;  %v692_v37 = vmul.f32 %v12271_v29, %v12240_v31  ;;  %15378 = vst [vmem:[#allocation39_spill] sm:$0xff] %v12278_v52  ;;  %v12283_v24 = vstv %s12163_s15 }
 0x2d7   :  { %v7252_v33 = vpack.c.bf16 %v4797_v11, %v4790_v26  ;;  %v630_v26 = vmul.f32 %v12256_v42, %v12237_v12  ;;  %7251 = vmatpush3.bf16.msra.mxu1 %v7248_v2  ;;  %v12264_v11 = vld [vmem:[%s14697_s0 + $0x130] sm:$0xff]  ;;  %v693_v2 = vmul.f32 %v12278_v52, %v12240_v31  ;;  %7393 = vmatprep.subr.bf16.mxu0 %v12177_v25  ;;  %v12294_v40 = vstv %s12171_s16 }
 0x2d8   :  { %v631_v47 = vmul.f32 %v12264_v11, %v12237_v12  ;;  %v576_v16 = vadd.f32 %v568_v30, %v514_v18  ;;  %v577_v10 = vadd.f32 %v569_v43, %v515_v36  ;;  %v754_v0 = vmul.f32 %v12289_v14, %v12283_v24  ;;  %v12306_v18 = vld [vmem:[%s14697_s0 + $0x2d0] sm:$0xff]  ;;  %v12313_v30 = vld [vmem:[%s14697_s0 + $0x2e0] sm:$0xff] }
 0x2d9   :  { %7253 = vmatprep.subr.bf16.mxu1 %v7252_v33  ;;  %v755_v43 = vmul.f32 %v12299_v61, %v12283_v24  ;;  %v816_v36 = vmul.f32 %v12306_v18, %v12294_v40  ;;  %v817_v19 = vmul.f32 %v12313_v30, %v12294_v40  ;;  %v12318_v4 = vstv %s12185_s18  ;;  %7395 = vmatpush3.bf16.msra.mxu0 %v12177_v25  ;;  %v12349_v25 = vld [vmem:[%s14697_s0 + $0x3f0] sm:$0xff] }
 0x2da   :  { %v638_v57 = vadd.f32 %v630_v26, %v576_v16  ;;  %v639_v7 = vadd.f32 %v631_v47, %v577_v10  ;;  %v878_v22 = vmul.f32 %v12323_v45, %v12318_v4  ;;  %v879_v9 = vmul.f32 %v12330_v50, %v12318_v4  ;;  %7397 = vmatprep.subr.bf16.mxu0 %v12203_v38 }
 0x2db   :  { %7255 = vmatpush3.bf16.msra.mxu1 %v7252_v33  ;;  %v12336_v10 = vstv %s12217_s19  ;;  %v12339_v16 = vstv %s12219_s20  ;;  %v1034_v47 = vmul.f32 %v7648_v46, %v12215_v23  ;;  %v1035_v26 = vmul.f32 %v12249_v32, %v12215_v23  ;;  %v12356_v46 = vld [vmem:[%s14697_s0 + $0x400] sm:$0xff] }
 0x2dc   :  { %7257 = vmatprep.subr.bf16.mxu1 %v12183_v1  ;;  %v700_v20 = vadd.f32 %v692_v37, %v638_v57  ;;  %v701_v27 = vadd.f32 %v693_v2, %v639_v7  ;;  %v940_v33 = vmul.f32 %v12349_v25, %v12336_v10  ;;  %v941_v48 = vmul.f32 %v12356_v46, %v12336_v10  ;;  %v12363_v7 = vld [vmem:[%s14697_s0 + $0x480] sm:$0xff]  ;;  %v12370_v37 = vld [vmem:[%s14697_s0 + $0x490] sm:$0xff] }
 0x2dd   :  { %v1002_v57 = vmul.f32 %v12363_v7, %v12339_v16  ;;  %v1003_v2 = vmul.f32 %v12370_v37, %v12339_v16  ;;  %v1074_v56 = vmul.f32 %v12256_v42, %v12234_v62  ;;  %v1075_v49 = vmul.f32 %v12264_v11, %v12234_v62  ;;  %7399 = vmatpush3.bf16.msra.mxu0 %v12203_v38 }
 0x2de   :  { %6918 = vmatmul.mubr.f32.vlgmr.msra.gmra.mrb[0].mxu1 %v12045_v15  ;;  %v762_v63 = vadd.f32 %v754_v0, %v700_v20  ;;  %v763_v3 = vadd.f32 %v755_v43, %v701_v27  ;;  %v1130_v35 = vmul.f32 %v7664_v28, %v12237_v12  ;;  %v12388_v15 = vld [vmem:[%s14697_s0 + $0x11] sm:$0xff]  ;;  %v1178_v20 = vmul.f32 %v12289_v14, %v12240_v31  ;;  %v15379_v0 = vld [vmem:[#allocation50_spill] sm:$0xff] }
 0x2df   :  { %7259 = vmatpush3.bf16.msra.mxu1 %v12183_v1  ;;  %v1082_v8 = vadd.f32 %v1074_v56, %v1034_v47  ;;  %v1131_v27 = vmul.f32 %v12388_v15, %v12237_v12  ;;  %7401 = vmatprep.subr.bf16.mxu0 %v15379_v0  ;;  %v1083_v53 = vadd.f32 %v1075_v49, %v1035_v26  ;;  %v12407_v49 = vld [vmem:[%s14697_s0 + $0x1b1] sm:$0xff] }
 0x2e0   :  { %7261 = vmatprep.subr.bf16.mxu1 %v12197_v13  ;;  %v824_v43 = vadd.f32 %v816_v36, %v762_v63  ;;  %v825_v38 = vadd.f32 %v817_v19, %v763_v3  ;;  %6936 = vmatprep.mubr.f32.mxu1 %v12029_v41  ;;  %v1179_v1 = vmul.f32 %v12299_v61, %v12240_v31  ;;  %v12416_v19 = vld [vmem:[%s14697_s0 + $0x1c1] sm:$0xff] }
 0x2e1   :  { %v1138_v56 = vadd.f32 %v1130_v35, %v1082_v8  ;;  %v1226_v47 = vmul.f32 %v12306_v18, %v12283_v24  ;;  %v1227_v60 = vmul.f32 %v12313_v30, %v12283_v24  ;;  %7089 = vmatmul.mubr.f32.vlgmr.msra.gmra.mrb[0].mxu0 %v12057_v54  ;;  %v1139_v21 = vadd.f32 %v1131_v27, %v1083_v53  ;;  %v15380_v8 = vld [vmem:[#allocation60_spill] sm:$0xff] }
 0x2e2   :  { %v886_v51 = vadd.f32 %v878_v22, %v824_v43  ;;  %v887_v39 = vadd.f32 %v879_v9, %v825_v38  ;;  %v1282_v3 = vmul.f32 %v12407_v49, %v12294_v40  ;;  %7403 = vmatpush3.bf16.msra.mxu0 %v15379_v0  ;;  %v1283_v22 = vmul.f32 %v12416_v19, %v12294_v40 }
 0x2e3   :  { %7263 = vmatpush3.bf16.msra.mxu1 %v12197_v13  ;;  %v1186_v63 = vadd.f32 %v1178_v20, %v1138_v56  ;;  %v1330_v53 = vmul.f32 %v12349_v25, %v12318_v4  ;;  %7405 = vmatprep.subr.bf16.mxu0 %v15380_v8  ;;  %v1187_v36 = vadd.f32 %v1179_v1, %v1139_v21  ;;  %v12440_v21 = vld [vmem:[%s14697_s0 + $0x361] sm:$0xff] }
 0x2e4   :  { %7265 = vmatprep.subr.bf16.mxu1 %v12208_v58  ;;  %v948_v35 = vadd.f32 %v940_v33, %v886_v51  ;;  %v949_v9 = vadd.f32 %v941_v48, %v887_v39  ;;  %7107 = vmatprep.mubr.f32.mxu0 %v12017_v6  ;;  %v1331_v26 = vmul.f32 %v12356_v46, %v12318_v4  ;;  %v12449_v33 = vld [vmem:[%s14697_s0 + $0x371] sm:$0xff] }
 0x2e5   :  { %v1234_v13 = vadd.f32 %v1226_v47, %v1186_v63  ;;  %v1378_v27 = vmul.f32 %v12363_v7, %v12336_v10  ;;  %v1379_v20 = vmul.f32 %v12370_v37, %v12336_v10  ;;  %v1235_v39 = vadd.f32 %v1227_v60, %v1187_v36  ;;  %v7670_v63 = vld [vmem:[%s14697_s0 + $0x91] sm:$0xff] }
 0x2e6   :  { %v12433_v43 = vadd.f32 %v1002_v57, %v948_v35  ;;  %v12435_v38 = vadd.f32 %v1003_v2, %v949_v9  ;;  %v1434_v51 = vmul.f32 %v12440_v21, %v12339_v16  ;;  %7407 = vmatpush3.bf16.msra.mxu0 %v15380_v8  ;;  %v1435_v60 = vmul.f32 %v12449_v33, %v12339_v16  ;;  %v15381_v2 = vld [vmem:[#allocation20_spill] sm:$0xff]  ;;  %v12469_v35 = vld [vmem:[%s14697_s0 + $0xa1] sm:$0xff] }
 0x2e7   :  { %7267 = vmatpush3.bf16.msra.mxu1 %v12208_v58  ;;  %v1290_v48 = vadd.f32 %v1282_v3, %v1234_v13  ;;  %v1490_v57 = vmul.f32 %v12256_v42, %v12215_v23  ;;  %7409 = vmatprep.subr.bf16.mxu0 %v15381_v2  ;;  %v1291_v56 = vadd.f32 %v1283_v22, %v1235_v39 }
 0x2e8   :  { %7269 = vmatprep.subr.bf16.mxu1 %v12212_v55  ;;  %v1491_v58 = vmul.f32 %v12264_v11, %v12215_v23  ;;  %v1530_v1 = vmul.f32 %v7664_v28, %v12234_v62  ;;  %v1531_v3 = vmul.f32 %v12388_v15, %v12234_v62  ;;  %v1586_v42 = vmul.f32 %v7670_v63, %v12237_v12  ;;  %v15382_v63 = vld [vmem:[#allocation42_spill] sm:$0xff] }
 0x2e9   :  { %v1338_v47 = vadd.f32 %v1330_v53, %v1290_v48  ;;  %v1587_v22 = vmul.f32 %v12469_v35, %v12237_v12  ;;  %v1339_v28 = vadd.f32 %v1331_v26, %v1291_v56  ;;  %v1634_v9 = vmul.f32 %v12306_v18, %v12240_v31 }
 0x2ea   :  { %v1538_v53 = vadd.f32 %v1530_v1, %v1490_v57  ;;  %v1635_v36 = vmul.f32 %v12313_v30, %v12240_v31  ;;  %7411 = vmatpush3.bf16.msra.mxu0 %v15381_v2  ;;  %v1539_v39 = vadd.f32 %v1531_v3, %v1491_v58  ;;  %v1682_v48 = vmul.f32 %v12407_v49, %v12283_v24 }
 0x2eb   :  { %7271 = vmatpush3.bf16.msra.mxu1 %v12212_v55  ;;  %v1386_v13 = vadd.f32 %v1378_v27, %v1338_v47  ;;  %7413 = vmatprep.subr.bf16.mxu0 %v12110_v59  ;;  %v1387_v26 = vadd.f32 %v1379_v20, %v1339_v28  ;;  %v1683_v56 = vmul.f32 %v12416_v19, %v12283_v24  ;;  %v12486_v1 = vstv %s12424_s9  ;;  %v12493_v55 = vld [vmem:[%s14697_s0 + $0x241] sm:$0xff]  ;;  %v12500_v20 = vld [vmem:[%s14697_s0 + $0x251] sm:$0xff] }
 0x2ec   :  { %7273 = vmatprep.subr.bf16.mxu1 %v15382_v63  ;;  %v1594_v57 = vadd.f32 %v1586_v42, %v1538_v53  ;;  %15383 = vst [vmem:[#allocation41_spill] sm:$0xff] %v12486_v1  ;;  %v1595_v2 = vadd.f32 %v1587_v22, %v1539_v39  ;;  %v1738_v27 = vmul.f32 %v12493_v55, %v12294_v40  ;;  %v12523_v39 = vld [vmem:[%s14697_s0 + $0x3f1] sm:$0xff] }
 0x2ed   :  { %v12488_v6 = vadd.f32 %v1434_v51, %v1386_v13  ;;  %v1739_v58 = vmul.f32 %v12500_v20, %v12294_v40  ;;  %v12504_v47 = vadd.f32 %v1435_v60, %v1387_v26  ;;  %v1786_v3 = vmul.f32 %v12363_v7, %v12318_v4 }
 0x2ee   :  { %v1642_v51 = vadd.f32 %v1634_v9, %v1594_v57  ;;  %v1787_v42 = vmul.f32 %v12370_v37, %v12318_v4  ;;  %6937 = vmatmul.mubr.f32.vlgmr.msra.gmra.mrb[0].mxu1 %v12055_v5  ;;  %7415 = vmatpush3.bf16.msra.mxu0 %v12110_v59  ;;  %v1643_v28 = vadd.f32 %v1635_v36, %v1595_v2  ;;  %v15384_v57 = vld [vmem:[#allocation27_spill] sm:$0xff] }
 0x2ef   :  { %v1466_v22 = vmax.f32 %v12433_v43, %v12488_v6  ;;  %v1834_v53 = vmul.f32 %v12440_v21, %v12336_v10  ;;  %v1835_v60 = vmul.f32 %v12449_v33, %v12336_v10  ;;  %v1467_v9 = vmax.f32 %v12435_v38, %v12504_v47  ;;  %v12530_v6 = vld [vmem:[%s14697_s0 + $0x401] sm:$0xff]  ;;  %7275 = vmatpush3.bf16.msra.mxu1 %v15382_v63 }
 0x2f0   :  { %v1690_v13 = vadd.f32 %v1682_v48, %v1642_v51  ;;  %v1890_v26 = vmul.f32 %v12523_v39, %v12339_v16  ;;  %v1891_v43 = vmul.f32 %v12530_v6, %v12339_v16  ;;  %v1691_v38 = vadd.f32 %v1683_v56, %v1643_v28  ;;  %7277 = vmatprep.subr.bf16.mxu1 %v15384_v57 }
 0x2f1   :  { %v1946_v2 = vmul.f32 %v12271_v29, %v12215_v23  ;;  %v1947_v36 = vmul.f32 %v12278_v52, %v12215_v23  ;;  %v1986_v48 = vmul.f32 %v12289_v14, %v12234_v62  ;;  %v1987_v51 = vmul.f32 %v12299_v61, %v12234_v62  ;;  %7108 = vmatmul.mubr.f32.vlgmr.msra.gmra.mrb[0].mxu0 %v12057_v54 }
 0x2f2   :  { %v1746_v47 = vadd.f32 %v1738_v27, %v1690_v13  ;;  %v2034_v59 = vmul.f32 %v12306_v18, %v12237_v12  ;;  %v2035_v56 = vmul.f32 %v12313_v30, %v12237_v12  ;;  %v1747_v29 = vadd.f32 %v1739_v58, %v1691_v38 }
 0x2f3   :  { %v1994_v28 = vadd.f32 %v1986_v48, %v1946_v2  ;;  %v2082_v8 = vmul.f32 %v12323_v45, %v12240_v31  ;;  %v2083_v0 = vmul.f32 %v12330_v50, %v12240_v31  ;;  %v15385_v27 = vand.u32 4294901760, %v12029_v41  ;;  %7279 = vmatpush3.bf16.msra.mxu1 %v15384_v57  ;;  %v15386_v41 = vld [vmem:[#allocation53_spill] sm:$0xff] }
 0x2f4   :  { %v1794_v13 = vadd.f32 %v1786_v3, %v1746_v47  ;;  %v1995_v63 = vadd.f32 %v1987_v51, %v1947_v36  ;;  %v2130_v17 = vmul.f32 %v12349_v25, %v12283_v24  ;;  %v2131_v1 = vmul.f32 %v12356_v46, %v12283_v24  ;;  %7281 = vmatprep.subr.bf16.mxu1 %v15386_v41  ;;  %v12570_v51 = vld [vmem:[%s14697_s0 + $0x20] sm:$0xff] }
 0x2f5   :  { %6955 = vmatprep.mubr.f32.mxu1 %v15385_v27  ;;  %v1795_v58 = vadd.f32 %v1787_v42, %v1747_v29  ;;  %v2042_v38 = vadd.f32 %v2034_v59, %v1994_v28  ;;  %v2178_v2 = vmul.f32 %v12363_v7, %v12294_v40  ;;  %v2179_v48 = vmul.f32 %v12370_v37, %v12294_v40 }
 0x2f6   :  { %v1842_v3 = vadd.f32 %v1834_v53, %v1794_v13  ;;  %v2043_v36 = vadd.f32 %v2035_v56, %v1995_v63  ;;  %v2234_v47 = vmul.f32 %v12229_v44, %v12318_v4  ;;  %v2235_v59 = vmul.f32 %v12570_v51, %v12318_v4  ;;  %v12579_v63 = vld [vmem:[%s14697_s0 + $0xb0] sm:$0xff] }
 0x2f7   :  { %v1843_v42 = vadd.f32 %v1835_v60, %v1795_v58  ;;  %v2090_v29 = vadd.f32 %v2082_v8, %v2042_v38  ;;  %v2290_v28 = vmul.f32 %v12249_v32, %v12336_v10  ;;  %v2291_v53 = vmul.f32 %v12579_v63, %v12336_v10  ;;  %v12588_v8 = vld [vmem:[%s14697_s0 + $0x140] sm:$0xff]  ;;  %7283 = vmatpush3.bf16.msra.mxu1 %v15386_v41 }
 0x2f8   :  { %v1898_v56 = vadd.f32 %v1890_v26, %v1842_v3  ;;  %v2091_v27 = vadd.f32 %v2083_v0, %v2043_v36  ;;  %v2346_v13 = vmul.f32 %v12264_v11, %v12339_v16  ;;  %v2347_v60 = vmul.f32 %v12588_v8, %v12339_v16  ;;  %v15387_v26 = vld [vmem:[#allocation35_spill] sm:$0xff] }
 0x2f9   :  { %v1899_v58 = vadd.f32 %v1891_v43, %v1843_v42  ;;  %v2138_v38 = vadd.f32 %v2130_v17, %v2090_v29  ;;  %v2402_v54 = vmul.f32 %v12289_v14, %v12215_v23  ;;  %v2403_v0 = vmul.f32 %v12299_v61, %v12215_v23  ;;  %7285 = vmatprep.subr.bf16.mxu1 %v15387_v26 }
 0x2fa   :  { %v12598_v3 = vmax.f32 %v1466_v22, %v1898_v56  ;;  %v2139_v36 = vadd.f32 %v2131_v1, %v2091_v27  ;;  %v2442_v57 = vmul.f32 %v12306_v18, %v12234_v62  ;;  %v2443_v52 = vmul.f32 %v12313_v30, %v12234_v62 }
 0x2fb   :  { %v12604_v41 = vmax.f32 %v1467_v9, %v1899_v58  ;;  %v2186_v17 = vadd.f32 %v2178_v2, %v2138_v38  ;;  %v2490_v14 = vmul.f32 %v12407_v49, %v12237_v12  ;;  %v2491_v43 = vmul.f32 %v12416_v19, %v12237_v12  ;;  %7287 = vmatpush3.bf16.msra.mxu1 %v15387_v26 }
 0x2fc   :  { %v2187_v42 = vadd.f32 %v2179_v48, %v2139_v36  ;;  %v2450_v29 = vadd.f32 %v2442_v57, %v2402_v54  ;;  %v2451_v22 = vadd.f32 %v2443_v52, %v2403_v0  ;;  %v2538_v1 = vmul.f32 %v12349_v25, %v12240_v31 }
 0x2fd   :  { %v2242_v56 = vadd.f32 %v2234_v47, %v2186_v17  ;;  %v2539_v9 = vmul.f32 %v12356_v46, %v12240_v31  ;;  %v2586_v2 = vmul.f32 %v12363_v7, %v12283_v24  ;;  %v2587_v27 = vmul.f32 %v12370_v37, %v12283_v24 }
 0x2fe   :  { %v2243_v58 = vadd.f32 %v2235_v59, %v2187_v42  ;;  %v2498_v38 = vadd.f32 %v2490_v14, %v2450_v29  ;;  %v2499_v48 = vadd.f32 %v2491_v43, %v2451_v22  ;;  %v2634_v54 = vmul.f32 %v12440_v21, %v12294_v40 }
 0x2ff   :  { %v2298_v52 = vadd.f32 %v2290_v28, %v2242_v56  ;;  %v2635_v57 = vmul.f32 %v12449_v33, %v12294_v40  ;;  %v2682_v47 = vmul.f32 %v12249_v32, %v12318_v4  ;;  %v2683_v0 = vmul.f32 %v12579_v63, %v12318_v4 }
 0x300   :  { %v15388_v36 = vand.u32 4294901760, %v12055_v5  ;;  %v2299_v17 = vadd.f32 %v2291_v53, %v2243_v58  ;;  %v2546_v59 = vadd.f32 %v2538_v1, %v2498_v38  ;;  %v2547_v14 = vadd.f32 %v2539_v9, %v2499_v48  ;;  %v12639_v5 = vld [vmem:[%s14697_s0 + $0x21] sm:$0xff] }
 0x301   :  { %v2730_v43 = vmul.f32 %v12264_v11, %v12336_v10  ;;  %v2354_v28 = vadd.f32 %v2346_v13, %v2298_v52  ;;  %v2731_v42 = vmul.f32 %v12588_v8, %v12336_v10  ;;  %v2786_v29 = vmul.f32 %v12388_v15, %v12339_v16 }
 0x302   :  { %6956 = vmatmul.mubr.f32.vlgmr.msra.gmra.mrb[0].mxu1 %v15388_v36  ;;  %v2787_v53 = vmul.f32 %v12639_v5, %v12339_v16  ;;  %v2355_v22 = vadd.f32 %v2347_v60, %v2299_v17  ;;  %v2594_v1 = vadd.f32 %v2586_v2, %v2546_v59  ;;  %v2595_v56 = vadd.f32 %v2587_v27, %v2547_v14 }
 0x303   :  { %6974 = vmatprep.mubr.f32.mxu1 %v12015_v34  ;;  %v2842_v13 = vmul.f32 %v12306_v18, %v12215_v23  ;;  %v2378_v9 = vmax.f32 %v12598_v3, %v2354_v28  ;;  %v2843_v58 = vmul.f32 %v12313_v30, %v12215_v23  ;;  %v2882_v38 = vmul.f32 %v12407_v49, %v12234_v62 }
 0x304   :  { %v2883_v48 = vmul.f32 %v12416_v19, %v12234_v62  ;;  %v2379_v52 = vmax.f32 %v12604_v41, %v2355_v22  ;;  %v2642_v36 = vadd.f32 %v2634_v54, %v2594_v1  ;;  %v2643_v60 = vadd.f32 %v2635_v57, %v2595_v56 }
 0x305   :  { %v2930_v2 = vmul.f32 %v12493_v55, %v12237_v12  ;;  %v2890_v27 = vadd.f32 %v2882_v38, %v2842_v13  ;;  %v2931_v3 = vmul.f32 %v12500_v20, %v12237_v12  ;;  %v2978_v17 = vmul.f32 %v12363_v7, %v12240_v31 }
 0x306   :  { %v2891_v18 = vadd.f32 %v2883_v48, %v2843_v58  ;;  %v2690_v59 = vadd.f32 %v2682_v47, %v2642_v36  ;;  %v2691_v49 = vadd.f32 %v2683_v0, %v2643_v60  ;;  %v2979_v14 = vmul.f32 %v12370_v37, %v12240_v31 }
 0x307   :  { %v3026_v41 = vmul.f32 %v12440_v21, %v12283_v24  ;;  %v2938_v54 = vadd.f32 %v2930_v2, %v2890_v27  ;;  %v3027_v55 = vmul.f32 %v12449_v33, %v12283_v24  ;;  %v3074_v28 = vmul.f32 %v12523_v39, %v12294_v40  ;;  %v12682_v27 = vld [vmem:[%s14697_s0 + $0xb1] sm:$0xff] }
 0x308   :  { %v2939_v57 = vadd.f32 %v2931_v3, %v2891_v18  ;;  %v2738_v22 = vadd.f32 %v2730_v43, %v2690_v59  ;;  %v2739_v1 = vadd.f32 %v2731_v42, %v2691_v49  ;;  %v3075_v47 = vmul.f32 %v12530_v6, %v12294_v40 }
 0x309   :  { %v3122_v0 = vmul.f32 %v12264_v11, %v12318_v4  ;;  %v2986_v56 = vadd.f32 %v2978_v17, %v2938_v54  ;;  %v3123_v58 = vmul.f32 %v12588_v8, %v12318_v4  ;;  %v3170_v38 = vmul.f32 %v12388_v15, %v12336_v10 }
 0x30a   :  { %v2987_v13 = vadd.f32 %v2979_v14, %v2939_v57  ;;  %v2794_v48 = vadd.f32 %v2786_v29, %v2738_v22  ;;  %v2795_v36 = vadd.f32 %v2787_v53, %v2739_v1  ;;  %v3171_v43 = vmul.f32 %v12639_v5, %v12336_v10 }
 0x30b   :  { %v3226_v42 = vmul.f32 %v12469_v35, %v12339_v16  ;;  %v3034_v60 = vadd.f32 %v3026_v41, %v2986_v56  ;;  %v3227_v18 = vmul.f32 %v12682_v27, %v12339_v16  ;;  %v3282_v29 = vmul.f32 %v12323_v45, %v12215_v23 }
 0x30c   :  { %v3035_v2 = vadd.f32 %v3027_v55, %v2987_v13  ;;  %v12688_v53 = vmax.f32 %v2378_v9, %v2794_v48  ;;  %v12690_v3 = vmax.f32 %v2379_v52, %v2795_v36  ;;  %v3283_v17 = vmul.f32 %v12330_v50, %v12215_v23 }
 0x30d   :  { %v3322_v59 = vmul.f32 %v12349_v25, %v12234_v62  ;;  %v3082_v49 = vadd.f32 %v3074_v28, %v3034_v60  ;;  %v3323_v41 = vmul.f32 %v12356_v46, %v12234_v62  ;;  %v3370_v54 = vmul.f32 %v12363_v7, %v12237_v12  ;;  %v7681_v60 = vld [vmem:[%s14697_s0 + $0x1d0] sm:$0xff] }
 0x30e   :  { %v3083_v14 = vadd.f32 %v3075_v47, %v3035_v2  ;;  %v3371_v45 = vmul.f32 %v12370_v37, %v12237_v12  ;;  %v3418_v9 = vmul.f32 %v12229_v44, %v12240_v31  ;;  %v3419_v50 = vmul.f32 %v12570_v51, %v12240_v31  ;;  %v15389_v51 = vld [vmem:[#allocation39_spill] sm:$0xff] }
 0x30f   :  { %v3330_v57 = vadd.f32 %v3322_v59, %v3282_v29  ;;  %v3130_v52 = vadd.f32 %v3122_v0, %v3082_v49  ;;  %v3331_v28 = vadd.f32 %v3323_v41, %v3283_v17  ;;  %v3466_v22 = vmul.f32 %v12249_v32, %v12283_v24  ;;  %v7682_v17 = vld [vmem:[%s14697_s0 + $0x260] sm:$0xff] }
 0x310   :  { %v3131_v55 = vadd.f32 %v3123_v58, %v3083_v14  ;;  %v3467_v47 = vmul.f32 %v12579_v63, %v12283_v24  ;;  %v3514_v56 = vmul.f32 %v12264_v11, %v12294_v40  ;;  %v3515_v13 = vmul.f32 %v12588_v8, %v12294_v40 }
 0x311   :  { %v3378_v1 = vadd.f32 %v3370_v54, %v3330_v57  ;;  %v3178_v44 = vadd.f32 %v3170_v38, %v3130_v52  ;;  %v3379_v36 = vadd.f32 %v3371_v45, %v3331_v28  ;;  %v3570_v0 = vmul.f32 %v15389_v51, %v12318_v4  ;;  %v12731_v54 = vld [vmem:[%s14697_s0 + $0x2f0] sm:$0xff] }
 0x312   :  { %v3179_v48 = vadd.f32 %v3171_v43, %v3131_v55  ;;  %v3571_v2 = vmul.f32 %v7681_v60, %v12318_v4  ;;  %v3626_v29 = vmul.f32 %v12299_v61, %v12336_v10  ;;  %v3627_v38 = vmul.f32 %v7682_v17, %v12336_v10 }
 0x313   :  { %v3426_v58 = vadd.f32 %v3418_v9, %v3378_v1  ;;  %v3234_v43 = vadd.f32 %v3226_v42, %v3178_v44  ;;  %v3427_v49 = vadd.f32 %v3419_v50, %v3379_v36  ;;  %v3682_v14 = vmul.f32 %v12313_v30, %v12339_v16 }
 0x314   :  { %v3235_v59 = vadd.f32 %v3227_v18, %v3179_v48  ;;  %v3683_v57 = vmul.f32 %v12731_v54, %v12339_v16  ;;  %v3738_v45 = vmul.f32 %v12349_v25, %v12215_v23  ;;  %v3739_v42 = vmul.f32 %v12356_v46, %v12215_v23 }
 0x315   :  { %v3474_v41 = vadd.f32 %v3466_v22, %v3426_v58  ;;  %v3258_v18 = vmax.f32 %v12688_v53, %v3234_v43  ;;  %v3475_v50 = vadd.f32 %v3467_v47, %v3427_v49  ;;  %v3778_v52 = vmul.f32 %v12363_v7, %v12234_v62 }
 0x316   :  { %v3259_v9 = vmax.f32 %v12690_v3, %v3235_v59  ;;  %v3779_v28 = vmul.f32 %v12370_v37, %v12234_v62  ;;  %v3826_v22 = vmul.f32 %v12440_v21, %v12237_v12  ;;  %v3827_v25 = vmul.f32 %v12449_v33, %v12237_v12 }
 0x317   :  { %v3522_v55 = vadd.f32 %v3514_v56, %v3474_v41  ;;  %v3523_v1 = vadd.f32 %v3515_v13, %v3475_v50  ;;  %v3786_v46 = vadd.f32 %v3778_v52, %v3738_v45  ;;  %v3874_v53 = vmul.f32 %v12249_v32, %v12240_v31 }
 0x318   :  { %v3875_v3 = vmul.f32 %v12579_v63, %v12240_v31  ;;  %v3787_v44 = vadd.f32 %v3779_v28, %v3739_v42  ;;  %v3922_v56 = vmul.f32 %v12264_v11, %v12283_v24  ;;  %v3923_v48 = vmul.f32 %v12588_v8, %v12283_v24 }
 0x319   :  { %v3578_v47 = vadd.f32 %v3570_v0, %v3522_v55  ;;  %v3579_v36 = vadd.f32 %v3571_v2, %v3523_v1  ;;  %v3834_v51 = vadd.f32 %v3826_v22, %v3786_v46  ;;  %v3970_v13 = vmul.f32 %v12388_v15, %v12294_v40 }
 0x31a   :  { %v3971_v58 = vmul.f32 %v12639_v5, %v12294_v40  ;;  %v3835_v60 = vadd.f32 %v3827_v25, %v3787_v44  ;;  %v4018_v63 = vmul.f32 %v12299_v61, %v12318_v4  ;;  %v4019_v0 = vmul.f32 %v7682_v17, %v12318_v4 }
 0x31b   :  { %v3634_v32 = vadd.f32 %v3626_v29, %v3578_v47  ;;  %v3635_v43 = vadd.f32 %v3627_v38, %v3579_v36  ;;  %v3882_v59 = vadd.f32 %v3874_v53, %v3834_v51  ;;  %v4066_v49 = vmul.f32 %v12313_v30, %v12336_v10  ;;  %v7684_v29 = vld [vmem:[%s14697_s0 + $0x1d1] sm:$0xff] }
 0x31c   :  { %v4067_v2 = vmul.f32 %v12731_v54, %v12336_v10  ;;  %v3883_v45 = vadd.f32 %v3875_v3, %v3835_v60  ;;  %v4122_v42 = vmul.f32 %v12416_v19, %v12339_v16  ;;  %v4123_v61 = vmul.f32 %v7684_v29, %v12339_v16 }
 0x31d   :  { %v3690_v41 = vadd.f32 %v3682_v14, %v3634_v32  ;;  %v3691_v17 = vadd.f32 %v3683_v57, %v3635_v43  ;;  %v3930_v38 = vadd.f32 %v3922_v56, %v3882_v59  ;;  %v4178_v50 = vmul.f32 %v12363_v7, %v12215_v23  ;;  %v7688_v59 = vld [vmem:[%s14697_s0 + $0xb0] sm:$0xff] }
 0x31e   :  { %v4179_v52 = vmul.f32 %v12370_v37, %v12215_v23  ;;  %v3931_v14 = vadd.f32 %v3923_v48, %v3883_v45  ;;  %v4218_v28 = vmul.f32 %v12440_v21, %v12234_v62  ;;  %v4219_v22 = vmul.f32 %v12449_v33, %v12234_v62 }
 0x31f   :  { %v12778_v55 = vmax.f32 %v3258_v18, %v3690_v41  ;;  %v12784_v25 = vmax.f32 %v3259_v9, %v3691_v17  ;;  %v3978_v1 = vadd.f32 %v3970_v13, %v3930_v38  ;;  %v4266_v57 = vmul.f32 %v12523_v39, %v12237_v12 }
 0x320   :  { %v4267_v7 = vmul.f32 %v12530_v6, %v12237_v12  ;;  %v3979_v46 = vadd.f32 %v3971_v58, %v3931_v14  ;;  %v4226_v37 = vadd.f32 %v4218_v28, %v4178_v50  ;;  %v4227_v18 = vadd.f32 %v4219_v22, %v4179_v52  ;;  %v12852_v52 = vld [vmem:[%s14697_s0 + $0x150] sm:$0xff] }
 0x321   :  { %v4314_v53 = vmul.f32 %v12264_v11, %v12240_v31  ;;  %v4026_v3 = vadd.f32 %v4018_v63, %v3978_v1  ;;  %v4315_v21 = vmul.f32 %v12588_v8, %v12240_v31  ;;  %v4362_v33 = vmul.f32 %v12388_v15, %v12283_v24  ;;  %v12859_v14 = vld [vmem:[%s14697_s0 + $0x1d0] sm:$0xff]  ;;  %v12866_v1 = vld [vmem:[%s14697_s0 + $0x1e0] sm:$0xff] }
 0x322   :  { %v4363_v9 = vmul.f32 %v12639_v5, %v12283_v24  ;;  %v4027_v39 = vadd.f32 %v4019_v0, %v3979_v46  ;;  %v4274_v47 = vadd.f32 %v4266_v57, %v4226_v37  ;;  %v4275_v44 = vadd.f32 %v4267_v7, %v4227_v18  ;;  %v12873_v7 = vld [vmem:[%s14697_s0 + $0x260] sm:$0xff] }
 0x323   :  { %v4410_v6 = vmul.f32 %v12469_v35, %v12294_v40  ;;  %v4074_v56 = vadd.f32 %v4066_v49, %v4026_v3  ;;  %v4411_v11 = vmul.f32 %v12682_v27, %v12294_v40  ;;  %v4458_v48 = vmul.f32 %v12313_v30, %v12318_v4  ;;  %v7685_v30 = vld [vmem:[%s14697_s0 + $0x261] sm:$0xff] }
 0x324   :  { %v4459_v8 = vmul.f32 %v12731_v54, %v12318_v4  ;;  %v4075_v15 = vadd.f32 %v4067_v2, %v4027_v39  ;;  %v4322_v36 = vadd.f32 %v4314_v53, %v4274_v47  ;;  %v4323_v51 = vadd.f32 %v4315_v21, %v4275_v44  ;;  %v12837_v2 = vld [vmem:[%s14697_s0 + $0xc0] sm:$0xff]  ;;  %v12880_v53 = vld [vmem:[%s14697_s0 + $0x270] sm:$0xff] }
 0x325   :  { %v4506_v5 = vmul.f32 %v12416_v19, %v12336_v10  ;;  %v12808_v13 = vadd.f32 %v4122_v42, %v4074_v56  ;;  %v4507_v35 = vmul.f32 %v7684_v29, %v12336_v10  ;;  %v4562_v58 = vmul.f32 %v12500_v20, %v12339_v16  ;;  %v7686_v19 = vld [vmem:[%s14697_s0 + $0x20] sm:$0xff]  ;;  %v12826_v20 = vld [vmem:[%s14697_s0 + $0x30] sm:$0xff]  ;;  %15390 = vst [vmem:[#allocation40_spill] sm:$0xff] %v12880_v53 }
 0x326   :  { %v4563_v27 = vmul.f32 %v7685_v30, %v12339_v16  ;;  %v4131_v54 = vadd.f32 %v4123_v61, %v4075_v15  ;;  %v4370_v32 = vadd.f32 %v4362_v33, %v4322_v36  ;;  %v4371_v60 = vadd.f32 %v4363_v9, %v4323_v51  ;;  %v12845_v61 = vld [vmem:[%s14697_s0 + $0x140] sm:$0xff]  ;;  %v12887_v21 = vld [vmem:[%s14697_s0 + $0x2f0] sm:$0xff] }
 0x327   :  { %v516_v63 = vmul.f32 %v7686_v19, %v12215_v23  ;;  %v4154_v0 = vmax.f32 %v12778_v55, %v12808_v13  ;;  %v517_v43 = vmul.f32 %v12826_v20, %v12215_v23  ;;  %v570_v49 = vmul.f32 %v7688_v59, %v12234_v62  ;;  %v12894_v47 = vld [vmem:[%s14697_s0 + $0x300] sm:$0xff]  ;;  %v12915_v36 = vld [vmem:[%s14697_s0 + $0x410] sm:$0xff] }
 0x328   :  { %v571_v41 = vmul.f32 %v12837_v2, %v12234_v62  ;;  %v4155_v45 = vmax.f32 %v12784_v25, %v4131_v54  ;;  %v4418_v42 = vadd.f32 %v4410_v6, %v4370_v32  ;;  %v4419_v29 = vadd.f32 %v4411_v11, %v4371_v60  ;;  %v12901_v6 = vld [vmem:[%s14697_s0 + $0x380] sm:$0xff] }
 0x329   :  { %v632_v17 = vmul.f32 %v12845_v61, %v12237_v12  ;;  %v578_v38 = vadd.f32 %v570_v49, %v516_v63  ;;  %v633_v55 = vmul.f32 %v12852_v52, %v12237_v12  ;;  %v694_v28 = vmul.f32 %v12859_v14, %v12240_v31  ;;  %v12929_v54 = vld [vmem:[%s14697_s0 + $0x4a0] sm:$0xff] }
 0x32a   :  { %v579_v50 = vadd.f32 %v571_v41, %v517_v43  ;;  %v4466_v22 = vadd.f32 %v4458_v48, %v4418_v42  ;;  %v4467_v25 = vadd.f32 %v4459_v8, %v4419_v29  ;;  %v695_v57 = vmul.f32 %v12866_v1, %v12240_v31  ;;  %v12908_v8 = vld [vmem:[%s14697_s0 + $0x390] sm:$0xff] }
 0x32b   :  { %v756_v46 = vmul.f32 %v12873_v7, %v12283_v24  ;;  %v640_v37 = vadd.f32 %v632_v17, %v578_v38  ;;  %v757_v3 = vmul.f32 %v12880_v53, %v12283_v24  ;;  %v818_v33 = vmul.f32 %v12887_v21, %v12294_v40 }
 0x32c   :  { %v641_v18 = vadd.f32 %v633_v55, %v579_v50  ;;  %v4514_v9 = vadd.f32 %v4506_v5, %v4466_v22  ;;  %v4515_v39 = vadd.f32 %v4507_v35, %v4467_v25  ;;  %v819_v44 = vmul.f32 %v12894_v47, %v12294_v40  ;;  %v12922_v35 = vld [vmem:[%s14697_s0 + $0x420] sm:$0xff]  ;;  %v12960_v22 = vld [vmem:[%s14697_s0 + $0x31] sm:$0xff] }
 0x32d   :  { %v880_v56 = vmul.f32 %v12901_v6, %v12318_v4  ;;  %v702_v11 = vadd.f32 %v694_v28, %v640_v37  ;;  %v881_v15 = vmul.f32 %v12908_v8, %v12318_v4  ;;  %v942_v51 = vmul.f32 %v12915_v36, %v12336_v10  ;;  %v7704_v50 = vld [vmem:[%s14697_s0 + $0x21] sm:$0xff] }
 0x32e   :  { %v703_v48 = vadd.f32 %v695_v57, %v641_v18  ;;  %v4570_v5 = vadd.f32 %v4562_v58, %v4514_v9  ;;  %v4571_v13 = vadd.f32 %v4563_v27, %v4515_v39  ;;  %v943_v30 = vmul.f32 %v12922_v35, %v12336_v10  ;;  %v12936_v58 = vld [vmem:[%s14697_s0 + $0x4b0] sm:$0xff] }
 0x32f   :  { %v1004_v32 = vmul.f32 %v12929_v54, %v12339_v16  ;;  %v764_v60 = vadd.f32 %v756_v46, %v702_v11  ;;  %v1005_v27 = vmul.f32 %v12936_v58, %v12339_v16  ;;  %v1036_v63 = vmul.f32 %v7688_v59, %v12215_v23  ;;  %v15391_v59 = vld [vmem:[#allocation41_spill] sm:$0xff] }
 0x330   :  { %v765_v19 = vadd.f32 %v757_v3, %v703_v48  ;;  %v4594_v43 = vmax.f32 %v4154_v0, %v4570_v5  ;;  %v4595_v49 = vmax.f32 %v4155_v45, %v4571_v13  ;;  %v1037_v41 = vmul.f32 %v12837_v2, %v12215_v23 }
 0x331   :  { %v1076_v42 = vmul.f32 %v12845_v61, %v12234_v62  ;;  %v826_v29 = vadd.f32 %v818_v33, %v764_v60  ;;  %v1077_v38 = vmul.f32 %v12852_v52, %v12234_v62  ;;  %v1132_v55 = vmul.f32 %v7704_v50, %v12237_v12 }
 0x332   :  { %v827_v17 = vadd.f32 %v819_v44, %v765_v19  ;;  %v12952_v0 = vadd.f32 %v15391_v59, %v4594_v43  ;;  %v12955_v45 = vadd.f32 %v15391_v59, %v4595_v49  ;;  %v1133_v25 = vmul.f32 %v12960_v22, %v12237_v12 }
 0x333   :  { %v1084_v28 = vadd.f32 %v1076_v42, %v1036_v63  ;;  %v888_v57 = vadd.f32 %v880_v56, %v826_v29  ;;  %v1085_v37 = vadd.f32 %v1077_v38, %v1037_v41  ;;  %v1180_v18 = vmul.f32 %v12873_v7, %v12240_v31  ;;  %v12989_v63 = vld [vmem:[%s14697_s0 + $0x1d1] sm:$0xff] }
 0x334   :  { %15392 = vst [vmem:[#allocation70_spill] sm:$0xff] %v12952_v0  ;;  %15393 = vst [vmem:[#allocation48_spill] sm:$0xff] %v12955_v45  ;;  %v889_v46 = vadd.f32 %v881_v15, %v827_v17  ;;  %v15026_v3 = vmax.f32 %v12952_v0, 0.0  ;;  %v15025_v33 = vmax.f32 %v12955_v45, 0.0  ;;  %v1181_v39 = vmul.f32 %v12880_v53, %v12240_v31 }
 0x335   :  { %v1140_v9 = vadd.f32 %v1132_v55, %v1084_v28  ;;  %v950_v44 = vadd.f32 %v942_v51, %v888_v57  ;;  %v1141_v48 = vadd.f32 %v1133_v25, %v1085_v37  ;;  %v1228_v5 = vmul.f32 %v12887_v21, %v12283_v24  ;;  %v13016_v25 = vld [vmem:[%s14697_s0 + $0x381] sm:$0xff] }
 0x336   :  { %v951_v11 = vadd.f32 %v943_v30, %v889_v46  ;;  %v12974_v56 = vand.u32 4294901760, %v15026_v3  ;;  %v12978_v15 = vand.u32 4294901760, %v15025_v33  ;;  %v1229_v60 = vmul.f32 %v12894_v47, %v12283_v24  ;;  %v13023_v46 = vld [vmem:[%s14697_s0 + $0x391] sm:$0xff]  ;;  %v13087_v3 = vld [vmem:[%s14697_s0 + $0x421] sm:$0xff] }
 0x337   :  { %v1188_v13 = vadd.f32 %v1180_v18, %v1140_v9  ;;  %v12982_v19 = vadd.f32 %v1004_v32, %v950_v44  ;;  %v1189_v30 = vadd.f32 %v1181_v39, %v1141_v48  ;;  %v1284_v43 = vmul.f32 %v12989_v63, %v12294_v40  ;;  %v13000_v32 = vld [vmem:[%s14697_s0 + $0x1e1] sm:$0xff] }
 0x338   :  { %15394 = vst [vmem:[#allocation45_spill] sm:$0xff] %v12974_v56  ;;  %15395 = vst [vmem:[#allocation49_spill] sm:$0xff] %v12978_v15  ;;  %v12984_v51 = vadd.f32 %v1005_v27, %v951_v11  ;;  %v12995_v49 = vpack.c.bf16 %v12978_v15, %v12974_v56  ;;  %v1285_v27 = vmul.f32 %v13000_v32, %v12294_v40 }
 0x339   :  { %v1236_v41 = vadd.f32 %v1228_v5, %v1188_v13  ;;  %v1332_v42 = vmul.f32 %v12915_v36, %v12318_v4  ;;  %v1237_v29 = vadd.f32 %v1229_v60, %v1189_v30  ;;  %v1333_v17 = vmul.f32 %v12922_v35, %v12318_v4  ;;  %v7710_v5 = vld [vmem:[%s14697_s0 + $0xb1] sm:$0xff] }
 0x33a   :  { %15396 = vst [vmem:[#allocation46_spill] sm:$0xff] %v12995_v49  ;;  %v1380_v38 = vmul.f32 %v12929_v54, %v12336_v10  ;;  %v1381_v55 = vmul.f32 %v12936_v58, %v12336_v10  ;;  %7417 = vmatprep.subr.bf16.mxu0 %v12995_v49  ;;  %v1436_v57 = vmul.f32 %v13016_v25, %v12339_v16 }
 0x33b   :  { %v1292_v28 = vadd.f32 %v1284_v43, %v1236_v41  ;;  %v1437_v37 = vmul.f32 %v13023_v46, %v12339_v16  ;;  %v1492_v18 = vmul.f32 %v12845_v61, %v12215_v23  ;;  %7419 = vmatpush3.bf16.msra.mxu0 %v12995_v49  ;;  %v1293_v9 = vadd.f32 %v1285_v27, %v1237_v29  ;;  %v13042_v61 = vld [vmem:[%s14697_s0 + $0xc1] sm:$0xff] }
 0x33c   :  { %v1493_v39 = vmul.f32 %v12852_v52, %v12215_v23  ;;  %v1532_v44 = vmul.f32 %v7704_v50, %v12234_v62  ;;  %v1533_v11 = vmul.f32 %v12960_v22, %v12234_v62  ;;  %v1588_v13 = vmul.f32 %v7710_v5, %v12237_v12  ;;  %v13057_v5 = vld [vmem:[%s14697_s0 + $0x261] sm:$0xff] }
 0x33d   :  { %v1340_v48 = vadd.f32 %v1332_v42, %v1292_v28  ;;  %v1589_v60 = vmul.f32 %v13042_v61, %v12237_v12  ;;  %v1636_v50 = vmul.f32 %v12887_v21, %v12240_v31  ;;  %v1341_v30 = vadd.f32 %v1333_v17, %v1293_v9 }
 0x33e   :  { %v1540_v43 = vadd.f32 %v1532_v44, %v1492_v18  ;;  %v1541_v41 = vadd.f32 %v1533_v11, %v1493_v39  ;;  %v1637_v27 = vmul.f32 %v12894_v47, %v12240_v31  ;;  %v1684_v29 = vmul.f32 %v12989_v63, %v12283_v24 }
 0x33f   :  { %v1388_v42 = vadd.f32 %v1380_v38, %v1340_v48  ;;  %v1685_v28 = vmul.f32 %v13000_v32, %v12283_v24  ;;  %v1740_v17 = vmul.f32 %v13057_v5, %v12294_v40  ;;  %v1389_v18 = vadd.f32 %v1381_v55, %v1341_v30  ;;  %v13064_v38 = vld [vmem:[%s14697_s0 + $0x271] sm:$0xff] }
 0x340   :  { %v1596_v9 = vadd.f32 %v1588_v13, %v1540_v43  ;;  %v1597_v39 = vadd.f32 %v1589_v60, %v1541_v41  ;;  %v1741_v44 = vmul.f32 %v13064_v38, %v12294_v40  ;;  %v1788_v48 = vmul.f32 %v12929_v54, %v12318_v4 }
 0x341   :  { %v1444_v11 = vadd.f32 %v1436_v57, %v1388_v42  ;;  %v1789_v33 = vmul.f32 %v12936_v58, %v12318_v4  ;;  %v1836_v55 = vmul.f32 %v13016_v25, %v12336_v10  ;;  %v1445_v13 = vadd.f32 %v1437_v37, %v1389_v18  ;;  %v13080_v57 = vld [vmem:[%s14697_s0 + $0x411] sm:$0xff] }
 0x342   :  { %v1644_v60 = vadd.f32 %v1636_v50, %v1596_v9  ;;  %v1645_v30 = vadd.f32 %v1637_v27, %v1597_v39  ;;  %v1837_v43 = vmul.f32 %v13023_v46, %v12336_v10  ;;  %v1892_v42 = vmul.f32 %v13080_v57, %v12339_v16 }
 0x343   :  { %v1468_v41 = vmax.f32 %v12982_v19, %v1444_v11  ;;  %v1893_v37 = vmul.f32 %v13087_v3, %v12339_v16  ;;  %v1948_v50 = vmul.f32 %v12859_v14, %v12215_v23  ;;  %v1469_v19 = vmax.f32 %v12984_v51, %v1445_v13 }
 0x344   :  { %v1692_v27 = vadd.f32 %v1684_v29, %v1644_v60  ;;  %v1693_v18 = vadd.f32 %v1685_v28, %v1645_v30  ;;  %v1949_v9 = vmul.f32 %v12866_v1, %v12215_v23  ;;  %v1988_v39 = vmul.f32 %v12873_v7, %v12234_v62 }
 0x345   :  { %v1989_v11 = vmul.f32 %v12880_v53, %v12234_v62  ;;  %v2036_v49 = vmul.f32 %v12887_v21, %v12237_v12  ;;  %v2037_v26 = vmul.f32 %v12894_v47, %v12237_v12  ;;  %v2084_v51 = vmul.f32 %v12901_v6, %v12240_v31 }
 0x346   :  { %v1748_v14 = vadd.f32 %v1740_v17, %v1692_v27  ;;  %v1749_v34 = vadd.f32 %v1741_v44, %v1693_v18  ;;  %v2085_v29 = vmul.f32 %v12908_v8, %v12240_v31  ;;  %v1996_v28 = vadd.f32 %v1988_v39, %v1948_v50 }
 0x347   :  { %v1997_v13 = vadd.f32 %v1989_v11, %v1949_v9  ;;  %v2132_v60 = vmul.f32 %v12915_v36, %v12283_v24  ;;  %v2133_v30 = vmul.f32 %v12922_v35, %v12283_v24  ;;  %v2180_v17 = vmul.f32 %v12929_v54, %v12294_v40  ;;  %v13121_v9 = vld [vmem:[%s14697_s0 + $0x40] sm:$0xff] }
 0x348   :  { %v1796_v45 = vadd.f32 %v1788_v48, %v1748_v14  ;;  %v1797_v15 = vadd.f32 %v1789_v33, %v1749_v34  ;;  %v2181_v44 = vmul.f32 %v12936_v58, %v12294_v40  ;;  %v2044_v27 = vadd.f32 %v2036_v49, %v1996_v28 }
 0x349   :  { %v2045_v18 = vadd.f32 %v2037_v26, %v1997_v13  ;;  %v2236_v50 = vmul.f32 %v12826_v20, %v12318_v4  ;;  %v2237_v48 = vmul.f32 %v13121_v9, %v12318_v4  ;;  %v2292_v39 = vmul.f32 %v12837_v2, %v12336_v10  ;;  %v13130_v26 = vld [vmem:[%s14697_s0 + $0xd0] sm:$0xff] }
 0x34a   :  { %v1844_v34 = vadd.f32 %v1836_v55, %v1796_v45  ;;  %v1845_v33 = vadd.f32 %v1837_v43, %v1797_v15  ;;  %v2293_v49 = vmul.f32 %v13130_v26, %v12336_v10  ;;  %v2092_v11 = vadd.f32 %v2084_v51, %v2044_v27  ;;  %v13139_v45 = vld [vmem:[%s14697_s0 + $0x160] sm:$0xff] }
 0x34b   :  { %v2093_v14 = vadd.f32 %v2085_v29, %v2045_v18  ;;  %v2348_v28 = vmul.f32 %v12852_v52, %v12339_v16  ;;  %v2349_v15 = vmul.f32 %v13139_v45, %v12339_v16  ;;  %v2404_v13 = vmul.f32 %v12873_v7, %v12215_v23 }
 0x34c   :  { %v1900_v55 = vadd.f32 %v1892_v42, %v1844_v34  ;;  %v1901_v43 = vadd.f32 %v1893_v37, %v1845_v33  ;;  %v2405_v51 = vmul.f32 %v12880_v53, %v12215_v23  ;;  %v2140_v29 = vadd.f32 %v2132_v60, %v2092_v11 }
 0x34d   :  { %v2141_v27 = vadd.f32 %v2133_v30, %v2093_v14  ;;  %v2444_v18 = vmul.f32 %v12887_v21, %v12234_v62  ;;  %v2445_v0 = vmul.f32 %v12894_v47, %v12234_v62  ;;  %v2492_v42 = vmul.f32 %v12989_v63, %v12237_v12 }
 0x34e   :  { %v13151_v56 = vmax.f32 %v1468_v41, %v1900_v55  ;;  %v13153_v59 = vmax.f32 %v1469_v19, %v1901_v43  ;;  %v2493_v7 = vmul.f32 %v13000_v32, %v12237_v12  ;;  %v2188_v37 = vadd.f32 %v2180_v17, %v2140_v29 }
 0x34f   :  { %v2189_v34 = vadd.f32 %v2181_v44, %v2141_v27  ;;  %v2452_v60 = vadd.f32 %v2444_v18, %v2404_v13  ;;  %v2453_v30 = vadd.f32 %v2445_v0, %v2405_v51  ;;  %v2540_v33 = vmul.f32 %v12915_v36, %v12240_v31 }
 0x350   :  { %v2541_v11 = vmul.f32 %v12922_v35, %v12240_v31  ;;  %v2588_v41 = vmul.f32 %v12929_v54, %v12283_v24  ;;  %v2589_v19 = vmul.f32 %v12936_v58, %v12283_v24  ;;  %v2244_v14 = vadd.f32 %v2236_v50, %v2188_v37 }
 0x351   :  { %v2245_v55 = vadd.f32 %v2237_v48, %v2189_v34  ;;  %v2500_v43 = vadd.f32 %v2492_v42, %v2452_v60  ;;  %v2501_v53 = vadd.f32 %v2493_v7, %v2453_v30  ;;  %v2636_v17 = vmul.f32 %v13016_v25, %v12294_v40  ;;  %v13184_v7 = vld [vmem:[%s14697_s0 + $0x41] sm:$0xff] }
 0x352   :  { %v2637_v0 = vmul.f32 %v13023_v46, %v12294_v40  ;;  %v2684_v44 = vmul.f32 %v12837_v2, %v12318_v4  ;;  %v2685_v13 = vmul.f32 %v13130_v26, %v12318_v4  ;;  %v2300_v51 = vadd.f32 %v2292_v39, %v2244_v14 }
 0x353   :  { %v2301_v29 = vadd.f32 %v2293_v49, %v2245_v55  ;;  %v2548_v27 = vadd.f32 %v2540_v33, %v2500_v43  ;;  %v2549_v18 = vadd.f32 %v2541_v11, %v2501_v53  ;;  %v2732_v50 = vmul.f32 %v12852_v52, %v12336_v10 }
 0x354   :  { %v2733_v48 = vmul.f32 %v13139_v45, %v12336_v10  ;;  %v2788_v42 = vmul.f32 %v12960_v22, %v12339_v16  ;;  %v2789_v39 = vmul.f32 %v13184_v7, %v12339_v16  ;;  %v2356_v49 = vadd.f32 %v2348_v28, %v2300_v51 }
 0x355   :  { %v2357_v37 = vadd.f32 %v2349_v15, %v2301_v29  ;;  %v2596_v53 = vadd.f32 %v2588_v41, %v2548_v27  ;;  %v2597_v34 = vadd.f32 %v2589_v19, %v2549_v18  ;;  %v2844_v60 = vmul.f32 %v12887_v21, %v12215_v23 }
 0x356   :  { %v2845_v30 = vmul.f32 %v12894_v47, %v12215_v23  ;;  %v2884_v33 = vmul.f32 %v12989_v63, %v12234_v62  ;;  %v2885_v11 = vmul.f32 %v13000_v32, %v12234_v62  ;;  %v2380_v14 = vmax.f32 %v13151_v56, %v2356_v49 }
 0x357   :  { %v2381_v55 = vmax.f32 %v13153_v59, %v2357_v37  ;;  %v2644_v28 = vadd.f32 %v2636_v17, %v2596_v53  ;;  %v2645_v15 = vadd.f32 %v2637_v0, %v2597_v34  ;;  %v2932_v21 = vmul.f32 %v13057_v5, %v12237_v12 }
 0x358   :  { %v2892_v41 = vadd.f32 %v2884_v33, %v2844_v60  ;;  %v2893_v19 = vadd.f32 %v2885_v11, %v2845_v30  ;;  %v2933_v43 = vmul.f32 %v13064_v38, %v12237_v12  ;;  %v2980_v63 = vmul.f32 %v12929_v54, %v12240_v31 }
 0x359   :  { %v2692_v51 = vadd.f32 %v2684_v44, %v2644_v28  ;;  %v2693_v29 = vadd.f32 %v2685_v13, %v2645_v15  ;;  %v2981_v56 = vmul.f32 %v12936_v58, %v12240_v31  ;;  %v3028_v17 = vmul.f32 %v13016_v25, %v12283_v24  ;;  %v13227_v15 = vld [vmem:[%s14697_s0 + $0xd1] sm:$0xff] }
 0x35a   :  { %v2940_v27 = vadd.f32 %v2932_v21, %v2892_v41  ;;  %v2941_v59 = vadd.f32 %v2933_v43, %v2893_v19  ;;  %v3029_v0 = vmul.f32 %v13023_v46, %v12283_v24  ;;  %v3076_v44 = vmul.f32 %v13080_v57, %v12294_v40 }
 0x35b   :  { %v2740_v5 = vadd.f32 %v2732_v50, %v2692_v51  ;;  %v2741_v18 = vadd.f32 %v2733_v48, %v2693_v29  ;;  %v3077_v13 = vmul.f32 %v13087_v3, %v12294_v40  ;;  %v3124_v53 = vmul.f32 %v12852_v52, %v12318_v4 }
 0x35c   :  { %v2988_v49 = vadd.f32 %v2980_v63, %v2940_v27  ;;  %v2989_v37 = vadd.f32 %v2981_v56, %v2941_v59  ;;  %v3125_v34 = vmul.f32 %v13139_v45, %v12318_v4  ;;  %v3172_v50 = vmul.f32 %v12960_v22, %v12336_v10 }
 0x35d   :  { %v2796_v60 = vadd.f32 %v2788_v42, %v2740_v5  ;;  %v2797_v30 = vadd.f32 %v2789_v39, %v2741_v18  ;;  %v3173_v48 = vmul.f32 %v13184_v7, %v12336_v10  ;;  %v3228_v28 = vmul.f32 %v13042_v61, %v12339_v16 }
 0x35e   :  { %v3036_v33 = vadd.f32 %v3028_v17, %v2988_v49  ;;  %v3037_v11 = vadd.f32 %v3029_v0, %v2989_v37  ;;  %v3229_v42 = vmul.f32 %v13227_v15, %v12339_v16  ;;  %v3284_v19 = vmul.f32 %v12901_v6, %v12215_v23 }
 0x35f   :  { %v13231_v39 = vmax.f32 %v2380_v14, %v2796_v60  ;;  %v13233_v41 = vmax.f32 %v2381_v55, %v2797_v30  ;;  %v3285_v21 = vmul.f32 %v12908_v8, %v12215_v23  ;;  %v3324_v29 = vmul.f32 %v12915_v36, %v12234_v62  ;;  %v15397_v60 = vld [vmem:[#allocation40_spill] sm:$0xff] }
 0x360   :  { %v3084_v43 = vadd.f32 %v3076_v44, %v3036_v33  ;;  %v3085_v51 = vadd.f32 %v3077_v13, %v3037_v11  ;;  %v3325_v63 = vmul.f32 %v12922_v35, %v12234_v62  ;;  %v3372_v14 = vmul.f32 %v12929_v54, %v12237_v12  ;;  %v7722_v33 = vld [vmem:[%s14697_s0 + $0x280] sm:$0xff] }
 0x361   :  { %v3373_v55 = vmul.f32 %v12936_v58, %v12237_v12  ;;  %v3420_v6 = vmul.f32 %v12826_v20, %v12240_v31  ;;  %v3421_v8 = vmul.f32 %v13121_v9, %v12240_v31  ;;  %v3332_v59 = vadd.f32 %v3324_v29, %v3284_v19 }
 0x362   :  { %v3132_v56 = vadd.f32 %v3124_v53, %v3084_v43  ;;  %v3133_v27 = vadd.f32 %v3125_v34, %v3085_v51  ;;  %v3333_v17 = vadd.f32 %v3325_v63, %v3285_v21  ;;  %v3468_v0 = vmul.f32 %v12837_v2, %v12283_v24  ;;  %v7721_v53 = vld [vmem:[%s14697_s0 + $0x1f0] sm:$0xff] }
 0x363   :  { %v3469_v5 = vmul.f32 %v13130_v26, %v12283_v24  ;;  %v3516_v18 = vmul.f32 %v12852_v52, %v12294_v40  ;;  %v3517_v44 = vmul.f32 %v13139_v45, %v12294_v40  ;;  %v3380_v49 = vadd.f32 %v3372_v14, %v3332_v59  ;;  %v13276_v43 = vld [vmem:[%s14697_s0 + $0x310] sm:$0xff] }
 0x364   :  { %v3180_v20 = vadd.f32 %v3172_v50, %v3132_v56  ;;  %v3181_v13 = vadd.f32 %v3173_v48, %v3133_v27  ;;  %v3381_v9 = vadd.f32 %v3373_v55, %v3333_v17  ;;  %v3572_v37 = vmul.f32 %v12866_v1, %v12318_v4 }
 0x365   :  { %v3573_v34 = vmul.f32 %v7721_v53, %v12318_v4  ;;  %v3628_v30 = vmul.f32 %v15397_v60, %v12336_v10  ;;  %v3629_v50 = vmul.f32 %v7722_v33, %v12336_v10  ;;  %v3428_v19 = vadd.f32 %v3420_v6, %v3380_v49 }
 0x366   :  { %v3236_v48 = vadd.f32 %v3228_v28, %v3180_v20  ;;  %v3237_v11 = vadd.f32 %v3229_v42, %v3181_v13  ;;  %v3429_v21 = vadd.f32 %v3421_v8, %v3381_v9  ;;  %v3684_v1 = vmul.f32 %v12894_v47, %v12339_v16 }
 0x367   :  { %v3685_v51 = vmul.f32 %v13276_v43, %v12339_v16  ;;  %v3740_v29 = vmul.f32 %v12915_v36, %v12215_v23  ;;  %v3741_v28 = vmul.f32 %v12922_v35, %v12215_v23  ;;  %v3476_v14 = vadd.f32 %v3468_v0, %v3428_v19 }
 0x368   :  { %v3260_v42 = vmax.f32 %v13231_v39, %v3236_v48  ;;  %v3261_v63 = vmax.f32 %v13233_v41, %v3237_v11  ;;  %v3477_v55 = vadd.f32 %v3469_v5, %v3429_v21  ;;  %v3780_v6 = vmul.f32 %v12929_v54, %v12234_v62 }
 0x369   :  { %v3781_v8 = vmul.f32 %v12936_v58, %v12234_v62  ;;  %v3828_v56 = vmul.f32 %v13016_v25, %v12237_v12  ;;  %v3829_v36 = vmul.f32 %v13023_v46, %v12237_v12  ;;  %v3524_v27 = vadd.f32 %v3516_v18, %v3476_v14 }
 0x36a   :  { %v3525_v35 = vadd.f32 %v3517_v44, %v3477_v55  ;;  %v3876_v39 = vmul.f32 %v12837_v2, %v12240_v31  ;;  %v3877_v41 = vmul.f32 %v13130_v26, %v12240_v31  ;;  %v3788_v59 = vadd.f32 %v3780_v6, %v3740_v29  ;;  %v7724_v29 = vld [vmem:[%s14697_s0 + $0x1f1] sm:$0xff] }
 0x36b   :  { %v3789_v17 = vadd.f32 %v3781_v8, %v3741_v28  ;;  %v3924_v0 = vmul.f32 %v12852_v52, %v12283_v24  ;;  %v3925_v5 = vmul.f32 %v13139_v45, %v12283_v24  ;;  %v3580_v20 = vadd.f32 %v3572_v37, %v3524_v27 }
 0x36c   :  { %v3581_v13 = vadd.f32 %v3573_v34, %v3525_v35  ;;  %v3972_v18 = vmul.f32 %v12960_v22, %v12294_v40  ;;  %v3973_v44 = vmul.f32 %v13184_v7, %v12294_v40  ;;  %v3836_v2 = vadd.f32 %v3828_v56, %v3788_v59 }
 0x36d   :  { %v3837_v49 = vadd.f32 %v3829_v36, %v3789_v17  ;;  %v4020_v26 = vmul.f32 %v15397_v60, %v12318_v4  ;;  %v4021_v9 = vmul.f32 %v7722_v33, %v12318_v4  ;;  %v3636_v53 = vadd.f32 %v3628_v30, %v3580_v20 }
 0x36e   :  { %v3637_v48 = vadd.f32 %v3629_v50, %v3581_v13  ;;  %v4068_v11 = vmul.f32 %v12894_v47, %v12336_v10  ;;  %v4069_v37 = vmul.f32 %v13276_v43, %v12336_v10  ;;  %v3884_v34 = vadd.f32 %v3876_v39, %v3836_v2 }
 0x36f   :  { %v3885_v19 = vadd.f32 %v3877_v41, %v3837_v49  ;;  %v4124_v21 = vmul.f32 %v13000_v32, %v12339_v16  ;;  %v4125_v60 = vmul.f32 %v7724_v29, %v12339_v16  ;;  %v3692_v33 = vadd.f32 %v3684_v1, %v3636_v53  ;;  %v7726_v49 = vld [vmem:[%s14697_s0 + $0x40] sm:$0xff] }
 0x370   :  { %v3693_v30 = vadd.f32 %v3685_v51, %v3637_v48  ;;  %v4180_v50 = vmul.f32 %v12929_v54, %v12215_v23  ;;  %v4181_v28 = vmul.f32 %v12936_v58, %v12215_v23  ;;  %v3932_v14 = vadd.f32 %v3924_v0, %v3884_v34  ;;  %v13378_v48 = vld [vmem:[%s14697_s0 + $0xe0] sm:$0xff] }
 0x371   :  { %v3933_v55 = vadd.f32 %v3925_v5, %v3885_v19  ;;  %v4220_v6 = vmul.f32 %v13016_v25, %v12234_v62  ;;  %v4221_v8 = vmul.f32 %v13023_v46, %v12234_v62  ;;  %v13327_v56 = vmax.f32 %v3260_v42, %v3692_v33  ;;  %v13387_v33 = vld [vmem:[%s14697_s0 + $0x160] sm:$0xff] }
 0x372   :  { %v13329_v36 = vmax.f32 %v3261_v63, %v3693_v30  ;;  %v4268_v1 = vmul.f32 %v13080_v57, %v12237_v12  ;;  %v4269_v54 = vmul.f32 %v13087_v3, %v12237_v12  ;;  %v3980_v51 = vadd.f32 %v3972_v18, %v3932_v14 }
 0x373   :  { %v3981_v58 = vadd.f32 %v3973_v44, %v3933_v55  ;;  %v4228_v27 = vadd.f32 %v4220_v6, %v4180_v50  ;;  %v4229_v35 = vadd.f32 %v4221_v8, %v4181_v28  ;;  %v4316_v25 = vmul.f32 %v12852_v52, %v12240_v31  ;;  %v13394_v50 = vld [vmem:[%s14697_s0 + $0x170] sm:$0xff] }
 0x374   :  { %v4317_v46 = vmul.f32 %v13139_v45, %v12240_v31  ;;  %v4364_v42 = vmul.f32 %v12960_v22, %v12283_v24  ;;  %v4365_v63 = vmul.f32 %v13184_v7, %v12283_v24  ;;  %v4028_v57 = vadd.f32 %v4020_v26, %v3980_v51  ;;  %v13401_v6 = vld [vmem:[%s14697_s0 + $0x1f0] sm:$0xff]  ;;  %v13415_v51 = vld [vmem:[%s14697_s0 + $0x280] sm:$0xff] }
 0x375   :  { %v4029_v39 = vadd.f32 %v4021_v9, %v3981_v58  ;;  %v4276_v41 = vadd.f32 %v4268_v1, %v4228_v27  ;;  %v4277_v3 = vadd.f32 %v4269_v54, %v4229_v35  ;;  %v4412_v59 = vmul.f32 %v13042_v61, %v12294_v40  ;;  %v7728_v9 = vld [vmem:[%s14697_s0 + $0xd0] sm:$0xff] }
 0x376   :  { %v4413_v17 = vmul.f32 %v13227_v15, %v12294_v40  ;;  %v4460_v52 = vmul.f32 %v12894_v47, %v12318_v4  ;;  %v4461_v45 = vmul.f32 %v13276_v43, %v12318_v4  ;;  %v4076_v22 = vadd.f32 %v4068_v11, %v4028_v57  ;;  %v7725_v15 = vld [vmem:[%s14697_s0 + $0x281] sm:$0xff]  ;;  %v13422_v27 = vld [vmem:[%s14697_s0 + $0x290] sm:$0xff] }
 0x377   :  { %v4077_v0 = vadd.f32 %v4069_v37, %v4029_v39  ;;  %v4324_v5 = vadd.f32 %v4316_v25, %v4276_v41  ;;  %v4325_v7 = vadd.f32 %v4317_v46, %v4277_v3  ;;  %v4508_v20 = vmul.f32 %v13000_v32, %v12336_v10  ;;  %v13436_v57 = vld [vmem:[%s14697_s0 + $0x320] sm:$0xff] }
 0x378   :  { %v4509_v13 = vmul.f32 %v7724_v29, %v12336_v10  ;;  %v4564_v61 = vmul.f32 %v13064_v38, %v12339_v16  ;;  %v4565_v47 = vmul.f32 %v7725_v15, %v12339_v16  ;;  %v4132_v18 = vadd.f32 %v4124_v21, %v4076_v22  ;;  %v13367_v38 = vld [vmem:[%s14697_s0 + $0x50] sm:$0xff] }
 0x379   :  { %v4133_v43 = vadd.f32 %v4125_v60, %v4077_v0  ;;  %v4372_v44 = vadd.f32 %v4364_v42, %v4324_v5  ;;  %v4373_v2 = vadd.f32 %v4365_v63, %v4325_v7  ;;  %v518_v32 = vmul.f32 %v7726_v49, %v12215_v23  ;;  %v13429_v42 = vld [vmem:[%s14697_s0 + $0x310] sm:$0xff] }
 0x37a   :  { %v519_v26 = vmul.f32 %v13367_v38, %v12215_v23  ;;  %v572_v53 = vmul.f32 %v7728_v9, %v12234_v62  ;;  %v573_v11 = vmul.f32 %v13378_v48, %v12234_v62  ;;  %v4156_v37 = vmax.f32 %v13327_v56, %v4132_v18  ;;  %v13408_v56 = vld [vmem:[%s14697_s0 + $0x200] sm:$0xff]  ;;  %v13457_v5 = vld [vmem:[%s14697_s0 + $0x430] sm:$0xff] }
 0x37b   :  { %v4157_v34 = vmax.f32 %v13329_v36, %v4133_v43  ;;  %v4420_v19 = vadd.f32 %v4412_v59, %v4372_v44  ;;  %v4421_v21 = vadd.f32 %v4413_v17, %v4373_v2  ;;  %v634_v30 = vmul.f32 %v13387_v33, %v12237_v12  ;;  %v13443_v59 = vld [vmem:[%s14697_s0 + $0x3a0] sm:$0xff]  ;;  %v13478_v43 = vld [vmem:[%s14697_s0 + $0x4d0] sm:$0xff] }
 0x37c   :  { %v580_v29 = vadd.f32 %v572_v53, %v518_v32  ;;  %v581_v60 = vadd.f32 %v573_v11, %v519_v26  ;;  %v635_v28 = vmul.f32 %v13394_v50, %v12237_v12  ;;  %v696_v8 = vmul.f32 %v13401_v6, %v12240_v31 }
 0x37d   :  { %v4468_v14 = vadd.f32 %v4460_v52, %v4420_v19  ;;  %v4469_v55 = vadd.f32 %v4461_v45, %v4421_v21  ;;  %v697_v36 = vmul.f32 %v13408_v56, %v12240_v31  ;;  %v758_v58 = vmul.f32 %v13415_v51, %v12283_v24  ;;  %v13450_v52 = vld [vmem:[%s14697_s0 + $0x3b0] sm:$0xff] }
 0x37e   :  { %v642_v1 = vadd.f32 %v634_v30, %v580_v29  ;;  %v643_v54 = vadd.f32 %v635_v28, %v581_v60  ;;  %v759_v35 = vmul.f32 %v13422_v27, %v12283_v24  ;;  %v820_v63 = vmul.f32 %v13429_v42, %v12294_v40  ;;  %v15398_v29 = vld [vmem:[#allocation41_spill] sm:$0xff] }
 0x37f   :  { %v4516_v25 = vadd.f32 %v4508_v20, %v4468_v14  ;;  %v4517_v46 = vadd.f32 %v4509_v13, %v4469_v55  ;;  %v821_v39 = vmul.f32 %v13436_v57, %v12294_v40  ;;  %v882_v17 = vmul.f32 %v13443_v59, %v12318_v4  ;;  %v13464_v20 = vld [vmem:[%s14697_s0 + $0x440] sm:$0xff] }
 0x380   :  { %v704_v41 = vadd.f32 %v696_v8, %v642_v1  ;;  %v705_v3 = vadd.f32 %v697_v36, %v643_v54  ;;  %v883_v45 = vmul.f32 %v13450_v52, %v12318_v4  ;;  %v944_v7 = vmul.f32 %v13457_v5, %v12336_v10 }
 0x381   :  { %v4572_v22 = vadd.f32 %v4564_v61, %v4516_v25  ;;  %v4573_v0 = vadd.f32 %v4565_v47, %v4517_v46  ;;  %v945_v13 = vmul.f32 %v13464_v20, %v12336_v10  ;;  %v13471_v61 = vld [vmem:[%s14697_s0 + $0x4c0] sm:$0xff]  ;;  %v1007_v44 = vmul.f32 %v13478_v43, %v12339_v16 }
 0x382   :  { %v766_v15 = vadd.f32 %v758_v58, %v704_v41  ;;  %v767_v18 = vadd.f32 %v759_v35, %v705_v3  ;;  %v1006_v47 = vmul.f32 %v13471_v61, %v12339_v16  ;;  %v1038_v32 = vmul.f32 %v7728_v9, %v12215_v23  ;;  %v7744_v9 = vld [vmem:[%s14697_s0 + $0x41] sm:$0xff] }
 0x383   :  { %v4596_v2 = vmax.f32 %v4156_v37, %v4572_v22  ;;  %v4597_v49 = vmax.f32 %v4157_v34, %v4573_v0  ;;  %v1039_v26 = vmul.f32 %v13378_v48, %v12215_v23  ;;  %v1078_v19 = vmul.f32 %v13387_v33, %v12234_v62  ;;  %v13502_v34 = vld [vmem:[%s14697_s0 + $0x51] sm:$0xff] }
 0x384   :  { %v828_v53 = vadd.f32 %v820_v63, %v766_v15  ;;  %v829_v11 = vadd.f32 %v821_v39, %v767_v18  ;;  %v1079_v21 = vmul.f32 %v13394_v50, %v12234_v62  ;;  %v1134_v37 = vmul.f32 %v7744_v9, %v12237_v12  ;;  %v13533_v15 = vld [vmem:[%s14697_s0 + $0x1f1] sm:$0xff] }
 0x385   :  { %v13490_v60 = vadd.f32 %v15398_v29, %v4596_v2  ;;  %v13493_v30 = vadd.f32 %v15398_v29, %v4597_v49  ;;  %v1135_v28 = vmul.f32 %v13502_v34, %v12237_v12  ;;  %v1086_v8 = vadd.f32 %v1078_v19, %v1038_v32  ;;  %v13540_v2 = vld [vmem:[%s14697_s0 + $0x201] sm:$0xff] }
 0x386   :  { %v890_v14 = vadd.f32 %v882_v17, %v828_v53  ;;  %v891_v55 = vadd.f32 %v883_v45, %v829_v11  ;;  %v1087_v36 = vadd.f32 %v1079_v21, %v1039_v26  ;;  %v1182_v58 = vmul.f32 %v13415_v51, %v12240_v31 }
 0x387   :  { %15399 = vst [vmem:[#allocation23_spill] sm:$0xff] %v13490_v60  ;;  %15400 = vst [vmem:[#allocation28_spill] sm:$0xff] %v13493_v30  ;;  %v15039_v1 = vmax.f32 %v13490_v60, 0.0  ;;  %v15038_v54 = vmax.f32 %v13493_v30, 0.0  ;;  %v1183_v35 = vmul.f32 %v13422_v27, %v12240_v31  ;;  %v1142_v63 = vadd.f32 %v1134_v37, %v1086_v8 }
 0x388   :  { %v952_v25 = vadd.f32 %v944_v7, %v890_v14  ;;  %v953_v46 = vadd.f32 %v945_v13, %v891_v55  ;;  %v1143_v39 = vadd.f32 %v1135_v28, %v1087_v36  ;;  %v1230_v17 = vmul.f32 %v13429_v42, %v12283_v24 }
 0x389   :  { %v13514_v41 = vand.u32 4294901760, %v15039_v1  ;;  %v13518_v3 = vand.u32 4294901760, %v15038_v54  ;;  %v1231_v45 = vmul.f32 %v13436_v57, %v12283_v24  ;;  %v1190_v22 = vadd.f32 %v1182_v58, %v1142_v63  ;;  %v7749_v58 = vld [vmem:[%s14697_s0 + $0xd1] sm:$0xff] }
 0x38a   :  { %v1191_v0 = vadd.f32 %v1183_v35, %v1143_v39  ;;  %v13528_v13 = vadd.f32 %v1006_v47, %v952_v25  ;;  %v1286_v18 = vmul.f32 %v13533_v15, %v12294_v40  ;;  %v1287_v49 = vmul.f32 %v13540_v2, %v12294_v40 }
 0x38b   :  { %15401 = vst [vmem:[#allocation33_spill] sm:$0xff] %v13514_v41  ;;  %15402 = vst [vmem:[#allocation30_spill] sm:$0xff] %v13518_v3  ;;  %v13526_v7 = vpack.c.bf16 %v13518_v3, %v13514_v41  ;;  %v1238_v32 = vadd.f32 %v1230_v17, %v1190_v22  ;;  %v1334_v47 = vmul.f32 %v13457_v5, %v12318_v4 }
 0x38c   :  { %v1239_v26 = vadd.f32 %v1231_v45, %v1191_v0  ;;  %v1335_v53 = vmul.f32 %v13464_v20, %v12318_v4  ;;  %v13549_v11 = vadd.f32 %v1007_v44, %v953_v46  ;;  %v1382_v19 = vmul.f32 %v13471_v61, %v12336_v10  ;;  %v13564_v44 = vld [vmem:[%s14697_s0 + $0x3a1] sm:$0xff]  ;;  %v13586_v45 = vld [vmem:[%s14697_s0 + $0x3b1] sm:$0xff] }
 0x38d   :  { %15403 = vst [vmem:[#allocation32_spill] sm:$0xff] %v13526_v7  ;;  %7421 = vmatprep.subr.bf16.mxu0 %v13526_v7  ;;  %v1383_v21 = vmul.f32 %v13478_v43, %v12336_v10  ;;  %v1494_v37 = vmul.f32 %v13387_v33, %v12215_v23  ;;  %v1294_v28 = vadd.f32 %v1286_v18, %v1238_v32 }
 0x38e   :  { %7423 = vmatpush3.bf16.msra.mxu0 %v13526_v7  ;;  %v1295_v14 = vadd.f32 %v1287_v49, %v1239_v26  ;;  %v1495_v55 = vmul.f32 %v13394_v50, %v12215_v23  ;;  %v1534_v8 = vmul.f32 %v7744_v9, %v12234_v62  ;;  %v1438_v36 = vmul.f32 %v13564_v44, %v12339_v16  ;;  %v13577_v9 = vld [vmem:[%s14697_s0 + $0xe1] sm:$0xff] }
 0x38f   :  { %v1535_v33 = vmul.f32 %v13502_v34, %v12234_v62  ;;  %v1590_v35 = vmul.f32 %v7749_v58, %v12237_v12  ;;  %v1591_v25 = vmul.f32 %v13577_v9, %v12237_v12  ;;  %v1342_v46 = vadd.f32 %v1334_v47, %v1294_v28  ;;  %v13599_v28 = vld [vmem:[%s14697_s0 + $0x281] sm:$0xff] }
 0x390   :  { %v1343_v63 = vadd.f32 %v1335_v53, %v1295_v14  ;;  %v1542_v39 = vadd.f32 %v1534_v8, %v1494_v37  ;;  %v1638_v17 = vmul.f32 %v13429_v42, %v12240_v31  ;;  %v1439_v22 = vmul.f32 %v13586_v45, %v12339_v16 }
 0x391   :  { %v1543_v0 = vadd.f32 %v1535_v33, %v1495_v55  ;;  %v1639_v18 = vmul.f32 %v13436_v57, %v12240_v31  ;;  %v1686_v49 = vmul.f32 %v13533_v15, %v12283_v24  ;;  %v1390_v32 = vadd.f32 %v1382_v19, %v1342_v46  ;;  %v13606_v55 = vld [vmem:[%s14697_s0 + $0x291] sm:$0xff] }
 0x392   :  { %v1391_v26 = vadd.f32 %v1383_v21, %v1343_v63  ;;  %v1598_v47 = vadd.f32 %v1590_v35, %v1542_v39  ;;  %v1687_v53 = vmul.f32 %v13540_v2, %v12283_v24  ;;  %v1742_v14 = vmul.f32 %v13599_v28, %v12294_v40 }
 0x393   :  { %v1599_v37 = vadd.f32 %v1591_v25, %v1543_v0  ;;  %v1743_v19 = vmul.f32 %v13606_v55, %v12294_v40  ;;  %v1790_v21 = vmul.f32 %v13471_v61, %v12318_v4  ;;  %v1446_v8 = vadd.f32 %v1438_v36, %v1390_v32  ;;  %v13625_v36 = vld [vmem:[%s14697_s0 + $0x431] sm:$0xff] }
 0x394   :  { %v1646_v33 = vadd.f32 %v1638_v17, %v1598_v47  ;;  %v1791_v58 = vmul.f32 %v13478_v43, %v12318_v4  ;;  %v1838_v35 = vmul.f32 %v13564_v44, %v12336_v10  ;;  %v13616_v25 = vadd.f32 %v1439_v22, %v1391_v26  ;;  %v13632_v22 = vld [vmem:[%s14697_s0 + $0x441] sm:$0xff] }
 0x395   :  { %v1647_v46 = vadd.f32 %v1639_v18, %v1599_v37  ;;  %v1839_v63 = vmul.f32 %v13586_v45, %v12336_v10  ;;  %v1950_v39 = vmul.f32 %v13401_v6, %v12215_v23  ;;  %v1894_v17 = vmul.f32 %v13625_v36, %v12339_v16 }
 0x396   :  { %v1694_v0 = vadd.f32 %v1686_v49, %v1646_v33  ;;  %v1895_v18 = vmul.f32 %v13632_v22, %v12339_v16  ;;  %v1951_v6 = vmul.f32 %v13408_v56, %v12215_v23  ;;  %v1990_v32 = vmul.f32 %v13415_v51, %v12234_v62 }
 0x397   :  { %v1695_v49 = vadd.f32 %v1687_v53, %v1647_v46  ;;  %v1991_v26 = vmul.f32 %v13422_v27, %v12234_v62  ;;  %v2038_v47 = vmul.f32 %v13429_v42, %v12237_v12  ;;  %v1470_v37 = vmax.f32 %v13528_v13, %v1446_v8 }
 0x398   :  { %v1750_v33 = vadd.f32 %v1742_v14, %v1694_v0  ;;  %v2039_v54 = vmul.f32 %v13436_v57, %v12237_v12  ;;  %v2086_v1 = vmul.f32 %v13443_v59, %v12240_v31  ;;  %v1998_v53 = vadd.f32 %v1990_v32, %v1950_v39 }
 0x399   :  { %v1751_v7 = vadd.f32 %v1743_v19, %v1695_v49  ;;  %v1999_v46 = vadd.f32 %v1991_v26, %v1951_v6  ;;  %v2087_v30 = vmul.f32 %v13450_v52, %v12240_v31  ;;  %v1471_v3 = vmax.f32 %v13549_v11, %v13616_v25  ;;  %v13675_v49 = vld [vmem:[%s14697_s0 + $0xf0] sm:$0xff] }
 0x39a   :  { %v1798_v60 = vadd.f32 %v1790_v21, %v1750_v33  ;;  %v2134_v13 = vmul.f32 %v13457_v5, %v12283_v24  ;;  %v2135_v14 = vmul.f32 %v13464_v20, %v12283_v24  ;;  %v2046_v0 = vadd.f32 %v2038_v47, %v1998_v53  ;;  %v13666_v21 = vld [vmem:[%s14697_s0 + $0x60] sm:$0xff] }
 0x39b   :  { %v1799_v8 = vadd.f32 %v1791_v58, %v1751_v7  ;;  %v2047_v41 = vadd.f32 %v2039_v54, %v1999_v46  ;;  %v2182_v19 = vmul.f32 %v13471_v61, %v12294_v40  ;;  %v2183_v6 = vmul.f32 %v13478_v43, %v12294_v40 }
 0x39c   :  { %v1846_v39 = vadd.f32 %v1838_v35, %v1798_v60  ;;  %v2238_v11 = vmul.f32 %v13367_v38, %v12318_v4  ;;  %v2239_v7 = vmul.f32 %v13666_v21, %v12318_v4  ;;  %v2094_v54 = vadd.f32 %v2086_v1, %v2046_v0 }
 0x39d   :  { %v1847_v58 = vadd.f32 %v1839_v63, %v1799_v8  ;;  %v2095_v25 = vadd.f32 %v2087_v30, %v2047_v41  ;;  %v2294_v60 = vmul.f32 %v13378_v48, %v12336_v10  ;;  %v2295_v32 = vmul.f32 %v13675_v49, %v12336_v10 }
 0x39e   :  { %v1902_v35 = vadd.f32 %v1894_v17, %v1846_v39  ;;  %v2406_v26 = vmul.f32 %v13415_v51, %v12215_v23  ;;  %v2407_v63 = vmul.f32 %v13422_v27, %v12215_v23  ;;  %v2142_v1 = vadd.f32 %v2134_v13, %v2094_v54  ;;  %v13696_v13 = vld [vmem:[%s14697_s0 + $0x180] sm:$0xff] }
 0x39f   :  { %v2143_v30 = vadd.f32 %v2135_v14, %v2095_v25  ;;  %v2350_v41 = vmul.f32 %v13394_v50, %v12339_v16  ;;  %v2446_v17 = vmul.f32 %v13429_v42, %v12234_v62  ;;  %v1903_v47 = vadd.f32 %v1895_v18, %v1847_v58 }
 0x3a0   :  { %v2447_v33 = vmul.f32 %v13436_v57, %v12234_v62  ;;  %v2494_v53 = vmul.f32 %v13533_v15, %v12237_v12  ;;  %v2495_v51 = vmul.f32 %v13540_v2, %v12237_v12  ;;  %v2190_v46 = vadd.f32 %v2182_v19, %v2142_v1 }
 0x3a1   :  { %v2191_v8 = vadd.f32 %v2183_v6, %v2143_v30  ;;  %v2351_v14 = vmul.f32 %v13696_v13, %v12339_v16  ;;  %v2454_v18 = vadd.f32 %v2446_v17, %v2406_v26  ;;  %v13700_v0 = vmax.f32 %v1470_v37, %v1902_v35 }
 0x3a2   :  { %v2455_v39 = vadd.f32 %v2447_v33, %v2407_v63  ;;  %v2542_v58 = vmul.f32 %v13457_v5, %v12240_v31  ;;  %v2543_v54 = vmul.f32 %v13464_v20, %v12240_v31  ;;  %v2246_v19 = vadd.f32 %v2238_v11, %v2190_v46 }
 0x3a3   :  { %v2247_v6 = vadd.f32 %v2239_v7, %v2191_v8  ;;  %v2502_v25 = vadd.f32 %v2494_v53, %v2454_v18  ;;  %v2590_v1 = vmul.f32 %v13471_v61, %v12283_v24  ;;  %v13708_v30 = vmax.f32 %v1471_v3, %v1903_v47 }
 0x3a4   :  { %v2503_v29 = vadd.f32 %v2495_v51, %v2455_v39  ;;  %v2591_v37 = vmul.f32 %v13478_v43, %v12283_v24  ;;  %v2638_v35 = vmul.f32 %v13564_v44, %v12294_v40  ;;  %v2302_v26 = vadd.f32 %v2294_v60, %v2246_v19 }
 0x3a5   :  { %v2303_v63 = vadd.f32 %v2295_v32, %v2247_v6  ;;  %v2550_v17 = vadd.f32 %v2542_v58, %v2502_v25  ;;  %v2639_v11 = vmul.f32 %v13586_v45, %v12294_v40  ;;  %v2686_v33 = vmul.f32 %v13378_v48, %v12318_v4 }
 0x3a6   :  { %v2551_v7 = vadd.f32 %v2543_v54, %v2503_v29  ;;  %v2687_v3 = vmul.f32 %v13675_v49, %v12318_v4  ;;  %v2734_v47 = vmul.f32 %v13394_v50, %v12336_v10  ;;  %v2358_v53 = vadd.f32 %v2350_v41, %v2302_v26  ;;  %v13735_v41 = vld [vmem:[%s14697_s0 + $0x61] sm:$0xff] }
 0x3a7   :  { %v2598_v51 = vadd.f32 %v2590_v1, %v2550_v17  ;;  %v2735_v60 = vmul.f32 %v13696_v13, %v12336_v10  ;;  %v2790_v32 = vmul.f32 %v13502_v34, %v12339_v16  ;;  %v2846_v29 = vmul.f32 %v13429_v42, %v12215_v23 }
 0x3a8   :  { %v2599_v46 = vadd.f32 %v2591_v37, %v2551_v7  ;;  %v2847_v8 = vmul.f32 %v13436_v57, %v12215_v23  ;;  %v2886_v18 = vmul.f32 %v13533_v15, %v12234_v62  ;;  %v2359_v39 = vadd.f32 %v2351_v14, %v2303_v63 }
 0x3a9   :  { %v2646_v58 = vadd.f32 %v2638_v35, %v2598_v51  ;;  %v2791_v54 = vmul.f32 %v13735_v41, %v12339_v16  ;;  %v2887_v19 = vmul.f32 %v13540_v2, %v12234_v62  ;;  %v2934_v25 = vmul.f32 %v13599_v28, %v12237_v12 }
 0x3aa   :  { %v2647_v42 = vadd.f32 %v2639_v11, %v2599_v46  ;;  %v2894_v6 = vadd.f32 %v2886_v18, %v2846_v29  ;;  %v2935_v15 = vmul.f32 %v13606_v55, %v12237_v12  ;;  %v2982_v37 = vmul.f32 %v13471_v61, %v12240_v31 }
 0x3ab   :  { %v2694_v14 = vadd.f32 %v2686_v33, %v2646_v58  ;;  %v2895_v1 = vadd.f32 %v2887_v19, %v2847_v8  ;;  %v2983_v35 = vmul.f32 %v13478_v43, %v12240_v31  ;;  %v2382_v26 = vmax.f32 %v13700_v0, %v2358_v53 }
 0x3ac   :  { %v2695_v63 = vadd.f32 %v2687_v3, %v2647_v42  ;;  %v2942_v17 = vadd.f32 %v2934_v25, %v2894_v6  ;;  %v3030_v11 = vmul.f32 %v13564_v44, %v12283_v24  ;;  %v2383_v28 = vmax.f32 %v13708_v30, %v2359_v39 }
 0x3ad   :  { %v2742_v7 = vadd.f32 %v2734_v47, %v2694_v14  ;;  %v2943_v51 = vadd.f32 %v2935_v15, %v2895_v1  ;;  %v3031_v33 = vmul.f32 %v13586_v45, %v12283_v24  ;;  %v3078_v8 = vmul.f32 %v13625_v36, %v12294_v40 }
 0x3ae   :  { %v2743_v46 = vadd.f32 %v2735_v60, %v2695_v63  ;;  %v2990_v29 = vadd.f32 %v2982_v37, %v2942_v17  ;;  %v3079_v0 = vmul.f32 %v13632_v22, %v12294_v40  ;;  %v3126_v18 = vmul.f32 %v13394_v50, %v12318_v4 }
 0x3af   :  { %v2798_v3 = vadd.f32 %v2790_v32, %v2742_v7  ;;  %v2991_v53 = vadd.f32 %v2983_v35, %v2943_v51  ;;  %v3127_v30 = vmul.f32 %v13696_v13, %v12318_v4  ;;  %v3174_v60 = vmul.f32 %v13502_v34, %v12336_v10 }
 0x3b0   :  { %v2799_v47 = vadd.f32 %v2791_v54, %v2743_v46  ;;  %v3038_v39 = vadd.f32 %v3030_v11, %v2990_v29  ;;  %v3175_v58 = vmul.f32 %v13735_v41, %v12336_v10  ;;  %v3230_v42 = vmul.f32 %v13577_v9, %v12339_v16  ;;  %v13776_v54 = vld [vmem:[%s14697_s0 + $0xf1] sm:$0xff] }
 0x3b1   :  { %v3039_v19 = vadd.f32 %v3031_v33, %v2991_v53  ;;  %v3286_v32 = vmul.f32 %v13443_v59, %v12215_v23  ;;  %v3287_v6 = vmul.f32 %v13450_v52, %v12215_v23  ;;  %v3231_v15 = vmul.f32 %v13776_v54, %v12339_v16 }
 0x3b2   :  { %v3086_v25 = vadd.f32 %v3078_v8, %v3038_v39  ;;  %v3326_v14 = vmul.f32 %v13457_v5, %v12234_v62  ;;  %v3327_v1 = vmul.f32 %v13464_v20, %v12234_v62  ;;  %v3374_v59 = vmul.f32 %v13471_v61, %v12237_v12 }
 0x3b3   :  { %v3087_v37 = vadd.f32 %v3079_v0, %v3039_v19  ;;  %v3375_v52 = vmul.f32 %v13478_v43, %v12237_v12  ;;  %v3422_v35 = vmul.f32 %v13367_v38, %v12240_v31  ;;  %v3423_v7 = vmul.f32 %v13666_v21, %v12240_v31 }
 0x3b4   :  { %v3134_v63 = vadd.f32 %v3126_v18, %v3086_v25  ;;  %v3334_v17 = vadd.f32 %v3326_v14, %v3286_v32  ;;  %v3335_v11 = vadd.f32 %v3327_v1, %v3287_v6  ;;  %v13792_v51 = vmax.f32 %v2382_v26, %v2798_v3  ;;  %v7762_v32 = vld [vmem:[%s14697_s0 + $0x2a0] sm:$0xff]  ;;  %v13827_v1 = vld [vmem:[%s14697_s0 + $0x330] sm:$0xff] }
 0x3b5   :  { %v13794_v33 = vmax.f32 %v2383_v28, %v2799_v47  ;;  %v3135_v46 = vadd.f32 %v3127_v30, %v3087_v37  ;;  %v3470_v29 = vmul.f32 %v13378_v48, %v12283_v24  ;;  %v3471_v38 = vmul.f32 %v13675_v49, %v12283_v24  ;;  %v7761_v47 = vld [vmem:[%s14697_s0 + $0x210] sm:$0xff] }
 0x3b6   :  { %v3182_v8 = vadd.f32 %v3174_v60, %v3134_v63  ;;  %v3382_v0 = vadd.f32 %v3374_v59, %v3334_v17  ;;  %v3383_v53 = vadd.f32 %v3375_v52, %v3335_v11  ;;  %v3518_v39 = vmul.f32 %v13394_v50, %v12294_v40 }
 0x3b7   :  { %v3183_v18 = vadd.f32 %v3175_v58, %v3135_v46  ;;  %v3519_v21 = vmul.f32 %v13696_v13, %v12294_v40  ;;  %v3574_v26 = vmul.f32 %v13408_v56, %v12318_v4  ;;  %v3575_v60 = vmul.f32 %v7761_v47, %v12318_v4 }
 0x3b8   :  { %v3238_v28 = vadd.f32 %v3230_v42, %v3182_v8  ;;  %v3430_v3 = vadd.f32 %v3422_v35, %v3382_v0  ;;  %v3431_v30 = vadd.f32 %v3423_v7, %v3383_v53  ;;  %v3630_v58 = vmul.f32 %v13422_v27, %v12336_v10 }
 0x3b9   :  { %v13810_v19 = vadd.f32 %v3231_v15, %v3183_v18  ;;  %v3631_v56 = vmul.f32 %v7762_v32, %v12336_v10  ;;  %v3742_v42 = vmul.f32 %v13457_v5, %v12215_v23  ;;  %v3686_v14 = vmul.f32 %v13436_v57, %v12339_v16 }
 0x3ba   :  { %v3478_v6 = vadd.f32 %v3470_v29, %v3430_v3  ;;  %v3479_v25 = vadd.f32 %v3471_v38, %v3431_v30  ;;  %v3743_v15 = vmul.f32 %v13464_v20, %v12215_v23  ;;  %v3687_v37 = vmul.f32 %v13827_v1, %v12339_v16 }
 0x3bb   :  { %v3782_v59 = vmul.f32 %v13471_v61, %v12234_v62  ;;  %v3783_v5 = vmul.f32 %v13478_v43, %v12234_v62  ;;  %v3830_v52 = vmul.f32 %v13564_v44, %v12237_v12  ;;  %v3262_v35 = vmax.f32 %v13792_v51, %v3238_v28 }
 0x3bc   :  { %v3526_v20 = vadd.f32 %v3518_v39, %v3478_v6  ;;  %v3527_v63 = vadd.f32 %v3519_v21, %v3479_v25  ;;  %v3831_v17 = vmul.f32 %v13586_v45, %v12237_v12  ;;  %v3878_v46 = vmul.f32 %v13378_v48, %v12240_v31 }
 0x3bd   :  { %v3790_v11 = vadd.f32 %v3782_v59, %v3742_v42  ;;  %v3791_v7 = vadd.f32 %v3783_v5, %v3743_v15  ;;  %v3879_v29 = vmul.f32 %v13675_v49, %v12240_v31  ;;  %v3263_v8 = vmax.f32 %v13794_v33, %v13810_v19 }
 0x3be   :  { %v3582_v0 = vadd.f32 %v3574_v26, %v3526_v20  ;;  %v3583_v53 = vadd.f32 %v3575_v60, %v3527_v63  ;;  %v3926_v51 = vmul.f32 %v13394_v50, %v12283_v24  ;;  %v3927_v39 = vmul.f32 %v13696_v13, %v12283_v24 }
 0x3bf   :  { %v3838_v38 = vadd.f32 %v3830_v52, %v3790_v11  ;;  %v3839_v18 = vadd.f32 %v3831_v17, %v3791_v7  ;;  %v3974_v21 = vmul.f32 %v13502_v34, %v12294_v40  ;;  %v3975_v49 = vmul.f32 %v13735_v41, %v12294_v40 }
 0x3c0   :  { %v3638_v48 = vadd.f32 %v3630_v58, %v3582_v0  ;;  %v3639_v28 = vadd.f32 %v3631_v56, %v3583_v53  ;;  %v4022_v33 = vmul.f32 %v13422_v27, %v12318_v4  ;;  %v4023_v30 = vmul.f32 %v7762_v32, %v12318_v4 }
 0x3c1   :  { %v3886_v26 = vadd.f32 %v3878_v46, %v3838_v38  ;;  %v3887_v3 = vadd.f32 %v3879_v29, %v3839_v18  ;;  %v4070_v47 = vmul.f32 %v13436_v57, %v12336_v10  ;;  %v4071_v19 = vmul.f32 %v13827_v1, %v12336_v10 }
 0x3c2   :  { %v3694_v60 = vadd.f32 %v3686_v14, %v3638_v48  ;;  %v4126_v58 = vmul.f32 %v13540_v2, %v12339_v16  ;;  %v4182_v56 = vmul.f32 %v13471_v61, %v12215_v23  ;;  %v4183_v27 = vmul.f32 %v13478_v43, %v12215_v23  ;;  %v7764_v14 = vld [vmem:[%s14697_s0 + $0x211] sm:$0xff] }
 0x3c3   :  { %v3934_v42 = vadd.f32 %v3926_v51, %v3886_v26  ;;  %v3935_v6 = vadd.f32 %v3927_v39, %v3887_v3  ;;  %v4222_v32 = vmul.f32 %v13564_v44, %v12234_v62  ;;  %v3695_v25 = vadd.f32 %v3687_v37, %v3639_v28  ;;  %v7767_v48 = vld [vmem:[%s14697_s0 + $0xf0] sm:$0xff]  ;;  %v13926_v3 = vld [vmem:[%s14697_s0 + $0x100] sm:$0xff] }
 0x3c4   :  { %v4127_v15 = vmul.f32 %v7764_v14, %v12339_v16  ;;  %v4223_v59 = vmul.f32 %v13586_v45, %v12234_v62  ;;  %v4270_v61 = vmul.f32 %v13625_v36, %v12237_v12  ;;  %v4271_v43 = vmul.f32 %v13632_v22, %v12237_v12 }
 0x3c5   :  { %v3982_v5 = vadd.f32 %v3974_v21, %v3934_v42  ;;  %v3983_v52 = vadd.f32 %v3975_v49, %v3935_v6  ;;  %v4230_v20 = vadd.f32 %v4222_v32, %v4182_v56  ;;  %v13879_v44 = vmax.f32 %v3262_v35, %v3694_v60  ;;  %v13940_v56 = vld [vmem:[%s14697_s0 + $0x190] sm:$0xff] }
 0x3c6   :  { %v4231_v37 = vadd.f32 %v4223_v59, %v4183_v27  ;;  %v4318_v63 = vmul.f32 %v13394_v50, %v12240_v31  ;;  %v4319_v17 = vmul.f32 %v13696_v13, %v12240_v31  ;;  %v4366_v36 = vmul.f32 %v13502_v34, %v12283_v24  ;;  %v13947_v32 = vld [vmem:[%s14697_s0 + $0x210] sm:$0xff] }
 0x3c7   :  { %v4030_v11 = vadd.f32 %v4022_v33, %v3982_v5  ;;  %v4031_v45 = vadd.f32 %v4023_v30, %v3983_v52  ;;  %v4278_v7 = vadd.f32 %v4270_v61, %v4230_v20  ;;  %v13887_v46 = vmax.f32 %v3263_v8, %v3695_v25  ;;  %v7768_v33 = vld [vmem:[%s14697_s0 + $0x2a1] sm:$0xff] }
 0x3c8   :  { %v4279_v29 = vadd.f32 %v4271_v43, %v4231_v37  ;;  %v4367_v22 = vmul.f32 %v13735_v41, %v12283_v24  ;;  %v4414_v35 = vmul.f32 %v13577_v9, %v12294_v40  ;;  %v4415_v13 = vmul.f32 %v13776_v54, %v12294_v40  ;;  %v7765_v54 = vld [vmem:[%s14697_s0 + $0x60] sm:$0xff] }
 0x3c9   :  { %v4078_v0 = vadd.f32 %v4070_v47, %v4030_v11  ;;  %v4079_v50 = vadd.f32 %v4071_v19, %v4031_v45  ;;  %v4326_v53 = vadd.f32 %v4318_v63, %v4278_v7  ;;  %v4462_v38 = vmul.f32 %v13436_v57, %v12318_v4  ;;  %v13933_v19 = vld [vmem:[%s14697_s0 + $0x180] sm:$0xff]  ;;  %v13977_v7 = vld [vmem:[%s14697_s0 + $0x330] sm:$0xff] }
 0x3ca   :  { %v4327_v51 = vadd.f32 %v4319_v17, %v4279_v29  ;;  %v4463_v34 = vmul.f32 %v13827_v1, %v12318_v4  ;;  %v4510_v8 = vmul.f32 %v13540_v2, %v12336_v10  ;;  %v4511_v9 = vmul.f32 %v7764_v14, %v12336_v10  ;;  %v13911_v1 = vld [vmem:[%s14697_s0 + $0x70] sm:$0xff]  ;;  %v13954_v14 = vld [vmem:[%s14697_s0 + $0x220] sm:$0xff] }
 0x3cb   :  { %v4134_v41 = vadd.f32 %v4126_v58, %v4078_v0  ;;  %v4374_v18 = vadd.f32 %v4366_v36, %v4326_v53  ;;  %v4566_v39 = vmul.f32 %v13606_v55, %v12339_v16  ;;  %v520_v57 = vmul.f32 %v7765_v54, %v12215_v23  ;;  %v13962_v52 = vld [vmem:[%s14697_s0 + $0x2a0] sm:$0xff]  ;;  %v13970_v17 = vld [vmem:[%s14697_s0 + $0x2b0] sm:$0xff] }
 0x3cc   :  { %v4375_v21 = vadd.f32 %v4367_v22, %v4327_v51  ;;  %v521_v2 = vmul.f32 %v13911_v1, %v12215_v23  ;;  %v574_v55 = vmul.f32 %v7767_v48, %v12234_v62  ;;  %v4135_v28 = vadd.f32 %v4127_v15, %v4079_v50  ;;  %v13991_v0 = vld [vmem:[%s14697_s0 + $0x3c0] sm:$0xff]  ;;  %v13998_v53 = vld [vmem:[%s14697_s0 + $0x3d0] sm:$0xff] }
 0x3cd   :  { %v4422_v49 = vadd.f32 %v4414_v35, %v4374_v18  ;;  %v4567_v26 = vmul.f32 %v7768_v33, %v12339_v16  ;;  %v575_v30 = vmul.f32 %v13926_v3, %v12234_v62  ;;  %v636_v58 = vmul.f32 %v13933_v19, %v12237_v12 }
 0x3ce   :  { %v4423_v47 = vadd.f32 %v4415_v13, %v4375_v21  ;;  %v582_v60 = vadd.f32 %v574_v55, %v520_v57  ;;  %v637_v42 = vmul.f32 %v13940_v56, %v12237_v12  ;;  %v698_v25 = vmul.f32 %v13947_v32, %v12240_v31 }
 0x3cf   :  { %v4470_v6 = vadd.f32 %v4462_v38, %v4422_v49  ;;  %v583_v27 = vadd.f32 %v575_v30, %v521_v2  ;;  %v699_v15 = vmul.f32 %v13954_v14, %v12240_v31  ;;  %v4158_v59 = vmax.f32 %v13879_v44, %v4134_v41  ;;  %v14012_v41 = vld [vmem:[%s14697_s0 + $0x460] sm:$0xff]  ;;  %v15404_v49 = vld [vmem:[#allocation41_spill] sm:$0xff] }
 0x3d0   :  { %v4471_v61 = vadd.f32 %v4463_v34, %v4423_v47  ;;  %v644_v5 = vadd.f32 %v636_v58, %v582_v60  ;;  %v760_v20 = vmul.f32 %v13962_v52, %v12283_v24  ;;  %v4159_v43 = vmax.f32 %v13887_v46, %v4135_v28  ;;  %v13984_v46 = vld [vmem:[%s14697_s0 + $0x340] sm:$0xff]  ;;  %v14005_v34 = vld [vmem:[%s14697_s0 + $0x450] sm:$0xff] }
 0x3d1   :  { %v4518_v37 = vadd.f32 %v4510_v8, %v4470_v6  ;;  %v645_v63 = vadd.f32 %v637_v42, %v583_v27  ;;  %v761_v44 = vmul.f32 %v13970_v17, %v12283_v24  ;;  %v822_v36 = vmul.f32 %v13977_v7, %v12294_v40  ;;  %v7782_v30 = vld [vmem:[%s14697_s0 + $0x61] sm:$0xff]  ;;  %v14033_v47 = vld [vmem:[%s14697_s0 + $0x71] sm:$0xff] }
 0x3d2   :  { %v4519_v11 = vadd.f32 %v4511_v9, %v4471_v61  ;;  %v706_v45 = vadd.f32 %v698_v25, %v644_v5  ;;  %v823_v29 = vmul.f32 %v13984_v46, %v12294_v40  ;;  %v884_v50 = vmul.f32 %v13991_v0, %v12318_v4 }
 0x3d3   :  { %v4574_v22 = vadd.f32 %v4566_v39, %v4518_v37  ;;  %v707_v35 = vadd.f32 %v699_v15, %v645_v63  ;;  %v885_v13 = vmul.f32 %v13998_v53, %v12318_v4  ;;  %v946_v8 = vmul.f32 %v14005_v34, %v12336_v10  ;;  %v14044_v15 = vld [vmem:[%s14697_s0 + $0x4e0] sm:$0xff] }
 0x3d4   :  { %v4575_v51 = vadd.f32 %v4567_v26, %v4519_v11  ;;  %v768_v38 = vadd.f32 %v760_v20, %v706_v45  ;;  %v947_v18 = vmul.f32 %v14012_v41, %v12336_v10  ;;  %v1040_v21 = vmul.f32 %v7767_v48, %v12215_v23 }
 0x3d5   :  { %v4598_v9 = vmax.f32 %v4158_v59, %v4574_v22  ;;  %v769_v39 = vadd.f32 %v761_v44, %v707_v35  ;;  %v1041_v54 = vmul.f32 %v13926_v3, %v12215_v23  ;;  %v1080_v55 = vmul.f32 %v13933_v19, %v12234_v62 }
 0x3d6   :  { %v4599_v57 = vmax.f32 %v4159_v43, %v4575_v51  ;;  %v830_v2 = vadd.f32 %v822_v36, %v768_v38  ;;  %v1081_v28 = vmul.f32 %v13940_v56, %v12234_v62  ;;  %v1136_v48 = vmul.f32 %v7782_v30, %v12237_v12  ;;  %v14075_v51 = vld [vmem:[%s14697_s0 + $0x211] sm:$0xff] }
 0x3d7   :  { %v14024_v33 = vadd.f32 %v15404_v49, %v4598_v9  ;;  %v831_v26 = vadd.f32 %v823_v29, %v769_v39  ;;  %v1137_v60 = vmul.f32 %v14033_v47, %v12237_v12  ;;  %v1088_v6 = vadd.f32 %v1080_v55, %v1040_v21 }
 0x3d8   :  { %v14038_v58 = vadd.f32 %v15404_v49, %v4599_v57  ;;  %v892_v42 = vadd.f32 %v884_v50, %v830_v2  ;;  %v1089_v27 = vadd.f32 %v1081_v28, %v1041_v54  ;;  %v1008_v59 = vmul.f32 %v14044_v15, %v12339_v16  ;;  %v14068_v50 = vld [vmem:[%s14697_s0 + $0x4f0] sm:$0xff] }
 0x3d9   :  { %15405 = vst [vmem:[#allocation58_spill] sm:$0xff] %v14024_v33  ;;  %v15048_v25 = vmax.f32 %v14024_v33, 0.0  ;;  %v1184_v61 = vmul.f32 %v13962_v52, %v12240_v31  ;;  %v1185_v5 = vmul.f32 %v13970_v17, %v12240_v31  ;;  %v893_v43 = vadd.f32 %v885_v13, %v831_v26 }
 0x3da   :  { %15406 = vst [vmem:[#allocation56_spill] sm:$0xff] %v14038_v58  ;;  %v15047_v20 = vmax.f32 %v14038_v58, 0.0  ;;  %v1144_v37 = vadd.f32 %v1136_v48, %v1088_v6  ;;  %v1145_v63 = vadd.f32 %v1137_v60, %v1089_v27  ;;  %v954_v11 = vadd.f32 %v946_v8, %v892_v42  ;;  %v14082_v8 = vld [vmem:[%s14697_s0 + $0x221] sm:$0xff] }
 0x3db   :  { %v14055_v44 = vand.u32 4294901760, %v15048_v25  ;;  %v1232_v45 = vmul.f32 %v13977_v7, %v12283_v24  ;;  %v1233_v36 = vmul.f32 %v13984_v46, %v12283_v24  ;;  %v1009_v13 = vmul.f32 %v14068_v50, %v12339_v16 }
 0x3dc   :  { %v14063_v29 = vand.u32 4294901760, %v15047_v20  ;;  %v1192_v22 = vadd.f32 %v1184_v61, %v1144_v37  ;;  %v1193_v35 = vadd.f32 %v1185_v5, %v1145_v63  ;;  %v1288_v38 = vmul.f32 %v14075_v51, %v12294_v40  ;;  %v7788_v61 = vld [vmem:[%s14697_s0 + $0xf1] sm:$0xff] }
 0x3dd   :  { %15407 = vst [vmem:[#allocation59_spill] sm:$0xff] %v14055_v44  ;;  %v1289_v9 = vmul.f32 %v14082_v8, %v12294_v40  ;;  %v1336_v39 = vmul.f32 %v14005_v34, %v12318_v4  ;;  %v1337_v2 = vmul.f32 %v14012_v41, %v12318_v4  ;;  %v955_v55 = vadd.f32 %v947_v18, %v893_v43 }
 0x3de   :  { %15408 = vst [vmem:[#allocation31_spill] sm:$0xff] %v14063_v29  ;;  %v14090_v21 = vpack.c.bf16 %v14063_v29, %v14055_v44  ;;  %v1240_v54 = vadd.f32 %v1232_v45, %v1192_v22  ;;  %v1241_v57 = vadd.f32 %v1233_v36, %v1193_v35  ;;  %v14094_v28 = vadd.f32 %v1008_v59, %v954_v11  ;;  %v14130_v45 = vld [vmem:[%s14697_s0 + $0x3d1] sm:$0xff] }
 0x3df   :  { %v1384_v26 = vmul.f32 %v14044_v15, %v12336_v10  ;;  %v1385_v48 = vmul.f32 %v14068_v50, %v12336_v10  ;;  %v1496_v6 = vmul.f32 %v13933_v19, %v12215_v23  ;;  %v1497_v27 = vmul.f32 %v13940_v56, %v12215_v23  ;;  %v14116_v19 = vld [vmem:[%s14697_s0 + $0x101] sm:$0xff] }
 0x3e0   :  { %15409 = vst [vmem:[#allocation52_spill] sm:$0xff] %v14090_v21  ;;  %7425 = vmatprep.subr.bf16.mxu0 %v14090_v21  ;;  %v1296_v60 = vadd.f32 %v1288_v38, %v1240_v54  ;;  %v1297_v42 = vadd.f32 %v1289_v9, %v1241_v57  ;;  %v1536_v18 = vmul.f32 %v7782_v30, %v12234_v62  ;;  %v14123_v30 = vld [vmem:[%s14697_s0 + $0x3c1] sm:$0xff] }
 0x3e1   :  { %7427 = vmatpush3.bf16.msra.mxu0 %v14090_v21  ;;  %v1537_v59 = vmul.f32 %v14033_v47, %v12234_v62  ;;  %v1592_v5 = vmul.f32 %v7788_v61, %v12237_v12  ;;  %v1593_v43 = vmul.f32 %v14116_v19, %v12237_v12  ;;  %v1440_v11 = vmul.f32 %v14123_v30, %v12339_v16  ;;  %v14198_v21 = vld [vmem:[%s14697_s0 + $0x461] sm:$0xff] }
 0x3e2   :  { %v1344_v37 = vadd.f32 %v1336_v39, %v1296_v60  ;;  %v1345_v63 = vadd.f32 %v1337_v2, %v1297_v42  ;;  %v1441_v36 = vmul.f32 %v14130_v45, %v12339_v16  ;;  %v1544_v22 = vadd.f32 %v1536_v18, %v1496_v6  ;;  %v14147_v6 = vld [vmem:[%s14697_s0 + $0x2a1] sm:$0xff] }
 0x3e3   :  { %v1545_v35 = vadd.f32 %v1537_v59, %v1497_v27  ;;  %v1640_v38 = vmul.f32 %v13977_v7, %v12240_v31  ;;  %v1641_v9 = vmul.f32 %v13984_v46, %v12240_v31  ;;  %v14138_v39 = vadd.f32 %v1009_v13, %v955_v55  ;;  %v14156_v55 = vld [vmem:[%s14697_s0 + $0x2b1] sm:$0xff] }
 0x3e4   :  { %v1392_v54 = vadd.f32 %v1384_v26, %v1344_v37  ;;  %v1393_v57 = vadd.f32 %v1385_v48, %v1345_v63  ;;  %v1688_v2 = vmul.f32 %v14075_v51, %v12283_v24  ;;  %v1600_v60 = vadd.f32 %v1592_v5, %v1544_v22 }
 0x3e5   :  { %v1601_v42 = vadd.f32 %v1593_v43, %v1545_v35  ;;  %v1689_v61 = vmul.f32 %v14082_v8, %v12283_v24  ;;  %v1744_v27 = vmul.f32 %v14147_v6, %v12294_v40  ;;  %v1745_v26 = vmul.f32 %v14156_v55, %v12294_v40 }
 0x3e6   :  { %v14151_v13 = vadd.f32 %v1440_v11, %v1392_v54  ;;  %v1792_v48 = vmul.f32 %v14044_v15, %v12318_v4  ;;  %v1793_v18 = vmul.f32 %v14068_v50, %v12318_v4  ;;  %v14164_v59 = vadd.f32 %v1441_v36, %v1393_v57  ;;  %v14173_v11 = vld [vmem:[%s14697_s0 + $0x451] sm:$0xff] }
 0x3e7   :  { %v1648_v5 = vadd.f32 %v1640_v38, %v1600_v60  ;;  %v1649_v43 = vadd.f32 %v1641_v9, %v1601_v42  ;;  %v1840_v37 = vmul.f32 %v14123_v30, %v12336_v10  ;;  %v1841_v63 = vmul.f32 %v14130_v45, %v12336_v10 }
 0x3e8   :  { %v1896_v22 = vmul.f32 %v14173_v11, %v12339_v16  ;;  %v1952_v36 = vmul.f32 %v13947_v32, %v12215_v23  ;;  %v1953_v35 = vmul.f32 %v13954_v14, %v12215_v23  ;;  %v1992_v54 = vmul.f32 %v13962_v52, %v12234_v62 }
 0x3e9   :  { %v1696_v38 = vadd.f32 %v1688_v2, %v1648_v5  ;;  %v1697_v9 = vadd.f32 %v1689_v61, %v1649_v43  ;;  %v1993_v57 = vmul.f32 %v13970_v17, %v12234_v62  ;;  %v2040_v60 = vmul.f32 %v13977_v7, %v12237_v12 }
 0x3ea   :  { %v2041_v42 = vmul.f32 %v13984_v46, %v12237_v12  ;;  %v2088_v32 = vmul.f32 %v13991_v0, %v12240_v31  ;;  %v2089_v20 = vmul.f32 %v13998_v53, %v12240_v31  ;;  %v2000_v5 = vadd.f32 %v1992_v54, %v1952_v36 }
 0x3eb   :  { %v1752_v2 = vadd.f32 %v1744_v27, %v1696_v38  ;;  %v1753_v61 = vadd.f32 %v1745_v26, %v1697_v9  ;;  %v2001_v43 = vadd.f32 %v1993_v57, %v1953_v35  ;;  %v1472_v25 = vmax.f32 %v14094_v28, %v14151_v13 }
 0x3ec   :  { %v1897_v49 = vmul.f32 %v14198_v21, %v12339_v16  ;;  %v2136_v58 = vmul.f32 %v14005_v34, %v12283_v24  ;;  %v2137_v27 = vmul.f32 %v14012_v41, %v12283_v24  ;;  %v2048_v35 = vadd.f32 %v2040_v60, %v2000_v5 }
 0x3ed   :  { %v1800_v26 = vadd.f32 %v1792_v48, %v1752_v2  ;;  %v1801_v36 = vadd.f32 %v1793_v18, %v1753_v61  ;;  %v2049_v38 = vadd.f32 %v2041_v42, %v2001_v43  ;;  %v1473_v28 = vmax.f32 %v14138_v39, %v14164_v59  ;;  %v14217_v48 = vld [vmem:[%s14697_s0 + $0x80] sm:$0xff]  ;;  %v14230_v42 = vld [vmem:[%s14697_s0 + $0x110] sm:$0xff] }
 0x3ee   :  { %v2184_v13 = vmul.f32 %v14044_v15, %v12294_v40  ;;  %v2185_v9 = vmul.f32 %v14068_v50, %v12294_v40  ;;  %v2240_v54 = vmul.f32 %v13911_v1, %v12318_v4  ;;  %v2096_v33 = vadd.f32 %v2088_v32, %v2048_v35 }
 0x3ef   :  { %v1848_v57 = vadd.f32 %v1840_v37, %v1800_v26  ;;  %v1849_v29 = vadd.f32 %v1841_v63, %v1801_v36  ;;  %v2097_v44 = vadd.f32 %v2089_v20, %v2049_v38  ;;  %v2241_v39 = vmul.f32 %v14217_v48, %v12318_v4 }
 0x3f0   :  { %v2296_v18 = vmul.f32 %v13926_v3, %v12336_v10  ;;  %v2408_v59 = vmul.f32 %v13962_v52, %v12215_v23  ;;  %v2409_v37 = vmul.f32 %v13970_v17, %v12215_v23  ;;  %v2144_v60 = vadd.f32 %v2136_v58, %v2096_v33 }
 0x3f1   :  { %v1904_v63 = vadd.f32 %v1896_v22, %v1848_v57  ;;  %v2145_v20 = vadd.f32 %v2137_v27, %v2097_v44  ;;  %v2297_v32 = vmul.f32 %v14230_v42, %v12336_v10  ;;  %v2448_v2 = vmul.f32 %v13977_v7, %v12234_v62 }
 0x3f2   :  { %v2449_v52 = vmul.f32 %v13984_v46, %v12234_v62  ;;  %v2496_v61 = vmul.f32 %v14075_v51, %v12237_v12  ;;  %v2497_v33 = vmul.f32 %v14082_v8, %v12237_v12  ;;  %v1905_v58 = vadd.f32 %v1897_v49, %v1849_v29  ;;  %v14253_v49 = vld [vmem:[%s14697_s0 + $0x1a0] sm:$0xff] }
 0x3f3   :  { %v2192_v44 = vadd.f32 %v2184_v13, %v2144_v60  ;;  %v2193_v22 = vadd.f32 %v2185_v9, %v2145_v20  ;;  %v2352_v5 = vmul.f32 %v13940_v56, %v12339_v16  ;;  %v2456_v43 = vadd.f32 %v2448_v2, %v2408_v59 }
 0x3f4   :  { %v2457_v27 = vadd.f32 %v2449_v52, %v2409_v37  ;;  %v2544_v26 = vmul.f32 %v14005_v34, %v12240_v31  ;;  %v2545_v36 = vmul.f32 %v14012_v41, %v12240_v31  ;;  %v14248_v35 = vmax.f32 %v1472_v25, %v1904_v63 }
 0x3f5   :  { %v2248_v38 = vadd.f32 %v2240_v54, %v2192_v44  ;;  %v2249_v57 = vadd.f32 %v2241_v39, %v2193_v22  ;;  %v2353_v29 = vmul.f32 %v14253_v49, %v12339_v16  ;;  %v2504_v13 = vadd.f32 %v2496_v61, %v2456_v43 }
 0x3f6   :  { %v2505_v9 = vadd.f32 %v2497_v33, %v2457_v27  ;;  %v2592_v59 = vmul.f32 %v14044_v15, %v12283_v24  ;;  %v2593_v37 = vmul.f32 %v14068_v50, %v12283_v24  ;;  %v14261_v25 = vmax.f32 %v1473_v28, %v1905_v58 }
 0x3f7   :  { %v2304_v54 = vadd.f32 %v2296_v18, %v2248_v38  ;;  %v2305_v39 = vadd.f32 %v2297_v32, %v2249_v57  ;;  %v2640_v63 = vmul.f32 %v14123_v30, %v12294_v40  ;;  %v2552_v60 = vadd.f32 %v2544_v26, %v2504_v13 }
 0x3f8   :  { %v2553_v20 = vadd.f32 %v2545_v36, %v2505_v9  ;;  %v2641_v2 = vmul.f32 %v14130_v45, %v12294_v40  ;;  %v2688_v52 = vmul.f32 %v13926_v3, %v12318_v4  ;;  %v2689_v33 = vmul.f32 %v14230_v42, %v12318_v4 }
 0x3f9   :  { %v2360_v61 = vadd.f32 %v2352_v5, %v2304_v54  ;;  %v2736_v28 = vmul.f32 %v13940_v56, %v12336_v10  ;;  %v2737_v18 = vmul.f32 %v14253_v49, %v12336_v10  ;;  %v2600_v32 = vadd.f32 %v2592_v59, %v2552_v60 }
 0x3fa   :  { %v2601_v58 = vadd.f32 %v2593_v37, %v2553_v20  ;;  %v2848_v44 = vmul.f32 %v13977_v7, %v12215_v23  ;;  %v2849_v22 = vmul.f32 %v13984_v46, %v12215_v23  ;;  %v2361_v43 = vadd.f32 %v2353_v29, %v2305_v39  ;;  %v14297_v39 = vld [vmem:[%s14697_s0 + $0x81] sm:$0xff] }
 0x3fb   :  { %v2792_v5 = vmul.f32 %v14033_v47, %v12339_v16  ;;  %v2888_v27 = vmul.f32 %v14075_v51, %v12234_v62  ;;  %v2889_v26 = vmul.f32 %v14082_v8, %v12234_v62  ;;  %v2648_v36 = vadd.f32 %v2640_v63, %v2600_v32 }
 0x3fc   :  { %v2649_v38 = vadd.f32 %v2641_v2, %v2601_v58  ;;  %v2936_v57 = vmul.f32 %v14147_v6, %v12237_v12  ;;  %v2937_v7 = vmul.f32 %v14156_v55, %v12237_v12  ;;  %v2984_v29 = vmul.f32 %v14044_v15, %v12240_v31 }
 0x3fd   :  { %v2896_v13 = vadd.f32 %v2888_v27, %v2848_v44  ;;  %v2897_v9 = vadd.f32 %v2889_v26, %v2849_v22  ;;  %v2985_v59 = vmul.f32 %v14068_v50, %v12240_v31  ;;  %v2384_v51 = vmax.f32 %v14248_v35, %v2360_v61 }
 0x3fe   :  { %v2696_v37 = vadd.f32 %v2688_v52, %v2648_v36  ;;  %v2697_v54 = vadd.f32 %v2689_v33, %v2649_v38  ;;  %v2793_v6 = vmul.f32 %v14297_v39, %v12339_v16  ;;  %v3032_v20 = vmul.f32 %v14123_v30, %v12283_v24 }
 0x3ff   :  { %v2944_v63 = vadd.f32 %v2936_v57, %v2896_v13  ;;  %v2945_v60 = vadd.f32 %v2937_v7, %v2897_v9  ;;  %v3033_v2 = vmul.f32 %v14130_v45, %v12283_v24  ;;  %v2385_v35 = vmax.f32 %v14261_v25, %v2361_v43 }
 0x400   :  { %v2744_v52 = vadd.f32 %v2736_v28, %v2696_v37  ;;  %v2745_v61 = vadd.f32 %v2737_v18, %v2697_v54  ;;  %v3080_v33 = vmul.f32 %v14173_v11, %v12294_v40  ;;  %v3081_v44 = vmul.f32 %v14198_v21, %v12294_v40 }
 0x401   :  { %v2992_v32 = vadd.f32 %v2984_v29, %v2944_v63  ;;  %v2993_v58 = vadd.f32 %v2985_v59, %v2945_v60  ;;  %v3128_v22 = vmul.f32 %v13940_v56, %v12318_v4  ;;  %v3129_v26 = vmul.f32 %v14253_v49, %v12318_v4 }
 0x402   :  { %v2800_v27 = vadd.f32 %v2792_v5, %v2744_v52  ;;  %v3176_v25 = vmul.f32 %v14033_v47, %v12336_v10  ;;  %v3177_v28 = vmul.f32 %v14297_v39, %v12336_v10  ;;  %v3288_v36 = vmul.f32 %v13991_v0, %v12215_v23 }
 0x403   :  { %v3040_v18 = vadd.f32 %v3032_v20, %v2992_v32  ;;  %v3041_v43 = vadd.f32 %v3033_v2, %v2993_v58  ;;  %v3289_v38 = vmul.f32 %v13998_v53, %v12215_v23  ;;  %v2801_v57 = vadd.f32 %v2793_v6, %v2745_v61  ;;  %v14341_v2 = vld [vmem:[%s14697_s0 + $0x111] sm:$0xff] }
 0x404   :  { %v3232_v5 = vmul.f32 %v14116_v19, %v12339_v16  ;;  %v3328_v7 = vmul.f32 %v14005_v34, %v12234_v62  ;;  %v3329_v13 = vmul.f32 %v14012_v41, %v12234_v62  ;;  %v3376_v59 = vmul.f32 %v14044_v15, %v12237_v12 }
 0x405   :  { %v3088_v9 = vadd.f32 %v3080_v33, %v3040_v18  ;;  %v3089_v29 = vadd.f32 %v3081_v44, %v3041_v43  ;;  %v3377_v0 = vmul.f32 %v14068_v50, %v12237_v12  ;;  %v3424_v54 = vmul.f32 %v13911_v1, %v12240_v31 }
 0x406   :  { %v3336_v37 = vadd.f32 %v3328_v7, %v3288_v36  ;;  %v3337_v53 = vadd.f32 %v3329_v13, %v3289_v38  ;;  %v3425_v6 = vmul.f32 %v14217_v48, %v12240_v31  ;;  %v14336_v63 = vmax.f32 %v2384_v51, %v2800_v27  ;;  %v7801_v36 = vld [vmem:[%s14697_s0 + $0x230] sm:$0xff] }
 0x407   :  { %v3136_v60 = vadd.f32 %v3128_v22, %v3088_v9  ;;  %v3137_v20 = vadd.f32 %v3129_v26, %v3089_v29  ;;  %v3233_v52 = vmul.f32 %v14341_v2, %v12339_v16  ;;  %v3472_v1 = vmul.f32 %v13926_v3, %v12283_v24 }
 0x408   :  { %v3384_v61 = vadd.f32 %v3376_v59, %v3336_v37  ;;  %v3385_v33 = vadd.f32 %v3377_v0, %v3337_v53  ;;  %v3473_v48 = vmul.f32 %v14230_v42, %v12283_v24  ;;  %v14349_v51 = vmax.f32 %v2385_v35, %v2801_v57 }
 0x409   :  { %v3184_v32 = vadd.f32 %v3176_v25, %v3136_v60  ;;  %v3185_v58 = vadd.f32 %v3177_v28, %v3137_v20  ;;  %v3520_v44 = vmul.f32 %v13940_v56, %v12294_v40  ;;  %v3521_v26 = vmul.f32 %v14253_v49, %v12294_v40  ;;  %v7802_v28 = vld [vmem:[%s14697_s0 + $0x2c0] sm:$0xff] }
 0x40a   :  { %v3432_v22 = vadd.f32 %v3424_v54, %v3384_v61  ;;  %v3433_v27 = vadd.f32 %v3425_v6, %v3385_v33  ;;  %v3576_v18 = vmul.f32 %v13954_v14, %v12318_v4  ;;  %v3577_v35 = vmul.f32 %v7801_v36, %v12318_v4  ;;  %v7803_v33 = vld [vmem:[%s14697_s0 + $0x350] sm:$0xff] }
 0x40b   :  { %v3240_v43 = vadd.f32 %v3232_v5, %v3184_v32  ;;  %v3632_v25 = vmul.f32 %v13970_v17, %v12336_v10  ;;  %v3633_v38 = vmul.f32 %v7802_v28, %v12336_v10  ;;  %v3744_v14 = vmul.f32 %v14005_v34, %v12215_v23 }
 0x40c   :  { %v3480_v57 = vadd.f32 %v3472_v1, %v3432_v22  ;;  %v3481_v7 = vadd.f32 %v3473_v48, %v3433_v27  ;;  %v3745_v5 = vmul.f32 %v14012_v41, %v12215_v23  ;;  %v3241_v13 = vadd.f32 %v3233_v52, %v3185_v58 }
 0x40d   :  { %v3688_v9 = vmul.f32 %v13984_v46, %v12339_v16  ;;  %v3784_v29 = vmul.f32 %v14044_v15, %v12234_v62  ;;  %v3785_v59 = vmul.f32 %v14068_v50, %v12234_v62  ;;  %v3832_v53 = vmul.f32 %v14123_v30, %v12237_v12 }
 0x40e   :  { %v3528_v0 = vadd.f32 %v3520_v44, %v3480_v57  ;;  %v3529_v37 = vadd.f32 %v3521_v26, %v3481_v7  ;;  %v3833_v34 = vmul.f32 %v14130_v45, %v12237_v12  ;;  %v3880_v6 = vmul.f32 %v13926_v3, %v12240_v31 }
 0x40f   :  { %v3792_v54 = vadd.f32 %v3784_v29, %v3744_v14  ;;  %v3793_v41 = vadd.f32 %v3785_v59, %v3745_v5  ;;  %v3881_v60 = vmul.f32 %v14230_v42, %v12240_v31  ;;  %v3264_v20 = vmax.f32 %v14336_v63, %v3240_v43 }
 0x410   :  { %v3584_v52 = vadd.f32 %v3576_v18, %v3528_v0  ;;  %v3585_v61 = vadd.f32 %v3577_v35, %v3529_v37  ;;  %v3689_v1 = vmul.f32 %v7803_v33, %v12339_v16  ;;  %v3928_v58 = vmul.f32 %v13940_v56, %v12283_v24 }
 0x411   :  { %v3840_v48 = vadd.f32 %v3832_v53, %v3792_v54  ;;  %v3841_v32 = vadd.f32 %v3833_v34, %v3793_v41  ;;  %v3929_v3 = vmul.f32 %v14253_v49, %v12283_v24  ;;  %v3265_v42 = vmax.f32 %v14349_v51, %v3241_v13 }
 0x412   :  { %v3640_v44 = vadd.f32 %v3632_v25, %v3584_v52  ;;  %v3641_v63 = vadd.f32 %v3633_v38, %v3585_v61  ;;  %v3976_v22 = vmul.f32 %v14033_v47, %v12294_v40  ;;  %v3977_v18 = vmul.f32 %v14297_v39, %v12294_v40 }
 0x413   :  { %v3888_v27 = vadd.f32 %v3880_v6, %v3840_v48  ;;  %v3889_v26 = vadd.f32 %v3881_v60, %v3841_v32  ;;  %v4024_v43 = vmul.f32 %v13970_v17, %v12318_v4  ;;  %v4025_v35 = vmul.f32 %v7802_v28, %v12318_v4  ;;  %v6700_v6 = vld [vmem:[%s14700_s3 + $0x20] sm:$0xff] }
 0x414   :  { %v3696_v36 = vadd.f32 %v3688_v9, %v3640_v44  ;;  %v4072_v57 = vmul.f32 %v13984_v46, %v12336_v10  ;;  %v4073_v51 = vmul.f32 %v7803_v33, %v12336_v10  ;;  %v4184_v7 = vmul.f32 %v14044_v15, %v12215_v23 }
 0x415   :  { %v3936_v25 = vadd.f32 %v3928_v58, %v3888_v27  ;;  %v3937_v38 = vadd.f32 %v3929_v3, %v3889_v26  ;;  %v4185_v14 = vmul.f32 %v14068_v50, %v12215_v23  ;;  %v3697_v5 = vadd.f32 %v3689_v1, %v3641_v63  ;;  %v6701_v1 = vld [vmem:[%s14700_s3 + $0x28] sm:$0x3]  ;;  %v15410_v58 = vld [vmem:[#allocation61_spill] sm:$0xff] }
 0x416   :  { %v4128_v17 = vmul.f32 %v14082_v8, %v12339_v16  ;;  %v4224_v28 = vmul.f32 %v14123_v30, %v12234_v62  ;;  %v4225_v13 = vmul.f32 %v14130_v45, %v12234_v62  ;;  %v4272_v59 = vmul.f32 %v14173_v11, %v12237_v12  ;;  %v7804_v45 = vld [vmem:[%s14697_s0 + $0x231] sm:$0xff] }
 0x417   :  { %v3984_v9 = vadd.f32 %v3976_v22, %v3936_v25  ;;  %v3985_v29 = vadd.f32 %v3977_v18, %v3937_v38  ;;  %v4273_v15 = vmul.f32 %v14198_v21, %v12237_v12  ;;  %v4320_v50 = vmul.f32 %v13940_v56, %v12240_v31  ;;  %v15417_v18 = vld [vmem:[#allocation49_spill] sm:$0xff] }
 0x418   :  { %v4232_v0 = vadd.f32 %v4224_v28, %v4184_v7  ;;  %v4233_v23 = vadd.f32 %v4225_v13, %v4185_v14  ;;  %v4321_v37 = vmul.f32 %v14253_v49, %v12240_v31  ;;  %v14423_v30 = vmax.f32 %v3264_v20, %v3696_v36  ;;  %v15420_v7 = vld [vmem:[#allocation65_spill] sm:$0xff] }
 0x419   :  { %v4032_v53 = vadd.f32 %v4024_v43, %v3984_v9  ;;  %v4033_v62 = vadd.f32 %v4025_v35, %v3985_v29  ;;  %v4129_v11 = vmul.f32 %v7804_v45, %v12339_v16  ;;  %v4368_v21 = vmul.f32 %v14033_v47, %v12283_v24  ;;  %v15418_v43 = vld [vmem:[#allocation48_spill] sm:$0xff] }
 0x41a   :  { %v4280_v34 = vadd.f32 %v4272_v59, %v4232_v0  ;;  %v4281_v12 = vadd.f32 %v4273_v15, %v4233_v23  ;;  %v4369_v56 = vmul.f32 %v14297_v39, %v12283_v24  ;;  %v3721_v54 = vmax.f32 %v3265_v42, %v3697_v5  ;;  %v15422_v5 = vld [vmem:[#allocation66_spill] sm:$0xff]  ;;  %v15425_v0 = vld [vmem:[#allocation23_spill] sm:$0xff] }
 0x41b   :  { %v4080_v31 = vadd.f32 %v4072_v57, %v4032_v53  ;;  %v4081_v49 = vadd.f32 %v4073_v51, %v4033_v62  ;;  %v4416_v41 = vmul.f32 %v14116_v19, %v12294_v40  ;;  %v4417_v52 = vmul.f32 %v14341_v2, %v12294_v40  ;;  %v15412_v40 = vld [vmem:[#allocation13_spill] sm:$0xff]  ;;  %v15428_v53 = vld [vmem:[#allocation28_spill] sm:$0xff] }
 0x41c   :  { %v4328_v60 = vadd.f32 %v4320_v50, %v4280_v34  ;;  %v4329_v20 = vadd.f32 %v4321_v37, %v4281_v12  ;;  %v4464_v47 = vmul.f32 %v13984_v46, %v12318_v4  ;;  %v4465_v24 = vmul.f32 %v7803_v33, %v12318_v4  ;;  %v15415_v33 = vld [vmem:[#allocation70_spill] sm:$0xff] }
 0x41d   :  { %v4136_v61 = vadd.f32 %v4128_v17, %v4080_v31  ;;  %v4512_v39 = vmul.f32 %v14082_v8, %v12336_v10  ;;  %v4513_v19 = vmul.f32 %v7804_v45, %v12336_v10  ;;  %v15411_v3 = vand.u32 4294901760, %v15410_v58  ;;  %v15414_v10 = vld [vmem:[#allocation45_spill] sm:$0xff]  ;;  %v15427_v37 = vld [vmem:[#allocation30_spill] sm:$0xff] }
 0x41e   :  { %v4376_v48 = vadd.f32 %v4368_v21, %v4328_v60  ;;  %v4377_v32 = vadd.f32 %v4369_v56, %v4329_v20  ;;  %v15413_v2 = vand.u32 4294901760, %v15412_v40  ;;  %v5838_v46 = vsel %vm4643_vm0, %v6700_v6, 0  ;;  %v15435_v58 = vld [vmem:[#allocation58_spill] sm:$0xff] }
 0x41f   :  { %v4137_v44 = vadd.f32 %v4129_v11, %v4081_v49  ;;  %v4568_v4 = vmul.f32 %v14156_v55, %v12339_v16  ;;  %v14456_v8 = vand.u32 4294901760, %v5838_v46  ;;  %v15416_v63 = vmax.f32 %v15415_v33, 0.0  ;;  %v7805_v55 = vld [vmem:[%s14697_s0 + $0x2c1] sm:$0xff] }
 0x420   :  { %v7288_v42 = vpack.c.bf16 %v15413_v2, %v15411_v3  ;;  %v4424_v27 = vadd.f32 %v4416_v41, %v4376_v48  ;;  %v4425_v26 = vadd.f32 %v4417_v52, %v4377_v32  ;;  %v15419_v36 = vmax.f32 %v15418_v43, 0.0  ;;  %v15430_v52 = vld [vmem:[#allocation21_spill] sm:$0xff]  ;;  %v15434_v32 = vld [vmem:[#allocation59_spill] sm:$0xff] }
 0x421   :  { %v14461_v22 = vsub.f32 %v15416_v63, %v15414_v10  ;;  %v5841_v57 = vsel %vm4643_vm0, %v6701_v1, 0  ;;  %v4569_v51 = vmul.f32 %v7805_v55, %v12339_v16  ;;  %v14474_v25 = vsub.f32 %v5838_v46, %v14456_v8  ;;  %v15424_v16 = vld [vmem:[#allocation33_spill] sm:$0xff]  ;;  %v15437_v2 = vld [vmem:[#allocation31_spill] sm:$0xff] }
 0x422   :  { %7289 = vmatprep.subr.bf16.mxu1 %v7288_v42  ;;  %v14466_v35 = vsub.f32 %v15419_v36, %v15417_v18  ;;  %v15421_v14 = vand.u32 4294901760, %v15420_v7  ;;  %v15423_v17 = vand.u32 4294901760, %v15422_v5  ;;  %v4472_v13 = vadd.f32 %v4464_v47, %v4424_v27  ;;  %v15441_v27 = vld [vmem:[#allocation29_spill] sm:$0xff] }
 0x423   :  { %v5939_v38 = vand.u32 4294901760, %v14461_v22  ;;  %7291 = vmatpush3.bf16.msra.mxu1 %v7288_v42  ;;  %v4473_v9 = vadd.f32 %v4465_v24, %v4425_v26  ;;  %v14482_v59 = vand.u32 4294901760, %v5841_v57  ;;  %v5918_v15 = vand.u32 4294901760, %v14474_v25  ;;  %v15438_v42 = vld [vmem:[#allocation56_spill] sm:$0xff]  ;;  %v15443_v18 = vld [vmem:[#allocation69_spill] sm:$0xff] }
 0x424   :  { %v7292_v28 = vpack.c.bf16 %v15423_v17, %v15421_v14  ;;  %v5946_v29 = vand.u32 4294901760, %v14466_v35  ;;  %v15426_v23 = vmax.f32 %v15425_v0, 0.0  ;;  %v15429_v62 = vmax.f32 %v15428_v53, 0.0  ;;  %v15445_v53 = vld [vmem:[#allocation42_spill] sm:$0xff] }
 0x425   :  { %v4160_v11 = vmax.f32 %v14423_v30, %v4136_v61  ;;  %v4161_v34 = vmax.f32 %v3721_v54, %v4137_v44  ;;  %v4520_v12 = vadd.f32 %v4512_v39, %v4472_v13  ;;  %v4521_v21 = vadd.f32 %v4513_v19, %v4473_v9  ;;  %v15432_v61 = vld [vmem:[#allocation24_spill] sm:$0xff] }
 0x426   :  { %7293 = vmatprep.subr.bf16.mxu1 %v7292_v28  ;;  %v14488_v50 = vsub.f32 %v15426_v23, %v15424_v16  ;;  %v14493_v45 = vsub.f32 %v15429_v62, %v15427_v37  ;;  %v5919_v56 = vsub.f32 %v14474_v25, %v5918_v15  ;;  %v5940_v31 = vsub.f32 %v14461_v22, %v5939_v38 }
 0x427   :  { %7295 = vmatpush3.bf16.msra.mxu1 %v7292_v28  ;;  %v4576_v49 = vadd.f32 %v4568_v4, %v4520_v12  ;;  %v4577_v41 = vadd.f32 %v4569_v51, %v4521_v21  ;;  %v5947_v6 = vsub.f32 %v14466_v35, %v5946_v29  ;;  %v14506_v30 = vsub.f32 %v5841_v57, %v14482_v59  ;;  %v15440_v4 = vld [vmem:[#allocation41_spill] sm:$0xff] }
 0x428   :  { %v5920_v54 = vand.u32 4294901760, %v5919_v56  ;;  %v5953_v60 = vand.u32 4294901760, %v14488_v50  ;;  %v5960_v20 = vand.u32 4294901760, %v14493_v45  ;;  %v15431_v47 = vand.u32 4294901760, %v15430_v52  ;;  %v15446_v21 = vld [vmem:[#allocation37_spill] sm:$0xff] }
 0x429   :  { %v15433_v24 = vand.u32 4294901760, %v15432_v61  ;;  %v4600_v19 = vmax.f32 %v4160_v11, %v4576_v49  ;;  %v4601_v1 = vmax.f32 %v4161_v34, %v4577_v41  ;;  %v5941_v48 = vand.u32 4294901760, %v5940_v31 }
 0x42a   :  { %7126 = vmatprep.mubr.f32.mxu0 %v5920_v54  ;;  %v15436_v3 = vmax.f32 %v15435_v58, 0.0  ;;  %v15439_v46 = vmax.f32 %v15438_v42, 0.0  ;;  %v5928_v63 = vand.u32 4294901760, %v14506_v30  ;;  %v15442_v26 = vand.u32 4294901760, %v15441_v27  ;;  %v15453_v27 = vld [vmem:[#allocation50_spill] sm:$0xff] }
 0x42b   :  { %v7296_v39 = vpack.c.bf16 %v15433_v24, %v15431_v47  ;;  %v5824_v10 = vadd.f32 %v15440_v4, %v4600_v19  ;;  %v5825_v33 = vadd.f32 %v15440_v4, %v4601_v1  ;;  %v15444_v43 = vand.u32 4294901760, %v15443_v18  ;;  %v15448_v24 = vld [vmem:[#allocation14_spill] sm:$0xff]  ;;  %v15454_v18 = vld [vmem:[#allocation60_spill] sm:$0xff] }
 0x42c   :  { %v14517_v40 = vsub.f32 %v15436_v3, %v15434_v32  ;;  %v14522_v44 = vsub.f32 %v15439_v46, %v15437_v2  ;;  %v5948_v57 = vand.u32 4294901760, %v5947_v6  ;;  %v5954_v55 = vsub.f32 %v14488_v50, %v5953_v60  ;;  %v15447_v6 = vld [vmem:[#allocation27_spill] sm:$0xff]  ;;  %v15449_v32 = vld [vmem:[#allocation53_spill] sm:$0xff]  ;;  %v15450_v3 = vld [vmem:[#allocation16_spill] sm:$0xff] }
 0x42d   :  { %7297 = vmatprep.subr.bf16.mxu1 %v7296_v39  ;;  %v7300_v36 = vpack.c.bf16 %v15444_v43, %v15442_v26  ;;  %v5961_v51 = vsub.f32 %v14493_v45, %v5960_v20  ;;  %v5832_v14 = vmax.f32 %v5824_v10, 0.0  ;;  %v5833_v5 = vmax.f32 %v5825_v33, 0.0  ;;  %v15452_v46 = vld [vmem:[#allocation35_spill] sm:$0xff]  ;;  %v6425_v4 = vld [vmem:[%s14701_s4] sm:$0xff]  ;;  %v15455_v43 = vld [vmem:[#allocation57_spill] sm:$0xff] }
 0x42e   :  { %7299 = vmatpush3.bf16.msra.mxu1 %v7296_v39  ;;  %v5967_v7 = vand.u32 4294901760, %v14517_v40  ;;  %v5974_v17 = vand.u32 4294901760, %v14522_v44  ;;  %v5929_v9 = vsub.f32 %v14506_v30, %v5928_v63  ;;  %v7432_v16 = vpack.c.bf16 %v5948_v57, %v5941_v48  ;;  %v6426_v39 = vld [vmem:[%s14701_s4 + $0x8] sm:$0x3]  ;;  %s7861_s4 = smov [#allocation8]  }
 0x42f   :  { %7301 = vmatprep.subr.bf16.mxu1 %v7300_v36  ;;  %v5862_v28 = vand.u32 4294901760, %v5832_v14  ;;  %v5865_v13 = vand.u32 4294901760, %v5833_v5  ;;  %v5955_v0 = vand.u32 4294901760, %v5954_v55  ;;  %v5962_v23 = vand.u32 4294901760, %v5961_v51  ;;  %v15457_v55 = vld [vmem:[#allocation36_spill] sm:$0xff]  ;;  %s6473_s19 = sshll.u32 %s7861_s4, 4  ;;  %s6474_s19 = int_to_ptr.vmem [resolvable:$true] %s6473_s19 }
 0x430   :  { %v5968_v37 = vsub.f32 %v14517_v40, %v5967_v7  ;;  %v5975_v11 = vsub.f32 %v14522_v44, %v5974_v17  ;;  %v5930_v56 = vand.u32 4294901760, %v5929_v9  ;;  %v7860_v58 = vmov 0   ;;  %v15459_v9 = vld [vmem:[#allocation17_spill] sm:$0xff]  ;;  %s7830_s20 = scalar_lea.vmem %s6474_s19, 256  ;;  %p7835_p11 = scmp.lt.s32.totalorder %s6474_s19, %s6474_s19 }
 0x431   :  { %v14546_v62 = vpack.c.bf16 %v5865_v13, %v5862_v28  ;;  %v14551_v34 = vsub.f32 %v5832_v14, %v5862_v28  ;;  %v14553_v12 = vsub.f32 %v5833_v5, %v5865_v13  ;;  %v7436_v41 = vpack.c.bf16 %v5962_v23, %v5955_v0  ;;  %7552 = vset.pattern.permute.xlu0 %v7860_v58  ;;  %v15461_v23 = vld [vmem:[#allocation15_spill] sm:$0xff]  ;;  %p7831_p10 = scmp.ne.s32.totalorder %s6474_s19, %s7830_s20  ;;  %p7836_p12 = scmp.lt.s32.totalorder %s7830_s20, %s7830_s20 }
 0x432   :  { %7303 = vmatpush3.bf16.msra.mxu1 %v7300_v36  ;;  %v5969_v54 = vand.u32 4294901760, %v5968_v37  ;;  %v5976_v52 = vand.u32 4294901760, %v5975_v11  ;;  %v15451_v2 = vand.u32 4294901760, %v15450_v3  ;;  %6434 = vperm.xlu0 %7552, %v6426_v39   ;;  %v7448_v26 = vpack.c.bf16 %v14466_v35, %v14461_v22  ;;  %v15467_v39 = vld [vmem:[#allocation25_spill] sm:$0xff] }
 0x433   :  { %7305 = vmatprep.subr.bf16.mxu1 %v15445_v53  ;;  %7429 = vmatprep.subr.bf16.mxu0 %v14546_v62  ;;  %v5981_v31 = vand.u32 4294901760, %v14551_v34  ;;  %v5988_v49 = vand.u32 4294901760, %v14553_v12  ;;  %v15456_v36 = vand.u32 4294901760, %v15455_v43  ;;  %v15458_v51 = vand.u32 4294901760, %v15457_v55  ;;  %p7837_p13 = por %p7836_p12, %p7835_p11 }
 0x434   :  { %7431 = vmatpush3.bf16.msra.mxu0 %v14546_v62  ;;  %v7440_v19 = vpack.c.bf16 %v5976_v52, %v5969_v54  ;;  %v5312_v42 = vsub.f32 %v15450_v3, %v15451_v2  ;;  %v7452_v5 = vpack.c.bf16 %v14493_v45, %v14488_v50  ;;  %v15462_v37 = vand.u32 4294901760, %v15461_v23  ;;  %v15466_v54 = vld [vmem:[#allocation22_spill] sm:$0xff] }
 0x435   :  { %6975 = vmatmul.mubr.f32.vlgmr.msra.gmra.mrb[0].mxu1 %v15446_v21  ;;  %7433 = vmatprep.subr.bf16.mxu0 %v7432_v16  ;;  %v5982_v47 = vsub.f32 %v14551_v34, %v5981_v31  ;;  %v5989_v61 = vsub.f32 %v14553_v12, %v5988_v49  ;;  %v5333_v57 = vsub.f32 %v15455_v43, %v15456_v36  ;;  %p7838_p0 = pnand %p7837_p13, %p7831_p10 }
 0x436   :  { %7307 = vmatpush3.bf16.msra.mxu1 %v15445_v53  ;;  %6993 = vmatprep.mubr.f32.mxu1 %v15448_v24  ;;  %v5313_v33 = vand.u32 4294901760, %v5312_v42  ;;  %v5340_v14 = vsub.f32 %v15457_v55, %v15458_v51  ;;  %v5354_v53 = vsub.f32 %v15461_v23, %v15462_v37  ;;  %v7456_v11 = vpack.c.bf16 %v14522_v44, %v14517_v40  ;;  %v15478_v37 = vld [vmem:[#allocation52_spill] sm:$0xff] }
 0x437   :  { %7309 = vmatprep.subr.bf16.mxu1 %v15447_v6  ;;  %7127 = vmatmul.mubr.f32.vlgmr.msra.gmra.mrb[0].mxu0 %v5930_v56  ;;  %v5983_v1 = vand.u32 4294901760, %v5982_v47  ;;  %v5990_v48 = vand.u32 4294901760, %v5989_v61  ;;  %v5334_v28 = vand.u32 4294901760, %v5333_v57  ;;  %v15464_v56 = vld [vmem:[#allocation38_spill] sm:$0xff]  ;;  %v7460_v24 = vpack.c.bf16 %v14553_v12, %v14551_v34 }
 0x438   :  { %7435 = vmatpush3.bf16.msra.mxu0 %v7432_v16  ;;  %7145 = vmatprep.mubr.f32.mxu0 %v14456_v8  ;;  %v5341_v13 = vand.u32 4294901760, %v5340_v14  ;;  %v15460_v16 = vand.u32 4294901760, %v15459_v9  ;;  %v5355_v61 = vand.u32 4294901760, %v5354_v53  ;;  %v15475_v57 = vld [vmem:[#allocation62_spill] sm:$0xff]  ;;  %v15479_v53 = vld [vmem:[#allocation64_spill] sm:$0xff] }
 0x439   :  { %7437 = vmatprep.subr.bf16.mxu0 %v7436_v41  ;;  %v7444_v10 = vpack.c.bf16 %v5990_v48, %v5983_v1  ;;  %6429 = vperm.xlu0 %7552, %v6425_v4   ;;  %v15469_v48 = vld [vmem:[#allocation26_spill] sm:$0xff] }
 0x43a   :  { %7311 = vmatpush3.bf16.msra.mxu1 %v15447_v6  ;;  %v5347_v0 = vsub.f32 %v15459_v9, %v15460_v16  ;;  %v7336_v52 = vpack.c.bf16 %v5341_v13, %v5334_v28  ;;  %v15477_v16 = vld [vmem:[#allocation32_spill] sm:$0xff]  ;;  %v7360_v22 = vpack.c.bf16 %v15469_v48, %v15467_v39 }
 0x43b   :  { %7313 = vmatprep.subr.bf16.mxu1 %v15449_v32 }
 0x43c   :  { %7439 = vmatpush3.bf16.msra.mxu0 %v7436_v41  ;;  %v15465_v41 = vand.u32 4294901760, %v15464_v56  ;;  %v5348_v47 = vand.u32 4294901760, %v5347_v0  ;;  %v7352_v0 = vpack.c.bf16 %v15457_v55, %v15455_v43  ;;  %v7484_v43 = vpack.c.bf16 %v5960_v20, %v5953_v60 }
 0x43d   :  { %7441 = vmatprep.subr.bf16.mxu0 %v7440_v19 }
 0x43e   :  { %7315 = vmatpush3.bf16.msra.mxu1 %v15449_v32  ;;  %v5322_v6 = vsub.f32 %v15464_v56, %v15465_v41  ;;  %v15470_v32 = vand.u32 4294901760, %v15469_v48  ;;  %v7340_v42 = vpack.c.bf16 %v5355_v61, %v5348_v47 }
 0x43f   :  { %7317 = vmatprep.subr.bf16.mxu1 %v15452_v46 }
 0x440   :  { %7443 = vmatpush3.bf16.msra.mxu0 %v7440_v19  ;;  %v15468_v19 = vand.u32 4294901760, %v15467_v39  ;;  %v5368_v58 = vsub.f32 %v15469_v48, %v15470_v32  ;;  %v5323_v2 = vand.u32 4294901760, %v5322_v6 }
 0x441   :  { %7445 = vmatprep.subr.bf16.mxu0 %v7444_v10 }
 0x442   :  { %7319 = vmatpush3.bf16.msra.mxu1 %v15452_v46  ;;  %v5361_v1 = vsub.f32 %v15467_v39, %v15468_v19  ;;  %v15471_v46 = vld [vmem:[#allocation63_spill] sm:$0xff]  ;;  %v5369_v36 = vand.u32 4294901760, %v5368_v58 }
 0x443   :  { %7321 = vmatprep.subr.bf16.mxu1 %v15453_v27  ;;  %v15472_v4 = vand.u32 4294901760, %v15471_v46 }
 0x444   :  { %7447 = vmatpush3.bf16.msra.mxu0 %v7444_v10 }
 0x445   :  { %6994 = vmatmul.mubr.f32.vlgmr.msra.gmra.mrb[0].mxu1 %v15446_v21  ;;  %7449 = vmatprep.subr.bf16.mxu0 %v7448_v26  ;;  %v15463_v21 = vld [vmem:[#allocation20_spill] sm:$0xff]  ;;  %v5375_v10 = vsub.f32 %v15471_v46, %v15472_v4 }
 0x446   :  { %7323 = vmatpush3.bf16.msra.mxu1 %v15453_v27  ;;  %7012 = vmatprep.mubr.f32.mxu1 %v5313_v33  ;;  %v15473_v33 = vld [vmem:[#allocation19_spill] sm:$0xff] }
 0x447   :  { %7325 = vmatprep.subr.bf16.mxu1 %v15454_v18  ;;  %7146 = vmatmul.mubr.f32.vlgmr.msra.gmra.mrb[0].mxu0 %v14482_v59  ;;  %v15474_v27 = vand.u32 4294901760, %v15473_v33  ;;  %v5376_v51 = vand.u32 4294901760, %v5375_v10  ;;  %v7364_v35 = vpack.c.bf16 %v15473_v33, %v15471_v46 }
 0x448   :  { %7451 = vmatpush3.bf16.msra.mxu0 %v7448_v26  ;;  %7164 = vmatprep.mubr.f32.mxu0 %v14474_v25  ;;  %v7356_v25 = vpack.c.bf16 %v15461_v23, %v15459_v9 }
 0x449   :  { %7453 = vmatprep.subr.bf16.mxu0 %v7452_v5  ;;  %v5382_v26 = vsub.f32 %v15473_v33, %v15474_v27 }
 0x44a   :  { %7327 = vmatpush3.bf16.msra.mxu1 %v15454_v18  ;;  %v5362_v18 = vand.u32 4294901760, %v5361_v1 }
 0x44b   :  { %7329 = vmatprep.subr.bf16.mxu1 %v15463_v21  ;;  %v5383_v14 = vand.u32 4294901760, %v5382_v26 }
 0x44c   :  { %7455 = vmatpush3.bf16.msra.mxu0 %v7452_v5  ;;  %v15476_v5 = vld [vmem:[#allocation46_spill] sm:$0xff]  ;;  %v7344_v28 = vpack.c.bf16 %v5369_v36, %v5362_v18 }
 0x44d   :  { %7457 = vmatprep.subr.bf16.mxu0 %v7456_v11  ;;  %v7348_v13 = vpack.c.bf16 %v5383_v14, %v5376_v51 }
 0x44e   :  { %7331 = vmatpush3.bf16.msra.mxu1 %v15463_v21 }
 0x44f   :  { %7333 = vmatprep.subr.bf16.mxu1 %v15466_v54 }
 0x450   :  { %7459 = vmatpush3.bf16.msra.mxu0 %v7456_v11 }
 0x451   :  { %7461 = vmatprep.subr.bf16.mxu0 %v7460_v24 }
 0x452   :  { %7335 = vmatpush3.bf16.msra.mxu1 %v15466_v54 }
 0x453   :  { %7337 = vmatprep.subr.bf16.mxu1 %v7336_v52 }
 0x454   :  { %7463 = vmatpush3.bf16.msra.mxu0 %v7460_v24 }
 0x455   :  { %7013 = vmatmul.mubr.f32.vlgmr.msra.gmra.mrb[0].mxu1 %v5323_v2  ;;  %7465 = vmatprep.subr.bf16.mxu0 %v15476_v5 }
 0x456   :  { %7339 = vmatpush3.bf16.msra.mxu1 %v7336_v52  ;;  %7031 = vmatprep.mubr.f32.mxu1 %v15475_v57 }
 0x457   :  { %7341 = vmatprep.subr.bf16.mxu1 %v7340_v42  ;;  %7165 = vmatmul.mubr.f32.vlgmr.msra.gmra.mrb[0].mxu0 %v14506_v30 }
 0x458   :  { %7467 = vmatpush3.bf16.msra.mxu0 %v15476_v5  ;;  %7183 = vmatprep.mubr.f32.mxu0 %v5918_v15  ;;  %v7480_v15 = vpack.c.bf16 %v5946_v29, %v5939_v38  ;;  %v7488_v38 = vpack.c.bf16 %v5974_v17, %v5967_v7  ;;  %v7492_v29 = vpack.c.bf16 %v5988_v49, %v5981_v31 }
 0x459   :  { %7469 = vmatprep.subr.bf16.mxu0 %v15477_v16 }
 0x45a   :  { %7343 = vmatpush3.bf16.msra.mxu1 %v7340_v42 }
 0x45b   :  { %7345 = vmatprep.subr.bf16.mxu1 %v7344_v28 }
 0x45c   :  { %7471 = vmatpush3.bf16.msra.mxu0 %v15477_v16 }
 0x45d   :  { %7473 = vmatprep.subr.bf16.mxu0 %v15478_v37 }
 0x45e   :  { %7347 = vmatpush3.bf16.msra.mxu1 %v7344_v28 }
 0x45f   :  { %7349 = vmatprep.subr.bf16.mxu1 %v7348_v13 }
 0x460   :  { %7475 = vmatpush3.bf16.msra.mxu0 %v15478_v37 }
 0x461   :  { %7477 = vmatprep.subr.bf16.mxu0 %v14546_v62 }
 0x462   :  { %7351 = vmatpush3.bf16.msra.mxu1 %v7348_v13 }
 0x463   :  { %7353 = vmatprep.subr.bf16.mxu1 %v7352_v0 }
 0x464   :  { %7479 = vmatpush3.bf16.msra.mxu0 %v14546_v62 }
 0x465   :  { %7032 = vmatmul.mubr.f32.vlgmr.msra.gmra.mrb[0].mxu1 %v15479_v53  ;;  %7481 = vmatprep.subr.bf16.mxu0 %v7480_v15 }
 0x466   :  { %7355 = vmatpush3.bf16.msra.mxu1 %v7352_v0  ;;  %7050 = vmatprep.mubr.f32.mxu1 %v15450_v3 }
 0x467   :  { %7357 = vmatprep.subr.bf16.mxu1 %v7356_v25  ;;  %7184 = vmatmul.mubr.f32.vlgmr.msra.gmra.mrb[0].mxu0 %v5928_v63 }
 0x468   :  { %7483 = vmatpush3.bf16.msra.mxu0 %v7480_v15  ;;  %7202 = vmatprep.mubr.f32.mxu0 %v14456_v8 }
 0x469   :  { %7485 = vmatprep.subr.bf16.mxu0 %v7484_v43 }
 0x46a   :  { %7359 = vmatpush3.bf16.msra.mxu1 %v7356_v25 }
 0x46b   :  { %7361 = vmatprep.subr.bf16.mxu1 %v7360_v22 }
 0x46c   :  { %7487 = vmatpush3.bf16.msra.mxu0 %v7484_v43 }
 0x46d   :  { %7489 = vmatprep.subr.bf16.mxu0 %v7488_v38 }
 0x46e   :  { %7363 = vmatpush3.bf16.msra.mxu1 %v7360_v22 }
 0x46f   :  { %7365 = vmatprep.subr.bf16.mxu1 %v7364_v35 }
 0x470   :  { %7491 = vmatpush3.bf16.msra.mxu0 %v7488_v38 }
 0x471   :  { %7493 = vmatprep.subr.bf16.mxu0 %v7492_v29 }
 0x472   :  { %7367 = vmatpush3.bf16.msra.mxu1 %v7364_v35 }
 0x474   :  { %7495 = vmatpush3.bf16.msra.mxu0 %v7492_v29 }
 0x475   :  { %7051 = vmatmul.mubr.f32.vlgmr.msra.gmra.mrb[0].mxu1 %v15464_v56  ;;  %7497 = vmatprep.subr.bf16.mxu0 %v15476_v5 }
 0x477   :  { %7203 = vmatmul.mubr.f32.vlgmr.msra.gmra.mrb[0].mxu0 %v14482_v59 }
 0x478   :  { %7499 = vmatpush3.bf16.msra.mxu0 %v15476_v5  ;;  %7221 = vmatprep.mubr.f32.mxu0 %v14456_v8 }
 0x479   :  { %7501 = vmatprep.subr.bf16.mxu0 %v15477_v16 }
 0x47c   :  { %7503 = vmatpush3.bf16.msra.mxu0 %v15477_v16 }
 0x47d   :  { %7505 = vmatprep.subr.bf16.mxu0 %v15478_v37 }
 0x480   :  { %7507 = vmatpush3.bf16.msra.mxu0 %v15478_v37 }
 0x481   :  { %7509 = vmatprep.subr.bf16.mxu0 %v14546_v62 }
 0x484   :  { %7511 = vmatpush3.bf16.msra.mxu0 %v14546_v62 }
 0x487   :  { %7222 = vmatmul.mubr.f32.vlgmr.msra.gmra.mrb[0].mxu0 %v14482_v59 }
 0x4b1   :  { %v6435_v30 = vpop.permute.xlu0 %6434 }
 0x4b8   :  { %v6430_v44 = vpop.permute.xlu0 %6429 }
 0x548   :  { %v7052_v50 = vpop.f32.mrb[0].mxu1 }
 0x549   :  { %v5530_v45 = vpop.f32.mrb[1].mxu1 }
 0x55a   :  { %v7223_v60 = vpop.f32.mrb[0].mxu0 }
 0x55b   :  { %v7512_v20 = vadd.f32 %v7223_v60, %v7052_v50  ;;  %v6413_v8 = vpop.f32.mrb[1].mxu0 }
 0x55c   :  { %v7513_v40 = vadd.f32 %v6413_v8, %v5530_v45 }
 0x55d   :  { %v6438_v63 = vadd.f32 %v7512_v20, %v6435_v30 }
 0x55e   :  { %v6437_v7 = vadd.f32 %v7513_v40, %v6430_v44 }
 0x55f   :  { %v6440_v17 = vsel %vm6439_vm1, %v6438_v63, -inf }
 0x560   :  { %v6441_v34 = vmax.f32 %v6437_v7, %v6440_v17 }
 0x562   :  { %v6442_v12 = vrot.slane %v6441_v34, 4 }
 0x564   :  { %v6443_v31 = vmax.f32 %v6441_v34, %v6442_v12 }
 0x566   :  { %v6444_v49 = vrot.slane %v6443_v31, 2 }
 0x568   :  { %v6445_v62 = vmax.f32 %v6443_v31, %v6444_v49 }
 0x56a   :  { %v6446_v3 = vrot.slane %v6445_v62, 1 }
 0x56c   :  { %v6447_v59 = vmax.f32 %v6445_v62, %v6446_v3 }
 0x56e   :  { %v6448_v55 = vsub.f32 %v6437_v7, %v6447_v59  ;;  %v6449_v9 = vsub.f32 %v6438_v63, %v6447_v59 }
 0x570   :  { %v6450_v23 = vmul.f32 1.442695, %v6448_v55  ;;  %v6452_v11 = vmul.f32 1.442695, %v6449_v9 }
 0x572   :  { %7553 = vpow2.f32 %v6450_v23 }
 0x573   :  { %7555 = vpow2.f32 %v6452_v11 }
 0x57c   :  { %v7554_v21 = vpop.eup %7553 }
 0x57d   :  { %v7556_v56 = vpop.eup %7555 }
 0x57e   :  { %v6454_v41 = vsel %vm6439_vm1, %v7556_v56, 0.0 }
 0x57f   :  { %v6455_v6 = vadd.f32 %v7554_v21, %v6454_v41 }
 0x581   :  { %v6456_v54 = vrot.slane %v6455_v6, 4 }
 0x583   :  { %v6457_v52 = vadd.f32 %v6456_v54, %v6455_v6 }
 0x585   :  { %v6458_v47 = vrot.slane %v6457_v52, 2 }
 0x587   :  { %v6459_v61 = vadd.f32 %v6458_v47, %v6457_v52 }
 0x589   :  { %v6460_v24 = vrot.slane %v6459_v61, 1 }
 0x58b   :  { %v6461_v39 = vadd.f32 %v6460_v24, %v6459_v61 }
 0x58d   :  { %7557 = vlog2.f32 %v6461_v39 }
 0x597   :  { %v7558_v19 = vpop.eup %7557 }
 0x598   :  { %v6463_v1 = vmul.f32 0.6931472, %v7558_v19 }
 0x59a   :  { %v6464_v48 = vsub.f32 %v6448_v55, %v6463_v1  ;;  %v6465_v32 = vsub.f32 %v6449_v9, %v6463_v1 }
 0x59c   :  { %6466 = vst [vmem:[#allocation8] sm:$0xff] %v6464_v48  ;;  %6467 = vst [vmem:[#allocation8 + $0x8] sm:$0x3] %v6465_v32 }
 0x59d   :  { %7841 = shalt.err (!%p7838_p0)
}
 0x59e   :  { %s7842_s26 = scalar_lea.hbm %s14702_s5, 256 }
 0x59f   :  { %p7843_p1 = scmp.ne.s32.totalorder %s14702_s5, %s7842_s26  ;;  %p7846_p2 = scmp.lt.u32.totalorder %s7842_s26, %s14702_s5 }
 0x5a1   :  { %p7848_p3 = pnand %p7846_p2, %p7843_p1 }
 0x5a3   :  { %7851 = shalt.err (!%p7848_p3)
}
 0x5a4   :  { %s7862_s29 = smov 128   ;;  %s7863_s30 = smov 8  }
 0x5a5   :  { %6479 = dma.vmem_to_hbm [thread:$0]  %s6474_s19, 256, %s14702_s5, [#allocation4], %s7862_s29, %s7862_s29, %s7863_s30  }
 0x5a6   :  { %7856 = dma.done.wait [#allocation4], 256  }
 0x5a7   :  { %7857 = vsyncadd [#allocation4], 4294967040 }
 0x5a8   :  { %6483 = vsyncpa [#allocation4], 1 }
 0x5a9   :  { %6484 = vsyncpa [#allocation5], 1 }
 0x5aa   :  { %6485 = vsyncpa [#allocation7], 1 }

</bundles_post_ra>
